<compile_context>
chip_gen: v5e
topology: v5e:2x2
jax: 0.10.0
libtpu: 0.0.40
codegen_flags: <defaults>
</compile_context>

<pallas_src>
import functools

import jax
import jax.numpy as jnp
from jax import lax
from jax.experimental import pallas as pl
from jax.experimental.pallas import tpu as pltpu

# ---------------- model config (small synthetic, lane-dense sizes) ----------
VOCAB = 64        # vocab size
H = 128           # hidden size (multiple of 128 -> lane-dense)
HEADS = 4
DH = H // HEADS   # head dim = 32
FF = 256          # FFN intermediate (lane-dense)
LAYERS = 2
MAX_POS = 16
PROJ = 256        # nn.Linear(hidden, 256) from the module
LN_EPS = 1e-5

_VMEM = pl.BlockSpec(memory_space=pltpu.MemorySpace.VMEM)


def _ln(x, g, b, eps=LN_EPS):
    mu = jnp.mean(x, axis=-1, keepdims=True)
    var = jnp.mean(jnp.square(x - mu), axis=-1, keepdims=True)
    return (x - mu) * lax.rsqrt(var + eps) * g + b


# ---------------- fused triplet-encoder kernel ----------------
def _triplet_encoder_kernel(
        a_ids_ref, a_mask_ref, p_ids_ref, p_mask_ref, n_ids_ref, n_mask_ref,
        tok_emb_ref, pos_emb_ref, emb_g_ref, emb_b_ref,
        wqkv_ref, bqkv_ref, wo_ref, bo_ref, ln1_g_ref, ln1_b_ref,
        w1_ref, b1_ref, w2_ref, b2_ref, ln2_g_ref, ln2_b_ref,
        projw_ref, projb_ref,
        a_out_ref, p_out_ref, n_out_ref):
    b, s = a_ids_ref.shape          # per-input batch, seq len
    b3 = 3 * b                      # stacked anchor/positive/negative batch
    n = b3 * s                      # total tokens
    h = H
    layers = wqkv_ref.shape[0]
    scale = 1.0 / (DH ** 0.5)

    # ---- in-kernel embedding lookup: one-hot matmuls on the MXU ----
    def tok_one_hot(ids_ref):
        ids = ids_ref[...]                                            # [b, s] i32
        oh = (ids[:, :, None] ==
              lax.broadcasted_iota(jnp.int32, (b, s, VOCAB), 2))
        return oh.astype(jnp.float32).reshape(b * s, VOCAB)           # [b*s, V]

    # per-input pieces are (b*s)=16 rows each -> sublane-aligned concat
    tok_oh = jnp.concatenate(
        [tok_one_hot(a_ids_ref), tok_one_hot(p_ids_ref), tok_one_hot(n_ids_ref)],
        axis=0)                                                       # [n, V]
    pos_oh = (lax.broadcasted_iota(jnp.int32, (b3, s, MAX_POS), 1) ==
              lax.broadcasted_iota(jnp.int32, (b3, s, MAX_POS), 2))
    pos_oh = pos_oh.astype(jnp.float32).reshape(n, MAX_POS)           # [n, P]

    x = (jnp.dot(tok_oh, tok_emb_ref[...], preferred_element_type=jnp.float32) +
         jnp.dot(pos_oh, pos_emb_ref[...], preferred_element_type=jnp.float32))
    x = _ln(x, emb_g_ref[...], emb_b_ref[...])                        # [n, H]

    # ---- additive attention bias, hoisted (computed once per forward) ----
    def mask_bias(mask_ref):
        m = mask_ref[...].astype(jnp.float32)                         # [b, s]
        return ((1.0 - m) * (-1e9))[:, None, :]                       # [b, 1, s]

    bias = jnp.concatenate(
        [mask_bias(a_mask_ref), mask_bias(p_mask_ref), mask_bias(n_mask_ref)],
        axis=0)                                                       # [b3, 1, s]

    # ---- transformer layers (unrolled at trace time) ----
    for l in range(layers):
        # self-attention with fused QKV matmul
        qkv = jnp.dot(x, wqkv_ref[l],
                      preferred_element_type=jnp.float32) + bqkv_ref[l]   # [n, 3H]
        head_outs = []
        for hd in range(HEADS):
            q = qkv[:, hd * DH:(hd + 1) * DH].reshape(b3, s, DH)
            k = qkv[:, h + hd * DH:h + (hd + 1) * DH].reshape(b3, s, DH)
            v = qkv[:, 2 * h + hd * DH:2 * h + (hd + 1) * DH].reshape(b3, s, DH)
            # contract on head dim directly (no K transpose in-kernel)
            sc = jnp.einsum('bqd,bkd->bqk', q, k,
                            preferred_element_type=jnp.float32) * scale    # [b3,s,s]
            sc = sc + bias
            p = jax.nn.softmax(sc, axis=-1)
            head_outs.append(jnp.einsum('bqk,bkd->bqd', p, v,
                                        preferred_element_type=jnp.float32))
        att = jnp.concatenate(head_outs, axis=-1).reshape(n, h)        # [n, H]
        ao = jnp.dot(att, wo_ref[l],
                     preferred_element_type=jnp.float32) + bo_ref[l]
        x = _ln(x + ao, ln1_g_ref[l], ln1_b_ref[l])

        # FFN
        ff = jnp.dot(x, w1_ref[l],
                     preferred_element_type=jnp.float32) + b1_ref[l]
        ff = jax.nn.gelu(ff, approximate=True)
        ff = jnp.dot(ff, w2_ref[l],
                     preferred_element_type=jnp.float32) + b2_ref[l]
        x = _ln(x + ff, ln2_g_ref[l], ln2_b_ref[l])

    # ---- CLS pooling + projection + L2 normalize (F.normalize, p=2, dim=1) --
    cls = x.reshape(b3, s, h)[:, 0, :]                                 # [b3, H]
    y = jnp.dot(cls, projw_ref[...],
                preferred_element_type=jnp.float32) + projb_ref[...]   # [b3, PROJ]
    norm = jnp.sqrt(jnp.sum(y * y, axis=-1, keepdims=True))
    y = y / jnp.maximum(norm, 1e-12)

    a_out_ref[...] = y[0:b, :]
    p_out_ref[...] = y[b:2 * b, :]
    n_out_ref[...] = y[2 * b:3 * b, :]


# ---------------- wrapper: the whole forward is ONE pallas_call -------------
def forward(params, anchor_ids, anchor_mask, positive_ids, positive_mask,
            negative_ids, negative_mask):
    b, _ = anchor_ids.shape
    out_shape = tuple(jax.ShapeDtypeStruct((b, PROJ), jnp.float32)
                      for _ in range(3))
    return pl.pallas_call(
        _triplet_encoder_kernel,
        out_shape=out_shape,
        in_specs=[_VMEM] * 24,
        out_specs=(_VMEM, _VMEM, _VMEM),
    )(anchor_ids.astype(jnp.int32), anchor_mask.astype(jnp.int32),
      positive_ids.astype(jnp.int32), positive_mask.astype(jnp.int32),
      negative_ids.astype(jnp.int32), negative_mask.astype(jnp.int32),
      params["tok_emb"], params["pos_emb"],
      params["emb_ln_g"], params["emb_ln_b"],
      params["wqkv"], params["bqkv"], params["wo"], params["bo"],
      params["ln1_g"], params["ln1_b"],
      params["w1"], params["b1"], params["w2"], params["b2"],
      params["ln2_g"], params["ln2_b"],
      params["proj_w"], params["proj_b"])


# ---------------- parameters ----------------
def init_params(key):
    keys = iter(jax.random.split(key, 16))

    def nrm(shape, scale=0.02):
        return scale * jax.random.normal(next(keys), shape, jnp.float32)

    return {
        "tok_emb": nrm((VOCAB, H)),
        "pos_emb": nrm((MAX_POS, H)),
        "emb_ln_g": jnp.ones((1, H), jnp.float32),
        "emb_ln_b": jnp.zeros((1, H), jnp.float32),
        # per-layer weights stacked on a leading layer axis
        "wqkv": nrm((LAYERS, H, 3 * H)),
        "bqkv": jnp.zeros((LAYERS, 1, 3 * H), jnp.float32),
        "wo": nrm((LAYERS, H, H)),
        "bo": jnp.zeros((LAYERS, 1, H), jnp.float32),
        "ln1_g": jnp.ones((LAYERS, 1, H), jnp.float32),
        "ln1_b": jnp.zeros((LAYERS, 1, H), jnp.float32),
        "w1": nrm((LAYERS, H, FF)),
        "b1": jnp.zeros((LAYERS, 1, FF), jnp.float32),
        "w2": nrm((LAYERS, FF, H)),
        "b2": jnp.zeros((LAYERS, 1, H), jnp.float32),
        "ln2_g": jnp.ones((LAYERS, 1, H), jnp.float32),
        "ln2_b": jnp.zeros((LAYERS, 1, H), jnp.float32),
        # projection head (stored as W^T of torch Linear(hidden, 256))
        "proj_w": nrm((H, PROJ)),
        "proj_b": jnp.zeros((1, PROJ), jnp.float32),
    }


# ---------------- main ----------------
if __name__ == "__main__":
    key = jax.random.PRNGKey(0)
    kp, ka, kb, kc = jax.random.split(key, 4)
    params = init_params(kp)

    B, S = 2, 8

    def make_pair(k):
        k1, k2 = jax.random.split(k)
        ids = jax.random.randint(k1, (B, S), 0, VOCAB, dtype=jnp.int32)
        lens = jax.random.randint(k2, (B,), S // 2, S + 1, dtype=jnp.int32)
        mask = (jnp.arange(S)[None, :] < lens[:, None]).astype(jnp.int32)
        return ids, mask

    anchor_ids, anchor_mask = make_pair(ka)
    positive_ids, positive_mask = make_pair(kb)
    negative_ids, negative_mask = make_pair(kc)

    fwd = jax.jit(functools.partial(forward, params))
    a_emb, p_emb, n_emb = fwd(anchor_ids, anchor_mask,
                              positive_ids, positive_mask,
                              negative_ids, negative_mask)
    jax.block_until_ready((a_emb, p_emb, n_emb))

    assert a_emb.shape == (B, PROJ) and p_emb.shape == (B, PROJ) and n_emb.shape == (B, PROJ)
    for e in (a_emb, p_emb, n_emb):
        assert bool(jnp.all(jnp.isfinite(e)))
        # each embedding row must be unit-norm (F.normalize semantics)
        assert bool(jnp.allclose(jnp.linalg.norm(e, axis=1), 1.0, atol=1e-4))
    print("KERNEL_OK")
</pallas_src>

<mosaic_0001>
module attributes {stable_mosaic.version = 11 : i64} {
  func.func @_triplet_encoder_kernel(%arg0: memref<2x8xi32, #tpu.memory_space<vmem>>, %arg1: memref<2x8xi32, #tpu.memory_space<vmem>>, %arg2: memref<2x8xi32, #tpu.memory_space<vmem>>, %arg3: memref<2x8xi32, #tpu.memory_space<vmem>>, %arg4: memref<2x8xi32, #tpu.memory_space<vmem>>, %arg5: memref<2x8xi32, #tpu.memory_space<vmem>>, %arg6: memref<64x128xf32, #tpu.memory_space<vmem>>, %arg7: memref<16x128xf32, #tpu.memory_space<vmem>>, %arg8: memref<1x128xf32, #tpu.memory_space<vmem>>, %arg9: memref<1x128xf32, #tpu.memory_space<vmem>>, %arg10: memref<2x128x384xf32, #tpu.memory_space<vmem>>, %arg11: memref<2x1x384xf32, #tpu.memory_space<vmem>>, %arg12: memref<2x128x128xf32, #tpu.memory_space<vmem>>, %arg13: memref<2x1x128xf32, #tpu.memory_space<vmem>>, %arg14: memref<2x1x128xf32, #tpu.memory_space<vmem>>, %arg15: memref<2x1x128xf32, #tpu.memory_space<vmem>>, %arg16: memref<2x128x256xf32, #tpu.memory_space<vmem>>, %arg17: memref<2x1x256xf32, #tpu.memory_space<vmem>>, %arg18: memref<2x256x128xf32, #tpu.memory_space<vmem>>, %arg19: memref<2x1x128xf32, #tpu.memory_space<vmem>>, %arg20: memref<2x1x128xf32, #tpu.memory_space<vmem>>, %arg21: memref<2x1x128xf32, #tpu.memory_space<vmem>>, %arg22: memref<128x256xf32, #tpu.memory_space<vmem>>, %arg23: memref<1x256xf32, #tpu.memory_space<vmem>>, %arg24: memref<2x256xf32, #tpu.memory_space<vmem>>, %arg25: memref<2x256xf32, #tpu.memory_space<vmem>>, %arg26: memref<2x256xf32, #tpu.memory_space<vmem>>) attributes {dimension_semantics = [], scalar_prefetch = 0 : i64, scratch_operands = 0 : i64, tpu.core_type = #tpu.core_type<tc>} {
    %c0 = arith.constant 0 : index
    %c0_0 = arith.constant 0 : index
    %0 = vector.load %arg0[%c0, %c0_0] : memref<2x8xi32, #tpu.memory_space<vmem>>, vector<2x8xi32>
    %1 = vector.shape_cast %0 : vector<2x8xi32> to vector<2x8x1xi32>
    %2 = tpu.iota {dimensions = array<i32: 2>} : vector<2x8x64xi32>
    %3 = vector.broadcast %1 : vector<2x8x1xi32> to vector<2x8x64xi32>
    %4 = arith.cmpi eq, %3, %2 : vector<2x8x64xi32>
    %5 = arith.extui %4 : vector<2x8x64xi1> to vector<2x8x64xi32>
    %6 = arith.sitofp %5 : vector<2x8x64xi32> to vector<2x8x64xf32>
    %7 = vector.shape_cast %6 : vector<2x8x64xf32> to vector<16x64xf32>
    %c0_1 = arith.constant 0 : index
    %c0_2 = arith.constant 0 : index
    %8 = vector.load %arg2[%c0_1, %c0_2] : memref<2x8xi32, #tpu.memory_space<vmem>>, vector<2x8xi32>
    %9 = vector.shape_cast %8 : vector<2x8xi32> to vector<2x8x1xi32>
    %10 = tpu.iota {dimensions = array<i32: 2>} : vector<2x8x64xi32>
    %11 = vector.broadcast %9 : vector<2x8x1xi32> to vector<2x8x64xi32>
    %12 = arith.cmpi eq, %11, %10 : vector<2x8x64xi32>
    %13 = arith.extui %12 : vector<2x8x64xi1> to vector<2x8x64xi32>
    %14 = arith.sitofp %13 : vector<2x8x64xi32> to vector<2x8x64xf32>
    %15 = vector.shape_cast %14 : vector<2x8x64xf32> to vector<16x64xf32>
    %c0_3 = arith.constant 0 : index
    %c0_4 = arith.constant 0 : index
    %16 = vector.load %arg4[%c0_3, %c0_4] : memref<2x8xi32, #tpu.memory_space<vmem>>, vector<2x8xi32>
    %17 = vector.shape_cast %16 : vector<2x8xi32> to vector<2x8x1xi32>
    %18 = tpu.iota {dimensions = array<i32: 2>} : vector<2x8x64xi32>
    %19 = vector.broadcast %17 : vector<2x8x1xi32> to vector<2x8x64xi32>
    %20 = arith.cmpi eq, %19, %18 : vector<2x8x64xi32>
    %21 = arith.extui %20 : vector<2x8x64xi1> to vector<2x8x64xi32>
    %22 = arith.sitofp %21 : vector<2x8x64xi32> to vector<2x8x64xf32>
    %23 = vector.shape_cast %22 : vector<2x8x64xf32> to vector<16x64xf32>
    %24 = tpu.concatenate %7, %15, %23 in 0 : vector<16x64xf32>, vector<16x64xf32>, vector<16x64xf32> -> vector<48x64xf32>
    %25 = tpu.iota {dimensions = array<i32: 1>} : vector<6x8x16xi32>
    %26 = tpu.iota {dimensions = array<i32: 2>} : vector<6x8x16xi32>
    %27 = arith.cmpi eq, %25, %26 : vector<6x8x16xi32>
    %28 = arith.extui %27 : vector<6x8x16xi1> to vector<6x8x16xi32>
    %29 = arith.sitofp %28 : vector<6x8x16xi32> to vector<6x8x16xf32>
    %30 = vector.shape_cast %29 : vector<6x8x16xf32> to vector<48x16xf32>
    %c0_5 = arith.constant 0 : index
    %c0_6 = arith.constant 0 : index
    %31 = vector.load %arg6[%c0_5, %c0_6] : memref<64x128xf32, #tpu.memory_space<vmem>>, vector<64x128xf32>
    %cst = arith.constant dense<0.000000e+00> : vector<48x128xf32>
    %32 = tpu.matmul %24, %31, %cst {dimension_numbers = #tpu.dot_dimension_numbers<[1], [0], [0], [1], [0, 0, 1, 1], [], []>} : vector<48x64xf32>, vector<64x128xf32>, vector<48x128xf32> -> vector<48x128xf32>
    %c0_7 = arith.constant 0 : index
    %c0_8 = arith.constant 0 : index
    %33 = vector.load %arg7[%c0_7, %c0_8] : memref<16x128xf32, #tpu.memory_space<vmem>>, vector<16x128xf32>
    %cst_9 = arith.constant dense<0.000000e+00> : vector<48x128xf32>
    %34 = tpu.matmul %30, %33, %cst_9 {dimension_numbers = #tpu.dot_dimension_numbers<[1], [0], [0], [1], [0, 0, 1, 1], [], []>} : vector<48x16xf32>, vector<16x128xf32>, vector<48x128xf32> -> vector<48x128xf32>
    %35 = arith.addf %32, %34 : vector<48x128xf32>
    %c0_10 = arith.constant 0 : index
    %c0_11 = arith.constant 0 : index
    %36 = vector.load %arg8[%c0_10, %c0_11] : memref<1x128xf32, #tpu.memory_space<vmem>>, vector<1x128xf32>
    %c0_12 = arith.constant 0 : index
    %c0_13 = arith.constant 0 : index
    %37 = vector.load %arg9[%c0_12, %c0_13] : memref<1x128xf32, #tpu.memory_space<vmem>>, vector<1x128xf32>
    %cst_14 = arith.constant dense<0.000000e+00> : vector<48xf32>
    %38 = vector.multi_reduction <add>, %35, %cst_14 [1] : vector<48x128xf32> to vector<48xf32>
    %39 = vector.shape_cast %38 : vector<48xf32> to vector<48x1xf32>
    %cst_15 = arith.constant 1.280000e+02 : f32
    %40 = vector.broadcast %cst_15 : f32 to vector<48x1xf32>
    %41 = arith.divf %39, %40 : vector<48x1xf32>
    %42 = vector.broadcast %41 : vector<48x1xf32> to vector<48x128xf32>
    %43 = arith.subf %35, %42 : vector<48x128xf32>
    %44 = arith.mulf %43, %43 : vector<48x128xf32>
    %cst_16 = arith.constant dense<0.000000e+00> : vector<48xf32>
    %45 = vector.multi_reduction <add>, %44, %cst_16 [1] : vector<48x128xf32> to vector<48xf32>
    %46 = vector.shape_cast %45 : vector<48xf32> to vector<48x1xf32>
    %cst_17 = arith.constant 1.280000e+02 : f32
    %47 = vector.broadcast %cst_17 : f32 to vector<48x1xf32>
    %48 = arith.divf %46, %47 : vector<48x1xf32>
    %49 = vector.broadcast %41 : vector<48x1xf32> to vector<48x128xf32>
    %50 = arith.subf %35, %49 : vector<48x128xf32>
    %cst_18 = arith.constant 9.99999974E-6 : f32
    %51 = vector.broadcast %cst_18 : f32 to vector<48x1xf32>
    %52 = arith.addf %48, %51 : vector<48x1xf32>
    %53 = math.rsqrt %52 : vector<48x1xf32>
    %54 = vector.broadcast %53 : vector<48x1xf32> to vector<48x128xf32>
    %55 = arith.mulf %50, %54 : vector<48x128xf32>
    %56 = vector.broadcast %36 : vector<1x128xf32> to vector<48x128xf32>
    %57 = arith.mulf %55, %56 : vector<48x128xf32>
    %58 = vector.broadcast %37 : vector<1x128xf32> to vector<48x128xf32>
    %59 = arith.addf %57, %58 : vector<48x128xf32>
    %c0_19 = arith.constant 0 : index
    %c0_20 = arith.constant 0 : index
    %60 = vector.load %arg1[%c0_19, %c0_20] : memref<2x8xi32, #tpu.memory_space<vmem>>, vector<2x8xi32>
    %61 = arith.sitofp %60 : vector<2x8xi32> to vector<2x8xf32>
    %cst_21 = arith.constant 1.000000e+00 : f32
    %62 = vector.broadcast %cst_21 : f32 to vector<2x8xf32>
    %63 = arith.subf %62, %61 : vector<2x8xf32>
    %cst_22 = arith.constant -1.000000e+09 : f32
    %64 = vector.broadcast %cst_22 : f32 to vector<2x8xf32>
    %65 = arith.mulf %63, %64 : vector<2x8xf32>
    %66 = vector.shape_cast %65 : vector<2x8xf32> to vector<2x1x8xf32>
    %c0_23 = arith.constant 0 : index
    %c0_24 = arith.constant 0 : index
    %67 = vector.load %arg3[%c0_23, %c0_24] : memref<2x8xi32, #tpu.memory_space<vmem>>, vector<2x8xi32>
    %68 = arith.sitofp %67 : vector<2x8xi32> to vector<2x8xf32>
    %cst_25 = arith.constant 1.000000e+00 : f32
    %69 = vector.broadcast %cst_25 : f32 to vector<2x8xf32>
    %70 = arith.subf %69, %68 : vector<2x8xf32>
    %cst_26 = arith.constant -1.000000e+09 : f32
    %71 = vector.broadcast %cst_26 : f32 to vector<2x8xf32>
    %72 = arith.mulf %70, %71 : vector<2x8xf32>
    %73 = vector.shape_cast %72 : vector<2x8xf32> to vector<2x1x8xf32>
    %c0_27 = arith.constant 0 : index
    %c0_28 = arith.constant 0 : index
    %74 = vector.load %arg5[%c0_27, %c0_28] : memref<2x8xi32, #tpu.memory_space<vmem>>, vector<2x8xi32>
    %75 = arith.sitofp %74 : vector<2x8xi32> to vector<2x8xf32>
    %cst_29 = arith.constant 1.000000e+00 : f32
    %76 = vector.broadcast %cst_29 : f32 to vector<2x8xf32>
    %77 = arith.subf %76, %75 : vector<2x8xf32>
    %cst_30 = arith.constant -1.000000e+09 : f32
    %78 = vector.broadcast %cst_30 : f32 to vector<2x8xf32>
    %79 = arith.mulf %77, %78 : vector<2x8xf32>
    %80 = vector.shape_cast %79 : vector<2x8xf32> to vector<2x1x8xf32>
    %81 = tpu.concatenate %66, %73, %80 in 0 : vector<2x1x8xf32>, vector<2x1x8xf32>, vector<2x1x8xf32> -> vector<6x1x8xf32>
    %c0_31 = arith.constant 0 : index
    %c0_32 = arith.constant 0 : index
    %c0_33 = arith.constant 0 : index
    %82 = vector.load %arg10[%c0_31, %c0_32, %c0_33] : memref<2x128x384xf32, #tpu.memory_space<vmem>>, vector<1x128x384xf32>
    %83 = vector.shape_cast %82 : vector<1x128x384xf32> to vector<128x384xf32>
    %cst_34 = arith.constant dense<0.000000e+00> : vector<48x384xf32>
    %84 = tpu.matmul %59, %83, %cst_34 {dimension_numbers = #tpu.dot_dimension_numbers<[1], [0], [0], [1], [0, 0, 1, 1], [], []>} : vector<48x128xf32>, vector<128x384xf32>, vector<48x384xf32> -> vector<48x384xf32>
    %c0_35 = arith.constant 0 : index
    %c0_36 = arith.constant 0 : index
    %c0_37 = arith.constant 0 : index
    %85 = vector.load %arg11[%c0_35, %c0_36, %c0_37] : memref<2x1x384xf32, #tpu.memory_space<vmem>>, vector<1x1x384xf32>
    %86 = vector.shape_cast %85 : vector<1x1x384xf32> to vector<1x384xf32>
    %87 = vector.broadcast %86 : vector<1x384xf32> to vector<48x384xf32>
    %88 = arith.addf %84, %87 : vector<48x384xf32>
    %89 = vector.extract_strided_slice %88 {offsets = [0, 0], sizes = [48, 32], strides = [1, 1]} : vector<48x384xf32> to vector<48x32xf32>
    %90 = vector.shape_cast %89 : vector<48x32xf32> to vector<6x8x32xf32>
    %91 = vector.extract_strided_slice %88 {offsets = [0, 128], sizes = [48, 32], strides = [1, 1]} : vector<48x384xf32> to vector<48x32xf32>
    %92 = vector.shape_cast %91 : vector<48x32xf32> to vector<6x8x32xf32>
    %93 = vector.extract_strided_slice %88 {offsets = [0, 256], sizes = [48, 32], strides = [1, 1]} : vector<48x384xf32> to vector<48x32xf32>
    %94 = vector.shape_cast %93 : vector<48x32xf32> to vector<6x8x32xf32>
    "tpu.trace_start"() <{level = 10 : i32, message = "bqd,bkd->bqk"}> : () -> ()
    %cst_38 = arith.constant dense<0.000000e+00> : vector<6x8x8xf32>
    %95 = tpu.matmul %90, %92, %cst_38 {dimension_numbers = #tpu.dot_dimension_numbers<[2], [2], [1], [1], [0, 0, 0, 1, 1, 1], [0], [0]>} : vector<6x8x32xf32>, vector<6x8x32xf32>, vector<6x8x8xf32> -> vector<6x8x8xf32>
    "tpu.trace_stop"() : () -> ()
    %cst_39 = arith.constant 0.176776692 : f32
    %96 = vector.broadcast %cst_39 : f32 to vector<6x8x8xf32>
    %97 = arith.mulf %95, %96 : vector<6x8x8xf32>
    %98 = vector.broadcast %81 : vector<6x1x8xf32> to vector<6x8x8xf32>
    %99 = arith.addf %97, %98 : vector<6x8x8xf32>
    %cst_40 = arith.constant dense<0xFF800000> : vector<6x8xf32>
    %100 = vector.multi_reduction <maximumf>, %99, %cst_40 [2] : vector<6x8x8xf32> to vector<6x8xf32>
    %cst_41 = arith.constant 0xFF800000 : f32
    %101 = vector.broadcast %cst_41 : f32 to vector<6x8xf32>
    %102 = arith.maximumf %101, %100 : vector<6x8xf32>
    %103 = vector.shape_cast %102 : vector<6x8xf32> to vector<6x8x1xf32>
    %104 = vector.broadcast %103 : vector<6x8x1xf32> to vector<6x8x8xf32>
    %105 = arith.subf %99, %104 : vector<6x8x8xf32>
    %106 = math.exp %105 : vector<6x8x8xf32>
    %cst_42 = arith.constant dense<0.000000e+00> : vector<6x8xf32>
    %107 = vector.multi_reduction <add>, %106, %cst_42 [2] : vector<6x8x8xf32> to vector<6x8xf32>
    %108 = vector.shape_cast %107 : vector<6x8xf32> to vector<6x8x1xf32>
    %109 = vector.broadcast %108 : vector<6x8x1xf32> to vector<6x8x8xf32>
    %110 = arith.divf %106, %109 : vector<6x8x8xf32>
    "tpu.trace_start"() <{level = 10 : i32, message = "bqk,bkd->bqd"}> : () -> ()
    %cst_43 = arith.constant dense<0.000000e+00> : vector<6x8x32xf32>
    %111 = tpu.matmul %110, %94, %cst_43 {dimension_numbers = #tpu.dot_dimension_numbers<[2], [1], [1], [2], [0, 0, 0, 1, 1, 2], [0], [0]>} : vector<6x8x8xf32>, vector<6x8x32xf32>, vector<6x8x32xf32> -> vector<6x8x32xf32>
    "tpu.trace_stop"() : () -> ()
    %112 = vector.extract_strided_slice %88 {offsets = [0, 32], sizes = [48, 32], strides = [1, 1]} : vector<48x384xf32> to vector<48x32xf32>
    %113 = vector.shape_cast %112 : vector<48x32xf32> to vector<6x8x32xf32>
    %114 = vector.extract_strided_slice %88 {offsets = [0, 160], sizes = [48, 32], strides = [1, 1]} : vector<48x384xf32> to vector<48x32xf32>
    %115 = vector.shape_cast %114 : vector<48x32xf32> to vector<6x8x32xf32>
    %116 = vector.extract_strided_slice %88 {offsets = [0, 288], sizes = [48, 32], strides = [1, 1]} : vector<48x384xf32> to vector<48x32xf32>
    %117 = vector.shape_cast %116 : vector<48x32xf32> to vector<6x8x32xf32>
    "tpu.trace_start"() <{level = 10 : i32, message = "bqd,bkd->bqk"}> : () -> ()
    %cst_44 = arith.constant dense<0.000000e+00> : vector<6x8x8xf32>
    %118 = tpu.matmul %113, %115, %cst_44 {dimension_numbers = #tpu.dot_dimension_numbers<[2], [2], [1], [1], [0, 0, 0, 1, 1, 1], [0], [0]>} : vector<6x8x32xf32>, vector<6x8x32xf32>, vector<6x8x8xf32> -> vector<6x8x8xf32>
    "tpu.trace_stop"() : () -> ()
    %cst_45 = arith.constant 0.176776692 : f32
    %119 = vector.broadcast %cst_45 : f32 to vector<6x8x8xf32>
    %120 = arith.mulf %118, %119 : vector<6x8x8xf32>
    %121 = vector.broadcast %81 : vector<6x1x8xf32> to vector<6x8x8xf32>
    %122 = arith.addf %120, %121 : vector<6x8x8xf32>
    %cst_46 = arith.constant dense<0xFF800000> : vector<6x8xf32>
    %123 = vector.multi_reduction <maximumf>, %122, %cst_46 [2] : vector<6x8x8xf32> to vector<6x8xf32>
    %cst_47 = arith.constant 0xFF800000 : f32
    %124 = vector.broadcast %cst_47 : f32 to vector<6x8xf32>
    %125 = arith.maximumf %124, %123 : vector<6x8xf32>
    %126 = vector.shape_cast %125 : vector<6x8xf32> to vector<6x8x1xf32>
    %127 = vector.broadcast %126 : vector<6x8x1xf32> to vector<6x8x8xf32>
    %128 = arith.subf %122, %127 : vector<6x8x8xf32>
    %129 = math.exp %128 : vector<6x8x8xf32>
    %cst_48 = arith.constant dense<0.000000e+00> : vector<6x8xf32>
    %130 = vector.multi_reduction <add>, %129, %cst_48 [2] : vector<6x8x8xf32> to vector<6x8xf32>
    %131 = vector.shape_cast %130 : vector<6x8xf32> to vector<6x8x1xf32>
    %132 = vector.broadcast %131 : vector<6x8x1xf32> to vector<6x8x8xf32>
    %133 = arith.divf %129, %132 : vector<6x8x8xf32>
    "tpu.trace_start"() <{level = 10 : i32, message = "bqk,bkd->bqd"}> : () -> ()
    %cst_49 = arith.constant dense<0.000000e+00> : vector<6x8x32xf32>
    %134 = tpu.matmul %133, %117, %cst_49 {dimension_numbers = #tpu.dot_dimension_numbers<[2], [1], [1], [2], [0, 0, 0, 1, 1, 2], [0], [0]>} : vector<6x8x8xf32>, vector<6x8x32xf32>, vector<6x8x32xf32> -> vector<6x8x32xf32>
    "tpu.trace_stop"() : () -> ()
    %135 = vector.extract_strided_slice %88 {offsets = [0, 64], sizes = [48, 32], strides = [1, 1]} : vector<48x384xf32> to vector<48x32xf32>
    %136 = vector.shape_cast %135 : vector<48x32xf32> to vector<6x8x32xf32>
    %137 = vector.extract_strided_slice %88 {offsets = [0, 192], sizes = [48, 32], strides = [1, 1]} : vector<48x384xf32> to vector<48x32xf32>
    %138 = vector.shape_cast %137 : vector<48x32xf32> to vector<6x8x32xf32>
    %139 = vector.extract_strided_slice %88 {offsets = [0, 320], sizes = [48, 32], strides = [1, 1]} : vector<48x384xf32> to vector<48x32xf32>
    %140 = vector.shape_cast %139 : vector<48x32xf32> to vector<6x8x32xf32>
    "tpu.trace_start"() <{level = 10 : i32, message = "bqd,bkd->bqk"}> : () -> ()
    %cst_50 = arith.constant dense<0.000000e+00> : vector<6x8x8xf32>
    %141 = tpu.matmul %136, %138, %cst_50 {dimension_numbers = #tpu.dot_dimension_numbers<[2], [2], [1], [1], [0, 0, 0, 1, 1, 1], [0], [0]>} : vector<6x8x32xf32>, vector<6x8x32xf32>, vector<6x8x8xf32> -> vector<6x8x8xf32>
    "tpu.trace_stop"() : () -> ()
    %cst_51 = arith.constant 0.176776692 : f32
    %142 = vector.broadcast %cst_51 : f32 to vector<6x8x8xf32>
    %143 = arith.mulf %141, %142 : vector<6x8x8xf32>
    %144 = vector.broadcast %81 : vector<6x1x8xf32> to vector<6x8x8xf32>
    %145 = arith.addf %143, %144 : vector<6x8x8xf32>
    %cst_52 = arith.constant dense<0xFF800000> : vector<6x8xf32>
    %146 = vector.multi_reduction <maximumf>, %145, %cst_52 [2] : vector<6x8x8xf32> to vector<6x8xf32>
    %cst_53 = arith.constant 0xFF800000 : f32
    %147 = vector.broadcast %cst_53 : f32 to vector<6x8xf32>
    %148 = arith.maximumf %147, %146 : vector<6x8xf32>
    %149 = vector.shape_cast %148 : vector<6x8xf32> to vector<6x8x1xf32>
    %150 = vector.broadcast %149 : vector<6x8x1xf32> to vector<6x8x8xf32>
    %151 = arith.subf %145, %150 : vector<6x8x8xf32>
    %152 = math.exp %151 : vector<6x8x8xf32>
    %cst_54 = arith.constant dense<0.000000e+00> : vector<6x8xf32>
    %153 = vector.multi_reduction <add>, %152, %cst_54 [2] : vector<6x8x8xf32> to vector<6x8xf32>
    %154 = vector.shape_cast %153 : vector<6x8xf32> to vector<6x8x1xf32>
    %155 = vector.broadcast %154 : vector<6x8x1xf32> to vector<6x8x8xf32>
    %156 = arith.divf %152, %155 : vector<6x8x8xf32>
    "tpu.trace_start"() <{level = 10 : i32, message = "bqk,bkd->bqd"}> : () -> ()
    %cst_55 = arith.constant dense<0.000000e+00> : vector<6x8x32xf32>
    %157 = tpu.matmul %156, %140, %cst_55 {dimension_numbers = #tpu.dot_dimension_numbers<[2], [1], [1], [2], [0, 0, 0, 1, 1, 2], [0], [0]>} : vector<6x8x8xf32>, vector<6x8x32xf32>, vector<6x8x32xf32> -> vector<6x8x32xf32>
    "tpu.trace_stop"() : () -> ()
    %158 = vector.extract_strided_slice %88 {offsets = [0, 96], sizes = [48, 32], strides = [1, 1]} : vector<48x384xf32> to vector<48x32xf32>
    %159 = vector.shape_cast %158 : vector<48x32xf32> to vector<6x8x32xf32>
    %160 = vector.extract_strided_slice %88 {offsets = [0, 224], sizes = [48, 32], strides = [1, 1]} : vector<48x384xf32> to vector<48x32xf32>
    %161 = vector.shape_cast %160 : vector<48x32xf32> to vector<6x8x32xf32>
    %162 = vector.extract_strided_slice %88 {offsets = [0, 352], sizes = [48, 32], strides = [1, 1]} : vector<48x384xf32> to vector<48x32xf32>
    %163 = vector.shape_cast %162 : vector<48x32xf32> to vector<6x8x32xf32>
    "tpu.trace_start"() <{level = 10 : i32, message = "bqd,bkd->bqk"}> : () -> ()
    %cst_56 = arith.constant dense<0.000000e+00> : vector<6x8x8xf32>
    %164 = tpu.matmul %159, %161, %cst_56 {dimension_numbers = #tpu.dot_dimension_numbers<[2], [2], [1], [1], [0, 0, 0, 1, 1, 1], [0], [0]>} : vector<6x8x32xf32>, vector<6x8x32xf32>, vector<6x8x8xf32> -> vector<6x8x8xf32>
    "tpu.trace_stop"() : () -> ()
    %cst_57 = arith.constant 0.176776692 : f32
    %165 = vector.broadcast %cst_57 : f32 to vector<6x8x8xf32>
    %166 = arith.mulf %164, %165 : vector<6x8x8xf32>
    %167 = vector.broadcast %81 : vector<6x1x8xf32> to vector<6x8x8xf32>
    %168 = arith.addf %166, %167 : vector<6x8x8xf32>
    %cst_58 = arith.constant dense<0xFF800000> : vector<6x8xf32>
    %169 = vector.multi_reduction <maximumf>, %168, %cst_58 [2] : vector<6x8x8xf32> to vector<6x8xf32>
    %cst_59 = arith.constant 0xFF800000 : f32
    %170 = vector.broadcast %cst_59 : f32 to vector<6x8xf32>
    %171 = arith.maximumf %170, %169 : vector<6x8xf32>
    %172 = vector.shape_cast %171 : vector<6x8xf32> to vector<6x8x1xf32>
    %173 = vector.broadcast %172 : vector<6x8x1xf32> to vector<6x8x8xf32>
    %174 = arith.subf %168, %173 : vector<6x8x8xf32>
    %175 = math.exp %174 : vector<6x8x8xf32>
    %cst_60 = arith.constant dense<0.000000e+00> : vector<6x8xf32>
    %176 = vector.multi_reduction <add>, %175, %cst_60 [2] : vector<6x8x8xf32> to vector<6x8xf32>
    %177 = vector.shape_cast %176 : vector<6x8xf32> to vector<6x8x1xf32>
    %178 = vector.broadcast %177 : vector<6x8x1xf32> to vector<6x8x8xf32>
    %179 = arith.divf %175, %178 : vector<6x8x8xf32>
    "tpu.trace_start"() <{level = 10 : i32, message = "bqk,bkd->bqd"}> : () -> ()
    %cst_61 = arith.constant dense<0.000000e+00> : vector<6x8x32xf32>
    %180 = tpu.matmul %179, %163, %cst_61 {dimension_numbers = #tpu.dot_dimension_numbers<[2], [1], [1], [2], [0, 0, 0, 1, 1, 2], [0], [0]>} : vector<6x8x8xf32>, vector<6x8x32xf32>, vector<6x8x32xf32> -> vector<6x8x32xf32>
    "tpu.trace_stop"() : () -> ()
    %181 = tpu.concatenate %111, %134, %157, %180 in 2 : vector<6x8x32xf32>, vector<6x8x32xf32>, vector<6x8x32xf32>, vector<6x8x32xf32> -> vector<6x8x128xf32>
    %182 = vector.shape_cast %181 : vector<6x8x128xf32> to vector<48x128xf32>
    %c0_62 = arith.constant 0 : index
    %c0_63 = arith.constant 0 : index
    %c0_64 = arith.constant 0 : index
    %183 = vector.load %arg12[%c0_62, %c0_63, %c0_64] : memref<2x128x128xf32, #tpu.memory_space<vmem>>, vector<1x128x128xf32>
    %184 = vector.shape_cast %183 : vector<1x128x128xf32> to vector<128x128xf32>
    %cst_65 = arith.constant dense<0.000000e+00> : vector<48x128xf32>
    %185 = tpu.matmul %182, %184, %cst_65 {dimension_numbers = #tpu.dot_dimension_numbers<[1], [0], [0], [1], [0, 0, 1, 1], [], []>} : vector<48x128xf32>, vector<128x128xf32>, vector<48x128xf32> -> vector<48x128xf32>
    %c0_66 = arith.constant 0 : index
    %c0_67 = arith.constant 0 : index
    %c0_68 = arith.constant 0 : index
    %186 = vector.load %arg13[%c0_66, %c0_67, %c0_68] : memref<2x1x128xf32, #tpu.memory_space<vmem>>, vector<1x1x128xf32>
    %187 = vector.shape_cast %186 : vector<1x1x128xf32> to vector<1x128xf32>
    %188 = vector.broadcast %187 : vector<1x128xf32> to vector<48x128xf32>
    %189 = arith.addf %185, %188 : vector<48x128xf32>
    %190 = arith.addf %59, %189 : vector<48x128xf32>
    %c0_69 = arith.constant 0 : index
    %c0_70 = arith.constant 0 : index
    %c0_71 = arith.constant 0 : index
    %191 = vector.load %arg14[%c0_69, %c0_70, %c0_71] : memref<2x1x128xf32, #tpu.memory_space<vmem>>, vector<1x1x128xf32>
    %192 = vector.shape_cast %191 : vector<1x1x128xf32> to vector<1x128xf32>
    %c0_72 = arith.constant 0 : index
    %c0_73 = arith.constant 0 : index
    %c0_74 = arith.constant 0 : index
    %193 = vector.load %arg15[%c0_72, %c0_73, %c0_74] : memref<2x1x128xf32, #tpu.memory_space<vmem>>, vector<1x1x128xf32>
    %194 = vector.shape_cast %193 : vector<1x1x128xf32> to vector<1x128xf32>
    %cst_75 = arith.constant dense<0.000000e+00> : vector<48xf32>
    %195 = vector.multi_reduction <add>, %190, %cst_75 [1] : vector<48x128xf32> to vector<48xf32>
    %196 = vector.shape_cast %195 : vector<48xf32> to vector<48x1xf32>
    %cst_76 = arith.constant 1.280000e+02 : f32
    %197 = vector.broadcast %cst_76 : f32 to vector<48x1xf32>
    %198 = arith.divf %196, %197 : vector<48x1xf32>
    %199 = vector.broadcast %198 : vector<48x1xf32> to vector<48x128xf32>
    %200 = arith.subf %190, %199 : vector<48x128xf32>
    %201 = arith.mulf %200, %200 : vector<48x128xf32>
    %cst_77 = arith.constant dense<0.000000e+00> : vector<48xf32>
    %202 = vector.multi_reduction <add>, %201, %cst_77 [1] : vector<48x128xf32> to vector<48xf32>
    %203 = vector.shape_cast %202 : vector<48xf32> to vector<48x1xf32>
    %cst_78 = arith.constant 1.280000e+02 : f32
    %204 = vector.broadcast %cst_78 : f32 to vector<48x1xf32>
    %205 = arith.divf %203, %204 : vector<48x1xf32>
    %206 = vector.broadcast %198 : vector<48x1xf32> to vector<48x128xf32>
    %207 = arith.subf %190, %206 : vector<48x128xf32>
    %cst_79 = arith.constant 9.99999974E-6 : f32
    %208 = vector.broadcast %cst_79 : f32 to vector<48x1xf32>
    %209 = arith.addf %205, %208 : vector<48x1xf32>
    %210 = math.rsqrt %209 : vector<48x1xf32>
    %211 = vector.broadcast %210 : vector<48x1xf32> to vector<48x128xf32>
    %212 = arith.mulf %207, %211 : vector<48x128xf32>
    %213 = vector.broadcast %192 : vector<1x128xf32> to vector<48x128xf32>
    %214 = arith.mulf %212, %213 : vector<48x128xf32>
    %215 = vector.broadcast %194 : vector<1x128xf32> to vector<48x128xf32>
    %216 = arith.addf %214, %215 : vector<48x128xf32>
    %c0_80 = arith.constant 0 : index
    %c0_81 = arith.constant 0 : index
    %c0_82 = arith.constant 0 : index
    %217 = vector.load %arg16[%c0_80, %c0_81, %c0_82] : memref<2x128x256xf32, #tpu.memory_space<vmem>>, vector<1x128x256xf32>
    %218 = vector.shape_cast %217 : vector<1x128x256xf32> to vector<128x256xf32>
    %cst_83 = arith.constant dense<0.000000e+00> : vector<48x256xf32>
    %219 = tpu.matmul %216, %218, %cst_83 {dimension_numbers = #tpu.dot_dimension_numbers<[1], [0], [0], [1], [0, 0, 1, 1], [], []>} : vector<48x128xf32>, vector<128x256xf32>, vector<48x256xf32> -> vector<48x256xf32>
    %c0_84 = arith.constant 0 : index
    %c0_85 = arith.constant 0 : index
    %c0_86 = arith.constant 0 : index
    %220 = vector.load %arg17[%c0_84, %c0_85, %c0_86] : memref<2x1x256xf32, #tpu.memory_space<vmem>>, vector<1x1x256xf32>
    %221 = vector.shape_cast %220 : vector<1x1x256xf32> to vector<1x256xf32>
    %222 = vector.broadcast %221 : vector<1x256xf32> to vector<48x256xf32>
    %223 = arith.addf %219, %222 : vector<48x256xf32>
    %224 = arith.mulf %223, %223 : vector<48x256xf32>
    %225 = arith.mulf %223, %224 : vector<48x256xf32>
    %cst_87 = arith.constant 4.471500e-02 : f32
    %226 = vector.broadcast %cst_87 : f32 to vector<48x256xf32>
    %227 = arith.mulf %226, %225 : vector<48x256xf32>
    %228 = arith.addf %223, %227 : vector<48x256xf32>
    %cst_88 = arith.constant 0.797884583 : f32
    %229 = vector.broadcast %cst_88 : f32 to vector<48x256xf32>
    %230 = arith.mulf %229, %228 : vector<48x256xf32>
    %231 = math.tanh %230 : vector<48x256xf32>
    %cst_89 = arith.constant 1.000000e+00 : f32
    %232 = vector.broadcast %cst_89 : f32 to vector<48x256xf32>
    %233 = arith.addf %232, %231 : vector<48x256xf32>
    %cst_90 = arith.constant 5.000000e-01 : f32
    %234 = vector.broadcast %cst_90 : f32 to vector<48x256xf32>
    %235 = arith.mulf %234, %233 : vector<48x256xf32>
    %236 = arith.mulf %223, %235 : vector<48x256xf32>
    %c0_91 = arith.constant 0 : index
    %c0_92 = arith.constant 0 : index
    %c0_93 = arith.constant 0 : index
    %237 = vector.load %arg18[%c0_91, %c0_92, %c0_93] : memref<2x256x128xf32, #tpu.memory_space<vmem>>, vector<1x256x128xf32>
    %238 = vector.shape_cast %237 : vector<1x256x128xf32> to vector<256x128xf32>
    %cst_94 = arith.constant dense<0.000000e+00> : vector<48x128xf32>
    %239 = tpu.matmul %236, %238, %cst_94 {dimension_numbers = #tpu.dot_dimension_numbers<[1], [0], [0], [1], [0, 0, 1, 1], [], []>} : vector<48x256xf32>, vector<256x128xf32>, vector<48x128xf32> -> vector<48x128xf32>
    %c0_95 = arith.constant 0 : index
    %c0_96 = arith.constant 0 : index
    %c0_97 = arith.constant 0 : index
    %240 = vector.load %arg19[%c0_95, %c0_96, %c0_97] : memref<2x1x128xf32, #tpu.memory_space<vmem>>, vector<1x1x128xf32>
    %241 = vector.shape_cast %240 : vector<1x1x128xf32> to vector<1x128xf32>
    %242 = vector.broadcast %241 : vector<1x128xf32> to vector<48x128xf32>
    %243 = arith.addf %239, %242 : vector<48x128xf32>
    %244 = arith.addf %216, %243 : vector<48x128xf32>
    %c0_98 = arith.constant 0 : index
    %c0_99 = arith.constant 0 : index
    %c0_100 = arith.constant 0 : index
    %245 = vector.load %arg20[%c0_98, %c0_99, %c0_100] : memref<2x1x128xf32, #tpu.memory_space<vmem>>, vector<1x1x128xf32>
    %246 = vector.shape_cast %245 : vector<1x1x128xf32> to vector<1x128xf32>
    %c0_101 = arith.constant 0 : index
    %c0_102 = arith.constant 0 : index
    %c0_103 = arith.constant 0 : index
    %247 = vector.load %arg21[%c0_101, %c0_102, %c0_103] : memref<2x1x128xf32, #tpu.memory_space<vmem>>, vector<1x1x128xf32>
    %248 = vector.shape_cast %247 : vector<1x1x128xf32> to vector<1x128xf32>
    %cst_104 = arith.constant dense<0.000000e+00> : vector<48xf32>
    %249 = vector.multi_reduction <add>, %244, %cst_104 [1] : vector<48x128xf32> to vector<48xf32>
    %250 = vector.shape_cast %249 : vector<48xf32> to vector<48x1xf32>
    %cst_105 = arith.constant 1.280000e+02 : f32
    %251 = vector.broadcast %cst_105 : f32 to vector<48x1xf32>
    %252 = arith.divf %250, %251 : vector<48x1xf32>
    %253 = vector.broadcast %252 : vector<48x1xf32> to vector<48x128xf32>
    %254 = arith.subf %244, %253 : vector<48x128xf32>
    %255 = arith.mulf %254, %254 : vector<48x128xf32>
    %cst_106 = arith.constant dense<0.000000e+00> : vector<48xf32>
    %256 = vector.multi_reduction <add>, %255, %cst_106 [1] : vector<48x128xf32> to vector<48xf32>
    %257 = vector.shape_cast %256 : vector<48xf32> to vector<48x1xf32>
    %cst_107 = arith.constant 1.280000e+02 : f32
    %258 = vector.broadcast %cst_107 : f32 to vector<48x1xf32>
    %259 = arith.divf %257, %258 : vector<48x1xf32>
    %260 = vector.broadcast %252 : vector<48x1xf32> to vector<48x128xf32>
    %261 = arith.subf %244, %260 : vector<48x128xf32>
    %cst_108 = arith.constant 9.99999974E-6 : f32
    %262 = vector.broadcast %cst_108 : f32 to vector<48x1xf32>
    %263 = arith.addf %259, %262 : vector<48x1xf32>
    %264 = math.rsqrt %263 : vector<48x1xf32>
    %265 = vector.broadcast %264 : vector<48x1xf32> to vector<48x128xf32>
    %266 = arith.mulf %261, %265 : vector<48x128xf32>
    %267 = vector.broadcast %246 : vector<1x128xf32> to vector<48x128xf32>
    %268 = arith.mulf %266, %267 : vector<48x128xf32>
    %269 = vector.broadcast %248 : vector<1x128xf32> to vector<48x128xf32>
    %270 = arith.addf %268, %269 : vector<48x128xf32>
    %c1 = arith.constant 1 : index
    %c0_109 = arith.constant 0 : index
    %c0_110 = arith.constant 0 : index
    %271 = vector.load %arg10[%c1, %c0_109, %c0_110] : memref<2x128x384xf32, #tpu.memory_space<vmem>>, vector<1x128x384xf32>
    %272 = vector.shape_cast %271 : vector<1x128x384xf32> to vector<128x384xf32>
    %cst_111 = arith.constant dense<0.000000e+00> : vector<48x384xf32>
    %273 = tpu.matmul %270, %272, %cst_111 {dimension_numbers = #tpu.dot_dimension_numbers<[1], [0], [0], [1], [0, 0, 1, 1], [], []>} : vector<48x128xf32>, vector<128x384xf32>, vector<48x384xf32> -> vector<48x384xf32>
    %c1_112 = arith.constant 1 : index
    %c0_113 = arith.constant 0 : index
    %c0_114 = arith.constant 0 : index
    %274 = vector.load %arg11[%c1_112, %c0_113, %c0_114] : memref<2x1x384xf32, #tpu.memory_space<vmem>>, vector<1x1x384xf32>
    %275 = vector.shape_cast %274 : vector<1x1x384xf32> to vector<1x384xf32>
    %276 = vector.broadcast %275 : vector<1x384xf32> to vector<48x384xf32>
    %277 = arith.addf %273, %276 : vector<48x384xf32>
    %278 = vector.extract_strided_slice %277 {offsets = [0, 0], sizes = [48, 32], strides = [1, 1]} : vector<48x384xf32> to vector<48x32xf32>
    %279 = vector.shape_cast %278 : vector<48x32xf32> to vector<6x8x32xf32>
    %280 = vector.extract_strided_slice %277 {offsets = [0, 128], sizes = [48, 32], strides = [1, 1]} : vector<48x384xf32> to vector<48x32xf32>
    %281 = vector.shape_cast %280 : vector<48x32xf32> to vector<6x8x32xf32>
    %282 = vector.extract_strided_slice %277 {offsets = [0, 256], sizes = [48, 32], strides = [1, 1]} : vector<48x384xf32> to vector<48x32xf32>
    %283 = vector.shape_cast %282 : vector<48x32xf32> to vector<6x8x32xf32>
    "tpu.trace_start"() <{level = 10 : i32, message = "bqd,bkd->bqk"}> : () -> ()
    %cst_115 = arith.constant dense<0.000000e+00> : vector<6x8x8xf32>
    %284 = tpu.matmul %279, %281, %cst_115 {dimension_numbers = #tpu.dot_dimension_numbers<[2], [2], [1], [1], [0, 0, 0, 1, 1, 1], [0], [0]>} : vector<6x8x32xf32>, vector<6x8x32xf32>, vector<6x8x8xf32> -> vector<6x8x8xf32>
    "tpu.trace_stop"() : () -> ()
    %cst_116 = arith.constant 0.176776692 : f32
    %285 = vector.broadcast %cst_116 : f32 to vector<6x8x8xf32>
    %286 = arith.mulf %284, %285 : vector<6x8x8xf32>
    %287 = vector.broadcast %81 : vector<6x1x8xf32> to vector<6x8x8xf32>
    %288 = arith.addf %286, %287 : vector<6x8x8xf32>
    %cst_117 = arith.constant dense<0xFF800000> : vector<6x8xf32>
    %289 = vector.multi_reduction <maximumf>, %288, %cst_117 [2] : vector<6x8x8xf32> to vector<6x8xf32>
    %cst_118 = arith.constant 0xFF800000 : f32
    %290 = vector.broadcast %cst_118 : f32 to vector<6x8xf32>
    %291 = arith.maximumf %290, %289 : vector<6x8xf32>
    %292 = vector.shape_cast %291 : vector<6x8xf32> to vector<6x8x1xf32>
    %293 = vector.broadcast %292 : vector<6x8x1xf32> to vector<6x8x8xf32>
    %294 = arith.subf %288, %293 : vector<6x8x8xf32>
    %295 = math.exp %294 : vector<6x8x8xf32>
    %cst_119 = arith.constant dense<0.000000e+00> : vector<6x8xf32>
    %296 = vector.multi_reduction <add>, %295, %cst_119 [2] : vector<6x8x8xf32> to vector<6x8xf32>
    %297 = vector.shape_cast %296 : vector<6x8xf32> to vector<6x8x1xf32>
    %298 = vector.broadcast %297 : vector<6x8x1xf32> to vector<6x8x8xf32>
    %299 = arith.divf %295, %298 : vector<6x8x8xf32>
    "tpu.trace_start"() <{level = 10 : i32, message = "bqk,bkd->bqd"}> : () -> ()
    %cst_120 = arith.constant dense<0.000000e+00> : vector<6x8x32xf32>
    %300 = tpu.matmul %299, %283, %cst_120 {dimension_numbers = #tpu.dot_dimension_numbers<[2], [1], [1], [2], [0, 0, 0, 1, 1, 2], [0], [0]>} : vector<6x8x8xf32>, vector<6x8x32xf32>, vector<6x8x32xf32> -> vector<6x8x32xf32>
    "tpu.trace_stop"() : () -> ()
    %301 = vector.extract_strided_slice %277 {offsets = [0, 32], sizes = [48, 32], strides = [1, 1]} : vector<48x384xf32> to vector<48x32xf32>
    %302 = vector.shape_cast %301 : vector<48x32xf32> to vector<6x8x32xf32>
    %303 = vector.extract_strided_slice %277 {offsets = [0, 160], sizes = [48, 32], strides = [1, 1]} : vector<48x384xf32> to vector<48x32xf32>
    %304 = vector.shape_cast %303 : vector<48x32xf32> to vector<6x8x32xf32>
    %305 = vector.extract_strided_slice %277 {offsets = [0, 288], sizes = [48, 32], strides = [1, 1]} : vector<48x384xf32> to vector<48x32xf32>
    %306 = vector.shape_cast %305 : vector<48x32xf32> to vector<6x8x32xf32>
    "tpu.trace_start"() <{level = 10 : i32, message = "bqd,bkd->bqk"}> : () -> ()
    %cst_121 = arith.constant dense<0.000000e+00> : vector<6x8x8xf32>
    %307 = tpu.matmul %302, %304, %cst_121 {dimension_numbers = #tpu.dot_dimension_numbers<[2], [2], [1], [1], [0, 0, 0, 1, 1, 1], [0], [0]>} : vector<6x8x32xf32>, vector<6x8x32xf32>, vector<6x8x8xf32> -> vector<6x8x8xf32>
    "tpu.trace_stop"() : () -> ()
    %cst_122 = arith.constant 0.176776692 : f32
    %308 = vector.broadcast %cst_122 : f32 to vector<6x8x8xf32>
    %309 = arith.mulf %307, %308 : vector<6x8x8xf32>
    %310 = vector.broadcast %81 : vector<6x1x8xf32> to vector<6x8x8xf32>
    %311 = arith.addf %309, %310 : vector<6x8x8xf32>
    %cst_123 = arith.constant dense<0xFF800000> : vector<6x8xf32>
    %312 = vector.multi_reduction <maximumf>, %311, %cst_123 [2] : vector<6x8x8xf32> to vector<6x8xf32>
    %cst_124 = arith.constant 0xFF800000 : f32
    %313 = vector.broadcast %cst_124 : f32 to vector<6x8xf32>
    %314 = arith.maximumf %313, %312 : vector<6x8xf32>
    %315 = vector.shape_cast %314 : vector<6x8xf32> to vector<6x8x1xf32>
    %316 = vector.broadcast %315 : vector<6x8x1xf32> to vector<6x8x8xf32>
    %317 = arith.subf %311, %316 : vector<6x8x8xf32>
    %318 = math.exp %317 : vector<6x8x8xf32>
    %cst_125 = arith.constant dense<0.000000e+00> : vector<6x8xf32>
    %319 = vector.multi_reduction <add>, %318, %cst_125 [2] : vector<6x8x8xf32> to vector<6x8xf32>
    %320 = vector.shape_cast %319 : vector<6x8xf32> to vector<6x8x1xf32>
    %321 = vector.broadcast %320 : vector<6x8x1xf32> to vector<6x8x8xf32>
    %322 = arith.divf %318, %321 : vector<6x8x8xf32>
    "tpu.trace_start"() <{level = 10 : i32, message = "bqk,bkd->bqd"}> : () -> ()
    %cst_126 = arith.constant dense<0.000000e+00> : vector<6x8x32xf32>
    %323 = tpu.matmul %322, %306, %cst_126 {dimension_numbers = #tpu.dot_dimension_numbers<[2], [1], [1], [2], [0, 0, 0, 1, 1, 2], [0], [0]>} : vector<6x8x8xf32>, vector<6x8x32xf32>, vector<6x8x32xf32> -> vector<6x8x32xf32>
    "tpu.trace_stop"() : () -> ()
    %324 = vector.extract_strided_slice %277 {offsets = [0, 64], sizes = [48, 32], strides = [1, 1]} : vector<48x384xf32> to vector<48x32xf32>
    %325 = vector.shape_cast %324 : vector<48x32xf32> to vector<6x8x32xf32>
    %326 = vector.extract_strided_slice %277 {offsets = [0, 192], sizes = [48, 32], strides = [1, 1]} : vector<48x384xf32> to vector<48x32xf32>
    %327 = vector.shape_cast %326 : vector<48x32xf32> to vector<6x8x32xf32>
    %328 = vector.extract_strided_slice %277 {offsets = [0, 320], sizes = [48, 32], strides = [1, 1]} : vector<48x384xf32> to vector<48x32xf32>
    %329 = vector.shape_cast %328 : vector<48x32xf32> to vector<6x8x32xf32>
    "tpu.trace_start"() <{level = 10 : i32, message = "bqd,bkd->bqk"}> : () -> ()
    %cst_127 = arith.constant dense<0.000000e+00> : vector<6x8x8xf32>
    %330 = tpu.matmul %325, %327, %cst_127 {dimension_numbers = #tpu.dot_dimension_numbers<[2], [2], [1], [1], [0, 0, 0, 1, 1, 1], [0], [0]>} : vector<6x8x32xf32>, vector<6x8x32xf32>, vector<6x8x8xf32> -> vector<6x8x8xf32>
    "tpu.trace_stop"() : () -> ()
    %cst_128 = arith.constant 0.176776692 : f32
    %331 = vector.broadcast %cst_128 : f32 to vector<6x8x8xf32>
    %332 = arith.mulf %330, %331 : vector<6x8x8xf32>
    %333 = vector.broadcast %81 : vector<6x1x8xf32> to vector<6x8x8xf32>
    %334 = arith.addf %332, %333 : vector<6x8x8xf32>
    %cst_129 = arith.constant dense<0xFF800000> : vector<6x8xf32>
    %335 = vector.multi_reduction <maximumf>, %334, %cst_129 [2] : vector<6x8x8xf32> to vector<6x8xf32>
    %cst_130 = arith.constant 0xFF800000 : f32
    %336 = vector.broadcast %cst_130 : f32 to vector<6x8xf32>
    %337 = arith.maximumf %336, %335 : vector<6x8xf32>
    %338 = vector.shape_cast %337 : vector<6x8xf32> to vector<6x8x1xf32>
    %339 = vector.broadcast %338 : vector<6x8x1xf32> to vector<6x8x8xf32>
    %340 = arith.subf %334, %339 : vector<6x8x8xf32>
    %341 = math.exp %340 : vector<6x8x8xf32>
    %cst_131 = arith.constant dense<0.000000e+00> : vector<6x8xf32>
    %342 = vector.multi_reduction <add>, %341, %cst_131 [2] : vector<6x8x8xf32> to vector<6x8xf32>
    %343 = vector.shape_cast %342 : vector<6x8xf32> to vector<6x8x1xf32>
    %344 = vector.broadcast %343 : vector<6x8x1xf32> to vector<6x8x8xf32>
    %345 = arith.divf %341, %344 : vector<6x8x8xf32>
    "tpu.trace_start"() <{level = 10 : i32, message = "bqk,bkd->bqd"}> : () -> ()
    %cst_132 = arith.constant dense<0.000000e+00> : vector<6x8x32xf32>
    %346 = tpu.matmul %345, %329, %cst_132 {dimension_numbers = #tpu.dot_dimension_numbers<[2], [1], [1], [2], [0, 0, 0, 1, 1, 2], [0], [0]>} : vector<6x8x8xf32>, vector<6x8x32xf32>, vector<6x8x32xf32> -> vector<6x8x32xf32>
    "tpu.trace_stop"() : () -> ()
    %347 = vector.extract_strided_slice %277 {offsets = [0, 96], sizes = [48, 32], strides = [1, 1]} : vector<48x384xf32> to vector<48x32xf32>
    %348 = vector.shape_cast %347 : vector<48x32xf32> to vector<6x8x32xf32>
    %349 = vector.extract_strided_slice %277 {offsets = [0, 224], sizes = [48, 32], strides = [1, 1]} : vector<48x384xf32> to vector<48x32xf32>
    %350 = vector.shape_cast %349 : vector<48x32xf32> to vector<6x8x32xf32>
    %351 = vector.extract_strided_slice %277 {offsets = [0, 352], sizes = [48, 32], strides = [1, 1]} : vector<48x384xf32> to vector<48x32xf32>
    %352 = vector.shape_cast %351 : vector<48x32xf32> to vector<6x8x32xf32>
    "tpu.trace_start"() <{level = 10 : i32, message = "bqd,bkd->bqk"}> : () -> ()
    %cst_133 = arith.constant dense<0.000000e+00> : vector<6x8x8xf32>
    %353 = tpu.matmul %348, %350, %cst_133 {dimension_numbers = #tpu.dot_dimension_numbers<[2], [2], [1], [1], [0, 0, 0, 1, 1, 1], [0], [0]>} : vector<6x8x32xf32>, vector<6x8x32xf32>, vector<6x8x8xf32> -> vector<6x8x8xf32>
    "tpu.trace_stop"() : () -> ()
    %cst_134 = arith.constant 0.176776692 : f32
    %354 = vector.broadcast %cst_134 : f32 to vector<6x8x8xf32>
    %355 = arith.mulf %353, %354 : vector<6x8x8xf32>
    %356 = vector.broadcast %81 : vector<6x1x8xf32> to vector<6x8x8xf32>
    %357 = arith.addf %355, %356 : vector<6x8x8xf32>
    %cst_135 = arith.constant dense<0xFF800000> : vector<6x8xf32>
    %358 = vector.multi_reduction <maximumf>, %357, %cst_135 [2] : vector<6x8x8xf32> to vector<6x8xf32>
    %cst_136 = arith.constant 0xFF800000 : f32
    %359 = vector.broadcast %cst_136 : f32 to vector<6x8xf32>
    %360 = arith.maximumf %359, %358 : vector<6x8xf32>
    %361 = vector.shape_cast %360 : vector<6x8xf32> to vector<6x8x1xf32>
    %362 = vector.broadcast %361 : vector<6x8x1xf32> to vector<6x8x8xf32>
    %363 = arith.subf %357, %362 : vector<6x8x8xf32>
    %364 = math.exp %363 : vector<6x8x8xf32>
    %cst_137 = arith.constant dense<0.000000e+00> : vector<6x8xf32>
    %365 = vector.multi_reduction <add>, %364, %cst_137 [2] : vector<6x8x8xf32> to vector<6x8xf32>
    %366 = vector.shape_cast %365 : vector<6x8xf32> to vector<6x8x1xf32>
    %367 = vector.broadcast %366 : vector<6x8x1xf32> to vector<6x8x8xf32>
    %368 = arith.divf %364, %367 : vector<6x8x8xf32>
    "tpu.trace_start"() <{level = 10 : i32, message = "bqk,bkd->bqd"}> : () -> ()
    %cst_138 = arith.constant dense<0.000000e+00> : vector<6x8x32xf32>
    %369 = tpu.matmul %368, %352, %cst_138 {dimension_numbers = #tpu.dot_dimension_numbers<[2], [1], [1], [2], [0, 0, 0, 1, 1, 2], [0], [0]>} : vector<6x8x8xf32>, vector<6x8x32xf32>, vector<6x8x32xf32> -> vector<6x8x32xf32>
    "tpu.trace_stop"() : () -> ()
    %370 = tpu.concatenate %300, %323, %346, %369 in 2 : vector<6x8x32xf32>, vector<6x8x32xf32>, vector<6x8x32xf32>, vector<6x8x32xf32> -> vector<6x8x128xf32>
    %371 = vector.shape_cast %370 : vector<6x8x128xf32> to vector<48x128xf32>
    %c1_139 = arith.constant 1 : index
    %c0_140 = arith.constant 0 : index
    %c0_141 = arith.constant 0 : index
    %372 = vector.load %arg12[%c1_139, %c0_140, %c0_141] : memref<2x128x128xf32, #tpu.memory_space<vmem>>, vector<1x128x128xf32>
    %373 = vector.shape_cast %372 : vector<1x128x128xf32> to vector<128x128xf32>
    %cst_142 = arith.constant dense<0.000000e+00> : vector<48x128xf32>
    %374 = tpu.matmul %371, %373, %cst_142 {dimension_numbers = #tpu.dot_dimension_numbers<[1], [0], [0], [1], [0, 0, 1, 1], [], []>} : vector<48x128xf32>, vector<128x128xf32>, vector<48x128xf32> -> vector<48x128xf32>
    %c1_143 = arith.constant 1 : index
    %c0_144 = arith.constant 0 : index
    %c0_145 = arith.constant 0 : index
    %375 = vector.load %arg13[%c1_143, %c0_144, %c0_145] : memref<2x1x128xf32, #tpu.memory_space<vmem>>, vector<1x1x128xf32>
    %376 = vector.shape_cast %375 : vector<1x1x128xf32> to vector<1x128xf32>
    %377 = vector.broadcast %376 : vector<1x128xf32> to vector<48x128xf32>
    %378 = arith.addf %374, %377 : vector<48x128xf32>
    %379 = arith.addf %270, %378 : vector<48x128xf32>
    %c1_146 = arith.constant 1 : index
    %c0_147 = arith.constant 0 : index
    %c0_148 = arith.constant 0 : index
    %380 = vector.load %arg14[%c1_146, %c0_147, %c0_148] : memref<2x1x128xf32, #tpu.memory_space<vmem>>, vector<1x1x128xf32>
    %381 = vector.shape_cast %380 : vector<1x1x128xf32> to vector<1x128xf32>
    %c1_149 = arith.constant 1 : index
    %c0_150 = arith.constant 0 : index
    %c0_151 = arith.constant 0 : index
    %382 = vector.load %arg15[%c1_149, %c0_150, %c0_151] : memref<2x1x128xf32, #tpu.memory_space<vmem>>, vector<1x1x128xf32>
    %383 = vector.shape_cast %382 : vector<1x1x128xf32> to vector<1x128xf32>
    %cst_152 = arith.constant dense<0.000000e+00> : vector<48xf32>
    %384 = vector.multi_reduction <add>, %379, %cst_152 [1] : vector<48x128xf32> to vector<48xf32>
    %385 = vector.shape_cast %384 : vector<48xf32> to vector<48x1xf32>
    %cst_153 = arith.constant 1.280000e+02 : f32
    %386 = vector.broadcast %cst_153 : f32 to vector<48x1xf32>
    %387 = arith.divf %385, %386 : vector<48x1xf32>
    %388 = vector.broadcast %387 : vector<48x1xf32> to vector<48x128xf32>
    %389 = arith.subf %379, %388 : vector<48x128xf32>
    %390 = arith.mulf %389, %389 : vector<48x128xf32>
    %cst_154 = arith.constant dense<0.000000e+00> : vector<48xf32>
    %391 = vector.multi_reduction <add>, %390, %cst_154 [1] : vector<48x128xf32> to vector<48xf32>
    %392 = vector.shape_cast %391 : vector<48xf32> to vector<48x1xf32>
    %cst_155 = arith.constant 1.280000e+02 : f32
    %393 = vector.broadcast %cst_155 : f32 to vector<48x1xf32>
    %394 = arith.divf %392, %393 : vector<48x1xf32>
    %395 = vector.broadcast %387 : vector<48x1xf32> to vector<48x128xf32>
    %396 = arith.subf %379, %395 : vector<48x128xf32>
    %cst_156 = arith.constant 9.99999974E-6 : f32
    %397 = vector.broadcast %cst_156 : f32 to vector<48x1xf32>
    %398 = arith.addf %394, %397 : vector<48x1xf32>
    %399 = math.rsqrt %398 : vector<48x1xf32>
    %400 = vector.broadcast %399 : vector<48x1xf32> to vector<48x128xf32>
    %401 = arith.mulf %396, %400 : vector<48x128xf32>
    %402 = vector.broadcast %381 : vector<1x128xf32> to vector<48x128xf32>
    %403 = arith.mulf %401, %402 : vector<48x128xf32>
    %404 = vector.broadcast %383 : vector<1x128xf32> to vector<48x128xf32>
    %405 = arith.addf %403, %404 : vector<48x128xf32>
    %c1_157 = arith.constant 1 : index
    %c0_158 = arith.constant 0 : index
    %c0_159 = arith.constant 0 : index
    %406 = vector.load %arg16[%c1_157, %c0_158, %c0_159] : memref<2x128x256xf32, #tpu.memory_space<vmem>>, vector<1x128x256xf32>
    %407 = vector.shape_cast %406 : vector<1x128x256xf32> to vector<128x256xf32>
    %cst_160 = arith.constant dense<0.000000e+00> : vector<48x256xf32>
    %408 = tpu.matmul %405, %407, %cst_160 {dimension_numbers = #tpu.dot_dimension_numbers<[1], [0], [0], [1], [0, 0, 1, 1], [], []>} : vector<48x128xf32>, vector<128x256xf32>, vector<48x256xf32> -> vector<48x256xf32>
    %c1_161 = arith.constant 1 : index
    %c0_162 = arith.constant 0 : index
    %c0_163 = arith.constant 0 : index
    %409 = vector.load %arg17[%c1_161, %c0_162, %c0_163] : memref<2x1x256xf32, #tpu.memory_space<vmem>>, vector<1x1x256xf32>
    %410 = vector.shape_cast %409 : vector<1x1x256xf32> to vector<1x256xf32>
    %411 = vector.broadcast %410 : vector<1x256xf32> to vector<48x256xf32>
    %412 = arith.addf %408, %411 : vector<48x256xf32>
    %413 = arith.mulf %412, %412 : vector<48x256xf32>
    %414 = arith.mulf %412, %413 : vector<48x256xf32>
    %cst_164 = arith.constant 4.471500e-02 : f32
    %415 = vector.broadcast %cst_164 : f32 to vector<48x256xf32>
    %416 = arith.mulf %415, %414 : vector<48x256xf32>
    %417 = arith.addf %412, %416 : vector<48x256xf32>
    %cst_165 = arith.constant 0.797884583 : f32
    %418 = vector.broadcast %cst_165 : f32 to vector<48x256xf32>
    %419 = arith.mulf %418, %417 : vector<48x256xf32>
    %420 = math.tanh %419 : vector<48x256xf32>
    %cst_166 = arith.constant 1.000000e+00 : f32
    %421 = vector.broadcast %cst_166 : f32 to vector<48x256xf32>
    %422 = arith.addf %421, %420 : vector<48x256xf32>
    %cst_167 = arith.constant 5.000000e-01 : f32
    %423 = vector.broadcast %cst_167 : f32 to vector<48x256xf32>
    %424 = arith.mulf %423, %422 : vector<48x256xf32>
    %425 = arith.mulf %412, %424 : vector<48x256xf32>
    %c1_168 = arith.constant 1 : index
    %c0_169 = arith.constant 0 : index
    %c0_170 = arith.constant 0 : index
    %426 = vector.load %arg18[%c1_168, %c0_169, %c0_170] : memref<2x256x128xf32, #tpu.memory_space<vmem>>, vector<1x256x128xf32>
    %427 = vector.shape_cast %426 : vector<1x256x128xf32> to vector<256x128xf32>
    %cst_171 = arith.constant dense<0.000000e+00> : vector<48x128xf32>
    %428 = tpu.matmul %425, %427, %cst_171 {dimension_numbers = #tpu.dot_dimension_numbers<[1], [0], [0], [1], [0, 0, 1, 1], [], []>} : vector<48x256xf32>, vector<256x128xf32>, vector<48x128xf32> -> vector<48x128xf32>
    %c1_172 = arith.constant 1 : index
    %c0_173 = arith.constant 0 : index
    %c0_174 = arith.constant 0 : index
    %429 = vector.load %arg19[%c1_172, %c0_173, %c0_174] : memref<2x1x128xf32, #tpu.memory_space<vmem>>, vector<1x1x128xf32>
    %430 = vector.shape_cast %429 : vector<1x1x128xf32> to vector<1x128xf32>
    %431 = vector.broadcast %430 : vector<1x128xf32> to vector<48x128xf32>
    %432 = arith.addf %428, %431 : vector<48x128xf32>
    %433 = arith.addf %405, %432 : vector<48x128xf32>
    %c1_175 = arith.constant 1 : index
    %c0_176 = arith.constant 0 : index
    %c0_177 = arith.constant 0 : index
    %434 = vector.load %arg20[%c1_175, %c0_176, %c0_177] : memref<2x1x128xf32, #tpu.memory_space<vmem>>, vector<1x1x128xf32>
    %435 = vector.shape_cast %434 : vector<1x1x128xf32> to vector<1x128xf32>
    %c1_178 = arith.constant 1 : index
    %c0_179 = arith.constant 0 : index
    %c0_180 = arith.constant 0 : index
    %436 = vector.load %arg21[%c1_178, %c0_179, %c0_180] : memref<2x1x128xf32, #tpu.memory_space<vmem>>, vector<1x1x128xf32>
    %437 = vector.shape_cast %436 : vector<1x1x128xf32> to vector<1x128xf32>
    %cst_181 = arith.constant dense<0.000000e+00> : vector<48xf32>
    %438 = vector.multi_reduction <add>, %433, %cst_181 [1] : vector<48x128xf32> to vector<48xf32>
    %439 = vector.shape_cast %438 : vector<48xf32> to vector<48x1xf32>
    %cst_182 = arith.constant 1.280000e+02 : f32
    %440 = vector.broadcast %cst_182 : f32 to vector<48x1xf32>
    %441 = arith.divf %439, %440 : vector<48x1xf32>
    %442 = vector.broadcast %441 : vector<48x1xf32> to vector<48x128xf32>
    %443 = arith.subf %433, %442 : vector<48x128xf32>
    %444 = arith.mulf %443, %443 : vector<48x128xf32>
    %cst_183 = arith.constant dense<0.000000e+00> : vector<48xf32>
    %445 = vector.multi_reduction <add>, %444, %cst_183 [1] : vector<48x128xf32> to vector<48xf32>
    %446 = vector.shape_cast %445 : vector<48xf32> to vector<48x1xf32>
    %cst_184 = arith.constant 1.280000e+02 : f32
    %447 = vector.broadcast %cst_184 : f32 to vector<48x1xf32>
    %448 = arith.divf %446, %447 : vector<48x1xf32>
    %449 = vector.broadcast %441 : vector<48x1xf32> to vector<48x128xf32>
    %450 = arith.subf %433, %449 : vector<48x128xf32>
    %cst_185 = arith.constant 9.99999974E-6 : f32
    %451 = vector.broadcast %cst_185 : f32 to vector<48x1xf32>
    %452 = arith.addf %448, %451 : vector<48x1xf32>
    %453 = math.rsqrt %452 : vector<48x1xf32>
    %454 = vector.broadcast %453 : vector<48x1xf32> to vector<48x128xf32>
    %455 = arith.mulf %450, %454 : vector<48x128xf32>
    %456 = vector.broadcast %435 : vector<1x128xf32> to vector<48x128xf32>
    %457 = arith.mulf %455, %456 : vector<48x128xf32>
    %458 = vector.broadcast %437 : vector<1x128xf32> to vector<48x128xf32>
    %459 = arith.addf %457, %458 : vector<48x128xf32>
    %460 = vector.shape_cast %459 : vector<48x128xf32> to vector<6x8x128xf32>
    %461 = vector.extract_strided_slice %460 {offsets = [0, 0, 0], sizes = [6, 1, 128], strides = [1, 1, 1]} : vector<6x8x128xf32> to vector<6x1x128xf32>
    %462 = vector.shape_cast %461 : vector<6x1x128xf32> to vector<6x128xf32>
    %c0_186 = arith.constant 0 : index
    %c0_187 = arith.constant 0 : index
    %463 = vector.load %arg22[%c0_186, %c0_187] : memref<128x256xf32, #tpu.memory_space<vmem>>, vector<128x256xf32>
    %cst_188 = arith.constant dense<0.000000e+00> : vector<6x256xf32>
    %464 = tpu.matmul %462, %463, %cst_188 {dimension_numbers = #tpu.dot_dimension_numbers<[1], [0], [0], [1], [0, 0, 1, 1], [], []>} : vector<6x128xf32>, vector<128x256xf32>, vector<6x256xf32> -> vector<6x256xf32>
    %c0_189 = arith.constant 0 : index
    %c0_190 = arith.constant 0 : index
    %465 = vector.load %arg23[%c0_189, %c0_190] : memref<1x256xf32, #tpu.memory_space<vmem>>, vector<1x256xf32>
    %466 = vector.broadcast %465 : vector<1x256xf32> to vector<6x256xf32>
    %467 = arith.addf %464, %466 : vector<6x256xf32>
    %468 = arith.mulf %467, %467 : vector<6x256xf32>
    %cst_191 = arith.constant dense<0.000000e+00> : vector<6xf32>
    %469 = vector.multi_reduction <add>, %468, %cst_191 [1] : vector<6x256xf32> to vector<6xf32>
    %470 = vector.shape_cast %469 : vector<6xf32> to vector<6x1xf32>
    %471 = math.sqrt %470 : vector<6x1xf32>
    %cst_192 = arith.constant 9.99999996E-13 : f32
    %472 = vector.broadcast %cst_192 : f32 to vector<6x1xf32>
    %473 = arith.maximumf %471, %472 : vector<6x1xf32>
    %474 = vector.broadcast %473 : vector<6x1xf32> to vector<6x256xf32>
    %475 = arith.divf %467, %474 : vector<6x256xf32>
    %476 = vector.extract_strided_slice %475 {offsets = [0, 0], sizes = [2, 256], strides = [1, 1]} : vector<6x256xf32> to vector<2x256xf32>
    %c0_193 = arith.constant 0 : index
    %c0_194 = arith.constant 0 : index
    %477 = vector.load %arg24[%c0_193, %c0_194] : memref<2x256xf32, #tpu.memory_space<vmem>>, vector<2x256xf32>
    tpu.vector_store %arg24[%c0_193, %c0_194], %476 {strides = array<i32>} : memref<2x256xf32, #tpu.memory_space<vmem>>, vector<2x256xf32>,
    %478 = vector.extract_strided_slice %475 {offsets = [2, 0], sizes = [2, 256], strides = [1, 1]} : vector<6x256xf32> to vector<2x256xf32>
    %c0_195 = arith.constant 0 : index
    %c0_196 = arith.constant 0 : index
    %479 = vector.load %arg25[%c0_195, %c0_196] : memref<2x256xf32, #tpu.memory_space<vmem>>, vector<2x256xf32>
    tpu.vector_store %arg25[%c0_195, %c0_196], %478 {strides = array<i32>} : memref<2x256xf32, #tpu.memory_space<vmem>>, vector<2x256xf32>,
    %480 = vector.extract_strided_slice %475 {offsets = [4, 0], sizes = [2, 256], strides = [1, 1]} : vector<6x256xf32> to vector<2x256xf32>
    %c0_197 = arith.constant 0 : index
    %c0_198 = arith.constant 0 : index
    %481 = vector.load %arg26[%c0_197, %c0_198] : memref<2x256xf32, #tpu.memory_space<vmem>>, vector<2x256xf32>
    tpu.vector_store %arg26[%c0_197, %c0_198], %480 {strides = array<i32>} : memref<2x256xf32, #tpu.memory_space<vmem>>, vector<2x256xf32>,
    return
  }
}

</mosaic_0001>

<bundles_post_ra>
// kernel: forward.1
= control target key start
LH: loop header
LB: loop body
LE: loop exit
PB: predicated region body
PF: predicated region fallthrough
CT: control target
= control target key end

     0   :  { %s9245_s0 = inlined_call_operand.vmem [shape: s32[2,8], index: 0, kind: input, shape index: {}]   ;;  %s9246_s1 = inlined_call_operand.vmem [shape: s32[2,8], index: 1, kind: input, shape index: {}]   ;;  %s9247_s2 = inlined_call_operand.vmem [shape: s32[2,8], index: 2, kind: input, shape index: {}]   ;;  %s9248_s3 = inlined_call_operand.vmem [shape: s32[2,8], index: 3, kind: input, shape index: {}]   ;;  %s9249_s4 = inlined_call_operand.vmem [shape: s32[2,8], index: 4, kind: input, shape index: {}]   ;;  %s9250_s5 = inlined_call_operand.vmem [shape: s32[2,8], index: 5, kind: input, shape index: {}]   ;;  %s9251_s6 = inlined_call_operand.hbm [shape: f32[64,128], index: 6, kind: input, shape index: {}]   ;;  %s9252_s7 = inlined_call_operand.vmem [shape: f32[16,128], index: 7, kind: input, shape index: {}]   ;;  %s9253_s8 = inlined_call_operand.vmem [shape: f32[1,128], index: 8, kind: input, shape index: {}]   ;;  %s9254_s9 = inlined_call_operand.vmem [shape: f32[1,128], index: 9, kind: input, shape index: {}]   ;;  %s9255_s10 = inlined_call_operand.hbm [shape: f32[2,128,384], index: 10, kind: input, shape index: {}]   ;;  %s9256_s11 = inlined_call_operand.vmem [shape: f32[2,1,384], index: 11, kind: input, shape index: {}]   ;;  %s9257_s12 = inlined_call_operand.hbm [shape: f32[2,128,128], index: 12, kind: input, shape index: {}]   ;;  %s9258_s13 = inlined_call_operand.vmem [shape: f32[2,1,128], index: 13, kind: input, shape index: {}, may-alias: {13,15,19,21}]   ;;  %s9259_s14 = inlined_call_operand.vmem [shape: f32[2,1,128], index: 14, kind: input, shape index: {}, may-alias: {14,20}]   ;;  %s9260_s15 = inlined_call_operand.vmem [shape: f32[2,1,128], index: 15, kind: input, shape index: {}, may-alias: {13,15,19,21}]   ;;  %s9261_s16 = inlined_call_operand.hbm [shape: f32[2,128,256], index: 16, kind: input, shape index: {}]   ;;  %s9262_s17 = inlined_call_operand.vmem [shape: f32[2,1,256], index: 17, kind: input, shape index: {}]   ;;  %s9263_s18 = inlined_call_operand.hbm [shape: f32[2,256,128], index: 18, kind: input, shape index: {}]   ;;  %s9264_s19 = inlined_call_operand.vmem [shape: f32[2,1,128], index: 19, kind: input, shape index: {}, may-alias: {13,15,19,21}]   ;;  %s9265_s20 = inlined_call_operand.vmem [shape: f32[2,1,128], index: 20, kind: input, shape index: {}, may-alias: {14,20}]   ;;  %s9266_s21 = inlined_call_operand.vmem [shape: f32[2,1,128], index: 21, kind: input, shape index: {}, may-alias: {13,15,19,21}]   ;;  %s9267_s22 = inlined_call_operand.hbm [shape: f32[128,256], index: 22, kind: input, shape index: {}]   ;;  %s9268_s23 = inlined_call_operand.vmem [shape: f32[1,256], index: 23, kind: input, shape index: {}]   ;;  %s9269_s24 = inlined_call_operand.hbm [shape: f32[2,256], index: 24, kind: output, shape index: {0}]   ;;  %s9270_s25 = inlined_call_operand.hbm [shape: f32[2,256], index: 25, kind: output, shape index: {1}]   ;;  %s9271_s26 = inlined_call_operand.hbm [shape: f32[2,256], index: 26, kind: output, shape index: {2}]  }
   0x1   :  { %9277 = sst [smem:[#allocation26_spill]] %s9245_s0 }
   0x2   :  { %9278 = sst [smem:[#allocation27_spill]] %s9246_s1 }
   0x3   :  { %9279 = sst [smem:[#allocation28_spill]] %s9247_s2 }
   0x4   :  { %9280 = sst [smem:[#allocation29_spill]] %s9248_s3 }
   0x5   :  { %9281 = sst [smem:[#allocation30_spill]] %s9249_s4 }
   0x6   :  { %9282 = sst [smem:[#allocation31_spill]] %s9250_s5 }
   0x7   :  { %9283 = sst [smem:[#allocation32_spill]] %s9251_s6 }
   0x8   :  { %9284 = sst [smem:[#allocation33_spill]] %s9252_s7 }
   0x9   :  { %9285 = sst [smem:[#allocation34_spill]] %s9253_s8 }
   0xa   :  { %9286 = sst [smem:[#allocation35_spill]] %s9254_s9 }
   0xb   :  { %9287 = sst [smem:[#allocation36_spill]] %s9255_s10 }
   0xc   :  { %9288 = sst [smem:[#allocation37_spill]] %s9270_s25 }
   0xd   :  { %9289 = sst [smem:[#allocation38_spill]] %s9271_s26 }
   0xe   :  { %32 = vsyncpa [#allocation3], 0 }
   0xf   :  { %33 = vsyncpa [#allocation6], 0 }
  0x10   :  { %34 = vsyncpa [#allocation9], 0 }
  0x11   :  { %35 = vsyncpa [#allocation12], 0 }
  0x12   :  { %36 = vsyncpa [#allocation4], 0  ;;  %s9290_s7 = sld [smem:[#allocation36_spill]] }
  0x18   :  { %s73_s28 = sshll.u32 %s9290_s7, 4  ;;  %s74_s28 = int_to_ptr.hbm [resolvable:$true] %s73_s28 }
  0x19   :  { %37 = vsyncpa [#allocation15], 0  ;;  %s7240_s8 = smov [#allocation5]   ;;  %s107_s9 = sshll.u32 %s9261_s16, 4  ;;  %s108_s9 = int_to_ptr.hbm [resolvable:$true] %s107_s9 }
  0x1a   :  { %s75_s4 = sshll.u32 %s7240_s8, 4  ;;  %s7241_s30 = smov 384   ;;  %s76_s4 = int_to_ptr.vmem [resolvable:$true] %s75_s4 }
  0x1b   :  { %s7242_s2 = smov 24   ;;  %s7243_s5 = smov [#allocation8]  }
  0x1c   :  { %81 = dma.hbm_to_vmem [thread:$0]  %s74_s28, 12288, %s76_s4, [#allocation6], %s7241_s30, %s7241_s30, %s7242_s2  }
  0x1d   :  { %s109_s10 = sshll.u32 %s7243_s5, 4  ;;  %s7244_s6 = smov 256   ;;  %s110_s10 = int_to_ptr.vmem [resolvable:$true] %s109_s10 }
  0x1e   :  { %s7245_s1 = smov 16   ;;  %s9291_s7 = sld [smem:[#allocation32_spill]] }
  0x1f   :  { %115 = dma.hbm_to_vmem [thread:$0]  %s108_s9, 8192, %s110_s10, [#allocation9], %s7244_s6, %s7244_s6, %s7245_s1  }
  0x20   :  { %s7246_s29 = smov [#allocation2]   ;;  %s88_s4 = sshll.u32 %s9257_s12, 4  ;;  %s89_s4 = int_to_ptr.hbm [resolvable:$true] %s88_s4 }
  0x21   :  { %s56_s16 = sshll.u32 %s7246_s29, 4  ;;  %s7247_s30 = smov 128   ;;  %s57_s16 = int_to_ptr.vmem [resolvable:$true] %s56_s16 }
  0x22   :  { %s7248_s2 = smov 8   ;;  %s7249_s5 = smov [#allocation7]  }
  0x23   :  { %s90_s26 = sshll.u32 %s7249_s5, 4  ;;  %s122_s10 = sshll.u32 %s9263_s18, 4  ;;  %s91_s26 = int_to_ptr.vmem [resolvable:$true] %s90_s26  ;;  %s123_s10 = int_to_ptr.hbm [resolvable:$true] %s122_s10 }
  0x24   :  { %s54_s8 = sshll.u32 %s9291_s7, 4  ;;  %s141_s7 = sshll.u32 %s9267_s22, 4  ;;  %s55_s8 = int_to_ptr.hbm [resolvable:$true] %s54_s8  ;;  %s142_s7 = int_to_ptr.hbm [resolvable:$true] %s141_s7 }
  0x25   :  { %62 = dma.hbm_to_vmem [thread:$0]  %s55_s8, 1024, %s57_s16, [#allocation3], %s7247_s30, %s7247_s30, %s7248_s2  }
  0x26   :  { %96 = dma.hbm_to_vmem [thread:$0]  %s89_s4, 4096, %s91_s26, [#allocation6], %s7247_s30, %s7247_s30, %s7248_s2  }
  0x27   :  { %s7250_s29 = smov [#allocation10]   ;;  %s7251_s12 = smov [#allocation11]  }
  0x28   :  { %s124_s0 = sshll.u32 %s7250_s29, 4  ;;  %s143_s8 = sshll.u32 %s7251_s12, 4  ;;  %s125_s0 = int_to_ptr.vmem [resolvable:$true] %s124_s0  ;;  %s144_s8 = int_to_ptr.vmem [resolvable:$true] %s143_s8 }
  0x29   :  { %130 = dma.hbm_to_vmem [thread:$0]  %s123_s10, 8192, %s125_s0, [#allocation9], %s7247_s30, %s7247_s30, %s7248_s2  }
  0x2a   :  { %149 = dma.hbm_to_vmem [thread:$0]  %s142_s7, 4096, %s144_s8, [#allocation12], %s7244_s6, %s7244_s6, %s7245_s1  }
  0x2b   :  { %7228 = dma.done.wait [#allocation3], 1024  }
  0x2c   :  { %7229 = vsyncadd [#allocation3], 4294966272 }
  0x2d   :  { %7230 = dma.done.wait [#allocation6], 16384  }
  0x2e   :  { %7231 = vsyncadd [#allocation6], 4294950912 }
  0x2f   :  { %7232 = dma.done.wait [#allocation9], 16384  }
  0x30   :  { %7233 = vsyncadd [#allocation9], 4294950912 }
  0x31   :  { %7234 = dma.done.wait [#allocation12], 4096  }
  0x32   :  { %7235 = vsyncadd [#allocation12], 4294963200  ;;  %v178_v0 = vlaneseq  ;;  %s9292_s25 = sld [smem:[#allocation26_spill]]  ;;  %v253_v7 = vld [vmem:[#allocation2 + $0x38] sm:$0xff]  ;;  %v252_v8 = vld [vmem:[#allocation2 + $0x30] sm:$0xff]  ;;  %vm256_vm1 = vcmask 130048  }
  0x33   :  { %s9293_s6 = sld [smem:[#allocation28_spill]]  ;;  %322 = vmatpush.msra.mxu1 %v253_v7  ;;  %v251_v10 = vld [vmem:[#allocation2 + $0x28] sm:$0xff]  ;;  %v250_v11 = vld [vmem:[#allocation2 + $0x20] sm:$0xff]  ;;  %v249_v13 = vld [vmem:[#allocation2 + $0x18] sm:$0xff]  ;;  %v7252_v22 = vmov 0.0   ;;  %vm295_vm3 = vcmask 523264  }
  0x34   :  { %v179_v1 = vshrl.u32 %v178_v0, 7  ;;  %s9294_s4 = sld [smem:[#allocation30_spill]]  ;;  %v248_v16 = vld [vmem:[#allocation2 + $0x10] sm:$0xff]  ;;  %v247_v18 = vld [vmem:[#allocation2 + $0x8] sm:$0xff]  ;;  %v192_v19 = vand.u32 127, %v178_v0  ;;  %v246_v21 = vld [vmem:[#allocation2] sm:$0xff] }
  0x35   :  { %s9295_s5 = sld [smem:[#allocation33_spill]]  ;;  %323 = vmatpush.msra.mxu1 %v252_v8  ;;  %v7253_v54 = vmov 128.0   ;;  %v561_v7 = vld [vmem:[#allocation5 + $0x178] sm:$0xff]  ;;  %s7254_s22 = smov 96  }
  0x36   :  { %6589 = vset.pattern.permute.xlu0 %v179_v1  ;;  %6590 = vset.pattern.permute.xlu1 %v179_v1  ;;  %vm243_vm0 = vcmp.eq.s32.totalorder %v179_v1, %v192_v19  ;;  %6706 = vrcp.f32 %v7253_v54  ;;  %v526_v54 = vld [vmem:[#allocation5 + $0x60] sm:$0xff]  ;;  %s9297_s7 = sld [smem:[#allocation34_spill]]  ;;  %s7256_s9 = smov 32  }
  0x37   :  { %6591 = vset.pattern.permute.xlu2 %v179_v1  ;;  %324 = vmatpush.msra.mxu1 %v251_v10  ;;  %v6386_v23 = vsel %vm243_vm0, 1.0, %v7252_v22  ;;  %v557_v10 = vld [vmem:[#allocation5 + $0x158] sm:$0xff]  ;;  %s9298_s12 = sld [smem:[#allocation35_spill]]  ;;  %s7258_s8 = smov [#allocation14]  }
  0x38   :  { %v176_v2 = vld [vmem:[%s9292_s25] sm:$0x3]  ;;  %s9301_s16 = sld [smem:[#allocation27_spill]]  ;;  %s6345_s18 = sshll.u32 %s7258_s8, 4  ;;  %s6346_s18 = int_to_ptr.vmem [resolvable:$true] %s6345_s18 }
  0x39   :  { %v199_v3 = vld [vmem:[%s9293_s6] sm:$0x3]  ;;  %v177_v5 = vperm.slane %v176_v2, 0  ;;  %325 = vmatpush.msra.mxu1 %v250_v11  ;;  %v184_v14 = vperm.slane %v176_v2, 1  ;;  %v558_v11 = vld [vmem:[#allocation5 + $0x160] sm:$0xff]  ;;  %s9302_s28 = sld [smem:[#allocation29_spill]] }
  0x3a   :  { %v220_v4 = vld [vmem:[%s9294_s4] sm:$0x3]  ;;  %v200_v6 = vperm.slane %v199_v3, 0  ;;  %v207_v15 = vperm.slane %v199_v3, 1  ;;  %s9303_s2 = sld [smem:[#allocation31_spill]] }
  0x3b   :  { %v221_v9 = vperm.slane %v220_v4, 0  ;;  %v255_v12 = vld [vmem:[%s9295_s5 + $0x8] sm:$0xff]  ;;  %v228_v17 = vperm.slane %v220_v4, 1  ;;  %326 = vmatpush.msra.mxu1 %v249_v13  ;;  %v254_v20 = vld [vmem:[%s9295_s5] sm:$0xff]  ;;  %s7255_s5 = smov 64  }
  0x3c   :  { %274 = vmatpush.msra.mxu0 %v255_v12  ;;  %6551 = vmatpush.msra.mxu2 %v255_v12  ;;  %v6707_v55 = vpop.eup %6706 }
  0x3d   :  { %327 = vmatpush.msra.mxu1 %v248_v16  ;;  %v364_v56 = vmul.f32 128.0, %v6707_v55  ;;  %vm368_vm9 = vweird.f32 %v6707_v55 }
  0x3e   :  { %182 = vperm.xlu0 %6589, %v177_v5   ;;  %205 = vperm.xlu1 %6590, %v200_v6   ;;  %v559_v5 = vld [vmem:[#allocation5 + $0x168] sm:$0xff]  ;;  %v560_v6 = vld [vmem:[#allocation5 + $0x170] sm:$0xff] }
  0x3f   :  { %226 = vperm.xlu2 %6591, %v221_v9   ;;  %328 = vmatpush.msra.mxu1 %v247_v18  ;;  %v365_v57 = vsub.f32 1.0, %v364_v56  ;;  %v556_v9 = vld [vmem:[#allocation5 + $0x150] sm:$0xff] }
  0x40   :  { %275 = vmatpush.msra.mxu0 %v254_v20  ;;  %6552 = vmatpush.msra.mxu2 %v254_v20  ;;  %v528_v56 = vld [vmem:[#allocation5 + $0x70] sm:$0xff] }
  0x41   :  { %329 = vmatpush.msra.mxu1 %v246_v21  ;;  %6387 = vmatmul.msk.f32.vlgmr.msra.gmra.mxu0 %vm256_vm1, %v6386_v23  ;;  %v366_v58 = vmul.f32 %v6707_v55, %v365_v57  ;;  %v523_v57 = vld [vmem:[#allocation5 + $0x48] sm:$0xff] }
  0x42   :  { %6391 = vmatmul.msk.f32.vlgmr.msra.gmra.mxu2 %vm256_vm1, %v6386_v23  ;;  %605 = vmatpush.msra.mxu3 %v560_v6  ;;  %v515_v6 = vld [vmem:[#allocation5 + $0x8] sm:$0xff] }
  0x43   :  { %v367_v59 = vadd.f32 %v6707_v55, %v366_v58  ;;  %570 = vmatpush.msrb.mxu2 %v559_v5  ;;  %640 = vmatpush.msrb.mxu0 %v561_v7  ;;  %v524_v58 = vld [vmem:[#allocation5 + $0x50] sm:$0xff]  ;;  %v514_v5 = vld [vmem:[#allocation5] sm:$0xff] }
  0x44   :  { %606 = vmatpush.msra.mxu3 %v557_v10  ;;  %v516_v7 = vld [vmem:[#allocation5 + $0x10] sm:$0xff] }
  0x45   :  { %v7440_v60 = vsel %vm368_vm9, %v6707_v55, %v367_v59  ;;  %571 = vmatpush.msrb.mxu2 %v556_v9  ;;  %641 = vmatpush.msrb.mxu0 %v558_v11  ;;  %v527_v55 = vld [vmem:[#allocation5 + $0x68] sm:$0xff]  ;;  %v525_v59 = vld [vmem:[#allocation5 + $0x58] sm:$0xff] }
  0x46   :  { %189 = vperm.xlu0 %6589, %v184_v14   ;;  %212 = vperm.xlu1 %6590, %v207_v15   ;;  %9296 = vst [vmem:[#allocation23_spill] sm:$0xff] %v7440_v60 }
  0x47   :  { %233 = vperm.xlu2 %6591, %v228_v17  }
  0x49   :  { %6388 = vmatmul.msk.f32.gmra.mxu0 %vm256_vm1, %v6386_v23 }
  0x4a   :  { %6392 = vmatmul.msk.f32.gmra.mxu2 %vm256_vm1, %v6386_v23 }
  0x51   :  { %6389 = vmatmul.msk.f32.gmra.mxu0 %vm256_vm1, %v6386_v23 }
  0x59   :  { %6390 = vmatmul.msk.f32.gmra.mxu0 %vm256_vm1, %v6386_v23 }
  0x99   :  { %v227_v24 = vpop.permute.xlu2 %226 }
  0x9a   :  { %vm235_vm2 = vcmp.eq.s32.totalorder %v227_v24, %v192_v19 }
  0x9b   :  { %v6384_v25 = vsel %vm235_vm2, 1.0, %v7252_v22 }
  0xa1   :  { %v234_v28 = vpop.permute.xlu2 %233 }
  0xa2   :  { %vm236_vm5 = vcmp.eq.s32.totalorder %v234_v28, %v192_v19  ;;  %v554_v28 = vld [vmem:[#allocation5 + $0x140] sm:$0xff] }
  0xa3   :  { %v6385_v29 = vsel %vm236_vm5, 1.0, %v7252_v22  ;;  %607 = vmatpush.msra.mxu3 %v554_v28 }
  0xb0   :  { %v183_v26 = vpop.permute.xlu0 %182  ;;  %v206_v31 = vpop.permute.xlu1 %205 }
  0xb1   :  { %vm193_vm4 = vcmp.eq.s32.totalorder %v183_v26, %v192_v19  ;;  %vm214_vm7 = vcmp.eq.s32.totalorder %v206_v31, %v192_v19  ;;  %v551_v31 = vld [vmem:[#allocation5 + $0x128] sm:$0xff] }
  0xb2   :  { %v6380_v27 = vsel %vm193_vm4, 1.0, %v7252_v22  ;;  %v6382_v33 = vsel %vm214_vm7, 1.0, %v7252_v22  ;;  %608 = vmatpush.msra.mxu3 %v551_v31 }
  0xb3   :  { %6393 = vmatmul.msk.f32.vlgmr.msra.gmra.mxu1 %vm295_vm3, %v6380_v27  ;;  %v553_v27 = vld [vmem:[#allocation5 + $0x138] sm:$0xff] }
  0xb4   :  { %572 = vmatpush.msrb.mxu2 %v553_v27 }
  0xb8   :  { %v190_v30 = vpop.permute.xlu0 %189  ;;  %v213_v34 = vpop.permute.xlu1 %212 }
  0xb9   :  { %vm194_vm6 = vcmp.eq.s32.totalorder %v190_v30, %v192_v19  ;;  %vm215_vm8 = vcmp.eq.s32.totalorder %v213_v34, %v192_v19  ;;  %v550_v30 = vld [vmem:[#allocation5 + $0x120] sm:$0xff]  ;;  %v548_v34 = vld [vmem:[#allocation5 + $0x110] sm:$0xff] }
  0xba   :  { %v6381_v32 = vsel %vm194_vm6, 1.0, %v7252_v22  ;;  %v6383_v35 = vsel %vm215_vm8, 1.0, %v7252_v22  ;;  %573 = vmatpush.msrb.mxu2 %v550_v30  ;;  %609 = vmatpush.msra.mxu3 %v548_v34 }
  0xbb   :  { %6394 = vmatmul.msk.f32.gmra.mxu1 %vm295_vm3, %v6381_v32  ;;  %v552_v32 = vld [vmem:[#allocation5 + $0x130] sm:$0xff] }
  0xbe   :  { %v277_v36 = vpop.f32.mrf.mxu0 }
  0xc3   :  { %6395 = vmatmul.msk.f32.gmra.mxu1 %vm295_vm3, %v6382_v33  ;;  %v547_v33 = vld [vmem:[#allocation5 + $0x108] sm:$0xff] }
  0xc4   :  { %574 = vmatpush.msrb.mxu2 %v547_v33  ;;  %v7484_v33 = vld [vmem:[%s9298_s12] ss:$0 sm:$0xff]  ;;  %s6336_s12 = sshll.u32 %s9269_s24, 4  ;;  %s7259_s24 = smov [#allocation16]   ;;  %s6337_s12 = int_to_ptr.hbm [resolvable:$true] %s6336_s12 }
  0xc5   :  { %v289_v48 = vpop.f32.mrf.mxu2  ;;  %s6356_s1 = sshll.u32 %s7259_s24, 4  ;;  %s6357_s1 = int_to_ptr.vmem [resolvable:$true] %s6356_s1 }
  0xc6   :  { %v280_v39 = vpop.f32.mrf.mxu0 }
  0xcb   :  { %6396 = vmatmul.msk.f32.gmra.mxu1 %vm295_vm3, %v6383_v35  ;;  %v549_v35 = vld [vmem:[#allocation5 + $0x118] sm:$0xff] }
  0xcd   :  { %v292_v51 = vpop.f32.mrf.mxu2 }
  0xce   :  { %v283_v42 = vpop.f32.mrf.mxu0 }
  0xd3   :  { %6397 = vmatmul.msk.f32.gmra.mxu1 %vm295_vm3, %v6384_v25 }
  0xd6   :  { %v286_v45 = vpop.f32.mrf.mxu0 }
  0xdb   :  { %6398 = vmatmul.msk.f32.gmra.mxu1 %vm295_vm3, %v6385_v29  ;;  %v555_v29 = vld [vmem:[#allocation5 + $0x148] sm:$0xff] }
  0xdc   :  { %642 = vmatpush.msrb.mxu0 %v555_v29  ;;  %v7478_v29 = vld [vmem:[%s9297_s7] ss:$0 sm:$0xff] }
  0xde   :  { %643 = vmatpush.msrb.mxu0 %v552_v32 }
  0xe0   :  { %644 = vmatpush.msrb.mxu0 %v549_v35 }
 0x130   :  { %v331_v37 = vpop.f32.mrf.mxu1 }
 0x131   :  { %v332_v38 = vadd.f32 %v331_v37, %v277_v36  ;;  %v544_v36 = vld [vmem:[#allocation5 + $0xf0] sm:$0xff]  ;;  %v545_v37 = vld [vmem:[#allocation5 + $0xf8] sm:$0xff] }
 0x132   :  { %575 = vmatpush.msrb.mxu2 %v544_v36  ;;  %610 = vmatpush.msra.mxu3 %v545_v37 }
 0x133   :  { %351 = vadd.xlane.f32.xlu0 %v332_v38 }
 0x138   :  { %v334_v40 = vpop.f32.mrf.mxu1 }
 0x139   :  { %v335_v41 = vadd.f32 %v334_v40, %v280_v39  ;;  %v541_v39 = vld [vmem:[#allocation5 + $0xd8] sm:$0xff]  ;;  %v542_v40 = vld [vmem:[#allocation5 + $0xe0] sm:$0xff] }
 0x13a   :  { %576 = vmatpush.msrb.mxu2 %v541_v39  ;;  %611 = vmatpush.msra.mxu3 %v542_v40 }
 0x13b   :  { %353 = vadd.xlane.f32.xlu1 %v335_v41 }
 0x140   :  { %v337_v43 = vpop.f32.mrf.mxu1 }
 0x141   :  { %v338_v44 = vadd.f32 %v337_v43, %v283_v42  ;;  %v538_v42 = vld [vmem:[#allocation5 + $0xc0] sm:$0xff]  ;;  %v539_v43 = vld [vmem:[#allocation5 + $0xc8] sm:$0xff] }
 0x142   :  { %577 = vmatpush.msrb.mxu2 %v538_v42  ;;  %612 = vmatpush.msra.mxu3 %v539_v43 }
 0x143   :  { %355 = vadd.xlane.f32.xlu2 %v338_v44 }
 0x148   :  { %v340_v46 = vpop.f32.mrf.mxu1 }
 0x149   :  { %v341_v47 = vadd.f32 %v340_v46, %v286_v45  ;;  %v535_v45 = vld [vmem:[#allocation5 + $0xa8] sm:$0xff]  ;;  %v536_v46 = vld [vmem:[#allocation5 + $0xb0] sm:$0xff] }
 0x14a   :  { %578 = vmatpush.msrb.mxu2 %v535_v45  ;;  %613 = vmatpush.msra.mxu3 %v536_v46 }
 0x14b   :  { %357 = vadd.xlane.f32.xlu2 %v341_v47 }
 0x150   :  { %v343_v49 = vpop.f32.mrf.mxu1 }
 0x151   :  { %v344_v50 = vadd.f32 %v343_v49, %v289_v48  ;;  %v532_v48 = vld [vmem:[#allocation5 + $0x90] sm:$0xff]  ;;  %v533_v49 = vld [vmem:[#allocation5 + $0x98] sm:$0xff] }
 0x152   :  { %579 = vmatpush.msrb.mxu2 %v532_v48  ;;  %614 = vmatpush.msra.mxu3 %v533_v49 }
 0x153   :  { %359 = vadd.xlane.f32.xlu0 %v344_v50 }
 0x158   :  { %v346_v52 = vpop.f32.mrf.mxu1 }
 0x159   :  { %v347_v53 = vadd.f32 %v346_v52, %v292_v51  ;;  %v529_v51 = vld [vmem:[#allocation5 + $0x78] sm:$0xff]  ;;  %v530_v52 = vld [vmem:[#allocation5 + $0x80] sm:$0xff] }
 0x15a   :  { %580 = vmatpush.msrb.mxu2 %v529_v51  ;;  %615 = vmatpush.msra.mxu3 %v530_v52 }
 0x15b   :  { %361 = vadd.xlane.f32.xlu1 %v347_v53 }
 0x15c   :  { %581 = vmatpush.msrb.mxu2 %v526_v54  ;;  %616 = vmatpush.msra.mxu3 %v527_v55 }
 0x15e   :  { %582 = vmatpush.msrb.mxu2 %v523_v57  ;;  %617 = vmatpush.msra.mxu3 %v524_v58 }
 0x1a6   :  { %v352_v61 = vpop.xlane.xlu0 %351 }
 0x1a7   :  { %v370_v62 = vmul.f32 %v7440_v60, %v352_v61  ;;  %v520_v61 = vld [vmem:[#allocation5 + $0x30] sm:$0xff] }
 0x1a8   :  { %583 = vmatpush.msrb.mxu2 %v520_v61 }
 0x1a9   :  { %v7443_v63 = vsub.f32 %v332_v38, %v370_v62  ;;  %v546_v38 = vld [vmem:[#allocation5 + $0x100] sm:$0xff]  ;;  %v521_v62 = vld [vmem:[#allocation5 + $0x38] sm:$0xff] }
 0x1aa   :  { %645 = vmatpush.msrb.mxu0 %v546_v38  ;;  %618 = vmatpush.msra.mxu3 %v521_v62 }
 0x1ab   :  { %v382_v0 = vmul.f32 %v7443_v63, %v7443_v63 }
 0x1ad   :  { %388 = vadd.xlane.f32.xlu2 %v382_v0  ;;  %v522_v0 = vld [vmem:[#allocation5 + $0x40] sm:$0xff] }
 0x1ae   :  { %v354_v1 = vpop.xlane.xlu1 %353 }
 0x1af   :  { %v371_v2 = vmul.f32 %v7440_v60, %v354_v1  ;;  %v517_v1 = vld [vmem:[#allocation5 + $0x18] sm:$0xff] }
 0x1b0   :  { %584 = vmatpush.msrb.mxu2 %v517_v1 }
 0x1b1   :  { %v7448_v3 = vsub.f32 %v335_v41, %v371_v2  ;;  %v543_v41 = vld [vmem:[#allocation5 + $0xe8] sm:$0xff]  ;;  %v518_v2 = vld [vmem:[#allocation5 + $0x20] sm:$0xff] }
 0x1b2   :  { %646 = vmatpush.msrb.mxu0 %v543_v41  ;;  %619 = vmatpush.msra.mxu3 %v518_v2 }
 0x1b3   :  { %v383_v4 = vmul.f32 %v7448_v3, %v7448_v3  ;;  %585 = vmatpush.msrb.mxu2 %v514_v5 }
 0x1b4   :  { %620 = vmatpush.msra.mxu3 %v515_v6 }
 0x1b5   :  { %390 = vadd.xlane.f32.xlu0 %v383_v4  ;;  %v519_v4 = vld [vmem:[#allocation5 + $0x28] sm:$0xff] }
 0x1b6   :  { %v356_v8 = vpop.xlane.xlu2 %355 }
 0x1b7   :  { %v372_v12 = vmul.f32 %v7440_v60, %v356_v8 }
 0x1b9   :  { %v7453_v13 = vsub.f32 %v338_v44, %v372_v12  ;;  %v540_v44 = vld [vmem:[#allocation5 + $0xd0] sm:$0xff] }
 0x1ba   :  { %647 = vmatpush.msrb.mxu0 %v540_v44 }
 0x1bb   :  { %v384_v14 = vmul.f32 %v7453_v13, %v7453_v13 }
 0x1bd   :  { %392 = vadd.xlane.f32.xlu1 %v384_v14 }
 0x1be   :  { %v358_v15 = vpop.xlane.xlu2 %357 }
 0x1bf   :  { %v373_v16 = vmul.f32 %v7440_v60, %v358_v15 }
 0x1c1   :  { %v7458_v17 = vsub.f32 %v341_v47, %v373_v16  ;;  %v537_v47 = vld [vmem:[#allocation5 + $0xb8] sm:$0xff] }
 0x1c2   :  { %648 = vmatpush.msrb.mxu0 %v537_v47 }
 0x1c3   :  { %v385_v18 = vmul.f32 %v7458_v17, %v7458_v17 }
 0x1c5   :  { %394 = vadd.xlane.f32.xlu2 %v385_v18 }
 0x1c6   :  { %v360_v19 = vpop.xlane.xlu0 %359 }
 0x1c7   :  { %v374_v20 = vmul.f32 %v7440_v60, %v360_v19 }
 0x1c9   :  { %v7463_v21 = vsub.f32 %v344_v50, %v374_v20  ;;  %v534_v50 = vld [vmem:[#allocation5 + $0xa0] sm:$0xff] }
 0x1ca   :  { %649 = vmatpush.msrb.mxu0 %v534_v50 }
 0x1cb   :  { %v386_v22 = vmul.f32 %v7463_v21, %v7463_v21 }
 0x1cd   :  { %396 = vadd.xlane.f32.xlu0 %v386_v22 }
 0x1ce   :  { %v362_v23 = vpop.xlane.xlu1 %361 }
 0x1cf   :  { %v375_v24 = vmul.f32 %v7440_v60, %v362_v23 }
 0x1d1   :  { %v7468_v25 = vsub.f32 %v347_v53, %v375_v24  ;;  %v531_v53 = vld [vmem:[#allocation5 + $0x88] sm:$0xff] }
 0x1d2   :  { %650 = vmatpush.msrb.mxu0 %v531_v53 }
 0x1d3   :  { %v387_v26 = vmul.f32 %v7468_v25, %v7468_v25 }
 0x1d4   :  { %651 = vmatpush.msrb.mxu0 %v528_v56 }
 0x1d5   :  { %398 = vadd.xlane.f32.xlu1 %v387_v26 }
 0x1d6   :  { %652 = vmatpush.msrb.mxu0 %v525_v59 }
 0x1d8   :  { %653 = vmatpush.msrb.mxu0 %v522_v0 }
 0x1da   :  { %654 = vmatpush.msrb.mxu0 %v519_v4 }
 0x1dc   :  { %655 = vmatpush.msrb.mxu0 %v516_v7 }
 0x220   :  { %v389_v8 = vpop.xlane.xlu2 %388 }
 0x221   :  { %v400_v9 = vmul.f32 %v389_v8, %v7440_v60 }
 0x223   :  { %v406_v10 = vadd.f32 1e-05, %v400_v9 }
 0x225   :  { %6708 = vrsqrt.f32 %v406_v10  ;;  %vm418_vm11 = vweird.f32 %v406_v10 }
 0x228   :  { %v391_v11 = vpop.xlane.xlu0 %390 }
 0x229   :  { %v401_v12 = vmul.f32 %v391_v11, %v7440_v60 }
 0x22b   :  { %v6709_v14 = vpop.eup %6708  ;;  %v407_v15 = vadd.f32 1e-05, %v401_v12 }
 0x22c   :  { %v413_v16 = vmul.f32 %v6709_v14, %v406_v10  ;;  %vm419_vm10 = vweird.f32 %v6709_v14 }
 0x22d   :  { %6710 = vrsqrt.f32 %v407_v15  ;;  %vm420_vm12 = vmor %vm418_vm11, %vm419_vm10  ;;  %vm428_vm14 = vweird.f32 %v407_v15 }
 0x22e   :  { %v414_v18 = vmul.f32 %v6709_v14, %v413_v16 }
 0x230   :  { %v415_v19 = vmul.f32 0.5, %v414_v18  ;;  %v393_v20 = vpop.xlane.xlu1 %392 }
 0x231   :  { %v402_v22 = vmul.f32 %v393_v20, %v7440_v60 }
 0x232   :  { %v416_v23 = vsub.f32 1.5, %v415_v19 }
 0x233   :  { %v6711_v24 = vpop.eup %6710  ;;  %v408_v26 = vadd.f32 1e-05, %v402_v22 }
 0x234   :  { %v417_v27 = vmul.f32 %v6709_v14, %v416_v23  ;;  %v423_v28 = vmul.f32 %v6711_v24, %v407_v15  ;;  %vm429_vm13 = vweird.f32 %v6711_v24 }
 0x235   :  { %6712 = vrsqrt.f32 %v408_v26  ;;  %vm430_vm15 = vmor %vm428_vm14, %vm429_vm13  ;;  %vm438_vm1 = vweird.f32 %v408_v26  ;;  %vm675_vm13 = vcmask 261120   ;;  %vm856_vm14 = vcmask 64512  }
 0x236   :  { %v421_v30 = vsel %vm420_vm12, %v6709_v14, %v417_v27  ;;  %v424_v31 = vmul.f32 %v6711_v24, %v423_v28 }
 0x237   :  { %v472_v32 = vmul.f32 %v421_v30, %v7443_v63 }
 0x238   :  { %v425_v34 = vmul.f32 0.5, %v424_v31  ;;  %v395_v35 = vpop.xlane.xlu2 %394 }
 0x239   :  { %v403_v36 = vmul.f32 %v395_v35, %v7440_v60  ;;  %v481_v37 = vmul.f32 %v7478_v29, %v472_v32  ;;  %v562_v32 = vld [vmem:[%s9256_s11] sm:$0x7] }
 0x23a   :  { %v426_v38 = vsub.f32 1.5, %v425_v34  ;;  %v7539_v34 = vperm.slane %v562_v32, 0  ;;  %v7541_v35 = vperm.slane %v562_v32, 1 }
 0x23b   :  { %v6713_v39 = vpop.eup %6712  ;;  %v409_v40 = vadd.f32 1e-05, %v403_v36  ;;  %v7489_v41 = vadd.f32 %v7484_v33, %v481_v37 }
 0x23c   :  { %v427_v42 = vmul.f32 %v6711_v24, %v426_v38  ;;  %v433_v63 = vmul.f32 %v6713_v39, %v408_v26  ;;  %vm439_vm0 = vweird.f32 %v6713_v39 }
 0x23d   :  { %6714 = vrsqrt.f32 %v409_v40  ;;  %586 = vmatmul.f32.vlgmr.msrb.gmra.mxu2 %v7489_v41  ;;  %621 = vmatmul.f32.vlgmr.msra.gmra.mxu3 %v7489_v41  ;;  %vm440_vm2 = vmor %vm438_vm1, %vm439_vm0  ;;  %vm448_vm5 = vweird.f32 %v409_v40 }
 0x23e   :  { %v431_v43 = vsel %vm430_vm15, %v6711_v24, %v427_v42  ;;  %v434_v44 = vmul.f32 %v6713_v39, %v433_v63  ;;  %656 = vmatmul.f32.vlgmr.msrb.gmra.mxu0 %v7489_v41 }
 0x23f   :  { %v473_v45 = vmul.f32 %v431_v43, %v7448_v3 }
 0x240   :  { %v435_v46 = vmul.f32 0.5, %v434_v44  ;;  %v397_v47 = vpop.xlane.xlu0 %396 }
 0x241   :  { %v404_v48 = vmul.f32 %v397_v47, %v7440_v60  ;;  %v482_v49 = vmul.f32 %v7478_v29, %v473_v45 }
 0x242   :  { %v436_v50 = vsub.f32 1.5, %v435_v46 }
 0x243   :  { %v6715_v51 = vpop.eup %6714  ;;  %v410_v52 = vadd.f32 1e-05, %v404_v48  ;;  %v7498_v53 = vadd.f32 %v7484_v33, %v482_v49 }
 0x244   :  { %v437_v54 = vmul.f32 %v6713_v39, %v436_v50  ;;  %v443_v55 = vmul.f32 %v6715_v51, %v409_v40  ;;  %vm449_vm4 = vweird.f32 %v6715_v51 }
 0x245   :  { %6716 = vrsqrt.f32 %v410_v52  ;;  %589 = vmatmul.f32.gmra.mxu2 %v7498_v53  ;;  %624 = vmatmul.f32.gmra.mxu3 %v7498_v53  ;;  %vm450_vm6 = vmor %vm448_vm5, %vm449_vm4  ;;  %vm458_vm8 = vweird.f32 %v410_v52 }
 0x246   :  { %v441_v3 = vsel %vm440_vm2, %v6713_v39, %v437_v54  ;;  %v444_v56 = vmul.f32 %v6715_v51, %v443_v55  ;;  %659 = vmatmul.f32.gmra.mxu0 %v7498_v53 }
 0x247   :  { %v474_v57 = vmul.f32 %v441_v3, %v7453_v13 }
 0x248   :  { %v445_v58 = vmul.f32 0.5, %v444_v56  ;;  %v399_v59 = vpop.xlane.xlu1 %398 }
 0x249   :  { %v405_v61 = vmul.f32 %v399_v59, %v7440_v60  ;;  %v483_v62 = vmul.f32 %v7478_v29, %v474_v57 }
 0x24a   :  { %v446_v0 = vsub.f32 1.5, %v445_v58 }
 0x24b   :  { %v6717_v1 = vpop.eup %6716  ;;  %v411_v2 = vadd.f32 1e-05, %v405_v61  ;;  %v7507_v4 = vadd.f32 %v7484_v33, %v483_v62 }
 0x24c   :  { %v447_v5 = vmul.f32 %v6715_v51, %v446_v0  ;;  %v453_v6 = vmul.f32 %v6717_v1, %v410_v52  ;;  %vm459_vm7 = vweird.f32 %v6717_v1 }
 0x24d   :  { %6718 = vrsqrt.f32 %v411_v2  ;;  %592 = vmatmul.f32.gmra.mxu2 %v7507_v4  ;;  %627 = vmatmul.f32.gmra.mxu3 %v7507_v4  ;;  %vm460_vm9 = vmor %vm458_vm8, %vm459_vm7  ;;  %vm468_vm11 = vweird.f32 %v411_v2 }
 0x24e   :  { %v451_v13 = vsel %vm450_vm6, %v6715_v51, %v447_v5  ;;  %v454_v7 = vmul.f32 %v6717_v1, %v453_v6  ;;  %662 = vmatmul.f32.gmra.mxu0 %v7507_v4 }
 0x24f   :  { %v475_v8 = vmul.f32 %v451_v13, %v7458_v17 }
 0x250   :  { %v455_v9 = vmul.f32 0.5, %v454_v7 }
 0x251   :  { %v484_v10 = vmul.f32 %v7478_v29, %v475_v8 }
 0x252   :  { %v456_v11 = vsub.f32 1.5, %v455_v9 }
 0x253   :  { %v6719_v12 = vpop.eup %6718  ;;  %v7515_v14 = vadd.f32 %v7484_v33, %v484_v10 }
 0x254   :  { %v457_v15 = vmul.f32 %v6717_v1, %v456_v11  ;;  %v463_v16 = vmul.f32 %v6719_v12, %v411_v2  ;;  %vm469_vm10 = vweird.f32 %v6719_v12 }
 0x255   :  { %595 = vmatmul.f32.gmra.mxu2 %v7515_v14  ;;  %630 = vmatmul.f32.gmra.mxu3 %v7515_v14  ;;  %vm470_vm12 = vmor %vm468_vm11, %vm469_vm10 }
 0x256   :  { %v461_v18 = vsel %vm460_vm9, %v6717_v1, %v457_v15  ;;  %v464_v19 = vmul.f32 %v6719_v12, %v463_v16  ;;  %665 = vmatmul.f32.gmra.mxu0 %v7515_v14  ;;  %v496_v16 = vld [vmem:[%s9301_s16] sm:$0x3]  ;;  %s9322_s16 = sld [smem:[#allocation37_spill]] }
 0x257   :  { %v476_v17 = vmul.f32 %v461_v18, %v7463_v21  ;;  %v497_v18 = vcvt.s32.f32 %v496_v16 }
 0x258   :  { %v465_v20 = vmul.f32 0.5, %v464_v19 }
 0x259   :  { %v485_v22 = vmul.f32 %v7478_v29, %v476_v17  ;;  %v498_v19 = vsub.f32 1.0, %v497_v18 }
 0x25a   :  { %v466_v23 = vsub.f32 1.5, %v465_v20  ;;  %v502_v20 = vld [vmem:[%s9302_s28] sm:$0x3] }
 0x25b   :  { %v7523_v24 = vadd.f32 %v7484_v33, %v485_v22  ;;  %v499_v17 = vmul.f32 -1e+09, %v498_v19 }
 0x25c   :  { %v467_v26 = vmul.f32 %v6719_v12, %v466_v23  ;;  %v503_v23 = vcvt.s32.f32 %v502_v20  ;;  %s6347_s6 = sshll.u32 %s9322_s16, 4  ;;  %s6348_s6 = int_to_ptr.hbm [resolvable:$true] %s6347_s6 }
 0x25d   :  { %9299 = vst [vmem:[#allocation24_spill] sm:$0xff] %v7523_v24  ;;  %598 = vmatmul.f32.gmra.mxu2 %v7523_v24  ;;  %633 = vmatmul.f32.gmra.mxu3 %v7523_v24  ;;  %v501_v22 = vrot.slane %v499_v17, 1 }
 0x25e   :  { %v471_v27 = vsel %vm470_vm12, %v6719_v12, %v467_v26  ;;  %668 = vmatmul.f32.gmra.mxu0 %v7523_v24  ;;  %v7650_v26 = vperm.slane %v499_v17, 0 }
 0x25f   :  { %v477_v21 = vmul.f32 %v471_v27, %v7468_v25  ;;  %v566_v25 = vperm.slane %v562_v32, 2 }
 0x261   :  { %v486_v28 = vmul.f32 %v7478_v29, %v477_v21 }
 0x263   :  { %v7531_v30 = vadd.f32 %v7484_v33, %v486_v28  ;;  %v7652_v28 = vperm.slane %v501_v22, 0 }
 0x265   :  { %9300 = vst [vmem:[#allocation25_spill] sm:$0xff] %v7531_v30  ;;  %601 = vmatmul.f32.gmra.mxu2 %v7531_v30  ;;  %636 = vmatmul.f32.gmra.mxu3 %v7531_v30 }
 0x266   :  { %671 = vmatmul.f32.gmra.mxu0 %v7531_v30 }
 0x2bb   :  { %v657_v31 = vpop.f32.mrf.mxu0 }
 0x2bc   :  { %v7553_v39 = vadd.f32 %v657_v31, %v566_v25  ;;  %v504_v31 = vsub.f32 1.0, %v503_v23 }
 0x2c0   :  { %v587_v29 = vpop.f32.mrf.mxu2  ;;  %v622_v36 = vpop.f32.mrf.mxu3 }
 0x2c1   :  { %v7544_v33 = vadd.f32 %v587_v29, %v7539_v34  ;;  %v7547_v37 = vadd.f32 %v622_v36, %v7541_v35  ;;  %v505_v36 = vmul.f32 -1e+09, %v504_v31 }
 0x2c3   :  { %v660_v38 = vpop.f32.mrf.mxu0  ;;  %1141 = vrot.lane.b32.xlu2 %v7547_v37, %s7254_s22  ;;  %6399 = vmatpush.xpose.msk.msrb.mxu3 %vm675_vm13, %v7547_v37 }
 0x2c4   :  { %v7555_v40 = vadd.f32 %v660_v38, %v566_v25  ;;  %1139 = vrot.lane.b32.xlu0 %v7544_v33, %s7254_s22 }
 0x2c6   :  { %6400 = vmatmul.msk.f32.vlgmr.msrb.gmra.mxu3 %vm675_vm13, %v7544_v33 }
 0x2c8   :  { %v590_v63 = vpop.f32.mrf.mxu2  ;;  %v625_v43 = vpop.f32.mrf.mxu3 }
 0x2c9   :  { %v7564_v44 = vadd.f32 %v590_v63, %v7539_v34  ;;  %v7567_v45 = vadd.f32 %v625_v43, %v7541_v35  ;;  %v7658_v63 = vperm.slane %v505_v36, 0 }
 0x2cb   :  { %v663_v46 = vpop.f32.mrf.mxu0  ;;  %1169 = vrot.lane.b32.xlu1 %v7567_v45, %s7254_s22  ;;  %6401 = vmatpush.xpose.msk.msrb.mxu1 %vm675_vm13, %v7567_v45 }
 0x2cc   :  { %v7573_v47 = vadd.f32 %v663_v46, %v566_v25  ;;  %1167 = vrot.lane.b32.xlu2 %v7564_v44, %s7254_s22 }
 0x2ce   :  { %6402 = vmatmul.msk.f32.vlgmr.msrb.gmra.mxu1 %vm675_vm13, %v7564_v44  ;;  %v6597_v48 = vpack.i.bf16 %v7573_v47, %v7555_v40 }
 0x2d0   :  { %v593_v50 = vpop.f32.mrf.mxu2  ;;  %v628_v51 = vpop.f32.mrf.mxu3 }
 0x2d1   :  { %v7584_v52 = vadd.f32 %v628_v51, %v7541_v35  ;;  %v7589_v55 = vadd.f32 %v593_v50, %v7539_v34  ;;  %v508_v51 = vld [vmem:[%s9303_s2] sm:$0x3] }
 0x2d3   :  { %v666_v54 = vpop.f32.mrf.mxu0  ;;  %6403 = vmatpush.xpose.msk.msra.mxu1 %vm675_vm13, %v7584_v52 }
 0x2d4   :  { %v7591_v3 = vadd.f32 %v666_v54, %v566_v25 }
 0x2d6   :  { %6404 = vmatmul.msk.f32.vlgmr.msra.gmra.mxu1 %vm675_vm13, %v7589_v55 }
 0x2d8   :  { %v596_v58 = vpop.f32.mrf.mxu2  ;;  %v631_v59 = vpop.f32.mrf.mxu3 }
 0x2d9   :  { %v7600_v61 = vadd.f32 %v631_v59, %v7541_v35  ;;  %v7605_v0 = vadd.f32 %v596_v58, %v7539_v34  ;;  %v509_v58 = vcvt.s32.f32 %v508_v51  ;;  %v507_v59 = vrot.slane %v505_v36, 1 }
 0x2db   :  { %v669_v62 = vpop.f32.mrf.mxu0  ;;  %6405 = vmatpush.xpose.msk.msra.mxu2 %vm675_vm13, %v7600_v61 }
 0x2dc   :  { %v7626_v8 = vadd.f32 %v669_v62, %v566_v25  ;;  %v510_v62 = vsub.f32 1.0, %v509_v58 }
 0x2de   :  { %6406 = vmatmul.msk.f32.vlgmr.msra.gmra.mxu2 %vm675_vm13, %v7605_v0 }
 0x2df   :  { %1019 = vmatpush.msrb.mxu2 %v7553_v39 }
 0x2e0   :  { %v599_v1 = vpop.f32.mrf.mxu2  ;;  %v634_v2 = vpop.f32.mrf.mxu3 }
 0x2e1   :  { %1088 = vmatpush.msra.mxu2 %v7591_v3  ;;  %v7612_v5 = vadd.f32 %v599_v1, %v7539_v34  ;;  %v7615_v6 = vadd.f32 %v634_v2, %v7541_v35  ;;  %v7665_v1 = vperm.slane %v507_v59, 0 }
 0x2e3   :  { %v672_v13 = vpop.f32.mrf.mxu0  ;;  %1253 = vrot.lane.b32.xlu0 %v7615_v6, %s7254_s22  ;;  %6407 = vmatpush.xpose.msk.msra.mxu3 %vm675_vm13, %v7615_v6 }
 0x2e4   :  { %v7621_v7 = vadd.f32 %v672_v13, %v566_v25  ;;  %1251 = vrot.lane.b32.xlu1 %v7612_v5, %s7254_s22 }
 0x2e6   :  { %1134 = vmatpush.msra.mxu0 %v7621_v7  ;;  %6408 = vmatmul.msk.f32.vlgmr.msra.gmra.mxu3 %vm675_vm13, %v7612_v5 }
 0x2e7   :  { %1042 = vmatpush.msrb.mxu3 %v7555_v40 }
 0x2e8   :  { %v637_v9 = vpop.f32.mrf.mxu3  ;;  %v602_v10 = vpop.f32.mrf.mxu2 }
 0x2e9   :  { %1111 = vmatpush.msra.mxu3 %v7626_v8  ;;  %v7633_v11 = vadd.f32 %v637_v9, %v7541_v35  ;;  %v7638_v12 = vadd.f32 %v602_v10, %v7539_v34  ;;  %v511_v9 = vmul.f32 -1e+09, %v510_v62 }
 0x2eb   :  { %6409 = vmatpush.xpose.msk.msrb.mxu1 %vm675_vm13, %v7633_v11  ;;  %v513_v16 = vrot.slane %v511_v9, 1  ;;  %v7669_v18 = vperm.slane %v511_v9, 0 }
 0x2ed   :  { %v7671_v20 = vperm.slane %v513_v16, 0 }
 0x2ee   :  { %6410 = vmatmul.msk.f32.vlgmr.msrb.gmra.mxu1 %vm675_vm13, %v7638_v12 }
 0x2ef   :  { %1065 = vmatpush.msra.mxu1 %v7573_v47 }
 0x31d   :  { %v1142_v15 = vpop.permute.xlu2 %1141 }
 0x31e   :  { %6417 = vmatpush.xpose.msk.msrb.mxu1 %vm675_vm13, %v1142_v15 }
 0x336   :  { %v7687_v36 = vpop.permute.xlu0 %1139 }
 0x349   :  { %v699_v27 = vpop.f32.mrf.mxu3 }
 0x34a   :  { %v832_v21 = vmul.f32 0.17677669, %v699_v27 }
 0x34b   :  { %v725_v32 = vpop.f32.mrf.mxu1 }
 0x34c   :  { %v833_v34 = vmul.f32 0.17677669, %v725_v32  ;;  %v850_v35 = vadd.f32 %v7650_v26, %v832_v21 }
 0x34e   :  { %v857_v25 = vsel %vm856_vm14, %v850_v35, -inf  ;;  %v851_v29 = vadd.f32 %v7652_v28, %v833_v34  ;;  %v7683_v34 = vpop.permute.xlu1 %1169 }
 0x34f   :  { %858 = vmax.xlane.f32.xlu2 %v857_v25  ;;  %v7685_v25 = vpop.permute.xlu2 %1167 }
 0x350   :  { %v860_v38 = vsel %vm856_vm14, %v851_v29, -inf }
 0x351   :  { %861 = vmax.xlane.f32.xlu1 %v860_v38 }
 0x353   :  { %v751_v43 = vpop.f32.mrf.mxu1 }
 0x354   :  { %v834_v46 = vmul.f32 0.17677669, %v751_v43 }
 0x355   :  { %v7691_v51 = vpop.permute.xlu0 %1253 }
 0x356   :  { %v852_v50 = vadd.f32 %v7658_v63, %v834_v46  ;;  %v7689_v38 = vpop.permute.xlu1 %1251 }
 0x358   :  { %v863_v54 = vsel %vm856_vm14, %v852_v50, -inf }
 0x359   :  { %864 = vmax.xlane.f32.xlu0 %v863_v54 }
 0x361   :  { %v777_v2 = vpop.f32.mrf.mxu2 }
 0x362   :  { %v835_v13 = vmul.f32 0.17677669, %v777_v2 }
 0x364   :  { %v853_v10 = vadd.f32 %v7665_v1, %v835_v13 }
 0x366   :  { %v866_v15 = vsel %vm856_vm14, %v853_v10, -inf }
 0x367   :  { %867 = vmax.xlane.f32.xlu2 %v866_v15 }
 0x369   :  { %v803_v19 = vpop.f32.mrf.mxu3 }
 0x36a   :  { %v836_v17 = vmul.f32 0.17677669, %v803_v19 }
 0x36b   :  { %v829_v22 = vpop.f32.mrf.mxu1 }
 0x36c   :  { %v837_v23 = vmul.f32 0.17677669, %v829_v22  ;;  %v854_v27 = vadd.f32 %v7669_v18, %v836_v17 }
 0x36e   :  { %v869_v21 = vsel %vm856_vm14, %v854_v27, -inf  ;;  %v855_v31 = vadd.f32 %v7671_v20, %v837_v23 }
 0x36f   :  { %870 = vmax.xlane.f32.xlu0 %v869_v21 }
 0x370   :  { %v872_v32 = vsel %vm856_vm14, %v855_v31, -inf }
 0x371   :  { %873 = vmax.xlane.f32.xlu1 %v872_v32 }
 0x37f   :  { %1281 = vrot.lane.b32.xlu2 %v7633_v11, %s7254_s22 }
 0x383   :  { %1197 = vrot.lane.b32.xlu0 %v7584_v52, %s7254_s22 }
 0x38a   :  { %1195 = vrot.lane.b32.xlu1 %v7589_v55, %s7254_s22 }
 0x3c2   :  { %v859_v43 = vpop.xlane.xlu2 %858 }
 0x3c3   :  { %v875_v46 = vsub.f32 %v850_v35, %v859_v43 }
 0x3c4   :  { %v862_v54 = vpop.xlane.xlu1 %861 }
 0x3c5   :  { %v881_v58 = vmul.f32 1.442695, %v875_v46  ;;  %v876_v59 = vsub.f32 %v851_v29, %v862_v54 }
 0x3c7   :  { %6720 = vpow2.f32 %v881_v58  ;;  %v883_v62 = vmul.f32 1.442695, %v876_v59 }
 0x3c9   :  { %6722 = vpow2.f32 %v883_v62 }
 0x3cc   :  { %v865_v2 = vpop.xlane.xlu0 %864 }
 0x3cd   :  { %v7693_v13 = vpop.eup %6720  ;;  %v877_v9 = vsub.f32 %v852_v50, %v865_v2 }
 0x3ce   :  { %v893_v15 = vsel %vm856_vm14, %v7693_v13, 0.0 }
 0x3cf   :  { %v7697_v16 = vpop.eup %6722  ;;  %v885_v19 = vmul.f32 1.442695, %v877_v9  ;;  %894 = vadd.xlane.f32.xlu2 %v893_v15 }
 0x3d0   :  { %v896_v35 = vsel %vm856_vm14, %v7697_v16, 0.0 }
 0x3d1   :  { %6724 = vpow2.f32 %v885_v19  ;;  %897 = vadd.xlane.f32.xlu1 %v896_v35 }
 0x3d7   :  { %v7701_v29 = vpop.eup %6724 }
 0x3d8   :  { %v899_v17 = vsel %vm856_vm14, %v7701_v29, 0.0 }
 0x3d9   :  { %900 = vadd.xlane.f32.xlu0 %v899_v17 }
 0x3da   :  { %v868_v22 = vpop.xlane.xlu2 %867 }
 0x3db   :  { %v878_v50 = vsub.f32 %v853_v10, %v868_v22 }
 0x3dd   :  { %v887_v23 = vmul.f32 1.442695, %v878_v50 }
 0x3df   :  { %6726 = vpow2.f32 %v887_v23 }
 0x3e2   :  { %v871_v21 = vpop.xlane.xlu0 %870  ;;  %v7734_v15 = vpop.permute.xlu2 %1281 }
 0x3e3   :  { %v879_v32 = vsub.f32 %v854_v27, %v871_v21 }
 0x3e4   :  { %v874_v43 = vpop.xlane.xlu1 %873 }
 0x3e5   :  { %v7705_v46 = vpop.eup %6726  ;;  %v889_v54 = vmul.f32 1.442695, %v879_v32  ;;  %v880_v58 = vsub.f32 %v855_v31, %v874_v43  ;;  %v6592_v31 = vpack.i.bf16 %v7626_v8, %v7553_v39 }
 0x3e6   :  { %v902_v59 = vsel %vm856_vm14, %v7705_v46, 0.0 }
 0x3e7   :  { %6728 = vpow2.f32 %v889_v54  ;;  %v891_v62 = vmul.f32 1.442695, %v880_v58  ;;  %903 = vadd.xlane.f32.xlu2 %v902_v59 }
 0x3e9   :  { %6730 = vpow2.f32 %v891_v62 }
 0x3ed   :  { %v7709_v2 = vpop.eup %6728 }
 0x3ee   :  { %v905_v10 = vsel %vm856_vm14, %v7709_v2, 0.0 }
 0x3ef   :  { %v7713_v9 = vpop.eup %6730  ;;  %906 = vadd.xlane.f32.xlu0 %v905_v10 }
 0x3f0   :  { %v908_v27 = vsel %vm856_vm14, %v7713_v9, 0.0 }
 0x3f1   :  { %909 = vadd.xlane.f32.xlu1 %v908_v27 }
 0x3f5   :  { %v1198_v17 = vpop.permute.xlu0 %1197 }
 0x3fc   :  { %v7736_v19 = vpop.permute.xlu1 %1195 }
 0x3ff   :  { %1225 = vrot.lane.b32.xlu2 %v7600_v61, %s7254_s22 }
 0x403   :  { %1279 = vrot.lane.b32.xlu0 %v7638_v12, %s7254_s22 }
 0x407   :  { %1683 = vrot.lane.b32.xlu2 %v7584_v52, %s7255_s5 }
 0x40a   :  { %1223 = vrot.lane.b32.xlu1 %v7605_v0, %s7254_s22 }
 0x40b   :  { %6593 = vrot.lane.b32.xlu0 %v6592_v31, %s7254_s22 }
 0x412   :  { %6598 = vrot.lane.b32.xlu1 %v6597_v48, %s7254_s22 }
 0x413   :  { %1681 = vrot.lane.b32.xlu0 %v7589_v55, %s7255_s5 }
 0x442   :  { %v895_v35 = vpop.xlane.xlu2 %894 }
 0x443   :  { %6732 = vrcp.f32 %v895_v35  ;;  %v922_v58 = vand.u32 2147483648, %v895_v35  ;;  %v920_v59 = vand.u32 2147483647, %v895_v35  ;;  %vm916_vm0 = vweird.f32 %v895_v35 }
 0x444   :  { %v898_v22 = vpop.xlane.xlu1 %897 }
 0x445   :  { %6734 = vrcp.f32 %v898_v22  ;;  %v937_v10 = vand.u32 2147483648, %v898_v22  ;;  %v935_v57 = vand.u32 2147483647, %v898_v22  ;;  %v923_v42 = vor.u32 1.1754944e-38, %v922_v58 }
 0x446   :  { %vm921_vm4 = vcmp.eq.f32.partialorder %v920_v59, 8.507059e+37  ;;  %vm931_vm5 = vweird.f32 %v898_v22 }
 0x447   :  { %v938_v60 = vor.u32 1.1754944e-38, %v937_v10  ;;  %vm936_vm7 = vcmp.eq.f32.partialorder %v935_v57, 8.507059e+37 }
 0x449   :  { %v6733_v50 = vpop.eup %6732 }
 0x44a   :  { %v912_v23 = vmul.f32 %v6733_v50, %v895_v35  ;;  %vm917_vm15 = vweird.f32 %v6733_v50 }
 0x44b   :  { %v6735_v21 = vpop.eup %6734  ;;  %vm918_vm2 = vmor %vm916_vm0, %vm917_vm15 }
 0x44c   :  { %v913_v32 = vsub.f32 1.0, %v912_v23  ;;  %v927_v43 = vmul.f32 %v6735_v21, %v898_v22  ;;  %v901_v54 = vpop.xlane.xlu0 %900  ;;  %vm932_vm1 = vweird.f32 %v6735_v21 }
 0x44d   :  { %6736 = vrcp.f32 %v901_v54  ;;  %vm933_vm6 = vmor %vm931_vm5, %vm932_vm1  ;;  %v952_v58 = vand.u32 2147483648, %v901_v54  ;;  %vm946_vm9 = vweird.f32 %v901_v54 }
 0x44e   :  { %v914_v48 = vmul.f32 %v6733_v50, %v913_v32  ;;  %v928_v62 = vsub.f32 1.0, %v927_v43 }
 0x450   :  { %v915_v27 = vadd.f32 %v6733_v50, %v914_v48  ;;  %v929_v31 = vmul.f32 %v6735_v21, %v928_v62 }
 0x452   :  { %v919_v56 = vsel %vm918_vm2, %v6733_v50, %v915_v27  ;;  %v930_v49 = vadd.f32 %v6735_v21, %v929_v31  ;;  %v950_v50 = vand.u32 2147483647, %v901_v54 }
 0x453   :  { %v6737_v23 = vpop.eup %6736  ;;  %v924_v30 = vsel %vm921_vm4, %v923_v42, %v919_v56 }
 0x454   :  { %v934_v32 = vsel %vm933_vm6, %v6735_v21, %v930_v49  ;;  %v942_v24 = vmul.f32 %v6737_v23, %v901_v54  ;;  %v925_v35 = vmul.f32 %v7693_v13, %v924_v30  ;;  %vm947_vm8 = vweird.f32 %v6737_v23 }
 0x455   :  { %v939_v43 = vsel %vm936_vm7, %v938_v60, %v934_v32  ;;  %vm948_vm10 = vmor %vm946_vm9, %vm947_vm8  ;;  %v953_v60 = vor.u32 1.1754944e-38, %v952_v58  ;;  %vm951_vm11 = vcmp.eq.f32.partialorder %v950_v50, 8.507059e+37 }
 0x456   :  { %v943_v48 = vsub.f32 1.0, %v942_v24  ;;  %6411 = vmatmul.msk.f32.vlgmr.msrb.gmra.mxu2 %vm856_vm14, %v925_v35  ;;  %v940_v62 = vmul.f32 %v7697_v16, %v939_v43 }
 0x457   :  { %6419 = vmatpush.xpose.msk.msrb.mxu2 %vm675_vm13, %v7683_v34 }
 0x458   :  { %v944_v22 = vmul.f32 %v6737_v23, %v943_v48  ;;  %6412 = vmatmul.msk.f32.vlgmr.msrb.gmra.mxu3 %vm856_vm14, %v940_v62 }
 0x459   :  { %6421 = vmatpush.xpose.msk.msrb.mxu3 %vm675_vm13, %v1198_v17 }
 0x45a   :  { %v945_v42 = vadd.f32 %v6737_v23, %v944_v22  ;;  %v904_v30 = vpop.xlane.xlu2 %903 }
 0x45b   :  { %6738 = vrcp.f32 %v904_v30  ;;  %v967_v54 = vand.u32 2147483648, %v904_v30  ;;  %v965_v10 = vand.u32 2147483647, %v904_v30  ;;  %vm961_vm15 = vweird.f32 %v904_v30 }
 0x45c   :  { %v949_v24 = vsel %vm948_vm10, %v6737_v23, %v945_v42 }
 0x45d   :  { %v954_v49 = vsel %vm951_vm11, %v953_v60, %v949_v24  ;;  %vm966_vm1 = vcmp.eq.f32.partialorder %v965_v10, 8.507059e+37 }
 0x45e   :  { %v955_v56 = vmul.f32 %v7701_v29, %v954_v49 }
 0x460   :  { %6413 = vmatmul.msk.f32.vlgmr.msra.gmra.mxu1 %vm856_vm14, %v955_v56 }
 0x461   :  { %v6739_v57 = vpop.eup %6738  ;;  %6425 = vmatpush.xpose.msk.msra.mxu1 %vm675_vm13, %v7691_v51  ;;  %v968_v51 = vor.u32 1.1754944e-38, %v967_v54 }
 0x462   :  { %v957_v34 = vmul.f32 %v6739_v57, %v904_v30  ;;  %v1226_v13 = vpop.permute.xlu2 %1225  ;;  %v907_v16 = vpop.xlane.xlu0 %906  ;;  %vm962_vm12 = vweird.f32 %v6739_v57 }
 0x463   :  { %6740 = vrcp.f32 %v907_v16  ;;  %6423 = vmatpush.xpose.msk.msrb.mxu0 %vm675_vm13, %v1226_v13  ;;  %vm963_vm0 = vmor %vm961_vm15, %vm962_vm12  ;;  %v982_v58 = vand.u32 2147483648, %v907_v16  ;;  %v980_v50 = vand.u32 2147483647, %v907_v16  ;;  %vm976_vm4 = vweird.f32 %v907_v16 }
 0x464   :  { %v958_v17 = vsub.f32 1.0, %v957_v34  ;;  %v910_v21 = vpop.xlane.xlu1 %909 }
 0x465   :  { %6742 = vrcp.f32 %v910_v21  ;;  %v995_v24 = vand.u32 2147483647, %v910_v21  ;;  %vm981_vm7 = vcmp.eq.f32.partialorder %v980_v50, 8.507059e+37  ;;  %vm991_vm8 = vweird.f32 %v910_v21 }
 0x466   :  { %v959_v59 = vmul.f32 %v6739_v57, %v958_v17 }
 0x467   :  { %vm996_vm10 = vcmp.eq.f32.partialorder %v995_v24, 8.507059e+37 }
 0x468   :  { %v960_v29 = vadd.f32 %v6739_v57, %v959_v59  ;;  %6418 = vmatmul.msk.f32.vlgmr.msrb.gmra.mxu1 %vm675_vm13, %v7687_v36  ;;  %v997_v36 = vand.u32 2147483648, %v910_v21 }
 0x469   :  { %v6741_v27 = vpop.eup %6740 }
 0x46a   :  { %v964_v31 = vsel %vm963_vm0, %v6739_v57, %v960_v29  ;;  %v972_v23 = vmul.f32 %v6741_v27, %v907_v16  ;;  %vm977_vm2 = vweird.f32 %v6741_v27  ;;  %v998_v57 = vor.u32 1.1754944e-38, %v997_v36 }
 0x46b   :  { %v6743_v32 = vpop.eup %6742  ;;  %v969_v35 = vsel %vm966_vm1, %v968_v51, %v964_v31  ;;  %vm978_vm6 = vmor %vm976_vm4, %vm977_vm2 }
 0x46c   :  { %v973_v43 = vsub.f32 1.0, %v972_v23  ;;  %v987_v48 = vmul.f32 %v6743_v32, %v910_v21  ;;  %v970_v62 = vmul.f32 %v7705_v46, %v969_v35  ;;  %vm992_vm5 = vweird.f32 %v6743_v32 }
 0x46d   :  { %v983_v46 = vor.u32 1.1754944e-38, %v982_v58  ;;  %vm993_vm9 = vmor %vm991_vm8, %vm992_vm5 }
 0x46e   :  { %v974_v22 = vmul.f32 %v6741_v27, %v973_v43  ;;  %v988_v42 = vsub.f32 1.0, %v987_v48  ;;  %6414 = vmatmul.msk.f32.vlgmr.msra.gmra.mxu2 %vm856_vm14, %v970_v62 }
 0x46f   :  { %6427 = vmatpush.xpose.msk.msra.mxu2 %vm675_vm13, %v7734_v15 }
 0x470   :  { %v975_v30 = vadd.f32 %v6741_v27, %v974_v22  ;;  %v989_v60 = vmul.f32 %v6743_v32, %v988_v42  ;;  %6426 = vmatmul.msk.f32.vlgmr.msra.gmra.mxu1 %vm675_vm13, %v7689_v38 }
 0x472   :  { %v979_v49 = vsel %vm978_vm6, %v6741_v27, %v975_v30  ;;  %v990_v56 = vadd.f32 %v6743_v32, %v989_v60 }
 0x473   :  { %v984_v34 = vsel %vm981_vm7, %v983_v46, %v979_v49 }
 0x474   :  { %v994_v13 = vsel %vm993_vm9, %v6743_v32, %v990_v56  ;;  %v985_v15 = vmul.f32 %v7709_v2, %v984_v34 }
 0x475   :  { %v1280_v16 = vpop.permute.xlu0 %1279  ;;  %v999_v17 = vsel %vm996_vm10, %v998_v57, %v994_v13 }
 0x476   :  { %6415 = vmatmul.msk.f32.vlgmr.msra.gmra.mxu3 %vm856_vm14, %v985_v15  ;;  %6420 = vmatmul.msk.f32.vlgmr.msrb.gmra.mxu2 %vm675_vm13, %v7685_v25  ;;  %v1000_v38 = vmul.f32 %v7713_v9, %v999_v17 }
 0x478   :  { %6416 = vmatmul.msk.f32.vlgmr.msra.gmra.mxu0 %vm856_vm14, %v1000_v38 }
 0x47c   :  { %v1224_v54 = vpop.permute.xlu1 %1223 }
 0x47d   :  { %v6594_v21 = vpop.permute.xlu0 %6593 }
 0x47e   :  { %v6596_v59 = vunpack.i.h.bf16 %v6594_v21  ;;  %v6595_v10 = vunpack.i.l.bf16 %v6594_v21  ;;  %6422 = vmatmul.msk.f32.vlgmr.msrb.gmra.mxu3 %vm675_vm13, %v7736_v19  ;;  %6428 = vmatmul.msk.f32.vlgmr.msra.gmra.mxu2 %vm675_vm13, %v1280_v16  ;;  %v6602_v21 = vpack.i.bf16 %v7591_v3, %v7621_v7 }
 0x480   :  { %6424 = vmatmul.msk.f32.vlgmr.msrb.gmra.mxu0 %vm675_vm13, %v1224_v54  ;;  %1485 = vmatpush.msra.mxu3 %v6595_v10  ;;  %v7805_v10 = vpop.permute.xlu2 %1683 }
 0x482   :  { %1593 = vmatpush.msrb.mxu3 %v6596_v59 }
 0x484   :  { %v6599_v2 = vpop.permute.xlu1 %6598 }
 0x485   :  { %v6601_v29 = vunpack.i.h.bf16 %v6599_v2  ;;  %v6600_v25 = vunpack.i.l.bf16 %v6599_v2  ;;  %v7803_v59 = vpop.permute.xlu0 %1681 }
 0x487   :  { %1512 = vmatpush.msra.mxu0 %v6600_v25  ;;  %1539 = vmatpush.msrb.mxu1 %v6601_v29 }
 0x4d9   :  { %v7771_v23 = vpop.f32.mrf.mxu2 }
 0x4db   :  { %v7775_v48 = vpop.f32.mrf.mxu3 }
 0x4dd   :  { %v7768_v9 = vpop.f32.mrf.mxu1 }
 0x4e5   :  { %v1164_v27 = vpop.f32.mrf.mxu1 }
 0x4e6   :  { %v1307_v51 = vmul.f32 0.17677669, %v1164_v27 }
 0x4e8   :  { %v1313_v31 = vadd.f32 %v1307_v51, %v7650_v26 }
 0x4ea   :  { %v1319_v19 = vsel %vm856_vm14, %v1313_v31, -inf }
 0x4eb   :  { %1320 = vmax.xlane.f32.xlu0 %v1319_v19 }
 0x4ed   :  { %v1276_v32 = vpop.f32.mrf.mxu1 }
 0x4ee   :  { %v1311_v35 = vmul.f32 0.17677669, %v1276_v32 }
 0x4f0   :  { %v1317_v43 = vadd.f32 %v1311_v35, %v7669_v18 }
 0x4f1   :  { %v7777_v62 = vpop.f32.mrf.mxu2 }
 0x4f2   :  { %v1331_v58 = vsel %vm856_vm14, %v1317_v43, -inf }
 0x4f3   :  { %1332 = vmax.xlane.f32.xlu2 %v1331_v58 }
 0x4f5   :  { %v7780_v22 = vpop.f32.mrf.mxu0 }
 0x4f9   :  { %v7782_v50 = vpop.f32.mrf.mxu3  ;;  %v1192_v42 = vpop.f32.mrf.mxu2 }
 0x4fa   :  { %v1308_v36 = vmul.f32 0.17677669, %v1192_v42 }
 0x4fc   :  { %v1314_v30 = vadd.f32 %v1308_v36, %v7652_v28 }
 0x4fd   :  { %v1248_v60 = vpop.f32.mrf.mxu0 }
 0x4fe   :  { %v1310_v24 = vmul.f32 0.17677669, %v1248_v60  ;;  %v1322_v46 = vsel %vm856_vm14, %v1314_v30, -inf }
 0x4ff   :  { %1323 = vmax.xlane.f32.xlu1 %v1322_v46 }
 0x500   :  { %v1316_v13 = vadd.f32 %v1310_v24, %v7665_v1 }
 0x501   :  { %v1220_v49 = vpop.f32.mrf.mxu3  ;;  %v1304_v56 = vpop.f32.mrf.mxu2 }
 0x502   :  { %v1309_v57 = vmul.f32 0.17677669, %v1220_v49  ;;  %v1312_v34 = vmul.f32 0.17677669, %v1304_v56  ;;  %v1328_v17 = vsel %vm856_vm14, %v1316_v13, -inf }
 0x504   :  { %v1315_v15 = vadd.f32 %v1309_v57, %v7658_v63  ;;  %v1318_v16 = vadd.f32 %v1312_v34, %v7671_v20 }
 0x506   :  { %v1325_v38 = vsel %vm856_vm14, %v1315_v15, -inf  ;;  %v1334_v54 = vsel %vm856_vm14, %v1318_v16, -inf }
 0x507   :  { %1329 = vmax.xlane.f32.xlu1 %v1328_v17  ;;  %1326 = vmax.xlane.f32.xlu0 %v1325_v38 }
 0x508   :  { %1335 = vmax.xlane.f32.xlu2 %v1334_v54 }
 0x51b   :  { %6603 = vrot.lane.b32.xlu0 %v6602_v21, %s7254_s22 }
 0x520   :  { %1655 = vrot.lane.b32.xlu2 %v7567_v45, %s7255_s5  ;;  %1711 = vrot.lane.b32.xlu1 %v7600_v61, %s7255_s5 }
 0x528   :  { %1653 = vrot.lane.b32.xlu2 %v7564_v44, %s7255_s5  ;;  %1709 = vrot.lane.b32.xlu1 %v7605_v0, %s7255_s5 }
 0x55e   :  { %v1321_v2 = vpop.xlane.xlu0 %1320 }
 0x55f   :  { %v1337_v29 = vsub.f32 %v1313_v31, %v1321_v2 }
 0x561   :  { %v1343_v25 = vmul.f32 1.442695, %v1337_v29 }
 0x563   :  { %6744 = vpow2.f32 %v1343_v25 }
 0x566   :  { %v1333_v27 = vpop.xlane.xlu2 %1332 }
 0x567   :  { %v1341_v51 = vsub.f32 %v1317_v43, %v1333_v27 }
 0x569   :  { %v7807_v19 = vpop.eup %6744  ;;  %v1351_v32 = vmul.f32 1.442695, %v1341_v51 }
 0x56a   :  { %v1355_v35 = vsel %vm856_vm14, %v7807_v19, 0.0 }
 0x56b   :  { %6746 = vpow2.f32 %v1351_v32  ;;  %1356 = vadd.xlane.f32.xlu0 %v1355_v35  ;;  %v9304_v35 = vpack.i.bf16 %v7553_v39, %v7573_v47 }
 0x571   :  { %v7811_v58 = vpop.eup %6746 }
 0x572   :  { %v1324_v42 = vpop.xlane.xlu1 %1323  ;;  %v1367_v36 = vsel %vm856_vm14, %v7811_v58, 0.0 }
 0x573   :  { %v1338_v60 = vsub.f32 %v1314_v30, %v1324_v42  ;;  %1368 = vadd.xlane.f32.xlu2 %v1367_v36  ;;  %v9305_v42 = vpack.i.bf16 %v7555_v40, %v7591_v3 }
 0x575   :  { %v1345_v31 = vmul.f32 1.442695, %v1338_v60 }
 0x577   :  { %6748 = vpow2.f32 %v1345_v31 }
 0x57a   :  { %v1330_v24 = vpop.xlane.xlu1 %1329  ;;  %v1327_v43 = vpop.xlane.xlu0 %1326 }
 0x57b   :  { %v1340_v46 = vsub.f32 %v1316_v13, %v1330_v24  ;;  %v1336_v49 = vpop.xlane.xlu2 %1335  ;;  %v1339_v17 = vsub.f32 %v1315_v15, %v1327_v43 }
 0x57c   :  { %v1342_v56 = vsub.f32 %v1318_v16, %v1336_v49 }
 0x57d   :  { %v7815_v57 = vpop.eup %6748  ;;  %v1349_v34 = vmul.f32 1.442695, %v1340_v46  ;;  %v1347_v30 = vmul.f32 1.442695, %v1339_v17 }
 0x57e   :  { %v1353_v38 = vmul.f32 1.442695, %v1342_v56  ;;  %v1358_v54 = vsel %vm856_vm14, %v7815_v57, 0.0 }
 0x57f   :  { %6750 = vpow2.f32 %v1349_v34  ;;  %1359 = vadd.xlane.f32.xlu1 %v1358_v54  ;;  %1627 = vrot.lane.b32.xlu0 %v7547_v37, %s7255_s5 }
 0x580   :  { %6752 = vpow2.f32 %v1353_v38 }
 0x581   :  { %6754 = vpow2.f32 %v1347_v30 }
 0x583   :  { %v1656_v32 = vpop.permute.xlu2 %1655 }
 0x585   :  { %v7821_v21 = vpop.eup %6750 }
 0x586   :  { %v7823_v13 = vpop.eup %6752  ;;  %v1364_v16 = vsel %vm856_vm14, %v7821_v21, 0.0 }
 0x587   :  { %1365 = vadd.xlane.f32.xlu2 %v1364_v16  ;;  %v1370_v15 = vsel %vm856_vm14, %v7823_v13, 0.0  ;;  %1625 = vrot.lane.b32.xlu0 %v7544_v33, %s7255_s5  ;;  %v7831_v2 = vpop.eup %6754 }
 0x588   :  { %1371 = vadd.xlane.f32.xlu1 %v1370_v15  ;;  %v1361_v51 = vsel %vm856_vm14, %v7831_v2, 0.0 }
 0x58d   :  { %v6604_v29 = vpop.permute.xlu0 %6603 }
 0x58e   :  { %v6606_v25 = vunpack.i.h.bf16 %v6604_v29  ;;  %v6605_v27 = vunpack.i.l.bf16 %v6604_v29 }
 0x58f   :  { %1739 = vrot.lane.b32.xlu0 %v7615_v6, %s7255_s5  ;;  %1362 = vadd.xlane.f32.xlu2 %v1361_v51 }
 0x590   :  { %1566 = vmatpush.msrb.mxu2 %v6606_v25  ;;  %1620 = vmatpush.msrb.mxu0 %v6605_v27 }
 0x592   :  { %6437 = vmatpush.xpose.msk.msra.mxu2 %vm675_vm13, %v1656_v32  ;;  %v7864_v60 = vpop.permute.xlu1 %1711 }
 0x597   :  { %1765 = vrot.lane.b32.xlu0 %v7638_v12, %s7255_s5 }
 0x59a   :  { %v7866_v49 = vpop.permute.xlu1 %1709 }
 0x59f   :  { %6608 = vrot.lane.b32.xlu0 %v9304_v35, %s7255_s5 }
 0x5a1   :  { %1767 = vrot.lane.b32.xlu1 %v7633_v11, %s7255_s5 }
 0x5a7   :  { %2105 = vrot.lane.b32.xlu0 %v7544_v33, %s7256_s9  ;;  %1737 = vrot.lane.b32.xlu2 %v7612_v5, %s7255_s5  ;;  %v7862_v33 = vpop.permute.xlu2 %1653 }
 0x5a9   :  { %6613 = vrot.lane.b32.xlu1 %v9305_v42, %s7255_s5 }
 0x5af   :  { %2135 = vrot.lane.b32.xlu0 %v7567_v45, %s7256_s9  ;;  %2107 = vrot.lane.b32.xlu2 %v7547_v37, %s7256_s9 }
 0x5b1   :  { %2133 = vrot.lane.b32.xlu1 %v7564_v44, %s7256_s9 }
 0x5b7   :  { %2053 = vrot.lane.b32.xlu2 %v7626_v8, %s7255_s5 }
 0x5de   :  { %v1357_v36 = vpop.xlane.xlu0 %1356 }
 0x5df   :  { %6756 = vrcp.f32 %v1357_v36  ;;  %v1384_v46 = vand.u32 2147483648, %v1357_v36  ;;  %v1382_v44 = vand.u32 2147483647, %v1357_v36  ;;  %vm1378_vm12 = vweird.f32 %v1357_v36 }
 0x5e1   :  { %v1385_v17 = vor.u32 1.1754944e-38, %v1384_v46  ;;  %vm1383_vm0 = vcmp.eq.f32.partialorder %v1382_v44, 8.507059e+37 }
 0x5e5   :  { %v6757_v31 = vpop.eup %6756 }
 0x5e6   :  { %v1374_v24 = vmul.f32 %v6757_v31, %v1357_v36  ;;  %v1369_v43 = vpop.xlane.xlu2 %1368  ;;  %vm1379_vm11 = vweird.f32 %v6757_v31 }
 0x5e7   :  { %6758 = vrcp.f32 %v1369_v43  ;;  %vm1380_vm15 = vmor %vm1378_vm12, %vm1379_vm11  ;;  %v1444_v29 = vand.u32 2147483648, %v1369_v43  ;;  %v1442_v51 = vand.u32 2147483647, %v1369_v43  ;;  %vm1438_vm2 = vweird.f32 %v1369_v43 }
 0x5e8   :  { %v1375_v45 = vsub.f32 1.0, %v1374_v24 }
 0x5e9   :  { %v1445_v42 = vor.u32 1.1754944e-38, %v1444_v29  ;;  %vm1443_vm5 = vcmp.eq.f32.partialorder %v1442_v51, 8.507059e+37 }
 0x5ea   :  { %v1376_v37 = vmul.f32 %v6757_v31, %v1375_v45 }
 0x5ec   :  { %v1377_v56 = vadd.f32 %v6757_v31, %v1376_v37 }
 0x5ed   :  { %v6759_v34 = vpop.eup %6758 }
 0x5ee   :  { %v1381_v38 = vsel %vm1380_vm15, %v6757_v31, %v1377_v56  ;;  %v1434_v54 = vmul.f32 %v6759_v34, %v1369_v43  ;;  %vm1439_vm1 = vweird.f32 %v6759_v34 }
 0x5ef   :  { %v1386_v30 = vsel %vm1383_vm0, %v1385_v17, %v1381_v38  ;;  %vm1440_vm4 = vmor %vm1438_vm2, %vm1439_vm1 }
 0x5f0   :  { %v1435_v16 = vsub.f32 1.0, %v1434_v54  ;;  %v1387_v15 = vmul.f32 %v7807_v19, %v1386_v30 }
 0x5f1   :  { %v1628_v25 = vpop.permute.xlu0 %1627 }
 0x5f2   :  { %v1436_v27 = vmul.f32 %v6759_v34, %v1435_v16  ;;  %v1360_v32 = vpop.xlane.xlu1 %1359  ;;  %6429 = vmatmul.msk.f32.vlgmr.msra.gmra.mxu3 %vm856_vm14, %v1387_v15  ;;  %6435 = vmatpush.xpose.msk.msra.mxu1 %vm675_vm13, %v1628_v25 }
 0x5f3   :  { %6760 = vrcp.f32 %v1360_v32  ;;  %6439 = vmatpush.xpose.msk.msra.mxu3 %vm675_vm13, %v7805_v10  ;;  %v1399_v43 = vand.u32 2147483648, %v1360_v32  ;;  %v1397_v17 = vand.u32 2147483647, %v1360_v32  ;;  %vm1393_vm7 = vweird.f32 %v1360_v32 }
 0x5f4   :  { %v1437_v35 = vadd.f32 %v6759_v34, %v1436_v27 }
 0x5f5   :  { %v1400_v16 = vor.u32 1.1754944e-38, %v1399_v43  ;;  %vm1398_vm9 = vcmp.eq.f32.partialorder %v1397_v17, 8.507059e+37 }
 0x5f6   :  { %v1441_v36 = vsel %vm1440_vm4, %v6759_v34, %v1437_v35 }
 0x5f7   :  { %v1446_v19 = vsel %vm1443_vm5, %v1445_v42, %v1441_v36 }
 0x5f8   :  { %v1447_v31 = vmul.f32 %v7811_v58, %v1446_v19 }
 0x5f9   :  { %v6761_v24 = vpop.eup %6760  ;;  %v7874_v45 = vpop.permute.xlu0 %1625 }
 0x5fa   :  { %v1389_v46 = vmul.f32 %v6761_v24, %v1360_v32  ;;  %v1366_v37 = vpop.xlane.xlu2 %1365  ;;  %6433 = vmatmul.msk.f32.vlgmr.msrb.gmra.mxu3 %vm856_vm14, %v1447_v31  ;;  %vm1394_vm6 = vweird.f32 %v6761_v24 }
 0x5fb   :  { %v1372_v44 = vpop.xlane.xlu1 %1371  ;;  %6762 = vrcp.f32 %v1366_v37  ;;  %vm1395_vm8 = vmor %vm1393_vm7, %vm1394_vm6  ;;  %v1429_v42 = vand.u32 2147483648, %v1366_v37  ;;  %v1427_v31 = vand.u32 2147483647, %v1366_v37  ;;  %vm1423_vm12 = vweird.f32 %v1366_v37 }
 0x5fc   :  { %v1390_v56 = vsub.f32 1.0, %v1389_v46  ;;  %6764 = vrcp.f32 %v1372_v44  ;;  %v1459_v36 = vand.u32 2147483648, %v1372_v44  ;;  %v1457_v46 = vand.u32 2147483647, %v1372_v44 }
 0x5fd   :  { %vm1453_vm15 = vweird.f32 %v1372_v44  ;;  %v1430_v43 = vor.u32 1.1754944e-38, %v1429_v42  ;;  %vm1428_vm2 = vcmp.eq.f32.partialorder %v1427_v31, 8.507059e+37 }
 0x5fe   :  { %v1391_v10 = vmul.f32 %v6761_v24, %v1390_v56  ;;  %v1460_v17 = vor.u32 1.1754944e-38, %v1459_v36  ;;  %vm1458_vm4 = vcmp.eq.f32.partialorder %v1457_v46, 8.507059e+37 }
 0x600   :  { %v1392_v34 = vadd.f32 %v6761_v24, %v1391_v10 }
 0x601   :  { %v6763_v38 = vpop.eup %6762  ;;  %v7877_v58 = vpop.permute.xlu0 %1739 }
 0x602   :  { %v6765_v54 = vpop.eup %6764  ;;  %v1396_v30 = vsel %vm1395_vm8, %v6761_v24, %v1392_v34  ;;  %v1419_v15 = vmul.f32 %v6763_v38, %v1366_v37  ;;  %v1363_v29 = vpop.xlane.xlu2 %1362  ;;  %6440 = vmatmul.msk.f32.vlgmr.msra.gmra.mxu3 %vm675_vm13, %v7803_v59  ;;  %vm1424_vm10 = vweird.f32 %v6763_v38 }
 0x603   :  { %v1449_v25 = vmul.f32 %v6765_v54, %v1372_v44  ;;  %6766 = vrcp.f32 %v1363_v29  ;;  %v1401_v51 = vsel %vm1398_vm9, %v1400_v16, %v1396_v30  ;;  %vm1454_vm11 = vweird.f32 %v6765_v54  ;;  %vm1425_vm0 = vmor %vm1423_vm12, %vm1424_vm10 }
 0x604   :  { %v1420_v27 = vsub.f32 1.0, %v1419_v15  ;;  %v1402_v32 = vmul.f32 %v7815_v57, %v1401_v51  ;;  %vm1455_vm1 = vmor %vm1453_vm15, %vm1454_vm11  ;;  %v1412_v42 = vand.u32 2147483647, %v1363_v29  ;;  %vm1408_vm6 = vweird.f32 %v1363_v29 }
 0x605   :  { %v1450_v35 = vsub.f32 1.0, %v1449_v25 }
 0x606   :  { %v1421_v19 = vmul.f32 %v6763_v38, %v1420_v27  ;;  %6430 = vmatmul.msk.f32.vlgmr.msra.gmra.mxu0 %vm856_vm14, %v1402_v32  ;;  %vm1413_vm8 = vcmp.eq.f32.partialorder %v1412_v42, 8.507059e+37 }
 0x607   :  { %v1451_v24 = vmul.f32 %v6765_v54, %v1450_v35  ;;  %6441 = vmatpush.xpose.msk.msra.mxu0 %vm675_vm13, %v7864_v60  ;;  %v1414_v60 = vand.u32 2147483648, %v1363_v29 }
 0x608   :  { %v1422_v56 = vadd.f32 %v6763_v38, %v1421_v19 }
 0x609   :  { %v6767_v59 = vpop.eup %6766  ;;  %v1452_v10 = vadd.f32 %v6765_v54, %v1451_v24  ;;  %v1766_v57 = vpop.permute.xlu0 %1765 }
 0x60a   :  { %v1426_v34 = vsel %vm1425_vm0, %v6763_v38, %v1422_v56  ;;  %v1404_v30 = vmul.f32 %v6767_v59, %v1363_v29  ;;  %v1738_v16 = vpop.permute.xlu2 %1737  ;;  %vm1409_vm5 = vweird.f32 %v6767_v59 }
 0x60b   :  { %v1456_v15 = vsel %vm1455_vm1, %v6765_v54, %v1452_v10  ;;  %v1431_v25 = vsel %vm1428_vm2, %v1430_v43, %v1426_v34  ;;  %vm1410_vm7 = vmor %vm1408_vm6, %vm1409_vm5  ;;  %v1415_v54 = vor.u32 1.1754944e-38, %v1414_v60 }
 0x60c   :  { %v1405_v27 = vsub.f32 1.0, %v1404_v30  ;;  %v1432_v37 = vmul.f32 %v7821_v21, %v1431_v25  ;;  %v1461_v51 = vsel %vm1458_vm4, %v1460_v17, %v1456_v15 }
 0x60d   :  { %v1462_v35 = vmul.f32 %v7823_v13, %v1461_v51 }
 0x60e   :  { %v1406_v44 = vmul.f32 %v6767_v59, %v1405_v27  ;;  %6432 = vmatmul.msk.f32.vlgmr.msrb.gmra.mxu2 %vm856_vm14, %v1432_v37 }
 0x60f   :  { %6434 = vmatmul.msk.f32.vlgmr.msrb.gmra.mxu0 %vm856_vm14, %v1462_v35 }
 0x610   :  { %v1407_v38 = vadd.f32 %v6767_v59, %v1406_v44 }
 0x611   :  { %v6609_v32 = vpop.permute.xlu0 %6608 }
 0x612   :  { %v1411_v36 = vsel %vm1410_vm7, %v6767_v59, %v1407_v38  ;;  %v6611_v19 = vunpack.i.h.bf16 %v6609_v32  ;;  %v2108_v21 = vpop.permute.xlu2 %2107  ;;  %v6610_v43 = vunpack.i.l.bf16 %v6609_v32 }
 0x613   :  { %v1768_v31 = vpop.permute.xlu1 %1767  ;;  %v1416_v24 = vsel %vm1413_vm8, %v1415_v54, %v1411_v36 }
 0x614   :  { %6445 = vmatpush.xpose.msk.msrb.mxu2 %vm675_vm13, %v1768_v31  ;;  %1970 = vmatpush.msrb.mxu3 %v6611_v19  ;;  %v1417_v13 = vmul.f32 %v7831_v2, %v1416_v24 }
 0x616   :  { %6431 = vmatmul.msk.f32.vlgmr.msrb.gmra.mxu1 %vm856_vm14, %v1417_v13  ;;  %6438 = vmatmul.msk.f32.vlgmr.msra.gmra.mxu2 %vm675_vm13, %v7862_v33 }
 0x617   :  { %6442 = vmatmul.msk.f32.vlgmr.msra.gmra.mxu0 %vm675_vm13, %v7866_v49  ;;  %6443 = vmatpush.xpose.msk.msrb.mxu1 %vm675_vm13, %v7877_v58 }
 0x619   :  { %v7898_v29 = vpop.permute.xlu0 %2105 }
 0x61a   :  { %v2054_v46 = vpop.permute.xlu2 %2053 }
 0x61b   :  { %v6614_v56 = vpop.permute.xlu1 %6613  ;;  %2074 = vmatpush.msra.mxu3 %v2054_v46 }
 0x61c   :  { %v6616_v59 = vunpack.i.h.bf16 %v6614_v56  ;;  %v6615_v10 = vunpack.i.l.bf16 %v6614_v56 }
 0x61e   :  { %1996 = vmatpush.msrb.mxu0 %v6616_v59  ;;  %2048 = vmatpush.msra.mxu2 %v6615_v10 }
 0x61f   :  { %6436 = vmatmul.msk.f32.vlgmr.msra.gmra.mxu1 %vm675_vm13, %v7874_v45  ;;  %6446 = vmatmul.msk.f32.vlgmr.msrb.gmra.mxu2 %vm675_vm13, %v1766_v57 }
 0x620   :  { %2022 = vmatpush.msra.mxu1 %v6610_v43 }
 0x621   :  { %v2136_v2 = vpop.permute.xlu0 %2135 }
 0x622   :  { %6455 = vmatpush.xpose.msk.msrb.mxu2 %vm675_vm13, %v2136_v2 }
 0x623   :  { %v7936_v10 = vpop.permute.xlu1 %2133 }
 0x627   :  { %6444 = vmatmul.msk.f32.vlgmr.msrb.gmra.mxu1 %vm675_vm13, %v1738_v16 }
 0x628   :  { %6453 = vmatpush.xpose.msk.msrb.mxu1 %vm675_vm13, %v2108_v21 }
 0x675   :  { %v7906_v33 = vpop.f32.mrf.mxu3 }
 0x67d   :  { %v7908_v49 = vpop.f32.mrf.mxu3 }
 0x683   :  { %v7910_v58 = vpop.f32.mrf.mxu0 }
 0x685   :  { %v1706_v17 = vpop.f32.mrf.mxu3 }
 0x686   :  { %v1795_v34 = vmul.f32 0.17677669, %v1706_v17 }
 0x688   :  { %v1801_v45 = vadd.f32 %v1795_v34, %v7658_v63 }
 0x68a   :  { %v1811_v57 = vsel %vm856_vm14, %v1801_v45, -inf }
 0x68b   :  { %1812 = vmax.xlane.f32.xlu1 %v1811_v57 }
 0x68c   :  { %v7914_v30 = vpop.f32.mrf.mxu0 }
 0x691   :  { %v7916_v15 = vpop.f32.mrf.mxu2 }
 0x693   :  { %v7918_v16 = vpop.f32.mrf.mxu1 }
 0x694   :  { %v1734_v25 = vpop.f32.mrf.mxu0 }
 0x695   :  { %v1796_v27 = vmul.f32 0.17677669, %v1734_v25 }
 0x697   :  { %v1802_v37 = vadd.f32 %v1796_v27, %v7665_v1 }
 0x699   :  { %v1678_v51 = vpop.f32.mrf.mxu2  ;;  %v1814_v60 = vsel %vm856_vm14, %v1802_v37, -inf }
 0x69a   :  { %v1794_v35 = vmul.f32 0.17677669, %v1678_v51  ;;  %1815 = vmax.xlane.f32.xlu0 %v1814_v60 }
 0x69c   :  { %v1650_v44 = vpop.f32.mrf.mxu1  ;;  %v1800_v42 = vadd.f32 %v1794_v35, %v7652_v28 }
 0x69d   :  { %v1793_v38 = vmul.f32 0.17677669, %v1650_v44 }
 0x69e   :  { %v1808_v54 = vsel %vm856_vm14, %v1800_v42, -inf }
 0x69f   :  { %1809 = vmax.xlane.f32.xlu1 %v1808_v54  ;;  %v1799_v32 = vadd.f32 %v1793_v38, %v7650_v26 }
 0x6a1   :  { %v1805_v36 = vsel %vm856_vm14, %v1799_v32, -inf }
 0x6a2   :  { %1806 = vmax.xlane.f32.xlu2 %v1805_v36  ;;  %v1790_v19 = vpop.f32.mrf.mxu2 }
 0x6a3   :  { %v1798_v21 = vmul.f32 0.17677669, %v1790_v19 }
 0x6a4   :  { %v1762_v31 = vpop.f32.mrf.mxu1 }
 0x6a5   :  { %v1797_v24 = vmul.f32 0.17677669, %v1762_v31  ;;  %v1804_v13 = vadd.f32 %v1798_v21, %v7671_v20 }
 0x6a7   :  { %v1820_v46 = vsel %vm856_vm14, %v1804_v13, -inf  ;;  %v1803_v56 = vadd.f32 %v1797_v24, %v7669_v18 }
 0x6a8   :  { %1821 = vmax.xlane.f32.xlu0 %v1820_v46 }
 0x6a9   :  { %v1817_v59 = vsel %vm856_vm14, %v1803_v56, -inf }
 0x6aa   :  { %1818 = vmax.xlane.f32.xlu2 %v1817_v59 }
 0x6b8   :  { %2161 = vrot.lane.b32.xlu1 %v7589_v55, %s7256_s9 }
 0x6bc   :  { %2163 = vrot.lane.b32.xlu0 %v7584_v52, %s7256_s9 }
 0x6c2   :  { %2079 = vrot.lane.b32.xlu2 %v7621_v7, %s7255_s5 }
 0x6fe   :  { %v1813_v43 = vpop.xlane.xlu1 %1812 }
 0x6ff   :  { %v1825_v2 = vsub.f32 %v1801_v45, %v1813_v43 }
 0x701   :  { %v1833_v17 = vmul.f32 1.442695, %v1825_v2 }
 0x703   :  { %6768 = vpow2.f32 %v1833_v17 }
 0x709   :  { %v7938_v34 = vpop.eup %6768 }
 0x70a   :  { %v1847_v57 = vsel %vm856_vm14, %v7938_v34, 0.0 }
 0x70b   :  { %1848 = vadd.xlane.f32.xlu1 %v1847_v57 }
 0x70d   :  { %v1816_v25 = vpop.xlane.xlu0 %1815 }
 0x70e   :  { %v1826_v55 = vsub.f32 %v1802_v37, %v1816_v25 }
 0x710   :  { %v1835_v27 = vmul.f32 1.442695, %v1826_v55 }
 0x712   :  { %6770 = vpow2.f32 %v1835_v27  ;;  %v1810_v52 = vpop.xlane.xlu1 %1809 }
 0x713   :  { %v1824_v51 = vsub.f32 %v1800_v42, %v1810_v52 }
 0x715   :  { %v1831_v60 = vmul.f32 1.442695, %v1824_v51  ;;  %v1807_v35 = vpop.xlane.xlu2 %1806 }
 0x716   :  { %v1823_v44 = vsub.f32 %v1799_v32, %v1807_v35 }
 0x717   :  { %6772 = vpow2.f32 %v1831_v60 }
 0x718   :  { %v7942_v38 = vpop.eup %6770  ;;  %v1829_v45 = vmul.f32 1.442695, %v1823_v44 }
 0x719   :  { %v1850_v54 = vsel %vm856_vm14, %v7942_v38, 0.0 }
 0x71a   :  { %6774 = vpow2.f32 %v1829_v45  ;;  %1851 = vadd.xlane.f32.xlu0 %v1850_v54 }
 0x71b   :  { %v1822_v36 = vpop.xlane.xlu0 %1821 }
 0x71c   :  { %v1828_v19 = vsub.f32 %v1804_v13, %v1822_v36 }
 0x71d   :  { %v7946_v21 = vpop.eup %6772  ;;  %v1819_v37 = vpop.xlane.xlu2 %1818 }
 0x71e   :  { %v1839_v31 = vmul.f32 1.442695, %v1828_v19  ;;  %v1827_v24 = vsub.f32 %v1803_v56, %v1819_v37  ;;  %v1844_v42 = vsel %vm856_vm14, %v7946_v21, 0.0 }
 0x71f   :  { %1845 = vadd.xlane.f32.xlu1 %v1844_v42 }
 0x720   :  { %v7950_v32 = vpop.eup %6774  ;;  %6776 = vpow2.f32 %v1839_v31  ;;  %v1837_v46 = vmul.f32 1.442695, %v1827_v24 }
 0x721   :  { %v1841_v59 = vsel %vm856_vm14, %v7950_v32, 0.0 }
 0x722   :  { %6778 = vpow2.f32 %v1837_v46  ;;  %1842 = vadd.xlane.f32.xlu2 %v1841_v59 }
 0x725   :  { %v2080_v43 = vpop.permute.xlu2 %2079 }
 0x726   :  { %v7954_v13 = vpop.eup %6776  ;;  %2100 = vmatpush.msra.mxu0 %v2080_v43 }
 0x727   :  { %v1856_v56 = vsel %vm856_vm14, %v7954_v13, 0.0 }
 0x728   :  { %v7958_v2 = vpop.eup %6778  ;;  %1857 = vadd.xlane.f32.xlu1 %v1856_v56 }
 0x729   :  { %v1853_v17 = vsel %vm856_vm14, %v7958_v2, 0.0 }
 0x72a   :  { %1854 = vadd.xlane.f32.xlu2 %v1853_v17  ;;  %v7974_v57 = vpop.permute.xlu1 %2161 }
 0x72e   :  { %2191 = vrot.lane.b32.xlu0 %v7600_v61, %s7256_s9  ;;  %v7976_v55 = vpop.permute.xlu0 %2163 }
 0x736   :  { %2217 = vrot.lane.b32.xlu0 %v7612_v5, %s7256_s9 }
 0x741   :  { %2219 = vrot.lane.b32.xlu1 %v7615_v6, %s7256_s9 }
 0x742   :  { %2189 = vrot.lane.b32.xlu2 %v7605_v0, %s7256_s9 }
 0x749   :  { %2245 = vrot.lane.b32.xlu1 %v7638_v12, %s7256_s9 }
 0x74a   :  { %2247 = vrot.lane.b32.xlu2 %v7633_v11, %s7256_s9 }
 0x77e   :  { %v1849_v25 = vpop.xlane.xlu1 %1848 }
 0x77f   :  { %6780 = vrcp.f32 %v1849_v25  ;;  %v1900_v52 = vand.u32 2147483648, %v1849_v25  ;;  %v1898_v51 = vand.u32 2147483647, %v1849_v25  ;;  %vm1894_vm10 = vweird.f32 %v1849_v25 }
 0x781   :  { %v1901_v12 = vor.u32 1.1754944e-38, %v1900_v52  ;;  %vm1899_vm12 = vcmp.eq.f32.partialorder %v1898_v51, 8.507059e+37 }
 0x785   :  { %v6781_v61 = vpop.eup %6780 }
 0x786   :  { %v1890_v5 = vmul.f32 %v6781_v61, %v1849_v25  ;;  %vm1895_vm9 = vweird.f32 %v6781_v61 }
 0x787   :  { %vm1896_vm11 = vmor %vm1894_vm10, %vm1895_vm9 }
 0x788   :  { %v1891_v27 = vsub.f32 1.0, %v1890_v5 }
 0x78a   :  { %v1892_v6 = vmul.f32 %v6781_v61, %v1891_v27 }
 0x78c   :  { %v1893_v0 = vadd.f32 %v6781_v61, %v1892_v6 }
 0x78d   :  { %v1852_v60 = vpop.xlane.xlu0 %1851 }
 0x78e   :  { %v1897_v35 = vsel %vm1896_vm11, %v6781_v61, %v1893_v0  ;;  %6782 = vrcp.f32 %v1852_v60  ;;  %v1915_v42 = vand.u32 2147483648, %v1852_v60  ;;  %vm1909_vm0 = vweird.f32 %v1852_v60 }
 0x78f   :  { %v1902_v11 = vsel %vm1899_vm12, %v1901_v12, %v1897_v35 }
 0x790   :  { %v1903_v44 = vmul.f32 %v7938_v34, %v1902_v11  ;;  %v1913_v34 = vand.u32 2147483647, %v1852_v60  ;;  %v1916_v27 = vor.u32 1.1754944e-38, %v1915_v42 }
 0x792   :  { %6449 = vmatmul.msk.f32.vlgmr.msra.gmra.mxu1 %vm856_vm14, %v1903_v44  ;;  %v1846_v45 = vpop.xlane.xlu1 %1845  ;;  %vm1914_vm4 = vcmp.eq.f32.partialorder %v1913_v34, 8.507059e+37 }
 0x793   :  { %6784 = vrcp.f32 %v1846_v45  ;;  %v1885_v61 = vand.u32 2147483648, %v1846_v45  ;;  %v1883_v51 = vand.u32 2147483647, %v1846_v45  ;;  %vm1879_vm5 = vweird.f32 %v1846_v45 }
 0x794   :  { %v6783_v54 = vpop.eup %6782 }
 0x795   :  { %v1905_v36 = vmul.f32 %v6783_v54, %v1852_v60  ;;  %v1843_v19 = vpop.xlane.xlu2 %1842  ;;  %vm1910_vm15 = vweird.f32 %v6783_v54  ;;  %v1886_v60 = vor.u32 1.1754944e-38, %v1885_v61  ;;  %vm1884_vm8 = vcmp.eq.f32.partialorder %v1883_v51, 8.507059e+37 }
 0x796   :  { %6786 = vrcp.f32 %v1843_v19  ;;  %vm7984_vm1 = vmor %vm1909_vm0, %vm1910_vm15  ;;  %v1870_v35 = vand.u32 2147483648, %v1843_v19  ;;  %vm1864_vm9 = vweird.f32 %v1843_v19 }
 0x797   :  { %v1906_v37 = vsub.f32 1.0, %v1905_v36 }
 0x798   :  { %v1871_v34 = vor.u32 1.1754944e-38, %v1870_v35 }
 0x799   :  { %v6785_v31 = vpop.eup %6784  ;;  %v1907_v24 = vmul.f32 %v6783_v54, %v1906_v37 }
 0x79a   :  { %v1875_v46 = vmul.f32 %v6785_v31, %v1846_v45  ;;  %6454 = vmatmul.msk.f32.vlgmr.msrb.gmra.mxu1 %vm675_vm13, %v7898_v29  ;;  %vm1880_vm2 = vweird.f32 %v6785_v31 }
 0x79b   :  { %v1908_v59 = vadd.f32 %v6783_v54, %v1907_v24  ;;  %v7982_v43 = vpop.xlane.xlu1 %1857  ;;  %vm1881_vm6 = vmor %vm1879_vm5, %vm1880_vm2 }
 0x79c   :  { %v6787_v56 = vpop.eup %6786  ;;  %v1876_v25 = vsub.f32 1.0, %v1875_v46  ;;  %6788 = vrcp.f32 %v7982_v43  ;;  %vm1939_vm15 = vweird.f32 %v7982_v43 }
 0x79d   :  { %v1912_v5 = vsel %vm7984_vm1, %v6783_v54, %v1908_v59  ;;  %v1860_v52 = vmul.f32 %v6787_v56, %v1843_v19  ;;  %v7991_v29 = vpop.xlane.xlu2 %1854  ;;  %vm1865_vm7 = vweird.f32 %v6787_v56  ;;  %v1868_v54 = vand.u32 2147483647, %v1843_v19 }
 0x79e   :  { %v1877_v6 = vmul.f32 %v6785_v31, %v1876_v25  ;;  %6790 = vrcp.f32 %v7991_v29  ;;  %v1917_v11 = vsel %vm1914_vm4, %v1916_v27, %v1912_v5  ;;  %vm1866_vm10 = vmor %vm1864_vm9, %vm1865_vm7  ;;  %v1945_v19 = vand.u32 2147483648, %v7982_v43 }
 0x79f   :  { %v1861_v0 = vsub.f32 1.0, %v1860_v52  ;;  %v1918_v36 = vmul.f32 %v7942_v38, %v1917_v11  ;;  %vm1869_vm11 = vcmp.eq.f32.partialorder %v1868_v54, 8.507059e+37  ;;  %vm1924_vm4 = vweird.f32 %v7991_v29 }
 0x7a0   :  { %v1878_v12 = vadd.f32 %v6785_v31, %v1877_v6  ;;  %v2192_v27 = vpop.permute.xlu0 %2191  ;;  %v1946_v35 = vor.u32 1.1754944e-38, %v1945_v19 }
 0x7a1   :  { %v1862_v44 = vmul.f32 %v6787_v56, %v1861_v0  ;;  %6450 = vmatmul.msk.f32.vlgmr.msra.gmra.mxu2 %vm856_vm14, %v1918_v36 }
 0x7a2   :  { %v6789_v37 = vpop.eup %6788  ;;  %v1882_v24 = vsel %vm1881_vm6, %v6785_v31, %v1878_v12  ;;  %v1943_v31 = vand.u32 2147483647, %v7982_v43 }
 0x7a3   :  { %v1863_v42 = vadd.f32 %v6787_v56, %v1862_v44  ;;  %v1935_v46 = vmul.f32 %v6789_v37, %v7982_v43  ;;  %v1887_v45 = vsel %vm1884_vm8, %v1886_v60, %v1882_v24  ;;  %vm1940_vm12 = vweird.f32 %v6789_v37 }
 0x7a4   :  { %v6791_v59 = vpop.eup %6790  ;;  %v1888_v17 = vmul.f32 %v7946_v21, %v1887_v45  ;;  %v1928_v60 = vand.u32 2147483647, %v7991_v29  ;;  %vm1941_vm1 = vmor %vm1939_vm15, %vm1940_vm12  ;;  %vm1944_vm2 = vcmp.eq.f32.partialorder %v1943_v31, 8.507059e+37 }
 0x7a5   :  { %v1867_v25 = vsel %vm1866_vm10, %v6787_v56, %v1863_v42  ;;  %v1936_v61 = vsub.f32 1.0, %v1935_v46  ;;  %v1920_v38 = vmul.f32 %v6791_v59, %v7991_v29  ;;  %v2190_v5 = vpop.permute.xlu2 %2189  ;;  %v1930_v56 = vand.u32 2147483648, %v7991_v29 }
 0x7a6   :  { %6448 = vmatmul.msk.f32.vlgmr.msrb.gmra.mxu0 %vm856_vm14, %v1888_v17  ;;  %v1872_v52 = vsel %vm1869_vm11, %v1871_v34, %v1867_v25  ;;  %vm1925_vm0 = vweird.f32 %v6791_v59  ;;  %vm1929_vm6 = vcmp.eq.f32.partialorder %v1928_v60, 8.507059e+37 }
 0x7a7   :  { %v1937_v6 = vmul.f32 %v6789_v37, %v1936_v61  ;;  %v1921_v51 = vsub.f32 1.0, %v1920_v38  ;;  %6459 = vmatpush.xpose.msk.msrb.mxu0 %vm675_vm13, %v2192_v27  ;;  %v1873_v21 = vmul.f32 %v7950_v32, %v1872_v52  ;;  %vm1926_vm5 = vmor %vm1924_vm4, %vm1925_vm0  ;;  %v1931_v32 = vor.u32 1.1754944e-38, %v1930_v56 }
 0x7a9   :  { %v1938_v0 = vadd.f32 %v6789_v37, %v1937_v6  ;;  %v1922_v12 = vmul.f32 %v6791_v59, %v1921_v51  ;;  %6447 = vmatmul.msk.f32.vlgmr.msrb.gmra.mxu3 %vm856_vm14, %v1873_v21  ;;  %6456 = vmatmul.msk.f32.vlgmr.msrb.gmra.mxu2 %vm675_vm13, %v7936_v10  ;;  %v2218_v10 = vpop.permute.xlu0 %2217 }
 0x7aa   :  { %6457 = vmatpush.xpose.msk.msrb.mxu3 %vm675_vm13, %v7976_v55 }
 0x7ab   :  { %v1942_v11 = vsel %vm1941_vm1, %v6789_v37, %v1938_v0  ;;  %v1923_v44 = vadd.f32 %v6791_v59, %v1922_v12 }
 0x7ac   :  { %v1947_v43 = vsel %vm1944_vm2, %v1946_v35, %v1942_v11 }
 0x7ad   :  { %v1927_v54 = vsel %vm1926_vm5, %v6791_v59, %v1923_v44  ;;  %v2248_v36 = vpop.permute.xlu2 %2247  ;;  %v1948_v24 = vmul.f32 %v7954_v13, %v1947_v43 }
 0x7ae   :  { %6463 = vmatpush.xpose.msk.msra.mxu2 %vm675_vm13, %v2248_v36  ;;  %v1932_v42 = vsel %vm1929_vm6, %v1931_v32, %v1927_v54 }
 0x7af   :  { %6452 = vmatmul.msk.f32.vlgmr.msra.gmra.mxu0 %vm856_vm14, %v1948_v24  ;;  %v1933_v55 = vmul.f32 %v7958_v2, %v1932_v42  ;;  %v9308_v24 = vpack.i.bf16 %v7555_v40, %v7553_v39  ;;  %v6627_v42 = vpack.i.bf16 %v7910_v58, %v7906_v33 }
 0x7b1   :  { %6451 = vmatmul.msk.f32.vlgmr.msra.gmra.mxu3 %vm856_vm14, %v1933_v55 }
 0x7b3   :  { %v2220_v29 = vpop.permute.xlu1 %2219 }
 0x7b4   :  { %6461 = vmatpush.xpose.msk.msra.mxu1 %vm675_vm13, %v2220_v29 }
 0x7b7   :  { %6460 = vmatmul.msk.f32.vlgmr.msrb.gmra.mxu0 %vm675_vm13, %v2190_v5  ;;  %6462 = vmatmul.msk.f32.vlgmr.msra.gmra.mxu1 %vm675_vm13, %v2218_v10 }
 0x7b9   :  { %6458 = vmatmul.msk.f32.vlgmr.msrb.gmra.mxu3 %vm675_vm13, %v7974_v57 }
 0x7bb   :  { %v2246_v13 = vpop.permute.xlu1 %2245 }
 0x7bc   :  { %6464 = vmatmul.msk.f32.vlgmr.msra.gmra.mxu2 %vm675_vm13, %v2246_v13 }
 0x80f   :  { %v8024_v37 = vpop.f32.mrf.mxu1 }
 0x817   :  { %v2130_v46 = vpop.f32.mrf.mxu1 }
 0x818   :  { %v2273_v2 = vmul.f32 0.17677669, %v2130_v46 }
 0x81a   :  { %v2279_v45 = vadd.f32 %v2273_v2, %v7650_v26 }
 0x81c   :  { %v2285_v59 = vsel %vm856_vm14, %v2279_v45, -inf }
 0x81d   :  { %2286 = vmax.xlane.f32.xlu0 %v2285_v59 }
 0x823   :  { %v8028_v34 = vpop.f32.mrf.mxu0 }
 0x824   :  { %v8030_v17 = vpop.f32.mrf.mxu2 }
 0x82c   :  { %v8032_v25 = vpop.f32.mrf.mxu3  ;;  %v8034_v61 = vpop.f32.mrf.mxu0 }
 0x82d   :  { %v2158_v57 = vpop.f32.mrf.mxu2 }
 0x82e   :  { %v2274_v38 = vmul.f32 0.17677669, %v2158_v57 }
 0x830   :  { %v2280_v5 = vadd.f32 %v2274_v38, %v7652_v28 }
 0x832   :  { %v2288_v31 = vsel %vm856_vm14, %v2280_v5, -inf }
 0x833   :  { %2289 = vmax.xlane.f32.xlu2 %v2288_v31 }
 0x834   :  { %v8038_v19 = vpop.f32.mrf.mxu3  ;;  %v2214_v27 = vpop.f32.mrf.mxu0 }
 0x835   :  { %v2276_v52 = vmul.f32 0.17677669, %v2214_v27  ;;  %v2242_v6 = vpop.f32.mrf.mxu1 }
 0x836   :  { %v2277_v51 = vmul.f32 0.17677669, %v2242_v6 }
 0x837   :  { %v2282_v21 = vadd.f32 %v2276_v52, %v7665_v1 }
 0x838   :  { %v2283_v56 = vadd.f32 %v2277_v51, %v7669_v18 }
 0x839   :  { %v2294_v0 = vsel %vm856_vm14, %v2282_v21, -inf }
 0x83a   :  { %2295 = vmax.xlane.f32.xlu0 %v2294_v0  ;;  %v2297_v12 = vsel %vm856_vm14, %v2283_v56, -inf }
 0x83b   :  { %2298 = vmax.xlane.f32.xlu2 %v2297_v12 }
 0x83c   :  { %v2186_v60 = vpop.f32.mrf.mxu3 }
 0x83d   :  { %v2275_v35 = vmul.f32 0.17677669, %v2186_v60 }
 0x83f   :  { %v2270_v11 = vpop.f32.mrf.mxu2  ;;  %v2281_v44 = vadd.f32 %v2275_v35, %v7658_v63 }
 0x840   :  { %v2278_v32 = vmul.f32 0.17677669, %v2270_v11 }
 0x841   :  { %v2291_v43 = vsel %vm856_vm14, %v2281_v44, -inf }
 0x842   :  { %2292 = vmax.xlane.f32.xlu1 %v2291_v43  ;;  %v2284_v54 = vadd.f32 %v2278_v32, %v7671_v20  ;;  %v9309_v43 = vpack.i.bf16 %v7591_v3, %v7573_v47 }
 0x844   :  { %v2300_v36 = vsel %vm856_vm14, %v2284_v54, -inf }
 0x84a   :  { %2301 = vmax.xlane.f32.xlu1 %v2300_v36 }
 0x863   :  { %6618 = vrot.lane.b32.xlu1 %v9308_v24, %s7256_s9 }
 0x86b   :  { %2559 = vrot.lane.b32.xlu1 %v7621_v7, %s7256_s9 }
 0x873   :  { %6628 = vrot.lane.b32.xlu1 %v6627_v42, %s7256_s9  ;;  %v6632_v42 = vpack.i.bf16 %v8028_v34, %v8032_v25 }
 0x890   :  { %v2287_v55 = vpop.xlane.xlu0 %2286 }
 0x891   :  { %v2303_v29 = vsub.f32 %v2279_v45, %v2287_v55 }
 0x893   :  { %v2309_v10 = vmul.f32 1.442695, %v2303_v29  ;;  %v6637_v29 = vpack.i.bf16 %v7916_v15, %v7918_v16 }
 0x895   :  { %6792 = vpow2.f32 %v2309_v10 }
 0x89b   :  { %v8057_v13 = vpop.eup %6792 }
 0x89c   :  { %v2321_v46 = vsel %vm856_vm14, %v8057_v13, 0.0 }
 0x89d   :  { %2322 = vadd.xlane.f32.xlu0 %v2321_v46 }
 0x8a6   :  { %v2290_v39 = vpop.xlane.xlu2 %2289 }
 0x8a7   :  { %v2304_v40 = vsub.f32 %v2280_v5, %v2290_v39 }
 0x8a9   :  { %v2311_v2 = vmul.f32 1.442695, %v2304_v40 }
 0x8ab   :  { %6794 = vpow2.f32 %v2311_v2 }
 0x8ad   :  { %v2296_v7 = vpop.xlane.xlu0 %2295 }
 0x8ae   :  { %v2306_v59 = vsub.f32 %v2282_v21, %v2296_v7  ;;  %v2299_v57 = vpop.xlane.xlu2 %2298 }
 0x8af   :  { %v2307_v58 = vsub.f32 %v2283_v56, %v2299_v57 }
 0x8b0   :  { %v2315_v33 = vmul.f32 1.442695, %v2306_v59 }
 0x8b1   :  { %v8061_v38 = vpop.eup %6794  ;;  %v2317_v45 = vmul.f32 1.442695, %v2307_v58 }
 0x8b2   :  { %6796 = vpow2.f32 %v2315_v33  ;;  %v2324_v31 = vsel %vm856_vm14, %v8061_v38, 0.0 }
 0x8b3   :  { %6798 = vpow2.f32 %v2317_v45  ;;  %2325 = vadd.xlane.f32.xlu2 %v2324_v31 }
 0x8b5   :  { %v2293_v27 = vpop.xlane.xlu1 %2292 }
 0x8b6   :  { %v2305_v52 = vsub.f32 %v2281_v44, %v2293_v27 }
 0x8b8   :  { %v8065_v6 = vpop.eup %6796  ;;  %v2313_v5 = vmul.f32 1.442695, %v2305_v52 }
 0x8b9   :  { %v2330_v51 = vsel %vm856_vm14, %v8065_v6, 0.0  ;;  %v8069_v21 = vpop.eup %6798 }
 0x8ba   :  { %6800 = vpow2.f32 %v2313_v5  ;;  %v2333_v56 = vsel %vm856_vm14, %v8069_v21, 0.0 }
 0x8bb   :  { %2331 = vadd.xlane.f32.xlu2 %v2330_v51  ;;  %2334 = vadd.xlane.f32.xlu0 %v2333_v56 }
 0x8bd   :  { %v2302_v0 = vpop.xlane.xlu1 %2301 }
 0x8be   :  { %v2308_v12 = vsub.f32 %v2284_v54, %v2302_v0 }
 0x8c0   :  { %v8073_v60 = vpop.eup %6800  ;;  %v2319_v35 = vmul.f32 1.442695, %v2308_v12 }
 0x8c1   :  { %v2327_v11 = vsel %vm856_vm14, %v8073_v60, 0.0 }
 0x8c2   :  { %6802 = vpow2.f32 %v2319_v35 }
 0x8c3   :  { %2328 = vadd.xlane.f32.xlu0 %v2327_v11 }
 0x8c8   :  { %v8077_v44 = vpop.eup %6802 }
 0x8c9   :  { %v2336_v32 = vsel %vm856_vm14, %v8077_v44, 0.0 }
 0x8cb   :  { %2337 = vadd.xlane.f32.xlu0 %v2336_v32 }
 0x8d3   :  { %6623 = vrot.lane.b32.xlu2 %v9309_v43, %s7256_s9 }
 0x8d5   :  { %v6619_v54 = vpop.permute.xlu1 %6618 }
 0x8d6   :  { %v6621_v36 = vunpack.i.h.bf16 %v6619_v54  ;;  %v6620_v24 = vunpack.i.l.bf16 %v6619_v54 }
 0x8d8   :  { %2450 = vmatpush.msra.mxu3 %v6620_v24  ;;  %2476 = vmatpush.msra.mxu0 %v6621_v36 }
 0x8db   :  { %6633 = vrot.lane.b32.xlu2 %v6632_v42, %s7255_s5 }
 0x8dd   :  { %v2560_v55 = vpop.permute.xlu1 %2559 }
 0x8de   :  { %2580 = vmatpush.msrb.mxu0 %v2560_v55 }
 0x8df   :  { %2533 = vrot.lane.b32.xlu0 %v7626_v8, %s7256_s9 }
 0x8e7   :  { %6638 = vrot.lane.b32.xlu0 %v6637_v29, %s7256_s9 }
 0x8ef   :  { %2621 = vrot.lane.b32.xlu0 %v8030_v17, %s7255_s5 }
 0x8f7   :  { %2623 = vrot.lane.b32.xlu0 %v8038_v19, %s7255_s5 }
 0x8ff   :  { %2625 = vrot.lane.b32.xlu0 %v8034_v61, %s7255_s5 }
 0x910   :  { %v2323_v47 = vpop.xlane.xlu0 %2322 }
 0x911   :  { %6804 = vrcp.f32 %v2323_v47  ;;  %v2350_v8 = vand.u32 2147483648, %v2323_v47  ;;  %v2348_v15 = vand.u32 2147483647, %v2323_v47  ;;  %vm2344_vm8 = vweird.f32 %v2323_v47 }
 0x913   :  { %v2351_v46 = vor.u32 1.1754944e-38, %v2350_v8  ;;  %vm2349_vm10 = vcmp.eq.f32.partialorder %v2348_v15, 8.507059e+37 }
 0x917   :  { %v6805_v3 = vpop.eup %6804 }
 0x918   :  { %v2340_v34 = vmul.f32 %v6805_v3, %v2323_v47  ;;  %vm2345_vm7 = vweird.f32 %v6805_v3 }
 0x919   :  { %vm2346_vm9 = vmor %vm2344_vm8, %vm2345_vm7 }
 0x91a   :  { %v2341_v25 = vsub.f32 1.0, %v2340_v34 }
 0x91c   :  { %v2342_v10 = vmul.f32 %v6805_v3, %v2341_v25 }
 0x91e   :  { %v2343_v16 = vadd.f32 %v6805_v3, %v2342_v10 }
 0x920   :  { %v2347_v17 = vsel %vm2346_vm9, %v6805_v3, %v2343_v16 }
 0x921   :  { %v2352_v39 = vsel %vm2349_vm10, %v2351_v46, %v2347_v17 }
 0x922   :  { %v2353_v19 = vmul.f32 %v8057_v13, %v2352_v39 }
 0x924   :  { %6465 = vmatmul.msk.f32.vlgmr.msra.gmra.mxu3 %vm856_vm14, %v2353_v19 }
 0x926   :  { %v2326_v61 = vpop.xlane.xlu2 %2325 }
 0x927   :  { %6806 = vrcp.f32 %v2326_v61  ;;  %v2365_v58 = vand.u32 2147483648, %v2326_v61  ;;  %vm2359_vm12 = vweird.f32 %v2326_v61  ;;  %v2363_v31 = vand.u32 2147483647, %v2326_v61 }
 0x929   :  { %v2366_v56 = vor.u32 1.1754944e-38, %v2365_v58  ;;  %vm2364_vm0 = vcmp.eq.f32.partialorder %v2363_v31, 8.507059e+37 }
 0x92d   :  { %v6807_v40 = vpop.eup %6806 }
 0x92e   :  { %v2355_v2 = vmul.f32 %v6807_v40, %v2326_v61  ;;  %v8101_v7 = vpop.xlane.xlu0 %2334  ;;  %v2332_v59 = vpop.xlane.xlu2 %2331  ;;  %vm2360_vm11 = vweird.f32 %v6807_v40 }
 0x92f   :  { %6808 = vrcp.f32 %v2332_v59  ;;  %vm8104_vm15 = vmor %vm2359_vm12, %vm2360_vm11  ;;  %v2395_v42 = vand.u32 2147483648, %v2332_v59  ;;  %v2393_v55 = vand.u32 2147483647, %v2332_v59  ;;  %vm2389_vm2 = vweird.f32 %v2332_v59 }
 0x930   :  { %v2356_v57 = vsub.f32 1.0, %v2355_v2  ;;  %6810 = vrcp.f32 %v8101_v7  ;;  %vm2404_vm11 = vweird.f32 %v8101_v7 }
 0x931   :  { %v2396_v8 = vor.u32 1.1754944e-38, %v2395_v42  ;;  %vm2394_vm5 = vcmp.eq.f32.partialorder %v2393_v55, 8.507059e+37  ;;  %v2690_v42 = vld [vmem:[#allocation7 + $0x70] sm:$0xff]  ;;  %v2687_v55 = vld [vmem:[#allocation7 + $0x58] sm:$0xff] }
 0x932   :  { %v2357_v33 = vmul.f32 %v6807_v40, %v2356_v57 }
 0x934   :  { %v2358_v45 = vadd.f32 %v6807_v40, %v2357_v33 }
 0x935   :  { %v6809_v27 = vpop.eup %6808 }
 0x936   :  { %v2362_v52 = vsel %vm8104_vm15, %v6807_v40, %v2358_v45  ;;  %v6624_v5 = vpop.permute.xlu2 %6623  ;;  %v2329_v51 = vpop.xlane.xlu0 %2328  ;;  %v2385_v0 = vmul.f32 %v6809_v27, %v2332_v59  ;;  %vm2390_vm1 = vweird.f32 %v6809_v27  ;;  %v2408_v45 = vand.u32 2147483647, %v8101_v7 }
 0x937   :  { %v6626_v12 = vunpack.i.h.bf16 %v6624_v5  ;;  %v6625_v35 = vunpack.i.l.bf16 %v6624_v5  ;;  %v8110_v11 = vpop.eup %6810  ;;  %6812 = vrcp.f32 %v2329_v51  ;;  %v2367_v43 = vsel %vm2364_vm0, %v2366_v56, %v2362_v52  ;;  %vm2391_vm4 = vmor %vm2389_vm2, %vm2390_vm1 }
 0x938   :  { %v2386_v32 = vsub.f32 1.0, %v2385_v0  ;;  %v2368_v54 = vmul.f32 %v8061_v38, %v2367_v43  ;;  %v2400_v36 = vmul.f32 %v8110_v11, %v8101_v7  ;;  %v2380_v16 = vand.u32 2147483648, %v2329_v51 }
 0x939   :  { %2502 = vmatpush.msrb.mxu1 %v6625_v35  ;;  %2528 = vmatpush.msrb.mxu2 %v6626_v12  ;;  %v2378_v19 = vand.u32 2147483647, %v2329_v51  ;;  %vm2374_vm7 = vweird.f32 %v2329_v51  ;;  %vm2405_vm8 = vweird.f32 %v8110_v11  ;;  %vm2409_vm0 = vcmp.eq.f32.partialorder %v2408_v45, 8.507059e+37 }
 0x93a   :  { %v2387_v24 = vmul.f32 %v6809_v27, %v2386_v32  ;;  %6466 = vmatmul.msk.f32.vlgmr.msra.gmra.mxu0 %vm856_vm14, %v2368_v54  ;;  %v2401_v34 = vsub.f32 1.0, %v2400_v36  ;;  %v2381_v2 = vor.u32 1.1754944e-38, %v2380_v16  ;;  %vm2406_vm12 = vmor %vm2404_vm11, %vm2405_vm8  ;;  %v2680_v16 = vld [vmem:[#allocation7 + $0x20] sm:$0xff] }
 0x93b   :  { %vm2379_vm10 = vcmp.eq.f32.partialorder %v2378_v19, 8.507059e+37  ;;  %v6629_v19 = vpop.permute.xlu1 %6628 }
 0x93c   :  { %v2388_v29 = vadd.f32 %v6809_v27, %v2387_v24  ;;  %v2402_v17 = vmul.f32 %v8110_v11, %v2401_v34  ;;  %v2691_v24 = vld [vmem:[#allocation7 + $0x78] sm:$0xff]  ;;  %v2684_v34 = vld [vmem:[#allocation7 + $0x40] sm:$0xff] }
 0x93d   :  { %v6813_v47 = vpop.eup %6812  ;;  %2696 = vmatpush.msra.mxu1 %v2691_v24 }
 0x93e   :  { %v2338_v3 = vpop.xlane.xlu0 %2337  ;;  %v2392_v25 = vsel %vm2391_vm4, %v6809_v27, %v2388_v29  ;;  %v2370_v10 = vmul.f32 %v6813_v47, %v2329_v51  ;;  %vm2375_vm6 = vweird.f32 %v6813_v47  ;;  %v2403_v59 = vadd.f32 %v8110_v11, %v2402_v17  ;;  %v2678_v17 = vld [vmem:[#allocation7 + $0x10] sm:$0xff] }
 0x93f   :  { %6814 = vrcp.f32 %v2338_v3  ;;  %v2397_v15 = vsel %vm2394_vm5, %v2396_v8, %v2392_v25  ;;  %vm2376_vm9 = vmor %vm2374_vm7, %vm2375_vm6  ;;  %v2425_v27 = vand.u32 2147483648, %v2338_v3  ;;  %v2423_v51 = vand.u32 2147483647, %v2338_v3  ;;  %2697 = vmatpush.msra.mxu1 %v2690_v42  ;;  %v2683_v25 = vld [vmem:[#allocation7 + $0x38] sm:$0xff]  ;;  %v2682_v8 = vld [vmem:[#allocation7 + $0x30] sm:$0xff] }
 0x940   :  { %v2371_v38 = vsub.f32 1.0, %v2370_v10  ;;  %v2398_v46 = vmul.f32 %v8065_v6, %v2397_v15  ;;  %v2410_v6 = vand.u32 2147483648, %v8101_v7  ;;  %v2407_v52 = vsel %vm2406_vm12, %v8110_v11, %v2403_v59  ;;  %v2681_v15 = vld [vmem:[#allocation7 + $0x28] sm:$0xff] }
 0x941   :  { %vm2419_vm1 = vweird.f32 %v2338_v3  ;;  %v2426_v12 = vor.u32 1.1754944e-38, %v2425_v27  ;;  %vm2424_vm4 = vcmp.eq.f32.partialorder %v2423_v51, 8.507059e+37  ;;  %vm2669_vm5 = vcmask 785408  }
 0x942   :  { %v2372_v39 = vmul.f32 %v6813_v47, %v2371_v38  ;;  %6468 = vmatmul.msk.f32.vlgmr.msrb.gmra.mxu2 %vm856_vm14, %v2398_v46  ;;  %v2411_v56 = vor.u32 1.1754944e-38, %v2410_v6  ;;  %v2679_v46 = vld [vmem:[#allocation7 + $0x18] sm:$0xff]  ;;  %v6631_v6 = vunpack.i.h.bf16 %v6629_v19 }
 0x944   :  { %v2373_v61 = vadd.f32 %v6813_v47, %v2372_v39  ;;  %v2412_v35 = vsel %vm2409_vm0, %v2411_v56, %v2407_v52  ;;  %v2677_v39 = vld [vmem:[#allocation7 + $0x8] sm:$0xff] }
 0x945   :  { %v6815_v40 = vpop.eup %6814  ;;  %v2413_v11 = vmul.f32 %v8069_v21, %v2412_v35  ;;  %v2688_v21 = vld [vmem:[#allocation7 + $0x60] sm:$0xff] }
 0x946   :  { %v2377_v57 = vsel %vm2376_vm9, %v6813_v47, %v2373_v61  ;;  %v2415_v33 = vmul.f32 %v6815_v40, %v2338_v3  ;;  %vm2420_vm15 = vweird.f32 %v6815_v40  ;;  %v2686_v47 = vld [vmem:[#allocation7 + $0x50] sm:$0xff]  ;;  %v6634_v61 = vpop.permute.xlu2 %6633 }
 0x947   :  { %v2382_v58 = vsel %vm2379_vm10, %v2381_v2, %v2377_v57  ;;  %vm2421_vm2 = vmor %vm2419_vm1, %vm2420_vm15  ;;  %v6635_v2 = vunpack.i.l.bf16 %v6634_v61 }
 0x948   :  { %v2416_v31 = vsub.f32 1.0, %v2415_v33  ;;  %v2383_v13 = vmul.f32 %v8073_v60, %v2382_v58  ;;  %v6636_v58 = vunpack.i.h.bf16 %v6634_v61 }
 0x94a   :  { %v2417_v5 = vmul.f32 %v6815_v40, %v2416_v31  ;;  %6467 = vmatmul.msk.f32.vlgmr.msrb.gmra.mxu1 %vm856_vm14, %v2383_v13  ;;  %v2658_v13 = vsel %vm675_vm13, %v7775_v48, %v6631_v6 }
 0x94b   :  { %v2664_v27 = vsel %vm295_vm3, %v2658_v13, %v6636_v58 }
 0x94c   :  { %v2418_v0 = vadd.f32 %v6815_v40, %v2417_v5 }
 0x94e   :  { %v2422_v7 = vsel %vm2421_vm2, %v6815_v40, %v2418_v0  ;;  %v6630_v40 = vunpack.i.l.bf16 %v6629_v19  ;;  %v9312_v19 = vld [vmem:[#allocation24_spill] sm:$0xff] }
 0x94f   :  { %v2427_v32 = vsel %vm2424_vm4, %v2426_v12, %v2422_v7 }
 0x950   :  { %v2428_v43 = vmul.f32 %v8077_v44, %v2427_v32  ;;  %v2689_v44 = vld [vmem:[#allocation7 + $0x68] sm:$0xff] }
 0x951   :  { %v2534_v60 = vpop.permute.xlu0 %2533  ;;  %2698 = vmatpush.msra.mxu1 %v2689_v44 }
 0x952   :  { %2554 = vmatpush.msrb.mxu3 %v2534_v60  ;;  %6470 = vmatmul.msk.f32.vlgmr.msrb.gmra.mxu0 %vm856_vm14, %v2428_v43 }
 0x953   :  { %6469 = vmatmul.msk.f32.vlgmr.msrb.gmra.mxu3 %vm856_vm14, %v2413_v11  ;;  %2699 = vmatpush.msra.mxu1 %v2688_v21 }
 0x955   :  { %2700 = vmatpush.msra.mxu1 %v2687_v55 }
 0x957   :  { %2701 = vmatpush.msra.mxu1 %v2686_v47 }
 0x959   :  { %v6639_v45 = vpop.permute.xlu0 %6638 }
 0x95a   :  { %v6640_v52 = vunpack.i.l.bf16 %v6639_v45  ;;  %v6641_v35 = vunpack.i.h.bf16 %v6639_v45 }
 0x95c   :  { %v2659_v51 = vsel %vm675_vm13, %v7768_v9, %v6640_v52  ;;  %v2660_v48 = vsel %vm675_vm13, %v7777_v62, %v6641_v35 }
 0x961   :  { %v2622_v7 = vpop.permute.xlu0 %2621 }
 0x962   :  { %v2666_v32 = vsel %vm295_vm3, %v2660_v48, %v2622_v7 }
 0x9a7   :  { %v2452_v54 = vpop.f32.mrf.mxu3 }
 0x9a8   :  { %2639 = vrot.lane.b32.xlu1 %v2452_v54, %s7254_s22  ;;  %v2624_v54 = vpop.permute.xlu0 %2623 }
 0x9b0   :  { %2619 = vrot.lane.b32.xlu1 %v8024_v37, %s7255_s5  ;;  %v2685_v37 = vld [vmem:[#allocation7 + $0x48] sm:$0xff]  ;;  %v2626_v21 = vpop.permute.xlu0 %2625 }
 0x9b1   :  { %2702 = vmatpush.msra.mxu1 %v2685_v37 }
 0x9b3   :  { %2703 = vmatpush.msra.mxu1 %v2684_v34 }
 0x9b5   :  { %2704 = vmatpush.msra.mxu1 %v2683_v25 }
 0x9b7   :  { %v2478_v36 = vpop.f32.mrf.mxu0  ;;  %2705 = vmatpush.msra.mxu1 %v2682_v8 }
 0x9b8   :  { %2641 = vrot.lane.b32.xlu2 %v2478_v36, %s7254_s22 }
 0x9b9   :  { %2706 = vmatpush.msra.mxu1 %v2681_v15 }
 0x9bb   :  { %2707 = vmatpush.msra.mxu1 %v2680_v16 }
 0x9bd   :  { %2708 = vmatpush.msra.mxu1 %v2679_v46 }
 0x9bf   :  { %2709 = vmatpush.msra.mxu1 %v2678_v17 }
 0x9c1   :  { %2710 = vmatpush.msra.mxu1 %v2677_v39 }
 0x9c5   :  { %v2530_v29 = vpop.f32.mrf.mxu2 }
 0x9c6   :  { %2645 = vrot.lane.b32.xlu1 %v2530_v29, %s7254_s22 }
 0x9c7   :  { %v2504_v3 = vpop.f32.mrf.mxu1 }
 0x9c8   :  { %2643 = vrot.lane.b32.xlu2 %v2504_v3, %s7254_s22 }
 0x9cf   :  { %v2582_v38 = vpop.f32.mrf.mxu0 }
 0x9d0   :  { %2599 = vrot.lane.b32.xlu2 %v7908_v49, %s7256_s9  ;;  %v2676_v49 = vld [vmem:[#allocation7] sm:$0xff] }
 0x9d1   :  { %2711 = vmatpush.msra.mxu1 %v2676_v49 }
 0x9d6   :  { %v2556_v10 = vpop.f32.mrf.mxu3 }
 0x9d7   :  { %2647 = vrot.lane.b32.xlu1 %v2556_v10, %s7254_s22 }
 0x9d8   :  { %2601 = vrot.lane.b32.xlu2 %v7914_v30, %s7256_s9  ;;  %v2657_v30 = vsel %vm675_vm13, %v7771_v23, %v6630_v40 }
 0x9d9   :  { %v2663_v59 = vsel %vm295_vm3, %v2657_v30, %v6635_v2  ;;  %v9313_v2 = vld [vmem:[#allocation25_spill] sm:$0xff] }
 0x9df   :  { %2649 = vrot.lane.b32.xlu1 %v2582_v38, %s7254_s22 }
 0xa12   :  { %v2642_v31 = vpop.permute.xlu2 %2641 }
 0xa13   :  { %v2671_v5 = vsel %vm2669_vm5, %v2664_v27, %v2642_v31 }
 0xa1a   :  { %v2640_v57 = vpop.permute.xlu1 %2639 }
 0xa1b   :  { %v2670_v33 = vsel %vm2669_vm5, %v2663_v59, %v2640_v57  ;;  %v9314_v59 = vld [vmem:[#allocation23_spill] sm:$0xff] }
 0xa1c   :  { %2712 = vmatmul.f32.vlgmr.msra.gmra.mxu1 %v2670_v33 }
 0xa22   :  { %v2620_v23 = vpop.permute.xlu1 %2619  ;;  %v2644_v0 = vpop.permute.xlu2 %2643 }
 0xa23   :  { %v2665_v56 = vsel %vm295_vm3, %v2659_v51, %v2620_v23  ;;  %v2908_v23 = vld [vmem:[#allocation8 + $0xf8] sm:$0xff]  ;;  %v2905_v51 = vld [vmem:[#allocation8 + $0xe0] sm:$0xff] }
 0xa24   :  { %2715 = vmatmul.f32.gmra.mxu1 %v2671_v5  ;;  %v2672_v12 = vsel %vm2669_vm5, %v2665_v56, %v2644_v0  ;;  %v2907_v5 = vld [vmem:[#allocation8 + $0xf0] sm:$0xff]  ;;  %2950 = vmatpush.msra.mxu3 %v2908_v23  ;;  %v2906_v56 = vld [vmem:[#allocation8 + $0xe8] sm:$0xff] }
 0xa25   :  { %2915 = vmatpush.msra.mxu2 %v2907_v5 }
 0xa26   :  { %2951 = vmatpush.msra.mxu3 %v2906_v56 }
 0xa27   :  { %2916 = vmatpush.msra.mxu2 %v2905_v51 }
 0xa2a   :  { %v2600_v11 = vpop.permute.xlu2 %2599 }
 0xa2b   :  { %v2661_v9 = vsel %vm675_vm13, %v7782_v50, %v2600_v11  ;;  %v6694_v50 = vld [vmem:[%s9258_s13] ss:$0 sm:$0xff] }
 0xa2c   :  { %2718 = vmatmul.f32.gmra.mxu1 %v2672_v12  ;;  %v2667_v24 = vsel %vm295_vm3, %v2661_v9, %v2624_v54 }
 0xa32   :  { %v2602_v44 = vpop.permute.xlu2 %2601 }
 0xa33   :  { %v2662_v62 = vsel %vm675_vm13, %v7780_v22, %v2602_v44  ;;  %v2901_v44 = vld [vmem:[#allocation8 + $0xc0] sm:$0xff] }
 0xa34   :  { %v2668_v29 = vsel %vm295_vm3, %v2662_v62, %v2626_v21  ;;  %v2902_v62 = vld [vmem:[#allocation8 + $0xc8] sm:$0xff]  ;;  %v2899_v21 = vld [vmem:[#allocation8 + $0xb0] sm:$0xff] }
 0xa38   :  { %v2646_v60 = vpop.permute.xlu1 %2645 }
 0xa39   :  { %v2673_v43 = vsel %vm2669_vm5, %v2666_v32, %v2646_v60 }
 0xa3a   :  { %2721 = vmatmul.f32.gmra.mxu1 %v2673_v43 }
 0xa49   :  { %v2648_v36 = vpop.permute.xlu1 %2647 }
 0xa4a   :  { %v2674_v42 = vsel %vm2669_vm5, %v2667_v24, %v2648_v36  ;;  %v2903_v24 = vld [vmem:[#allocation8 + $0xd0] sm:$0xff] }
 0xa4b   :  { %2724 = vmatmul.f32.gmra.mxu1 %v2674_v42  ;;  %v2904_v42 = vld [vmem:[#allocation8 + $0xd8] sm:$0xff]  ;;  %2917 = vmatpush.msra.mxu2 %v2903_v24 }
 0xa4c   :  { %2952 = vmatpush.msra.mxu3 %v2904_v42 }
 0xa4d   :  { %2918 = vmatpush.msra.mxu2 %v2901_v44 }
 0xa4e   :  { %2953 = vmatpush.msra.mxu3 %v2902_v62 }
 0xa4f   :  { %2919 = vmatpush.msra.mxu2 %v2899_v21 }
 0xa51   :  { %v2650_v55 = vpop.permute.xlu1 %2649 }
 0xa52   :  { %v2675_v47 = vsel %vm2669_vm5, %v2668_v29, %v2650_v55  ;;  %v2900_v55 = vld [vmem:[#allocation8 + $0xb8] sm:$0xff]  ;;  %v2897_v29 = vld [vmem:[#allocation8 + $0xa0] sm:$0xff] }
 0xa53   :  { %2727 = vmatmul.f32.gmra.mxu1 %v2675_v47  ;;  %2954 = vmatpush.msra.mxu3 %v2900_v55  ;;  %v2898_v47 = vld [vmem:[#allocation8 + $0xa8] sm:$0xff] }
 0xa54   :  { %2920 = vmatpush.msra.mxu2 %v2897_v29 }
 0xa55   :  { %2955 = vmatpush.msra.mxu3 %v2898_v47 }
 0xa99   :  { %v2713_v3 = vpop.f32.mrf.mxu1 }
 0xa9a   :  { %v2714_v37 = vadd.f32 %v6694_v50, %v2713_v3  ;;  %v2896_v3 = vld [vmem:[#allocation8 + $0x98] sm:$0xff] }
 0xa9b   :  { %2956 = vmatpush.msra.mxu3 %v2896_v3 }
 0xa9c   :  { %v2731_v34 = vadd.f32 %v2714_v37, %v7489_v41  ;;  %v2893_v37 = vld [vmem:[#allocation8 + $0x80] sm:$0xff] }
 0xa9e   :  { %2739 = vadd.xlane.f32.xlu2 %v2731_v34 }
 0xaa1   :  { %v2716_v25 = vpop.f32.mrf.mxu1 }
 0xaa2   :  { %v2717_v8 = vadd.f32 %v6694_v50, %v2716_v25  ;;  %v2891_v25 = vld [vmem:[#allocation8 + $0x70] sm:$0xff] }
 0xaa4   :  { %v2732_v22 = vadd.f32 %v2717_v8, %v7498_v53  ;;  %v2892_v8 = vld [vmem:[#allocation8 + $0x78] sm:$0xff] }
 0xaa6   :  { %2741 = vadd.xlane.f32.xlu0 %v2732_v22 }
 0xaa9   :  { %v2719_v10 = vpop.f32.mrf.mxu1 }
 0xaaa   :  { %v2720_v38 = vadd.f32 %v6694_v50, %v2719_v10  ;;  %v2890_v10 = vld [vmem:[#allocation8 + $0x68] sm:$0xff] }
 0xaac   :  { %v2733_v15 = vadd.f32 %v2720_v38, %v7507_v4  ;;  %v2887_v38 = vld [vmem:[#allocation8 + $0x50] sm:$0xff] }
 0xaae   :  { %2743 = vadd.xlane.f32.xlu1 %v2733_v15 }
 0xab7   :  { %v2722_v16 = vpop.f32.mrf.mxu1 }
 0xab8   :  { %v2723_v46 = vadd.f32 %v6694_v50, %v2722_v16  ;;  %v2885_v16 = vld [vmem:[#allocation8 + $0x40] sm:$0xff] }
 0xaba   :  { %v2734_v17 = vadd.f32 %v2723_v46, %v7515_v14  ;;  %v2886_v46 = vld [vmem:[#allocation8 + $0x48] sm:$0xff] }
 0xabc   :  { %2745 = vadd.xlane.f32.xlu2 %v2734_v17 }
 0xac8   :  { %v2725_v39 = vpop.f32.mrf.mxu1 }
 0xac9   :  { %v2726_v49 = vadd.f32 %v6694_v50, %v2725_v39  ;;  %v2884_v39 = vld [vmem:[#allocation8 + $0x38] sm:$0xff] }
 0xacb   :  { %v2735_v41 = vadd.f32 %v2726_v49, %v9312_v19  ;;  %v2881_v49 = vld [vmem:[#allocation8 + $0x20] sm:$0xff]  ;;  %v2882_v19 = vld [vmem:[#allocation8 + $0x28] sm:$0xff] }
 0xacd   :  { %2747 = vadd.xlane.f32.xlu0 %v2735_v41 }
 0xad0   :  { %v2728_v61 = vpop.f32.mrf.mxu1 }
 0xad1   :  { %v2729_v40 = vadd.f32 %v6694_v50, %v2728_v61  ;;  %v2895_v50 = vld [vmem:[#allocation8 + $0x90] sm:$0xff]  ;;  %v2880_v61 = vld [vmem:[#allocation8 + $0x18] sm:$0xff] }
 0xad2   :  { %2921 = vmatpush.msra.mxu2 %v2895_v50 }
 0xad3   :  { %v2736_v53 = vadd.f32 %v2729_v40, %v9313_v2  ;;  %v2877_v2 = vld [vmem:[#allocation8] sm:$0xff] }
 0xad4   :  { %2922 = vmatpush.msra.mxu2 %v2893_v37 }
 0xad5   :  { %2749 = vadd.xlane.f32.xlu2 %v2736_v53 }
 0xad6   :  { %2923 = vmatpush.msra.mxu2 %v2891_v25 }
 0xb11   :  { %v2740_v30 = vpop.xlane.xlu2 %2739 }
 0xb12   :  { %v2751_v57 = vmul.f32 %v2740_v30, %v9314_v59 }
 0xb14   :  { %v8177_v4 = vsub.f32 %v2731_v34, %v2751_v57  ;;  %v2894_v34 = vld [vmem:[#allocation8 + $0x88] sm:$0xff] }
 0xb15   :  { %2957 = vmatpush.msra.mxu3 %v2894_v34 }
 0xb16   :  { %v2763_v33 = vmul.f32 %v8177_v4, %v8177_v4 }
 0xb17   :  { %2958 = vmatpush.msra.mxu3 %v2892_v8 }
 0xb18   :  { %2769 = vadd.xlane.f32.xlu1 %v2763_v33 }
 0xb19   :  { %v2742_v14 = vpop.xlane.xlu0 %2741  ;;  %2959 = vmatpush.msra.mxu3 %v2890_v10 }
 0xb1a   :  { %v2752_v6 = vmul.f32 %v2742_v14, %v9314_v59 }
 0xb1c   :  { %v8182_v58 = vsub.f32 %v2732_v22, %v2752_v6  ;;  %v2889_v22 = vld [vmem:[#allocation8 + $0x60] sm:$0xff] }
 0xb1d   :  { %2924 = vmatpush.msra.mxu2 %v2889_v22 }
 0xb1e   :  { %v2764_v45 = vmul.f32 %v8182_v58, %v8182_v58 }
 0xb1f   :  { %2925 = vmatpush.msra.mxu2 %v2887_v38 }
 0xb20   :  { %2771 = vadd.xlane.f32.xlu0 %v2764_v45 }
 0xb21   :  { %v2744_v31 = vpop.xlane.xlu1 %2743  ;;  %2926 = vmatpush.msra.mxu2 %v2885_v16 }
 0xb22   :  { %v2753_v13 = vmul.f32 %v2744_v31, %v9314_v59 }
 0xb24   :  { %v8187_v27 = vsub.f32 %v2733_v15, %v2753_v13  ;;  %v2888_v15 = vld [vmem:[#allocation8 + $0x58] sm:$0xff] }
 0xb25   :  { %2960 = vmatpush.msra.mxu3 %v2888_v15 }
 0xb26   :  { %v2765_v52 = vmul.f32 %v8187_v27, %v8187_v27 }
 0xb27   :  { %2961 = vmatpush.msra.mxu3 %v2886_v46 }
 0xb28   :  { %2773 = vadd.xlane.f32.xlu2 %v2765_v52 }
 0xb29   :  { %2962 = vmatpush.msra.mxu3 %v2884_v39 }
 0xb2b   :  { %2963 = vmatpush.msra.mxu3 %v2882_v19 }
 0xb2d   :  { %2964 = vmatpush.msra.mxu3 %v2880_v61 }
 0xb2f   :  { %v2746_v0 = vpop.xlane.xlu2 %2745 }
 0xb30   :  { %v2754_v12 = vmul.f32 %v2746_v0, %v9314_v59 }
 0xb32   :  { %v8192_v35 = vsub.f32 %v2734_v17, %v2754_v12  ;;  %v2883_v17 = vld [vmem:[#allocation8 + $0x30] sm:$0xff] }
 0xb33   :  { %2927 = vmatpush.msra.mxu2 %v2883_v17 }
 0xb34   :  { %v2766_v7 = vmul.f32 %v8192_v35, %v8192_v35 }
 0xb35   :  { %2928 = vmatpush.msra.mxu2 %v2881_v49 }
 0xb36   :  { %2775 = vadd.xlane.f32.xlu1 %v2766_v7 }
 0xb40   :  { %v2748_v48 = vpop.xlane.xlu0 %2747 }
 0xb41   :  { %v2755_v32 = vmul.f32 %v2748_v48, %v9314_v59  ;;  %v8212_v48 = vld [vmem:[%s9259_s14] ss:$0 sm:$0xff] }
 0xb43   :  { %v8197_v60 = vsub.f32 %v2735_v41, %v2755_v32  ;;  %v2879_v41 = vld [vmem:[#allocation8 + $0x10] sm:$0xff] }
 0xb44   :  { %2929 = vmatpush.msra.mxu2 %v2879_v41 }
 0xb45   :  { %v2767_v43 = vmul.f32 %v8197_v60, %v8197_v60 }
 0xb46   :  { %2930 = vmatpush.msra.mxu2 %v2877_v2  ;;  %v3108_v2 = vld [vmem:[#allocation10 + $0x78] sm:$0xff] }
 0xb47   :  { %2777 = vadd.xlane.f32.xlu0 %v2767_v43  ;;  %3129 = vmatpush.msra.mxu0 %v3108_v2  ;;  %v3111_v2 = vld [vmem:[#allocation10 + $0x90] sm:$0xff] }
 0xb48   :  { %v2750_v11 = vpop.xlane.xlu2 %2749 }
 0xb49   :  { %v2756_v54 = vmul.f32 %v2750_v11, %v9314_v59 }
 0xb4b   :  { %v8202_v9 = vsub.f32 %v2736_v53, %v2756_v54  ;;  %v2878_v53 = vld [vmem:[#allocation8 + $0x8] sm:$0xff]  ;;  %v8218_v54 = vld [vmem:[%s9260_s15] ss:$0 sm:$0xff] }
 0xb4c   :  { %2965 = vmatpush.msra.mxu3 %v2878_v53  ;;  %v3124_v53 = vld [vmem:[#allocation10 + $0xf8] sm:$0xff] }
 0xb4d   :  { %v2768_v36 = vmul.f32 %v8202_v9, %v8202_v9  ;;  %3164 = vmatpush.msrb.mxu1 %v3124_v53  ;;  %v3094_v53 = vld [vmem:[#allocation10 + $0x8] sm:$0xff] }
 0xb4f   :  { %2779 = vadd.xlane.f32.xlu2 %v2768_v36 }
 0xb8b   :  { %v2770_v40 = vpop.xlane.xlu1 %2769 }
 0xb8c   :  { %v2781_v30 = vmul.f32 %v2770_v40, %v9314_v59 }
 0xb8e   :  { %v2787_v57 = vadd.f32 1e-05, %v2781_v30  ;;  %v3107_v30 = vld [vmem:[#allocation10 + $0x70] sm:$0xff] }
 0xb8f   :  { %3130 = vmatpush.msra.mxu0 %v3107_v30  ;;  %v2909_v30 = vld [vmem:[%s9262_s17] sm:$0x3] }
 0xb90   :  { %6816 = vrsqrt.f32 %v2787_v57  ;;  %vm2799_vm7 = vweird.f32 %v2787_v57 }
 0xb93   :  { %v2772_v33 = vpop.xlane.xlu0 %2771 }
 0xb94   :  { %v2782_v14 = vmul.f32 %v2772_v33, %v9314_v59 }
 0xb96   :  { %v6817_v6 = vpop.eup %6816  ;;  %v2788_v45 = vadd.f32 1e-05, %v2782_v14  ;;  %v3106_v14 = vld [vmem:[#allocation10 + $0x68] sm:$0xff] }
 0xb97   :  { %v2794_v31 = vmul.f32 %v6817_v6, %v2787_v57  ;;  %vm2800_vm6 = vweird.f32 %v6817_v6  ;;  %v3123_v57 = vld [vmem:[#allocation10 + $0xf0] sm:$0xff]  ;;  %3131 = vmatpush.msra.mxu0 %v3106_v14  ;;  %v3109_v14 = vld [vmem:[#allocation10 + $0x80] sm:$0xff] }
 0xb98   :  { %6818 = vrsqrt.f32 %v2788_v45  ;;  %vm2801_vm8 = vmor %vm2799_vm7, %vm2800_vm6  ;;  %vm2809_vm10 = vweird.f32 %v2788_v45  ;;  %3165 = vmatpush.msrb.mxu1 %v3123_v57  ;;  %v3110_v57 = vld [vmem:[#allocation10 + $0x88] sm:$0xff] }
 0xb99   :  { %v2795_v13 = vmul.f32 %v6817_v6, %v2794_v31 }
 0xb9b   :  { %v2796_v52 = vmul.f32 0.5, %v2795_v13  ;;  %v2774_v5 = vpop.xlane.xlu2 %2773 }
 0xb9c   :  { %v2783_v23 = vmul.f32 %v2774_v5, %v9314_v59 }
 0xb9d   :  { %v2797_v51 = vsub.f32 1.5, %v2796_v52 }
 0xb9e   :  { %v6819_v56 = vpop.eup %6818  ;;  %v2789_v0 = vadd.f32 1e-05, %v2783_v23 }
 0xb9f   :  { %v2798_v12 = vmul.f32 %v6817_v6, %v2797_v51  ;;  %v2804_v7 = vmul.f32 %v6819_v56, %v2788_v45  ;;  %vm2810_vm9 = vweird.f32 %v6819_v56 }
 0xba0   :  { %6820 = vrsqrt.f32 %v2789_v0  ;;  %vm2811_vm11 = vmor %vm2809_vm10, %vm2810_vm9  ;;  %vm2819_vm15 = vweird.f32 %v2789_v0 }
 0xba1   :  { %v2802_v32 = vsel %vm2801_vm8, %v6817_v6, %v2798_v12  ;;  %v2805_v43 = vmul.f32 %v6819_v56, %v2804_v7  ;;  %v3122_v6 = vld [vmem:[#allocation10 + $0xe8] sm:$0xff] }
 0xba2   :  { %v2853_v11 = vmul.f32 %v2802_v32, %v8177_v4  ;;  %3166 = vmatpush.msrb.mxu1 %v3122_v6  ;;  %v8267_v6 = vperm.slane %v2909_v30, 0 }
 0xba3   :  { %v2806_v36 = vmul.f32 0.5, %v2805_v43 }
 0xba4   :  { %v2862_v24 = vmul.f32 %v8212_v48, %v2853_v11 }
 0xba5   :  { %v2807_v42 = vsub.f32 1.5, %v2806_v36 }
 0xba6   :  { %v6821_v44 = vpop.eup %6820  ;;  %v8222_v62 = vadd.f32 %v8218_v54, %v2862_v24 }
 0xba7   :  { %v2808_v21 = vmul.f32 %v6819_v56, %v2807_v42  ;;  %v2814_v55 = vmul.f32 %v6821_v44, %v2789_v0  ;;  %vm2820_vm12 = vweird.f32 %v6821_v44 }
 0xba8   :  { %2931 = vmatmul.f32.vlgmr.msra.gmra.mxu2 %v8222_v62  ;;  %2966 = vmatmul.f32.vlgmr.msra.gmra.mxu3 %v8222_v62  ;;  %vm2821_vm0 = vmor %vm2819_vm15, %vm2820_vm12 }
 0xba9   :  { %v2815_v4 = vmul.f32 %v6821_v44, %v2814_v55  ;;  %v2812_v29 = vsel %vm2811_vm11, %v6819_v56, %v2808_v21  ;;  %v2776_v3 = vpop.xlane.xlu1 %2775 }
 0xbaa   :  { %v2854_v47 = vmul.f32 %v2812_v29, %v8182_v58  ;;  %v2784_v25 = vmul.f32 %v2776_v3, %v9314_v59  ;;  %v3105_v3 = vld [vmem:[#allocation10 + $0x60] sm:$0xff] }
 0xbab   :  { %v2816_v50 = vmul.f32 0.5, %v2815_v4  ;;  %3132 = vmatpush.msra.mxu0 %v3105_v3 }
 0xbac   :  { %v2863_v37 = vmul.f32 %v8212_v48, %v2854_v47  ;;  %v2790_v10 = vadd.f32 1e-05, %v2784_v25  ;;  %v3120_v25 = vld [vmem:[#allocation10 + $0xd8] sm:$0xff] }
 0xbad   :  { %v2817_v34 = vsub.f32 1.5, %v2816_v50 }
 0xbae   :  { %v8230_v8 = vadd.f32 %v8218_v54, %v2863_v37  ;;  %6822 = vrsqrt.f32 %v2790_v10  ;;  %vm2829_vm2 = vweird.f32 %v2790_v10  ;;  %v3121_v37 = vld [vmem:[#allocation10 + $0xe0] sm:$0xff] }
 0xbaf   :  { %v2818_v22 = vmul.f32 %v6821_v44, %v2817_v34  ;;  %3167 = vmatpush.msrb.mxu1 %v3121_v37  ;;  %v3104_v34 = vld [vmem:[#allocation10 + $0x58] sm:$0xff] }
 0xbb0   :  { %2934 = vmatmul.f32.gmra.mxu2 %v8230_v8  ;;  %2969 = vmatmul.f32.gmra.mxu3 %v8230_v8 }
 0xbb1   :  { %v2822_v58 = vsel %vm2821_vm0, %v6821_v44, %v2818_v22  ;;  %3133 = vmatpush.msra.mxu0 %v3104_v34  ;;  %3168 = vmatpush.msrb.mxu1 %v3120_v25  ;;  %v3103_v22 = vld [vmem:[#allocation10 + $0x50] sm:$0xff] }
 0xbb2   :  { %v2855_v38 = vmul.f32 %v2822_v58, %v8187_v27  ;;  %v3117_v58 = vld [vmem:[#allocation10 + $0xc0] sm:$0xff] }
 0xbb3   :  { %3134 = vmatpush.msra.mxu0 %v3103_v22 }
 0xbb4   :  { %v2864_v15 = vmul.f32 %v8212_v48, %v2855_v38  ;;  %v6823_v46 = vpop.eup %6822  ;;  %v3100_v38 = vld [vmem:[#allocation10 + $0x38] sm:$0xff] }
 0xbb5   :  { %v2824_v17 = vmul.f32 %v6823_v46, %v2790_v10  ;;  %vm2830_vm1 = vweird.f32 %v6823_v46  ;;  %v3119_v10 = vld [vmem:[#allocation10 + $0xd0] sm:$0xff] }
 0xbb6   :  { %v8237_v16 = vadd.f32 %v8218_v54, %v2864_v15  ;;  %vm2831_vm4 = vmor %vm2829_vm2, %vm2830_vm1  ;;  %3169 = vmatpush.msrb.mxu1 %v3119_v10  ;;  %v3116_v15 = vld [vmem:[#allocation10 + $0xb8] sm:$0xff] }
 0xbb7   :  { %v2825_v39 = vmul.f32 %v6823_v46, %v2824_v17  ;;  %v3115_v17 = vld [vmem:[#allocation10 + $0xb0] sm:$0xff] }
 0xbb8   :  { %2937 = vmatmul.f32.gmra.mxu2 %v8237_v16  ;;  %2972 = vmatmul.f32.gmra.mxu3 %v8237_v16 }
 0xbb9   :  { %v2826_v19 = vmul.f32 0.5, %v2825_v39  ;;  %v3098_v39 = vld [vmem:[#allocation10 + $0x28] sm:$0xff] }
 0xbba   :  { %v2778_v49 = vpop.xlane.xlu0 %2777 }
 0xbbb   :  { %v2785_v41 = vmul.f32 %v2778_v49, %v9314_v59  ;;  %v2827_v61 = vsub.f32 1.5, %v2826_v19  ;;  %v3114_v49 = vld [vmem:[#allocation10 + $0xa8] sm:$0xff]  ;;  %v3097_v19 = vld [vmem:[#allocation10 + $0x20] sm:$0xff] }
 0xbbd   :  { %v2791_v40 = vadd.f32 1e-05, %v2785_v41  ;;  %v2828_v27 = vmul.f32 %v6823_v46, %v2827_v61  ;;  %v3113_v41 = vld [vmem:[#allocation10 + $0xa0] sm:$0xff]  ;;  %v3096_v61 = vld [vmem:[#allocation10 + $0x18] sm:$0xff] }
 0xbbf   :  { %6824 = vrsqrt.f32 %v2791_v40  ;;  %v2832_v33 = vsel %vm2831_vm4, %v6823_v46, %v2828_v27  ;;  %vm2839_vm7 = vweird.f32 %v2791_v40  ;;  %v3099_v46 = vld [vmem:[#allocation10 + $0x30] sm:$0xff] }
 0xbc0   :  { %v2856_v31 = vmul.f32 %v2832_v33, %v8192_v35  ;;  %v3095_v27 = vld [vmem:[#allocation10 + $0x10] sm:$0xff]  ;;  %v3093_v33 = vld [vmem:[#allocation10] sm:$0xff] }
 0xbc2   :  { %v2780_v45 = vpop.xlane.xlu2 %2779  ;;  %v2865_v52 = vmul.f32 %v8212_v48, %v2856_v31 }
 0xbc3   :  { %v2786_v13 = vmul.f32 %v2780_v45, %v9314_v59  ;;  %v8269_v45 = vperm.slane %v2909_v30, 1 }
 0xbc4   :  { %v8246_v56 = vadd.f32 %v8218_v54, %v2865_v52 }
 0xbc5   :  { %v6825_v5 = vpop.eup %6824  ;;  %v2792_v23 = vadd.f32 1e-05, %v2786_v13 }
 0xbc6   :  { %v2834_v51 = vmul.f32 %v6825_v5, %v2791_v40  ;;  %2940 = vmatmul.f32.gmra.mxu2 %v8246_v56  ;;  %2975 = vmatmul.f32.gmra.mxu3 %v8246_v56  ;;  %vm2840_vm6 = vweird.f32 %v6825_v5  ;;  %v3112_v40 = vld [vmem:[#allocation10 + $0x98] sm:$0xff] }
 0xbc7   :  { %6826 = vrsqrt.f32 %v2792_v23  ;;  %vm2841_vm8 = vmor %vm2839_vm7, %vm2840_vm6  ;;  %vm2849_vm10 = vweird.f32 %v2792_v23 }
 0xbc8   :  { %v2835_v0 = vmul.f32 %v6825_v5, %v2834_v51 }
 0xbca   :  { %v2836_v35 = vmul.f32 0.5, %v2835_v0 }
 0xbcc   :  { %v2837_v12 = vsub.f32 1.5, %v2836_v35 }
 0xbcd   :  { %v6827_v7 = vpop.eup %6826 }
 0xbce   :  { %v2838_v32 = vmul.f32 %v6825_v5, %v2837_v12  ;;  %v2844_v43 = vmul.f32 %v6827_v7, %v2792_v23  ;;  %vm2850_vm9 = vweird.f32 %v6827_v7 }
 0xbcf   :  { %vm2851_vm11 = vmor %vm2849_vm10, %vm2850_vm9 }
 0xbd0   :  { %v2845_v11 = vmul.f32 %v6827_v7, %v2844_v43  ;;  %v2842_v36 = vsel %vm2841_vm8, %v6825_v5, %v2838_v32 }
 0xbd1   :  { %v2857_v24 = vmul.f32 %v2842_v36, %v8197_v60 }
 0xbd2   :  { %v2846_v42 = vmul.f32 0.5, %v2845_v11 }
 0xbd3   :  { %v2866_v44 = vmul.f32 %v8212_v48, %v2857_v24 }
 0xbd4   :  { %v2847_v21 = vsub.f32 1.5, %v2846_v42 }
 0xbd5   :  { %v8253_v55 = vadd.f32 %v8218_v54, %v2866_v44 }
 0xbd6   :  { %v2848_v4 = vmul.f32 %v6827_v7, %v2847_v21 }
 0xbd7   :  { %2943 = vmatmul.f32.gmra.mxu2 %v8253_v55  ;;  %2978 = vmatmul.f32.gmra.mxu3 %v8253_v55 }
 0xbd8   :  { %v2852_v29 = vsel %vm2851_vm11, %v6827_v7, %v2848_v4 }
 0xbd9   :  { %v2858_v47 = vmul.f32 %v2852_v29, %v8202_v9  ;;  %v3102_v9 = vld [vmem:[#allocation10 + $0x48] sm:$0xff] }
 0xbda   :  { %3135 = vmatpush.msra.mxu0 %v3102_v9 }
 0xbdb   :  { %v2867_v60 = vmul.f32 %v8212_v48, %v2858_v47  ;;  %v3118_v48 = vld [vmem:[#allocation10 + $0xc8] sm:$0xff] }
 0xbdc   :  { %3170 = vmatpush.msrb.mxu1 %v3118_v48 }
 0xbdd   :  { %v8260_v50 = vadd.f32 %v8218_v54, %v2867_v60  ;;  %v3101_v54 = vld [vmem:[#allocation10 + $0x40] sm:$0xff] }
 0xbde   :  { %3136 = vmatpush.msra.mxu0 %v3101_v54  ;;  %3171 = vmatpush.msrb.mxu1 %v3117_v58 }
 0xbdf   :  { %2946 = vmatmul.f32.gmra.mxu2 %v8260_v50  ;;  %2981 = vmatmul.f32.gmra.mxu3 %v8260_v50 }
 0xbe0   :  { %3137 = vmatpush.msra.mxu0 %v3100_v38  ;;  %3172 = vmatpush.msrb.mxu1 %v3116_v15 }
 0xbe2   :  { %3138 = vmatpush.msra.mxu0 %v3099_v46  ;;  %3173 = vmatpush.msrb.mxu1 %v3115_v17 }
 0xbe4   :  { %3139 = vmatpush.msra.mxu0 %v3098_v39  ;;  %3174 = vmatpush.msrb.mxu1 %v3114_v49 }
 0xbe6   :  { %3140 = vmatpush.msra.mxu0 %v3097_v19  ;;  %3175 = vmatpush.msrb.mxu1 %v3113_v41 }
 0xbe8   :  { %3141 = vmatpush.msra.mxu0 %v3096_v61  ;;  %3176 = vmatpush.msrb.mxu1 %v3112_v40 }
 0xbea   :  { %3142 = vmatpush.msra.mxu0 %v3095_v27  ;;  %3177 = vmatpush.msrb.mxu1 %v3111_v2 }
 0xbec   :  { %3143 = vmatpush.msra.mxu0 %v3094_v53  ;;  %3178 = vmatpush.msrb.mxu1 %v3110_v57 }
 0xbee   :  { %3144 = vmatpush.msra.mxu0 %v3093_v33  ;;  %3179 = vmatpush.msrb.mxu1 %v3109_v14 }
 0xc2b   :  { %v2932_v31 = vpop.f32.mrf.mxu2  ;;  %v2967_v13 = vpop.f32.mrf.mxu3 }
 0xc2c   :  { %v2933_v52 = vadd.f32 %v2932_v31, %v8267_v6  ;;  %v2968_v5 = vadd.f32 %v2967_v13, %v8269_v45 }
 0xc2e   :  { %v2985_v23 = vmul.f32 %v2933_v52, %v2933_v52  ;;  %v2986_v51 = vmul.f32 %v2968_v5, %v2968_v5 }
 0xc30   :  { %v2997_v0 = vmul.f32 %v2985_v23, %v2933_v52  ;;  %v2998_v35 = vmul.f32 %v2986_v51, %v2968_v5 }
 0xc32   :  { %v3009_v12 = vmul.f32 0.044715, %v2997_v0  ;;  %v3010_v7 = vmul.f32 0.044715, %v2998_v35 }
 0xc33   :  { %v2935_v32 = vpop.f32.mrf.mxu2  ;;  %v2970_v43 = vpop.f32.mrf.mxu3 }
 0xc34   :  { %v3021_v11 = vadd.f32 %v3009_v12, %v2933_v52  ;;  %v3022_v36 = vadd.f32 %v3010_v7, %v2968_v5  ;;  %v2936_v24 = vadd.f32 %v2935_v32, %v8267_v6  ;;  %v2971_v42 = vadd.f32 %v2970_v43, %v8269_v45 }
 0xc36   :  { %v3033_v44 = vmul.f32 0.7978846, %v3021_v11  ;;  %v3034_v21 = vmul.f32 0.7978846, %v3022_v36  ;;  %v2987_v4 = vmul.f32 %v2936_v24, %v2936_v24  ;;  %v2988_v29 = vmul.f32 %v2971_v42, %v2971_v42 }
 0xc38   :  { %6828 = vtanh.f32 %v3033_v44  ;;  %v3000_v47 = vmul.f32 %v2988_v29, %v2971_v42  ;;  %v2999_v60 = vmul.f32 %v2987_v4, %v2936_v24 }
 0xc39   :  { %6830 = vtanh.f32 %v3034_v21 }
 0xc3a   :  { %v3012_v3 = vmul.f32 0.044715, %v3000_v47  ;;  %v3011_v37 = vmul.f32 0.044715, %v2999_v60 }
 0xc3b   :  { %v2938_v34 = vpop.f32.mrf.mxu2  ;;  %v2973_v25 = vpop.f32.mrf.mxu3 }
 0xc3c   :  { %v2939_v22 = vadd.f32 %v2938_v34, %v8267_v6  ;;  %v2974_v10 = vadd.f32 %v2973_v25, %v8269_v45  ;;  %v3023_v9 = vadd.f32 %v3011_v37, %v2936_v24  ;;  %v3024_v48 = vadd.f32 %v3012_v3, %v2971_v42 }
 0xc3e   :  { %v6829_v54 = vpop.eup %6828  ;;  %v2989_v58 = vmul.f32 %v2939_v22, %v2939_v22  ;;  %v2990_v38 = vmul.f32 %v2974_v10, %v2974_v10  ;;  %v3035_v15 = vmul.f32 0.7978846, %v3023_v9  ;;  %v3036_v46 = vmul.f32 0.7978846, %v3024_v48 }
 0xc3f   :  { %v6831_v17 = vpop.eup %6830  ;;  %v3057_v39 = vadd.f32 1.0, %v6829_v54 }
 0xc40   :  { %v3058_v49 = vadd.f32 1.0, %v6831_v17  ;;  %v3002_v19 = vmul.f32 %v2990_v38, %v2974_v10  ;;  %6832 = vtanh.f32 %v3035_v15  ;;  %v3001_v41 = vmul.f32 %v2989_v58, %v2939_v22 }
 0xc41   :  { %v3069_v61 = vmul.f32 0.5, %v3057_v39  ;;  %6834 = vtanh.f32 %v3036_v46 }
 0xc42   :  { %v3070_v40 = vmul.f32 0.5, %v3058_v49  ;;  %v3014_v27 = vmul.f32 0.044715, %v3002_v19  ;;  %v3013_v2 = vmul.f32 0.044715, %v3001_v41 }
 0xc43   :  { %v3081_v53 = vmul.f32 %v3069_v61, %v2933_v52 }
 0xc44   :  { %v3082_v30 = vmul.f32 %v3070_v40, %v2968_v5  ;;  %v3025_v57 = vadd.f32 %v3013_v2, %v2939_v22  ;;  %v3026_v33 = vadd.f32 %v3014_v27, %v2974_v10 }
 0xc45   :  { %3145 = vmatmul.f32.vlgmr.msra.gmra.mxu0 %v3081_v53 }
 0xc46   :  { %v6833_v14 = vpop.eup %6832  ;;  %3180 = vmatmul.f32.vlgmr.msrb.gmra.mxu1 %v3082_v30  ;;  %v3037_v31 = vmul.f32 0.7978846, %v3025_v57  ;;  %v3038_v13 = vmul.f32 0.7978846, %v3026_v33 }
 0xc47   :  { %v6835_v23 = vpop.eup %6834  ;;  %v3059_v51 = vadd.f32 1.0, %v6833_v14 }
 0xc48   :  { %v3060_v0 = vadd.f32 1.0, %v6835_v23  ;;  %6836 = vtanh.f32 %v3037_v31 }
 0xc49   :  { %v3071_v35 = vmul.f32 0.5, %v3059_v51  ;;  %6838 = vtanh.f32 %v3038_v13  ;;  %v2941_v32 = vpop.f32.mrf.mxu2  ;;  %v2976_v43 = vpop.f32.mrf.mxu3 }
 0xc4a   :  { %v3072_v12 = vmul.f32 0.5, %v3060_v0  ;;  %v2942_v52 = vadd.f32 %v2941_v32, %v8267_v6  ;;  %v2977_v5 = vadd.f32 %v2976_v43, %v8269_v45 }
 0xc4b   :  { %v3083_v7 = vmul.f32 %v3071_v35, %v2936_v24 }
 0xc4c   :  { %v3084_v11 = vmul.f32 %v3072_v12, %v2971_v42  ;;  %v2991_v21 = vmul.f32 %v2942_v52, %v2942_v52  ;;  %v2992_v4 = vmul.f32 %v2977_v5, %v2977_v5 }
 0xc4d   :  { %3148 = vmatmul.f32.gmra.mxu0 %v3083_v7 }
 0xc4e   :  { %v6837_v36 = vpop.eup %6836  ;;  %3183 = vmatmul.f32.gmra.mxu1 %v3084_v11  ;;  %v3004_v60 = vmul.f32 %v2992_v4, %v2977_v5  ;;  %v3003_v37 = vmul.f32 %v2991_v21, %v2942_v52 }
 0xc4f   :  { %v6839_v44 = vpop.eup %6838  ;;  %v3061_v29 = vadd.f32 1.0, %v6837_v36 }
 0xc50   :  { %v3062_v47 = vadd.f32 1.0, %v6839_v44  ;;  %v3016_v24 = vmul.f32 0.044715, %v3004_v60  ;;  %v3015_v9 = vmul.f32 0.044715, %v3003_v37 }
 0xc51   :  { %v3073_v3 = vmul.f32 0.5, %v3061_v29 }
 0xc52   :  { %v3074_v34 = vmul.f32 0.5, %v3062_v47  ;;  %v3027_v48 = vadd.f32 %v3015_v9, %v2942_v52  ;;  %v3028_v54 = vadd.f32 %v3016_v24, %v2977_v5 }
 0xc53   :  { %v3085_v25 = vmul.f32 %v3073_v3, %v2939_v22 }
 0xc54   :  { %v3086_v42 = vmul.f32 %v3074_v34, %v2974_v10  ;;  %v3039_v58 = vmul.f32 0.7978846, %v3027_v48  ;;  %v3040_v38 = vmul.f32 0.7978846, %v3028_v54 }
 0xc55   :  { %3151 = vmatmul.f32.gmra.mxu0 %v3085_v25 }
 0xc56   :  { %3186 = vmatmul.f32.gmra.mxu1 %v3086_v42  ;;  %6840 = vtanh.f32 %v3039_v58 }
 0xc57   :  { %6842 = vtanh.f32 %v3040_v38 }
 0xc5a   :  { %v2944_v15 = vpop.f32.mrf.mxu2  ;;  %v2979_v46 = vpop.f32.mrf.mxu3 }
 0xc5b   :  { %v2945_v17 = vadd.f32 %v2944_v15, %v8267_v6  ;;  %v2980_v39 = vadd.f32 %v2979_v46, %v8269_v45  ;;  %v6697_v46 = vld [vmem:[%s9264_s19] ss:$0 sm:$0xff] }
 0xc5c   :  { %v6841_v41 = vpop.eup %6840 }
 0xc5d   :  { %v2993_v49 = vmul.f32 %v2945_v17, %v2945_v17  ;;  %v2994_v19 = vmul.f32 %v2980_v39, %v2980_v39  ;;  %v6843_v22 = vpop.eup %6842  ;;  %v3063_v40 = vadd.f32 1.0, %v6841_v41 }
 0xc5e   :  { %v3064_v27 = vadd.f32 1.0, %v6843_v22 }
 0xc5f   :  { %v3005_v61 = vmul.f32 %v2993_v49, %v2945_v17  ;;  %v3006_v10 = vmul.f32 %v2994_v19, %v2980_v39  ;;  %v3075_v30 = vmul.f32 0.5, %v3063_v40 }
 0xc60   :  { %v3076_v14 = vmul.f32 0.5, %v3064_v27 }
 0xc61   :  { %v3017_v2 = vmul.f32 0.044715, %v3005_v61  ;;  %v3018_v53 = vmul.f32 0.044715, %v3006_v10  ;;  %v3087_v23 = vmul.f32 %v3075_v30, %v2942_v52 }
 0xc62   :  { %v2947_v57 = vpop.f32.mrf.mxu2  ;;  %v2982_v33 = vpop.f32.mrf.mxu3  ;;  %v3088_v0 = vmul.f32 %v3076_v14, %v2977_v5 }
 0xc63   :  { %v2948_v31 = vadd.f32 %v2947_v57, %v8267_v6  ;;  %v2983_v13 = vadd.f32 %v2982_v33, %v8269_v45  ;;  %v3029_v51 = vadd.f32 %v3017_v2, %v2945_v17  ;;  %v3030_v35 = vadd.f32 %v3018_v53, %v2980_v39  ;;  %3154 = vmatmul.f32.gmra.mxu0 %v3087_v23 }
 0xc64   :  { %3189 = vmatmul.f32.gmra.mxu1 %v3088_v0 }
 0xc65   :  { %v2995_v12 = vmul.f32 %v2948_v31, %v2948_v31  ;;  %v2996_v7 = vmul.f32 %v2983_v13, %v2983_v13  ;;  %v3041_v32 = vmul.f32 0.7978846, %v3029_v51  ;;  %v3042_v43 = vmul.f32 0.7978846, %v3030_v35 }
 0xc67   :  { %v3007_v11 = vmul.f32 %v2995_v12, %v2948_v31  ;;  %v3008_v36 = vmul.f32 %v2996_v7, %v2983_v13  ;;  %6844 = vtanh.f32 %v3041_v32 }
 0xc68   :  { %6846 = vtanh.f32 %v3042_v43 }
 0xc69   :  { %v3019_v44 = vmul.f32 0.044715, %v3007_v11  ;;  %v3020_v21 = vmul.f32 0.044715, %v3008_v36 }
 0xc6b   :  { %v3031_v4 = vadd.f32 %v3019_v44, %v2948_v31  ;;  %v3032_v6 = vadd.f32 %v3020_v21, %v2983_v13 }
 0xc6d   :  { %v6845_v29 = vpop.eup %6844  ;;  %v3043_v45 = vmul.f32 0.7978846, %v3031_v4  ;;  %v3044_v52 = vmul.f32 0.7978846, %v3032_v6 }
 0xc6e   :  { %v6847_v47 = vpop.eup %6846  ;;  %v3065_v5 = vadd.f32 1.0, %v6845_v29 }
 0xc6f   :  { %v3066_v60 = vadd.f32 1.0, %v6847_v47  ;;  %6848 = vtanh.f32 %v3043_v45 }
 0xc70   :  { %v3077_v3 = vmul.f32 0.5, %v3065_v5  ;;  %6850 = vtanh.f32 %v3044_v52  ;;  %v3391_v5 = vld [vmem:[#allocation5 + $0x2e8] sm:$0xff] }
 0xc71   :  { %v3078_v37 = vmul.f32 0.5, %v3066_v60  ;;  %v3392_v60 = vld [vmem:[#allocation5 + $0x2f0] sm:$0xff]  ;;  %3403 = vmatpush.msrb.mxu2 %v3391_v5  ;;  %v3349_v5 = vld [vmem:[#allocation5 + $0x198] sm:$0xff] }
 0xc72   :  { %v3089_v34 = vmul.f32 %v3077_v3, %v2945_v17  ;;  %v3393_v3 = vld [vmem:[#allocation5 + $0x2f8] sm:$0xff]  ;;  %3438 = vmatpush.msrb.mxu3 %v3392_v60  ;;  %v3350_v60 = vld [vmem:[#allocation5 + $0x1a0] sm:$0xff] }
 0xc73   :  { %v3090_v24 = vmul.f32 %v3078_v37, %v2980_v39  ;;  %v3388_v37 = vld [vmem:[#allocation5 + $0x2d0] sm:$0xff]  ;;  %3473 = vmatpush.msrb.mxu0 %v3393_v3  ;;  %v3351_v3 = vld [vmem:[#allocation5 + $0x1a8] sm:$0xff] }
 0xc74   :  { %3157 = vmatmul.f32.gmra.mxu0 %v3089_v34  ;;  %v3389_v34 = vld [vmem:[#allocation5 + $0x2d8] sm:$0xff]  ;;  %3404 = vmatpush.msrb.mxu2 %v3388_v37 }
 0xc75   :  { %v6849_v25 = vpop.eup %6848  ;;  %3192 = vmatmul.f32.gmra.mxu1 %v3090_v24  ;;  %v3390_v24 = vld [vmem:[#allocation5 + $0x2e0] sm:$0xff]  ;;  %3439 = vmatpush.msrb.mxu3 %v3389_v34 }
 0xc76   :  { %v6851_v9 = vpop.eup %6850  ;;  %v3067_v42 = vadd.f32 1.0, %v6849_v25  ;;  %3474 = vmatpush.msrb.mxu0 %v3390_v24  ;;  %v3346_v24 = vld [vmem:[#allocation5 + $0x180] sm:$0xff] }
 0xc77   :  { %v3068_v48 = vadd.f32 1.0, %v6851_v9 }
 0xc78   :  { %v3079_v54 = vmul.f32 0.5, %v3067_v42 }
 0xc79   :  { %v3080_v58 = vmul.f32 0.5, %v3068_v48 }
 0xc7a   :  { %v3091_v38 = vmul.f32 %v3079_v54, %v2948_v31 }
 0xc7b   :  { %v3092_v15 = vmul.f32 %v3080_v58, %v2983_v13 }
 0xc7c   :  { %3160 = vmatmul.f32.gmra.mxu0 %v3091_v38 }
 0xc7d   :  { %3195 = vmatmul.f32.gmra.mxu1 %v3092_v15 }
 0xcc2   :  { %v3146_v49 = vpop.f32.mrf.mxu0 }
 0xcc3   :  { %v3147_v19 = vadd.f32 %v6697_v46, %v3146_v49  ;;  %v3181_v17 = vpop.f32.mrf.mxu1 }
 0xcc5   :  { %v3182_v39 = vadd.f32 %v3181_v17, %v3147_v19 }
 0xcc7   :  { %v3199_v41 = vadd.f32 %v3182_v39, %v8222_v62  ;;  %v3385_v39 = vld [vmem:[#allocation5 + $0x2b8] sm:$0xff] }
 0xcc8   :  { %3405 = vmatpush.msrb.mxu2 %v3385_v39 }
 0xcc9   :  { %3207 = vadd.xlane.f32.xlu1 %v3199_v41 }
 0xcca   :  { %v3149_v22 = vpop.f32.mrf.mxu0 }
 0xccb   :  { %v3150_v61 = vadd.f32 %v6697_v46, %v3149_v22  ;;  %v3184_v10 = vpop.f32.mrf.mxu1  ;;  %v3387_v22 = vld [vmem:[#allocation5 + $0x2c8] sm:$0xff] }
 0xccc   :  { %3475 = vmatpush.msrb.mxu0 %v3387_v22 }
 0xccd   :  { %v3185_v40 = vadd.f32 %v3184_v10, %v3150_v61  ;;  %v3382_v61 = vld [vmem:[#allocation5 + $0x2a0] sm:$0xff]  ;;  %v3383_v10 = vld [vmem:[#allocation5 + $0x2a8] sm:$0xff] }
 0xcce   :  { %3406 = vmatpush.msrb.mxu2 %v3382_v61 }
 0xccf   :  { %v3200_v27 = vadd.f32 %v3185_v40, %v8230_v8  ;;  %v3384_v40 = vld [vmem:[#allocation5 + $0x2b0] sm:$0xff] }
 0xcd0   :  { %3476 = vmatpush.msrb.mxu0 %v3384_v40 }
 0xcd1   :  { %3209 = vadd.xlane.f32.xlu0 %v3200_v27 }
 0xcd2   :  { %v3152_v2 = vpop.f32.mrf.mxu0 }
 0xcd3   :  { %v3153_v53 = vadd.f32 %v6697_v46, %v3152_v2  ;;  %v3187_v30 = vpop.f32.mrf.mxu1  ;;  %v3380_v2 = vld [vmem:[#allocation5 + $0x290] sm:$0xff] }
 0xcd5   :  { %v3188_v57 = vadd.f32 %v3187_v30, %v3153_v53  ;;  %v3381_v53 = vld [vmem:[#allocation5 + $0x298] sm:$0xff]  ;;  %v3376_v30 = vld [vmem:[#allocation5 + $0x270] sm:$0xff] }
 0xcd6   :  { %3477 = vmatpush.msrb.mxu0 %v3381_v53  ;;  %v8328_v53 = vld [vmem:[%s9265_s20] ss:$0 sm:$0xff] }
 0xcd7   :  { %v3201_v33 = vadd.f32 %v3188_v57, %v8237_v16  ;;  %v3377_v57 = vld [vmem:[#allocation5 + $0x278] sm:$0xff] }
 0xcd9   :  { %3211 = vadd.xlane.f32.xlu2 %v3201_v33 }
 0xce0   :  { %v3155_v14 = vpop.f32.mrf.mxu0 }
 0xce1   :  { %v3156_v31 = vadd.f32 %v6697_v46, %v3155_v14  ;;  %v3190_v13 = vpop.f32.mrf.mxu1  ;;  %v3373_v14 = vld [vmem:[#allocation5 + $0x258] sm:$0xff] }
 0xce3   :  { %v3191_v23 = vadd.f32 %v3190_v13, %v3156_v31  ;;  %v3374_v31 = vld [vmem:[#allocation5 + $0x260] sm:$0xff]  ;;  %v3375_v13 = vld [vmem:[#allocation5 + $0x268] sm:$0xff] }
 0xce5   :  { %v3202_v62 = vadd.f32 %v3191_v23, %v8246_v56  ;;  %v3370_v23 = vld [vmem:[#allocation5 + $0x240] sm:$0xff] }
 0xce7   :  { %3213 = vadd.xlane.f32.xlu1 %v3202_v62 }
 0xcf1   :  { %v3158_v51 = vpop.f32.mrf.mxu0 }
 0xcf2   :  { %v3159_v0 = vadd.f32 %v6697_v46, %v3158_v51  ;;  %v3193_v35 = vpop.f32.mrf.mxu1  ;;  %v3372_v51 = vld [vmem:[#allocation5 + $0x250] sm:$0xff] }
 0xcf4   :  { %v3194_v12 = vadd.f32 %v3193_v35, %v3159_v0  ;;  %v3367_v0 = vld [vmem:[#allocation5 + $0x228] sm:$0xff]  ;;  %v3368_v35 = vld [vmem:[#allocation5 + $0x230] sm:$0xff] }
 0xcf6   :  { %v3203_v8 = vadd.f32 %v3194_v12, %v8253_v55  ;;  %v3369_v12 = vld [vmem:[#allocation5 + $0x238] sm:$0xff] }
 0xcf8   :  { %3215 = vadd.xlane.f32.xlu0 %v3203_v8 }
 0xcf9   :  { %v3161_v7 = vpop.f32.mrf.mxu0 }
 0xcfa   :  { %v3162_v32 = vadd.f32 %v6697_v46, %v3161_v7  ;;  %v3196_v43 = vpop.f32.mrf.mxu1  ;;  %v3365_v7 = vld [vmem:[#allocation5 + $0x218] sm:$0xff] }
 0xcfc   :  { %v3197_v11 = vadd.f32 %v3196_v43, %v3162_v32  ;;  %v3366_v32 = vld [vmem:[#allocation5 + $0x220] sm:$0xff]  ;;  %v3361_v43 = vld [vmem:[#allocation5 + $0x1f8] sm:$0xff] }
 0xcfe   :  { %v3204_v16 = vadd.f32 %v3197_v11, %v8260_v50  ;;  %v3362_v11 = vld [vmem:[#allocation5 + $0x200] sm:$0xff] }
 0xd00   :  { %3217 = vadd.xlane.f32.xlu2 %v3204_v16 }
 0xd3c   :  { %v3208_v36 = vpop.xlane.xlu1 %3207 }
 0xd3d   :  { %v3219_v44 = vmul.f32 %v3208_v36, %v9314_v59  ;;  %v3358_v36 = vld [vmem:[#allocation5 + $0x1e0] sm:$0xff] }
 0xd3f   :  { %v8293_v21 = vsub.f32 %v3199_v41, %v3219_v44  ;;  %v3386_v41 = vld [vmem:[#allocation5 + $0x2c0] sm:$0xff]  ;;  %v3359_v44 = vld [vmem:[#allocation5 + $0x1e8] sm:$0xff] }
 0xd40   :  { %3440 = vmatpush.msrb.mxu3 %v3386_v41 }
 0xd41   :  { %v3231_v56 = vmul.f32 %v8293_v21, %v8293_v21 }
 0xd42   :  { %3441 = vmatpush.msrb.mxu3 %v3383_v10 }
 0xd43   :  { %3237 = vadd.xlane.f32.xlu1 %v3231_v56  ;;  %v3360_v56 = vld [vmem:[#allocation5 + $0x1f0] sm:$0xff] }
 0xd44   :  { %v3210_v4 = vpop.xlane.xlu0 %3209  ;;  %3442 = vmatpush.msrb.mxu3 %v3380_v2 }
 0xd45   :  { %v3220_v55 = vmul.f32 %v3210_v4, %v9314_v59  ;;  %v3355_v4 = vld [vmem:[#allocation5 + $0x1c8] sm:$0xff] }
 0xd46   :  { %3443 = vmatpush.msrb.mxu3 %v3377_v57 }
 0xd47   :  { %v8298_v6 = vsub.f32 %v3200_v27, %v3220_v55  ;;  %v3379_v27 = vld [vmem:[#allocation5 + $0x288] sm:$0xff]  ;;  %v3356_v55 = vld [vmem:[#allocation5 + $0x1d0] sm:$0xff] }
 0xd48   :  { %3407 = vmatpush.msrb.mxu2 %v3379_v27  ;;  %3444 = vmatpush.msrb.mxu3 %v3374_v31 }
 0xd49   :  { %v3232_v29 = vmul.f32 %v8298_v6, %v8298_v6 }
 0xd4a   :  { %3408 = vmatpush.msrb.mxu2 %v3376_v30 }
 0xd4b   :  { %3239 = vadd.xlane.f32.xlu0 %v3232_v29  ;;  %v3357_v29 = vld [vmem:[#allocation5 + $0x1d8] sm:$0xff] }
 0xd4c   :  { %v3212_v50 = vpop.xlane.xlu2 %3211  ;;  %3409 = vmatpush.msrb.mxu2 %v3373_v14  ;;  %v8334_v14 = vld [vmem:[%s9266_s21] ss:$0 sm:$0xff] }
 0xd4d   :  { %v3221_v45 = vmul.f32 %v3212_v50, %v9314_v59  ;;  %v3352_v50 = vld [vmem:[#allocation5 + $0x1b0] sm:$0xff] }
 0xd4e   :  { %3410 = vmatpush.msrb.mxu2 %v3370_v23 }
 0xd4f   :  { %v8303_v52 = vsub.f32 %v3201_v33, %v3221_v45  ;;  %v3378_v33 = vld [vmem:[#allocation5 + $0x280] sm:$0xff]  ;;  %v3353_v45 = vld [vmem:[#allocation5 + $0x1b8] sm:$0xff] }
 0xd50   :  { %3478 = vmatpush.msrb.mxu0 %v3378_v33  ;;  %3411 = vmatpush.msrb.mxu2 %v3367_v0 }
 0xd51   :  { %v3233_v47 = vmul.f32 %v8303_v52, %v8303_v52 }
 0xd52   :  { %3479 = vmatpush.msrb.mxu0 %v3375_v13 }
 0xd53   :  { %3241 = vadd.xlane.f32.xlu2 %v3233_v47  ;;  %v3354_v47 = vld [vmem:[#allocation5 + $0x1c0] sm:$0xff] }
 0xd54   :  { %3480 = vmatpush.msrb.mxu0 %v3372_v51 }
 0xd56   :  { %3481 = vmatpush.msrb.mxu0 %v3369_v12 }
 0xd58   :  { %3482 = vmatpush.msrb.mxu0 %v3366_v32 }
 0xd5a   :  { %v3214_v25 = vpop.xlane.xlu1 %3213 }
 0xd5b   :  { %v3222_v9 = vmul.f32 %v3214_v25, %v9314_v59  ;;  %v3347_v25 = vld [vmem:[#allocation5 + $0x188] sm:$0xff] }
 0xd5d   :  { %v8308_v42 = vsub.f32 %v3202_v62, %v3222_v9  ;;  %v3371_v62 = vld [vmem:[#allocation5 + $0x248] sm:$0xff]  ;;  %v3348_v9 = vld [vmem:[#allocation5 + $0x190] sm:$0xff] }
 0xd5e   :  { %3445 = vmatpush.msrb.mxu3 %v3371_v62 }
 0xd5f   :  { %v3234_v48 = vmul.f32 %v8308_v42, %v8308_v42 }
 0xd60   :  { %3446 = vmatpush.msrb.mxu3 %v3368_v35 }
 0xd61   :  { %3243 = vadd.xlane.f32.xlu1 %v3234_v48 }
 0xd62   :  { %3447 = vmatpush.msrb.mxu3 %v3365_v7 }
 0xd64   :  { %3448 = vmatpush.msrb.mxu3 %v3362_v11 }
 0xd66   :  { %3449 = vmatpush.msrb.mxu3 %v3359_v44 }
 0xd68   :  { %3450 = vmatpush.msrb.mxu3 %v3356_v55 }
 0xd6a   :  { %3451 = vmatpush.msrb.mxu3 %v3353_v45 }
 0xd6b   :  { %v3216_v54 = vpop.xlane.xlu0 %3215 }
 0xd6c   :  { %v3223_v58 = vmul.f32 %v3216_v54, %v9314_v59  ;;  %3452 = vmatpush.msrb.mxu3 %v3350_v60 }
 0xd6e   :  { %v8313_v38 = vsub.f32 %v3203_v8, %v3223_v58  ;;  %v3364_v8 = vld [vmem:[#allocation5 + $0x210] sm:$0xff]  ;;  %3453 = vmatpush.msrb.mxu3 %v3347_v25 }
 0xd6f   :  { %3412 = vmatpush.msrb.mxu2 %v3364_v8 }
 0xd70   :  { %v3235_v15 = vmul.f32 %v8313_v38, %v8313_v38 }
 0xd71   :  { %3413 = vmatpush.msrb.mxu2 %v3361_v43 }
 0xd72   :  { %3245 = vadd.xlane.f32.xlu0 %v3235_v15 }
 0xd73   :  { %v3218_v46 = vpop.xlane.xlu2 %3217  ;;  %3414 = vmatpush.msrb.mxu2 %v3358_v36 }
 0xd74   :  { %v3224_v49 = vmul.f32 %v3218_v46, %v9314_v59 }
 0xd75   :  { %3415 = vmatpush.msrb.mxu2 %v3355_v4 }
 0xd76   :  { %v8318_v19 = vsub.f32 %v3204_v16, %v3224_v49  ;;  %v3363_v16 = vld [vmem:[#allocation5 + $0x208] sm:$0xff] }
 0xd77   :  { %3483 = vmatpush.msrb.mxu0 %v3363_v16  ;;  %3416 = vmatpush.msrb.mxu2 %v3352_v50 }
 0xd78   :  { %v3236_v17 = vmul.f32 %v8318_v19, %v8318_v19 }
 0xd79   :  { %3484 = vmatpush.msrb.mxu0 %v3360_v56  ;;  %3417 = vmatpush.msrb.mxu2 %v3349_v5 }
 0xd7a   :  { %3247 = vadd.xlane.f32.xlu2 %v3236_v17 }
 0xd7b   :  { %3485 = vmatpush.msrb.mxu0 %v3357_v29  ;;  %3418 = vmatpush.msrb.mxu2 %v3346_v24 }
 0xd7d   :  { %3486 = vmatpush.msrb.mxu0 %v3354_v47 }
 0xd7f   :  { %3487 = vmatpush.msrb.mxu0 %v3351_v3 }
 0xd81   :  { %3488 = vmatpush.msrb.mxu0 %v3348_v9 }
 0xdb6   :  { %v3238_v37 = vpop.xlane.xlu1 %3237 }
 0xdb7   :  { %v3249_v34 = vmul.f32 %v3238_v37, %v9314_v59 }
 0xdb9   :  { %v3255_v48 = vadd.f32 1e-05, %v3249_v34 }
 0xdbb   :  { %6852 = vrsqrt.f32 %v3255_v48  ;;  %vm3267_vm15 = vweird.f32 %v3255_v48 }
 0xdbe   :  { %v3240_v54 = vpop.xlane.xlu0 %3239 }
 0xdbf   :  { %v3250_v58 = vmul.f32 %v3240_v54, %v9314_v59 }
 0xdc1   :  { %v6853_v15 = vpop.eup %6852  ;;  %v3256_v46 = vadd.f32 1e-05, %v3250_v58 }
 0xdc2   :  { %v3262_v49 = vmul.f32 %v6853_v15, %v3255_v48  ;;  %vm3268_vm12 = vweird.f32 %v6853_v15 }
 0xdc3   :  { %6854 = vrsqrt.f32 %v3256_v46  ;;  %vm3269_vm0 = vmor %vm3267_vm15, %vm3268_vm12  ;;  %vm3277_vm2 = vweird.f32 %v3256_v46 }
 0xdc4   :  { %v3263_v17 = vmul.f32 %v6853_v15, %v3262_v49 }
 0xdc6   :  { %v3264_v39 = vmul.f32 0.5, %v3263_v17  ;;  %v3242_v41 = vpop.xlane.xlu2 %3241 }
 0xdc7   :  { %v3251_v22 = vmul.f32 %v3242_v41, %v9314_v59 }
 0xdc8   :  { %v3265_v61 = vsub.f32 1.5, %v3264_v39 }
 0xdc9   :  { %v6855_v10 = vpop.eup %6854  ;;  %v3257_v40 = vadd.f32 1e-05, %v3251_v22 }
 0xdca   :  { %v3266_v27 = vmul.f32 %v6853_v15, %v3265_v61  ;;  %v3272_v2 = vmul.f32 %v6855_v10, %v3256_v46  ;;  %vm3278_vm1 = vweird.f32 %v6855_v10 }
 0xdcb   :  { %6856 = vrsqrt.f32 %v3257_v40  ;;  %vm3279_vm4 = vmor %vm3277_vm2, %vm3278_vm1  ;;  %vm3287_vm7 = vweird.f32 %v3257_v40 }
 0xdcc   :  { %v3270_v30 = vsel %vm3269_vm0, %v6853_v15, %v3266_v27  ;;  %v3273_v57 = vmul.f32 %v6855_v10, %v3272_v2 }
 0xdcd   :  { %v3321_v33 = vmul.f32 %v3270_v30, %v8293_v21 }
 0xdce   :  { %v3274_v31 = vmul.f32 0.5, %v3273_v57 }
 0xdcf   :  { %v3330_v13 = vmul.f32 %v8328_v53, %v3321_v33 }
 0xdd0   :  { %v3275_v23 = vsub.f32 1.5, %v3274_v31 }
 0xdd1   :  { %v6857_v62 = vpop.eup %6856  ;;  %v8338_v51 = vadd.f32 %v8334_v14, %v3330_v13 }
 0xdd2   :  { %v3276_v0 = vmul.f32 %v6855_v10, %v3275_v23  ;;  %v3282_v35 = vmul.f32 %v6857_v62, %v3257_v40  ;;  %vm3288_vm6 = vweird.f32 %v6857_v62 }
 0xdd3   :  { %3419 = vmatmul.f32.vlgmr.msrb.gmra.mxu2 %v8338_v51  ;;  %3454 = vmatmul.f32.vlgmr.msrb.gmra.mxu3 %v8338_v51  ;;  %vm3289_vm8 = vmor %vm3287_vm7, %vm3288_vm6 }
 0xdd4   :  { %v3280_v21 = vsel %vm3279_vm4, %v6855_v10, %v3276_v0  ;;  %v3283_v12 = vmul.f32 %v6857_v62, %v3282_v35  ;;  %3489 = vmatmul.f32.vlgmr.msrb.gmra.mxu0 %v8338_v51  ;;  %v3244_v32 = vpop.xlane.xlu1 %3243  ;;  %v6471_v35 = vld [vmem:[%s9256_s11 + $0x3] sm:$0x7]  ;;  %s9323_s11 = sld [smem:[#allocation38_spill]] }
 0xdd5   :  { %v3322_v8 = vmul.f32 %v3280_v21, %v8298_v6  ;;  %v3252_v16 = vmul.f32 %v3244_v32, %v9314_v59  ;;  %v8389_v21 = vperm.slane %v6471_v35, 0 }
 0xdd6   :  { %v3284_v7 = vmul.f32 0.5, %v3283_v12  ;;  %v3398_v12 = vperm.slane %v6471_v35, 1 }
 0xdd7   :  { %v3331_v43 = vmul.f32 %v8328_v53, %v3322_v8  ;;  %v3258_v56 = vadd.f32 1e-05, %v3252_v16 }
 0xdd8   :  { %v3285_v11 = vsub.f32 1.5, %v3284_v7 }
 0xdd9   :  { %v8347_v36 = vadd.f32 %v8334_v14, %v3331_v43  ;;  %6858 = vrsqrt.f32 %v3258_v56  ;;  %vm3297_vm10 = vweird.f32 %v3258_v56 }
 0xdda   :  { %v3286_v44 = vmul.f32 %v6857_v62, %v3285_v11 }
 0xddb   :  { %3422 = vmatmul.f32.gmra.mxu2 %v8347_v36  ;;  %3457 = vmatmul.f32.gmra.mxu3 %v8347_v36 }
 0xddc   :  { %v3290_v6 = vsel %vm3289_vm8, %v6857_v62, %v3286_v44  ;;  %3492 = vmatmul.f32.gmra.mxu0 %v8347_v36 }
 0xddd   :  { %v3323_v4 = vmul.f32 %v3290_v6, %v8303_v52 }
 0xddf   :  { %v3332_v55 = vmul.f32 %v8328_v53, %v3323_v4  ;;  %v6859_v50 = vpop.eup %6858 }
 0xde0   :  { %v3292_v45 = vmul.f32 %v6859_v50, %v3258_v56  ;;  %vm3298_vm9 = vweird.f32 %v6859_v50 }
 0xde1   :  { %v8355_v29 = vadd.f32 %v8334_v14, %v3332_v55  ;;  %vm3299_vm11 = vmor %vm3297_vm10, %vm3298_vm9 }
 0xde2   :  { %v3293_v47 = vmul.f32 %v6859_v50, %v3292_v45 }
 0xde3   :  { %3425 = vmatmul.f32.gmra.mxu2 %v8355_v29  ;;  %3460 = vmatmul.f32.gmra.mxu3 %v8355_v29 }
 0xde4   :  { %3495 = vmatmul.f32.gmra.mxu0 %v8355_v29  ;;  %v3294_v60 = vmul.f32 0.5, %v3293_v47 }
 0xde5   :  { %v3246_v5 = vpop.xlane.xlu0 %3245 }
 0xde6   :  { %v3253_v3 = vmul.f32 %v3246_v5, %v9314_v59  ;;  %v3295_v37 = vsub.f32 1.5, %v3294_v60 }
 0xde8   :  { %v3259_v52 = vadd.f32 1e-05, %v3253_v3  ;;  %v3296_v34 = vmul.f32 %v6859_v50, %v3295_v37 }
 0xdea   :  { %6860 = vrsqrt.f32 %v3259_v52  ;;  %v3300_v24 = vsel %vm3299_vm11, %v6859_v50, %v3296_v34  ;;  %vm3307_vm15 = vweird.f32 %v3259_v52 }
 0xdeb   :  { %v3324_v25 = vmul.f32 %v3300_v24, %v8308_v42 }
 0xded   :  { %v3248_v9 = vpop.xlane.xlu2 %3247  ;;  %v3333_v54 = vmul.f32 %v8328_v53, %v3324_v25 }
 0xdee   :  { %v3254_v48 = vmul.f32 %v3248_v9, %v9314_v59 }
 0xdef   :  { %v8365_v49 = vadd.f32 %v8334_v14, %v3333_v54 }
 0xdf0   :  { %v6861_v58 = vpop.eup %6860  ;;  %v3260_v15 = vadd.f32 1e-05, %v3254_v48 }
 0xdf1   :  { %v3302_v46 = vmul.f32 %v6861_v58, %v3259_v52  ;;  %3428 = vmatmul.f32.gmra.mxu2 %v8365_v49  ;;  %3463 = vmatmul.f32.gmra.mxu3 %v8365_v49  ;;  %vm3308_vm12 = vweird.f32 %v6861_v58 }
 0xdf2   :  { %6862 = vrsqrt.f32 %v3260_v15  ;;  %3498 = vmatmul.f32.gmra.mxu0 %v8365_v49  ;;  %vm3309_vm0 = vmor %vm3307_vm15, %vm3308_vm12  ;;  %vm3317_vm2 = vweird.f32 %v3260_v15 }
 0xdf3   :  { %v3303_v17 = vmul.f32 %v6861_v58, %v3302_v46 }
 0xdf5   :  { %v3304_v42 = vmul.f32 0.5, %v3303_v17 }
 0xdf7   :  { %v3305_v39 = vsub.f32 1.5, %v3304_v42 }
 0xdf8   :  { %v6863_v41 = vpop.eup %6862 }
 0xdf9   :  { %v3306_v22 = vmul.f32 %v6861_v58, %v3305_v39  ;;  %v3312_v61 = vmul.f32 %v6863_v41, %v3260_v15  ;;  %vm3318_vm1 = vweird.f32 %v6863_v41 }
 0xdfa   :  { %vm3319_vm4 = vmor %vm3317_vm2, %vm3318_vm1 }
 0xdfb   :  { %v3310_v10 = vsel %vm3309_vm0, %v6861_v58, %v3306_v22  ;;  %v3313_v40 = vmul.f32 %v6863_v41, %v3312_v61 }
 0xdfc   :  { %v3325_v27 = vmul.f32 %v3310_v10, %v8313_v38 }
 0xdfd   :  { %v3314_v2 = vmul.f32 0.5, %v3313_v40 }
 0xdfe   :  { %v3334_v30 = vmul.f32 %v8328_v53, %v3325_v27 }
 0xdff   :  { %v3315_v57 = vsub.f32 1.5, %v3314_v2 }
 0xe00   :  { %v8373_v33 = vadd.f32 %v8334_v14, %v3334_v30 }
 0xe01   :  { %v3316_v31 = vmul.f32 %v6863_v41, %v3315_v57 }
 0xe02   :  { %3431 = vmatmul.f32.gmra.mxu2 %v8373_v33  ;;  %3466 = vmatmul.f32.gmra.mxu3 %v8373_v33 }
 0xe03   :  { %v3320_v13 = vsel %vm3319_vm4, %v6863_v41, %v3316_v31  ;;  %3501 = vmatmul.f32.gmra.mxu0 %v8373_v33 }
 0xe04   :  { %v3326_v38 = vmul.f32 %v3320_v13, %v8318_v19  ;;  %v3399_v19 = vperm.slane %v6471_v35, 2 }
 0xe06   :  { %v3335_v23 = vmul.f32 %v8328_v53, %v3326_v38 }
 0xe08   :  { %v8381_v62 = vadd.f32 %v8334_v14, %v3335_v23 }
 0xe0a   :  { %3434 = vmatmul.f32.gmra.mxu2 %v8381_v62  ;;  %3469 = vmatmul.f32.gmra.mxu3 %v8381_v62 }
 0xe0b   :  { %3504 = vmatmul.f32.gmra.mxu0 %v8381_v62 }
 0xe51   :  { %v3490_v0 = vpop.f32.mrf.mxu0 }
 0xe52   :  { %v8400_v43 = vadd.f32 %v3490_v0, %v3399_v19 }
 0xe56   :  { %v3420_v8 = vpop.f32.mrf.mxu2  ;;  %v3455_v53 = vpop.f32.mrf.mxu3 }
 0xe57   :  { %v8392_v14 = vadd.f32 %v3420_v8, %v8389_v21  ;;  %v8394_v7 = vadd.f32 %v3455_v53, %v3398_v12 }
 0xe59   :  { %v3493_v32 = vpop.f32.mrf.mxu0  ;;  %3960 = vrot.lane.b32.xlu1 %v8394_v7, %s7254_s22  ;;  %6472 = vmatpush.xpose.msk.msra.mxu1 %vm675_vm13, %v8394_v7 }
 0xe5a   :  { %v8402_v11 = vadd.f32 %v3493_v32, %v3399_v19  ;;  %3958 = vrot.lane.b32.xlu0 %v8392_v14, %s7254_s22 }
 0xe5c   :  { %6473 = vmatmul.msk.f32.vlgmr.msra.gmra.mxu1 %vm675_vm13, %v8392_v14  ;;  %v6667_v16 = vpack.i.bf16 %v8402_v11, %v8400_v43 }
 0xe5e   :  { %v3423_v44 = vpop.f32.mrf.mxu2  ;;  %v3458_v56 = vpop.f32.mrf.mxu3 }
 0xe5f   :  { %v8410_v6 = vadd.f32 %v3458_v56, %v3398_v12  ;;  %v8417_v55 = vadd.f32 %v3423_v44, %v8389_v21 }
 0xe61   :  { %v3496_v4 = vpop.f32.mrf.mxu0  ;;  %3988 = vrot.lane.b32.xlu2 %v8410_v6, %s7254_s22  ;;  %6474 = vmatpush.xpose.msk.msra.mxu2 %vm675_vm13, %v8410_v6 }
 0xe62   :  { %v8419_v50 = vadd.f32 %v3496_v4, %v3399_v19 }
 0xe64   :  { %6475 = vmatmul.msk.f32.vlgmr.msra.gmra.mxu2 %vm675_vm13, %v8417_v55  ;;  %v6647_v45 = vpack.i.bf16 %v8419_v50, %v8402_v11  ;;  %v6657_v47 = vpack.i.bf16 %v8400_v43, %v8419_v50 }
 0xe66   :  { %v3461_v5 = vpop.f32.mrf.mxu3  ;;  %v3426_v60 = vpop.f32.mrf.mxu2 }
 0xe67   :  { %v8427_v3 = vadd.f32 %v3461_v5, %v3398_v12  ;;  %v8432_v37 = vadd.f32 %v3426_v60, %v8389_v21 }
 0xe69   :  { %6476 = vmatpush.xpose.msk.msra.mxu3 %vm675_vm13, %v8427_v3 }
 0xe6c   :  { %6477 = vmatmul.msk.f32.vlgmr.msra.gmra.mxu3 %vm675_vm13, %v8432_v37 }
 0xe6d   :  { %3838 = vmatpush.msrb.mxu3 %v8400_v43 }
 0xe6f   :  { %v3499_v52 = vpop.f32.mrf.mxu0 }
 0xe70   :  { %v8437_v34 = vadd.f32 %v3499_v52, %v3399_v19 }
 0xe72   :  { %v6662_v24 = vpack.i.bf16 %v8402_v11, %v8437_v34 }
 0xe74   :  { %v3464_v9 = vpop.f32.mrf.mxu3  ;;  %v3429_v48 = vpop.f32.mrf.mxu2 }
 0xe75   :  { %v8443_v54 = vadd.f32 %v3464_v9, %v3398_v12  ;;  %v8448_v58 = vadd.f32 %v3429_v48, %v8389_v21 }
 0xe77   :  { %6478 = vmatpush.xpose.msk.msra.mxu0 %vm675_vm13, %v8443_v54 }
 0xe7a   :  { %6479 = vmatmul.msk.f32.vlgmr.msra.gmra.mxu0 %vm675_vm13, %v8448_v58 }
 0xe7b   :  { %3861 = vmatpush.msrb.mxu0 %v8402_v11 }
 0xe80   :  { %v3502_v15 = vpop.f32.mrf.mxu0 }
 0xe81   :  { %v8453_v46 = vadd.f32 %v3502_v15, %v3399_v19 }
 0xe83   :  { %3930 = vmatpush.msra.mxu3 %v8453_v46 }
 0xe85   :  { %v3432_v17 = vpop.f32.mrf.mxu2  ;;  %v3467_v42 = vpop.f32.mrf.mxu3 }
 0xe86   :  { %v8457_v39 = vadd.f32 %v3432_v17, %v8389_v21  ;;  %v8459_v41 = vadd.f32 %v3467_v42, %v3398_v12 }
 0xe88   :  { %v3505_v22 = vpop.f32.mrf.mxu0  ;;  %4072 = vrot.lane.b32.xlu0 %v8459_v41, %s7254_s22  ;;  %6480 = vmatpush.xpose.msk.msrb.mxu1 %vm675_vm13, %v8459_v41 }
 0xe89   :  { %v8465_v61 = vadd.f32 %v3505_v22, %v3399_v19  ;;  %4070 = vrot.lane.b32.xlu2 %v8457_v39, %s7254_s22 }
 0xe8b   :  { %3953 = vmatpush.msra.mxu0 %v8465_v61  ;;  %6481 = vmatmul.msk.f32.vlgmr.msrb.gmra.mxu1 %vm675_vm13, %v8457_v39 }
 0xe8c   :  { %3884 = vmatpush.msra.mxu1 %v8419_v50 }
 0xe8d   :  { %v3470_v10 = vpop.f32.mrf.mxu3  ;;  %v3435_v40 = vpop.f32.mrf.mxu2 }
 0xe8e   :  { %v8473_v27 = vadd.f32 %v3470_v10, %v3398_v12  ;;  %v8478_v2 = vadd.f32 %v3435_v40, %v8389_v21 }
 0xe90   :  { %6482 = vmatpush.xpose.msk.msrb.mxu2 %vm675_vm13, %v8473_v27 }
 0xe93   :  { %6483 = vmatmul.msk.f32.vlgmr.msrb.gmra.mxu2 %vm675_vm13, %v8478_v2 }
 0xe94   :  { %3907 = vmatpush.msra.mxu2 %v8437_v34 }
 0xebb   :  { %v3989_v30 = vpop.permute.xlu2 %3988 }
 0xebc   :  { %6492 = vmatpush.xpose.msk.msrb.mxu2 %vm675_vm13, %v3989_v30 }
 0xecb   :  { %v3961_v57 = vpop.permute.xlu1 %3960 }
 0xecc   :  { %6490 = vmatpush.xpose.msk.msrb.mxu1 %vm675_vm13, %v3961_v57  ;;  %v8503_v10 = vpop.permute.xlu0 %3958 }
 0xed9   :  { %v3531_v31 = vpop.f32.mrf.mxu1 }
 0xeda   :  { %v3664_v13 = vmul.f32 0.17677669, %v3531_v31 }
 0xedc   :  { %v3670_v38 = vadd.f32 %v3664_v13, %v7650_v26 }
 0xede   :  { %v3676_v23 = vsel %vm856_vm14, %v3670_v38, -inf }
 0xedf   :  { %3677 = vmax.xlane.f32.xlu0 %v3676_v23 }
 0xee7   :  { %v3557_v0 = vpop.f32.mrf.mxu2 }
 0xee8   :  { %v3665_v35 = vmul.f32 0.17677669, %v3557_v0 }
 0xeea   :  { %v3671_v21 = vadd.f32 %v3665_v35, %v7652_v28 }
 0xeec   :  { %v3679_v12 = vsel %vm856_vm14, %v3671_v21, -inf }
 0xeed   :  { %3680 = vmax.xlane.f32.xlu1 %v3679_v12 }
 0xeef   :  { %v3583_v19 = vpop.f32.mrf.mxu3 }
 0xef0   :  { %v3666_v8 = vmul.f32 0.17677669, %v3583_v19 }
 0xef2   :  { %v3672_v53 = vadd.f32 %v3666_v8, %v7658_v63 }
 0xef4   :  { %v3682_v32 = vsel %vm856_vm14, %v3672_v53, -inf }
 0xef5   :  { %3683 = vmax.xlane.f32.xlu1 %v3682_v32 }
 0xef7   :  { %v3609_v44 = vpop.f32.mrf.mxu0 }
 0xef8   :  { %v3667_v56 = vmul.f32 0.17677669, %v3609_v44  ;;  %v8513_v44 = vpop.permute.xlu2 %4070 }
 0xefa   :  { %v3673_v4 = vadd.f32 %v3667_v56, %v7665_v1  ;;  %v8505_v40 = vpop.permute.xlu0 %4072 }
 0xefc   :  { %v3685_v5 = vsel %vm856_vm14, %v3673_v4, -inf }
 0xefd   :  { %3686 = vmax.xlane.f32.xlu2 %v3685_v5 }
 0xf08   :  { %v3635_v60 = vpop.f32.mrf.mxu1 }
 0xf09   :  { %v3668_v52 = vmul.f32 0.17677669, %v3635_v60 }
 0xf0b   :  { %v3674_v9 = vadd.f32 %v3668_v52, %v7669_v18 }
 0xf0d   :  { %v3688_v48 = vsel %vm856_vm14, %v3674_v9, -inf }
 0xf0e   :  { %3986 = vrot.lane.b32.xlu1 %v8417_v55, %s7254_s22  ;;  %3689 = vmax.xlane.f32.xlu0 %v3688_v48 }
 0xf16   :  { %v3661_v15 = vpop.f32.mrf.mxu2 }
 0xf17   :  { %v3669_v17 = vmul.f32 0.17677669, %v3661_v15 }
 0xf19   :  { %v3675_v42 = vadd.f32 %v3669_v17, %v7671_v20 }
 0xf1b   :  { %v3691_v22 = vsel %vm856_vm14, %v3675_v42, -inf }
 0xf1c   :  { %3692 = vmax.xlane.f32.xlu2 %v3691_v22 }
 0xf22   :  { %4016 = vrot.lane.b32.xlu0 %v8427_v3, %s7254_s22 }
 0xf34   :  { %4014 = vrot.lane.b32.xlu2 %v8432_v37, %s7254_s22 }
 0xf52   :  { %v3678_v30 = vpop.xlane.xlu0 %3677 }
 0xf53   :  { %v3694_v57 = vsub.f32 %v3670_v38, %v3678_v30 }
 0xf55   :  { %v3700_v31 = vmul.f32 1.442695, %v3694_v57 }
 0xf57   :  { %6864 = vpow2.f32 %v3700_v31 }
 0xf5d   :  { %v8507_v13 = vpop.eup %6864 }
 0xf5e   :  { %v3712_v23 = vsel %vm856_vm14, %v8507_v13, 0.0 }
 0xf5f   :  { %3713 = vadd.xlane.f32.xlu0 %v3712_v23 }
 0xf60   :  { %v3681_v0 = vpop.xlane.xlu1 %3680 }
 0xf61   :  { %v3695_v35 = vsub.f32 %v3671_v21, %v3681_v0 }
 0xf63   :  { %v3702_v12 = vmul.f32 1.442695, %v3695_v35 }
 0xf65   :  { %6866 = vpow2.f32 %v3702_v12 }
 0xf68   :  { %v3684_v19 = vpop.xlane.xlu1 %3683 }
 0xf69   :  { %v3696_v8 = vsub.f32 %v3672_v53, %v3684_v19 }
 0xf6b   :  { %v8511_v32 = vpop.eup %6866  ;;  %v3704_v56 = vmul.f32 1.442695, %v3696_v8 }
 0xf6c   :  { %v3715_v38 = vsel %vm856_vm14, %v8511_v32, 0.0 }
 0xf6d   :  { %6868 = vpow2.f32 %v3704_v56  ;;  %3716 = vadd.xlane.f32.xlu1 %v3715_v38 }
 0xf70   :  { %v3687_v60 = vpop.xlane.xlu2 %3686 }
 0xf71   :  { %v3697_v52 = vsub.f32 %v3673_v4, %v3687_v60 }
 0xf73   :  { %v8517_v5 = vpop.eup %6868  ;;  %v3706_v48 = vmul.f32 1.442695, %v3697_v52 }
 0xf74   :  { %v3718_v21 = vsel %vm856_vm14, %v8517_v5, 0.0 }
 0xf75   :  { %3719 = vadd.xlane.f32.xlu1 %v3718_v21  ;;  %6870 = vpow2.f32 %v3706_v48 }
 0xf7b   :  { %v8521_v53 = vpop.eup %6870 }
 0xf7c   :  { %v3721_v15 = vsel %vm856_vm14, %v8521_v53, 0.0 }
 0xf7d   :  { %3722 = vadd.xlane.f32.xlu2 %v3721_v15 }
 0xf80   :  { %v8552_v8 = vpop.permute.xlu1 %3986 }
 0xf81   :  { %v3690_v17 = vpop.xlane.xlu0 %3689 }
 0xf82   :  { %v3698_v22 = vsub.f32 %v3674_v9, %v3690_v17 }
 0xf84   :  { %v3708_v30 = vmul.f32 1.442695, %v3698_v22 }
 0xf86   :  { %6872 = vpow2.f32 %v3708_v30 }
 0xf8c   :  { %v8525_v57 = vpop.eup %6872 }
 0xf8d   :  { %v3724_v4 = vsel %vm856_vm14, %v8525_v57, 0.0 }
 0xf8e   :  { %4100 = vrot.lane.b32.xlu1 %v8473_v27, %s7254_s22  ;;  %3725 = vadd.xlane.f32.xlu0 %v3724_v4 }
 0xf8f   :  { %v3693_v31 = vpop.xlane.xlu2 %3692 }
 0xf90   :  { %v3699_v23 = vsub.f32 %v3675_v42, %v3693_v31  ;;  %v6642_v42 = vpack.i.bf16 %v8453_v46, %v8400_v43 }
 0xf92   :  { %v3710_v0 = vmul.f32 1.442695, %v3699_v23 }
 0xf94   :  { %6874 = vpow2.f32 %v3710_v0  ;;  %v4017_v12 = vpop.permute.xlu0 %4016 }
 0xf96   :  { %4044 = vrot.lane.b32.xlu1 %v8443_v54, %s7254_s22 }
 0xf9a   :  { %v8533_v35 = vpop.eup %6874 }
 0xf9b   :  { %v3727_v9 = vsel %vm856_vm14, %v8533_v35, 0.0 }
 0xf9c   :  { %3728 = vadd.xlane.f32.xlu2 %v3727_v9 }
 0xf9e   :  { %4502 = vrot.lane.b32.xlu1 %v8427_v3, %s7255_s5 }
 0xfa2   :  { %4098 = vrot.lane.b32.xlu0 %v8478_v2, %s7254_s22 }
 0xfaa   :  { %6643 = vrot.lane.b32.xlu0 %v6642_v42, %s7254_s22  ;;  %v8557_v42 = vpop.permute.xlu2 %4014 }
 0xfb2   :  { %4500 = vrot.lane.b32.xlu0 %v8432_v37, %s7255_s5 }
 0xfb4   :  { %4042 = vrot.lane.b32.xlu2 %v8448_v58, %s7254_s22 }
 0xfbc   :  { %6648 = vrot.lane.b32.xlu2 %v6647_v45, %s7254_s22 }
 0xfd2   :  { %v3714_v19 = vpop.xlane.xlu0 %3713 }
 0xfd3   :  { %6876 = vrcp.f32 %v3714_v19  ;;  %v3741_v52 = vand.u32 2147483648, %v3714_v19  ;;  %v3739_v48 = vand.u32 2147483647, %v3714_v19  ;;  %vm3735_vm7 = vweird.f32 %v3714_v19 }
 0xfd5   :  { %v3742_v22 = vor.u32 1.1754944e-38, %v3741_v52  ;;  %vm3740_vm9 = vcmp.eq.f32.partialorder %v3739_v48, 8.507059e+37 }
 0xfd9   :  { %v6877_v56 = vpop.eup %6876 }
 0xfda   :  { %v3731_v38 = vmul.f32 %v6877_v56, %v3714_v19  ;;  %vm3736_vm6 = vweird.f32 %v6877_v56 }
 0xfdb   :  { %vm3737_vm8 = vmor %vm3735_vm7, %vm3736_vm6 }
 0xfdc   :  { %v3732_v60 = vsub.f32 1.0, %v3731_v38 }
 0xfde   :  { %v3733_v21 = vmul.f32 %v6877_v56, %v3732_v60 }
 0xfe0   :  { %v3734_v15 = vadd.f32 %v6877_v56, %v3733_v21  ;;  %v3717_v17 = vpop.xlane.xlu1 %3716 }
 0xfe1   :  { %6878 = vrcp.f32 %v3717_v17  ;;  %v3756_v19 = vand.u32 2147483648, %v3717_v17  ;;  %v3754_v60 = vand.u32 2147483647, %v3717_v17  ;;  %vm3750_vm11 = vweird.f32 %v3717_v17 }
 0xfe2   :  { %v3738_v30 = vsel %vm3737_vm8, %v6877_v56, %v3734_v15 }
 0xfe3   :  { %v3743_v45 = vsel %vm3740_vm9, %v3742_v22, %v3738_v30  ;;  %vm3755_vm15 = vcmp.eq.f32.partialorder %v3754_v60, 8.507059e+37 }
 0xfe4   :  { %v3744_v4 = vmul.f32 %v8507_v13, %v3743_v45  ;;  %v3757_v13 = vor.u32 1.1754944e-38, %v3756_v19 }
 0xfe6   :  { %6484 = vmatmul.msk.f32.vlgmr.msrb.gmra.mxu3 %vm856_vm14, %v3744_v4 }
 0xfe7   :  { %v6879_v31 = vpop.eup %6878  ;;  %6494 = vmatpush.xpose.msk.msrb.mxu3 %vm675_vm13, %v4017_v12 }
 0xfe8   :  { %v3746_v23 = vmul.f32 %v6879_v31, %v3717_v17  ;;  %v3720_v0 = vpop.xlane.xlu1 %3719  ;;  %vm3751_vm10 = vweird.f32 %v6879_v31 }
 0xfe9   :  { %6880 = vrcp.f32 %v3720_v0  ;;  %vm3752_vm12 = vmor %vm3750_vm11, %vm3751_vm10  ;;  %v3771_v30 = vand.u32 2147483648, %v3720_v0  ;;  %vm3765_vm1 = vweird.f32 %v3720_v0 }
 0xfea   :  { %v3747_v9 = vsub.f32 1.0, %v3746_v23  ;;  %v3769_v23 = vand.u32 2147483647, %v3720_v0 }
 0xfeb   :  { %v3772_v17 = vor.u32 1.1754944e-38, %v3771_v30 }
 0xfec   :  { %v3748_v38 = vmul.f32 %v6879_v31, %v3747_v9  ;;  %vm3770_vm4 = vcmp.eq.f32.partialorder %v3769_v23, 8.507059e+37 }
 0xfee   :  { %v3749_v56 = vadd.f32 %v6879_v31, %v3748_v38 }
 0xfef   :  { %v6881_v52 = vpop.eup %6880 }
 0xff0   :  { %v3753_v21 = vsel %vm3752_vm12, %v6879_v31, %v3749_v56  ;;  %v3761_v48 = vmul.f32 %v6881_v52, %v3720_v0  ;;  %v3723_v45 = vpop.xlane.xlu2 %3722  ;;  %vm3766_vm0 = vweird.f32 %v6881_v52 }
 0xff1   :  { %v3758_v15 = vsel %vm3755_vm15, %v3757_v13, %v3753_v21  ;;  %6882 = vrcp.f32 %v3723_v45  ;;  %vm3767_vm2 = vmor %vm3765_vm1, %vm3766_vm0  ;;  %v3786_v13 = vand.u32 2147483648, %v3723_v45  ;;  %vm3780_vm7 = vweird.f32 %v3723_v45 }
 0xff2   :  { %v3759_v12 = vmul.f32 %v8511_v32, %v3758_v15  ;;  %v3762_v22 = vsub.f32 1.0, %v3761_v48  ;;  %v3784_v48 = vand.u32 2147483647, %v3723_v45 }
 0xff4   :  { %v3763_v4 = vmul.f32 %v6881_v52, %v3762_v22  ;;  %6485 = vmatmul.msk.f32.vlgmr.msrb.gmra.mxu0 %vm856_vm14, %v3759_v12  ;;  %vm3785_vm9 = vcmp.eq.f32.partialorder %v3784_v48, 8.507059e+37 }
 0xff6   :  { %v3764_v9 = vadd.f32 %v6881_v52, %v3763_v4 }
 0xff7   :  { %v6883_v38 = vpop.eup %6882 }
 0xff8   :  { %v3768_v19 = vsel %vm3767_vm2, %v6881_v52, %v3764_v9  ;;  %v3776_v32 = vmul.f32 %v6883_v38, %v3723_v45  ;;  %vm3781_vm6 = vweird.f32 %v6883_v38  ;;  %v3787_v52 = vor.u32 1.1754944e-38, %v3786_v13 }
 0xff9   :  { %v3773_v31 = vsel %vm3770_vm4, %v3772_v17, %v3768_v19  ;;  %vm3782_vm8 = vmor %vm3780_vm7, %vm3781_vm6 }
 0xffa   :  { %v3774_v60 = vmul.f32 %v8517_v5, %v3773_v31  ;;  %v3777_v56 = vsub.f32 1.0, %v3776_v32 }
 0xffc   :  { %6486 = vmatmul.msk.f32.vlgmr.msra.gmra.mxu1 %vm856_vm14, %v3774_v60  ;;  %v3778_v21 = vmul.f32 %v6883_v38, %v3777_v56 }
 0xffd   :  { %6498 = vmatpush.xpose.msk.msra.mxu1 %vm675_vm13, %v8505_v40 }
 0xffe   :  { %v3779_v15 = vadd.f32 %v6883_v38, %v3778_v21 }
0x1000   :  { %v4101_v0 = vpop.permute.xlu1 %4100  ;;  %v3783_v22 = vsel %vm3782_vm8, %v6883_v38, %v3779_v15 }
0x1001   :  { %v3726_v12 = vpop.xlane.xlu0 %3725  ;;  %v3788_v5 = vsel %vm3785_vm9, %v3787_v52, %v3783_v22 }
0x1002   :  { %6884 = vrcp.f32 %v3726_v12  ;;  %v3789_v30 = vmul.f32 %v8521_v53, %v3788_v5  ;;  %v3801_v9 = vand.u32 2147483648, %v3726_v12  ;;  %v3799_v19 = vand.u32 2147483647, %v3726_v12 }
0x1003   :  { %vm3795_vm11 = vweird.f32 %v3726_v12 }
0x1004   :  { %6491 = vmatmul.msk.f32.vlgmr.msrb.gmra.mxu1 %vm675_vm13, %v8503_v10  ;;  %6487 = vmatmul.msk.f32.vlgmr.msra.gmra.mxu2 %vm856_vm14, %v3789_v30  ;;  %v3802_v31 = vor.u32 1.1754944e-38, %v3801_v9  ;;  %vm3800_vm15 = vcmp.eq.f32.partialorder %v3799_v19, 8.507059e+37 }
0x1005   :  { %6500 = vmatpush.xpose.msk.msra.mxu2 %vm675_vm13, %v4101_v0 }
0x1008   :  { %v4045_v40 = vpop.permute.xlu1 %4044  ;;  %v6885_v4 = vpop.eup %6884 }
0x1009   :  { %6496 = vmatpush.xpose.msk.msrb.mxu0 %vm675_vm13, %v4045_v40  ;;  %v3791_v45 = vmul.f32 %v6885_v4, %v3726_v12  ;;  %vm3796_vm10 = vweird.f32 %v6885_v4 }
0x100a   :  { %vm3797_vm12 = vmor %vm3795_vm11, %vm3796_vm10 }
0x100b   :  { %v3792_v23 = vsub.f32 1.0, %v3791_v45 }
0x100c   :  { %6499 = vmatmul.msk.f32.vlgmr.msra.gmra.mxu1 %vm675_vm13, %v8513_v44  ;;  %6493 = vmatmul.msk.f32.vlgmr.msrb.gmra.mxu2 %vm675_vm13, %v8552_v8 }
0x100d   :  { %v3793_v17 = vmul.f32 %v6885_v4, %v3792_v23 }
0x100f   :  { %v3794_v10 = vadd.f32 %v6885_v4, %v3793_v17  ;;  %v3729_v53 = vpop.xlane.xlu2 %3728 }
0x1010   :  { %6886 = vrcp.f32 %v3729_v53  ;;  %v3816_v48 = vand.u32 2147483648, %v3729_v53  ;;  %v3814_v15 = vand.u32 2147483647, %v3729_v53  ;;  %vm3810_vm1 = vweird.f32 %v3729_v53 }
0x1011   :  { %v3798_v38 = vsel %vm3797_vm12, %v6885_v4, %v3794_v10 }
0x1012   :  { %v3803_v60 = vsel %vm3800_vm15, %v3802_v31, %v3798_v38  ;;  %vm3815_vm4 = vcmp.eq.f32.partialorder %v3814_v15, 8.507059e+37 }
0x1013   :  { %v3804_v32 = vmul.f32 %v8525_v57, %v3803_v60  ;;  %v3817_v57 = vor.u32 1.1754944e-38, %v3816_v48 }
0x1014   :  { %v4099_v56 = vpop.permute.xlu0 %4098 }
0x1015   :  { %6488 = vmatmul.msk.f32.vlgmr.msra.gmra.mxu3 %vm856_vm14, %v3804_v32  ;;  %6501 = vmatmul.msk.f32.vlgmr.msra.gmra.mxu2 %vm675_vm13, %v4099_v56 }
0x1016   :  { %v6887_v44 = vpop.eup %6886 }
0x1017   :  { %v3806_v13 = vmul.f32 %v6887_v44, %v3729_v53  ;;  %v4043_v21 = vpop.permute.xlu2 %4042  ;;  %vm3811_vm0 = vweird.f32 %v6887_v44 }
0x1018   :  { %vm3812_vm2 = vmor %vm3810_vm1, %vm3811_vm0 }
0x1019   :  { %v3807_v8 = vsub.f32 1.0, %v3806_v13 }
0x101b   :  { %v3808_v0 = vmul.f32 %v6887_v44, %v3807_v8 }
0x101c   :  { %v6644_v52 = vpop.permute.xlu0 %6643 }
0x101d   :  { %v3809_v12 = vadd.f32 %v6887_v44, %v3808_v0  ;;  %v6646_v22 = vunpack.i.h.bf16 %v6644_v52  ;;  %v6645_v5 = vunpack.i.l.bf16 %v6644_v52  ;;  %6495 = vmatmul.msk.f32.vlgmr.msrb.gmra.mxu3 %vm675_vm13, %v8557_v42 }
0x101f   :  { %v3813_v30 = vsel %vm3812_vm2, %v6887_v44, %v3809_v12  ;;  %4304 = vmatpush.msra.mxu3 %v6645_v5  ;;  %v6649_v40 = vpop.permute.xlu2 %6648 }
0x1020   :  { %v3818_v4 = vsel %vm3815_vm4, %v3817_v57, %v3813_v30  ;;  %v6651_v45 = vunpack.i.h.bf16 %v6649_v40  ;;  %v6650_v23 = vunpack.i.l.bf16 %v6649_v40 }
0x1021   :  { %4412 = vmatpush.msrb.mxu3 %v6646_v22  ;;  %v3819_v9 = vmul.f32 %v8533_v35, %v3818_v4 }
0x1022   :  { %4358 = vmatpush.msrb.mxu1 %v6651_v45 }
0x1023   :  { %6489 = vmatmul.msk.f32.vlgmr.msra.gmra.mxu0 %vm856_vm14, %v3819_v9 }
0x1024   :  { %4331 = vmatpush.msra.mxu0 %v6650_v23 }
0x102b   :  { %6497 = vmatmul.msk.f32.vlgmr.msrb.gmra.mxu0 %vm675_vm13, %v4043_v21 }
0x1069   :  { %v8591_v56 = vpop.f32.mrf.mxu3 }
0x1071   :  { %v8595_v48 = vpop.f32.mrf.mxu0 }
0x1079   :  { %v8583_v17 = vpop.f32.mrf.mxu1 }
0x1081   :  { %v3983_v42 = vpop.f32.mrf.mxu1 }
0x1082   :  { %v4126_v19 = vmul.f32 0.17677669, %v3983_v42 }
0x1084   :  { %v4132_v10 = vadd.f32 %v4126_v19, %v7650_v26  ;;  %v6652_v19 = vpack.i.bf16 %v8437_v34, %v8465_v61 }
0x1086   :  { %v4138_v53 = vsel %vm856_vm14, %v4132_v10, -inf }
0x1087   :  { %4139 = vmax.xlane.f32.xlu0 %v4138_v53  ;;  %v8587_v38 = vpop.f32.mrf.mxu2  ;;  %v8618_v53 = vpop.permute.xlu0 %4500 }
0x1089   :  { %v4095_v31 = vpop.f32.mrf.mxu1 }
0x108a   :  { %v4130_v60 = vmul.f32 0.17677669, %v4095_v31  ;;  %v8620_v31 = vpop.permute.xlu1 %4502 }
0x108c   :  { %v4136_v35 = vadd.f32 %v4130_v60, %v7669_v18 }
0x108e   :  { %v4150_v32 = vsel %vm856_vm14, %v4136_v35, -inf }
0x108f   :  { %4151 = vmax.xlane.f32.xlu1 %v4150_v32  ;;  %v4011_v44 = vpop.f32.mrf.mxu2 }
0x1090   :  { %v4127_v13 = vmul.f32 0.17677669, %v4011_v44 }
0x1092   :  { %v4133_v21 = vadd.f32 %v4127_v13, %v7652_v28 }
0x1094   :  { %v4141_v8 = vsel %vm856_vm14, %v4133_v21, -inf }
0x1095   :  { %4142 = vmax.xlane.f32.xlu2 %v4141_v8 }
0x1098   :  { %v8597_v0 = vpop.f32.mrf.mxu3  ;;  %v4123_v15 = vpop.f32.mrf.mxu2 }
0x1099   :  { %v4131_v52 = vmul.f32 0.17677669, %v4123_v15 }
0x109b   :  { %v4137_v12 = vadd.f32 %v4131_v52, %v7671_v20 }
0x109d   :  { %v4153_v22 = vsel %vm856_vm14, %v4137_v12, -inf }
0x109e   :  { %4154 = vmax.xlane.f32.xlu1 %v4153_v22 }
0x10a0   :  { %v8601_v5 = vpop.f32.mrf.mxu0  ;;  %v4039_v57 = vpop.f32.mrf.mxu3 }
0x10a1   :  { %v4128_v30 = vmul.f32 0.17677669, %v4039_v57 }
0x10a3   :  { %v4134_v40 = vadd.f32 %v4128_v30, %v7658_v63 }
0x10a5   :  { %v4144_v4 = vsel %vm856_vm14, %v4134_v40, -inf }
0x10a6   :  { %4145 = vmax.xlane.f32.xlu0 %v4144_v4 }
0x10a8   :  { %v4067_v45 = vpop.f32.mrf.mxu0 }
0x10a9   :  { %v4129_v23 = vmul.f32 0.17677669, %v4067_v45 }
0x10ab   :  { %v4135_v9 = vadd.f32 %v4129_v23, %v7665_v1 }
0x10ad   :  { %v4147_v42 = vsel %vm856_vm14, %v4135_v9, -inf }
0x10ae   :  { %4148 = vmax.xlane.f32.xlu2 %v4147_v42 }
0x10b7   :  { %4474 = vrot.lane.b32.xlu1 %v8410_v6, %s7255_s5 }
0x10ba   :  { %6653 = vrot.lane.b32.xlu0 %v6652_v19, %s7254_s22 }
0x10bf   :  { %4472 = vrot.lane.b32.xlu1 %v8417_v55, %s7255_s5 }
0x10c6   :  { %4530 = vrot.lane.b32.xlu2 %v8443_v54, %s7255_s5 }
0x10ce   :  { %4528 = vrot.lane.b32.xlu2 %v8448_v58, %s7255_s5 }
0x10fa   :  { %v4140_v60 = vpop.xlane.xlu0 %4139 }
0x10fb   :  { %v4156_v32 = vsub.f32 %v4132_v10, %v4140_v60 }
0x10fd   :  { %v4162_v44 = vmul.f32 1.442695, %v4156_v32 }
0x10ff   :  { %6888 = vpow2.f32 %v4162_v44 }
0x1102   :  { %v4152_v13 = vpop.xlane.xlu1 %4151 }
0x1103   :  { %v4160_v8 = vsub.f32 %v4136_v35, %v4152_v13 }
0x1105   :  { %v8622_v15 = vpop.eup %6888  ;;  %v4170_v52 = vmul.f32 1.442695, %v4160_v8 }
0x1106   :  { %v4174_v22 = vsel %vm856_vm14, %v8622_v15, 0.0 }
0x1107   :  { %6890 = vpow2.f32 %v4170_v52  ;;  %4175 = vadd.xlane.f32.xlu0 %v4174_v22 }
0x1108   :  { %v4143_v57 = vpop.xlane.xlu2 %4142 }
0x1109   :  { %v4157_v30 = vsub.f32 %v4133_v21, %v4143_v57 }
0x110b   :  { %v4164_v45 = vmul.f32 1.442695, %v4157_v30 }
0x110d   :  { %v8626_v4 = vpop.eup %6890  ;;  %6892 = vpow2.f32 %v4164_v45 }
0x110e   :  { %v4186_v10 = vsel %vm856_vm14, %v8626_v4, 0.0 }
0x110f   :  { %4187 = vadd.xlane.f32.xlu1 %v4186_v10 }
0x1111   :  { %v4155_v23 = vpop.xlane.xlu1 %4154 }
0x1112   :  { %v4161_v35 = vsub.f32 %v4137_v12, %v4155_v23 }
0x1113   :  { %v8630_v42 = vpop.eup %6892 }
0x1114   :  { %v4172_v19 = vmul.f32 1.442695, %v4161_v35  ;;  %v4177_v60 = vsel %vm856_vm14, %v8630_v42, 0.0 }
0x1115   :  { %4178 = vadd.xlane.f32.xlu2 %v4177_v60 }
0x1116   :  { %6894 = vpow2.f32 %v4172_v19 }
0x1119   :  { %v4146_v32 = vpop.xlane.xlu0 %4145 }
0x111a   :  { %v4158_v21 = vsub.f32 %v4134_v40, %v4146_v32 }
0x111b   :  { %4446 = vrot.lane.b32.xlu0 %v8394_v7, %s7255_s5 }
0x111c   :  { %v4166_v44 = vmul.f32 1.442695, %v4158_v21  ;;  %v8636_v13 = vpop.eup %6894 }
0x111d   :  { %v4189_v12 = vsel %vm856_vm14, %v8636_v13, 0.0 }
0x111e   :  { %6896 = vpow2.f32 %v4166_v44  ;;  %4190 = vadd.xlane.f32.xlu2 %v4189_v12 }
0x1121   :  { %v4149_v8 = vpop.xlane.xlu2 %4148 }
0x1122   :  { %v4159_v52 = vsub.f32 %v4135_v9, %v4149_v8 }
0x1123   :  { %4444 = vrot.lane.b32.xlu0 %v8392_v14, %s7255_s5 }
0x1124   :  { %v8642_v22 = vpop.eup %6896  ;;  %v4168_v57 = vmul.f32 1.442695, %v4159_v52 }
0x1125   :  { %v4180_v40 = vsel %vm856_vm14, %v8642_v22, 0.0 }
0x1126   :  { %6898 = vpow2.f32 %v4168_v57  ;;  %4181 = vadd.xlane.f32.xlu1 %v4180_v40 }
0x1129   :  { %v4475_v35 = vpop.permute.xlu1 %4474 }
0x112b   :  { %4558 = vrot.lane.b32.xlu0 %v8459_v41, %s7255_s5 }
0x112c   :  { %v8648_v30 = vpop.eup %6898  ;;  %v6654_v45 = vpop.permute.xlu0 %6653 }
0x112d   :  { %v6656_v10 = vunpack.i.h.bf16 %v6654_v45  ;;  %v6655_v23 = vunpack.i.l.bf16 %v6654_v45  ;;  %v4183_v9 = vsel %vm856_vm14, %v8648_v30, 0.0 }
0x112e   :  { %4184 = vadd.xlane.f32.xlu1 %v4183_v9 }
0x112f   :  { %4385 = vmatpush.msrb.mxu2 %v6656_v10  ;;  %4439 = vmatpush.msrb.mxu0 %v6655_v23 }
0x1131   :  { %6510 = vmatpush.xpose.msk.msra.mxu2 %vm675_vm13, %v4475_v35 }
0x1133   :  { %4584 = vrot.lane.b32.xlu0 %v8478_v2, %s7255_s5 }
0x1136   :  { %4586 = vrot.lane.b32.xlu2 %v8473_v27, %s7255_s5 }
0x113b   :  { %6658 = vrot.lane.b32.xlu0 %v6657_v47, %s7255_s5  ;;  %v8677_v47 = vpop.permute.xlu2 %4530 }
0x113e   :  { %6663 = vrot.lane.b32.xlu2 %v6662_v24, %s7255_s5  ;;  %v8679_v24 = vpop.permute.xlu1 %4472 }
0x1143   :  { %4924 = vrot.lane.b32.xlu0 %v8392_v14, %s7256_s9  ;;  %v8681_v32 = vpop.permute.xlu2 %4528 }
0x1146   :  { %4952 = vrot.lane.b32.xlu2 %v8417_v55, %s7256_s9 }
0x1147   :  { %4556 = vrot.lane.b32.xlu1 %v8457_v39, %s7255_s5 }
0x114b   :  { %4954 = vrot.lane.b32.xlu0 %v8410_v6, %s7256_s9 }
0x114f   :  { %4926 = vrot.lane.b32.xlu1 %v8394_v7, %s7256_s9 }
0x1157   :  { %4872 = vrot.lane.b32.xlu1 %v8453_v46, %s7255_s5 }
0x117a   :  { %v4176_v14 = vpop.xlane.xlu0 %4175 }
0x117b   :  { %6900 = vrcp.f32 %v4176_v14  ;;  %v4203_v6 = vand.u32 2147483648, %v4176_v14  ;;  %v4201_v7 = vand.u32 2147483647, %v4176_v14  ;;  %vm4197_vm7 = vweird.f32 %v4176_v14 }
0x117d   :  { %v4204_v52 = vor.u32 1.1754944e-38, %v4203_v6  ;;  %vm4202_vm9 = vcmp.eq.f32.partialorder %v4201_v7, 8.507059e+37 }
0x1181   :  { %v6901_v19 = vpop.eup %6900 }
0x1182   :  { %v4193_v55 = vmul.f32 %v6901_v19, %v4176_v14  ;;  %v4188_v60 = vpop.xlane.xlu1 %4187  ;;  %vm4198_vm6 = vweird.f32 %v6901_v19 }
0x1183   :  { %6902 = vrcp.f32 %v4188_v60  ;;  %vm4199_vm8 = vmor %vm4197_vm7, %vm4198_vm6  ;;  %v4263_v35 = vand.u32 2147483648, %v4188_v60  ;;  %vm4257_vm11 = vweird.f32 %v4188_v60 }
0x1184   :  { %v4194_v21 = vsub.f32 1.0, %v4193_v55 }
0x1186   :  { %v4195_v44 = vmul.f32 %v6901_v19, %v4194_v21  ;;  %v4261_v21 = vand.u32 2147483647, %v4188_v60 }
0x1188   :  { %v4196_v12 = vadd.f32 %v6901_v19, %v4195_v44  ;;  %v4179_v10 = vpop.xlane.xlu2 %4178  ;;  %vm4262_vm15 = vcmp.eq.f32.partialorder %v4261_v21, 8.507059e+37 }
0x1189   :  { %v6903_v8 = vpop.eup %6902  ;;  %6904 = vrcp.f32 %v4179_v10  ;;  %vm4212_vm1 = vweird.f32 %v4179_v10 }
0x118a   :  { %v4200_v57 = vsel %vm4199_vm8, %v6901_v19, %v4196_v12  ;;  %v4253_v40 = vmul.f32 %v6903_v8, %v4188_v60  ;;  %vm4258_vm10 = vweird.f32 %v6903_v8  ;;  %v4264_v19 = vor.u32 1.1754944e-38, %v4263_v35 }
0x118b   :  { %v4205_v45 = vsel %vm4202_vm9, %v4204_v52, %v4200_v57  ;;  %vm4259_vm12 = vmor %vm4257_vm11, %vm4258_vm10 }
0x118c   :  { %v4206_v23 = vmul.f32 %v8622_v15, %v4205_v45  ;;  %v4254_v9 = vsub.f32 1.0, %v4253_v40  ;;  %v4218_v45 = vand.u32 2147483648, %v4179_v10 }
0x118d   :  { %v4447_v55 = vpop.permute.xlu0 %4446 }
0x118e   :  { %v4255_v25 = vmul.f32 %v6903_v8, %v4254_v9  ;;  %6502 = vmatmul.msk.f32.vlgmr.msra.gmra.mxu3 %vm856_vm14, %v4206_v23  ;;  %6508 = vmatpush.xpose.msk.msra.mxu1 %vm675_vm13, %v4447_v55 }
0x118f   :  { %6512 = vmatpush.xpose.msk.msra.mxu3 %vm675_vm13, %v8620_v31  ;;  %v6905_v6 = vpop.eup %6904 }
0x1190   :  { %v4256_v14 = vadd.f32 %v6903_v8, %v4255_v25  ;;  %v4208_v7 = vmul.f32 %v6905_v6, %v4179_v10  ;;  %vm4213_vm0 = vweird.f32 %v6905_v6  ;;  %v4216_v25 = vand.u32 2147483647, %v4179_v10 }
0x1191   :  { %v4191_v12 = vpop.xlane.xlu2 %4190  ;;  %vm4214_vm2 = vmor %vm4212_vm1, %vm4213_vm0 }
0x1192   :  { %v4260_v15 = vsel %vm4259_vm12, %v6903_v8, %v4256_v14  ;;  %6906 = vrcp.f32 %v4191_v12  ;;  %v4209_v57 = vsub.f32 1.0, %v4208_v7  ;;  %v4219_v8 = vor.u32 1.1754944e-38, %v4218_v45 }
0x1193   :  { %v4265_v44 = vsel %vm4262_vm15, %v4264_v19, %v4260_v15  ;;  %vm4217_vm4 = vcmp.eq.f32.partialorder %v4216_v25, 8.507059e+37  ;;  %v4276_v7 = vand.u32 2147483647, %v4191_v12  ;;  %vm4272_vm7 = vweird.f32 %v4191_v12 }
0x1194   :  { %v4266_v52 = vmul.f32 %v8626_v4, %v4265_v44  ;;  %v4210_v31 = vmul.f32 %v6905_v6, %v4209_v57  ;;  %v4278_v44 = vand.u32 2147483648, %v4191_v12 }
0x1195   :  { %v8689_v40 = vpop.permute.xlu0 %4444  ;;  %vm4277_vm9 = vcmp.eq.f32.partialorder %v4276_v7, 8.507059e+37 }
0x1196   :  { %6506 = vmatmul.msk.f32.vlgmr.msrb.gmra.mxu3 %vm856_vm14, %v4266_v52  ;;  %v4211_v60 = vadd.f32 %v6905_v6, %v4210_v31  ;;  %v4279_v57 = vor.u32 1.1754944e-38, %v4278_v44 }
0x1198   :  { %v6907_v23 = vpop.eup %6906  ;;  %v4215_v35 = vsel %vm4214_vm2, %v6905_v6, %v4211_v60 }
0x1199   :  { %v4182_v9 = vpop.xlane.xlu1 %4181  ;;  %v4268_v55 = vmul.f32 %v6907_v23, %v4191_v12  ;;  %v8692_v4 = vpop.permute.xlu2 %4586  ;;  %v4220_v21 = vsel %vm4217_vm4, %v4219_v8, %v4215_v35  ;;  %vm4273_vm6 = vweird.f32 %v6907_v23 }
0x119a   :  { %6908 = vrcp.f32 %v4182_v9  ;;  %v4221_v14 = vmul.f32 %v8630_v42, %v4220_v21  ;;  %vm4274_vm8 = vmor %vm4272_vm7, %vm4273_vm6  ;;  %vm4227_vm11 = vweird.f32 %v4182_v9 }
0x119b   :  { %v4269_v19 = vsub.f32 1.0, %v4268_v55  ;;  %v4233_v55 = vand.u32 2147483648, %v4182_v9 }
0x119c   :  { %6503 = vmatmul.msk.f32.vlgmr.msra.gmra.mxu0 %vm856_vm14, %v4221_v14 }
0x119d   :  { %v4559_v15 = vpop.permute.xlu0 %4558  ;;  %v4270_v10 = vmul.f32 %v6907_v23, %v4269_v19  ;;  %6514 = vmatpush.xpose.msk.msra.mxu0 %vm675_vm13, %v8677_v47  ;;  %v4231_v47 = vand.u32 2147483647, %v4182_v9 }
0x119e   :  { %6513 = vmatmul.msk.f32.vlgmr.msra.gmra.mxu3 %vm675_vm13, %v8618_v53 }
0x119f   :  { %v4271_v52 = vadd.f32 %v6907_v23, %v4270_v10  ;;  %vm4232_vm15 = vcmp.eq.f32.partialorder %v4231_v47, 8.507059e+37 }
0x11a0   :  { %v6909_v6 = vpop.eup %6908 }
0x11a1   :  { %v4223_v42 = vmul.f32 %v6909_v6, %v4182_v9  ;;  %v4185_v45 = vpop.xlane.xlu1 %4184  ;;  %v4275_v31 = vsel %vm4274_vm8, %v6907_v23, %v4271_v52  ;;  %v6664_v25 = vpop.permute.xlu2 %6663  ;;  %vm4228_vm10 = vweird.f32 %v6909_v6  ;;  %v4234_v23 = vor.u32 1.1754944e-38, %v4233_v55 }
0x11a2   :  { %6910 = vrcp.f32 %v4185_v45  ;;  %v4280_v53 = vsel %vm4277_vm9, %v4279_v57, %v4275_v31  ;;  %v6666_v8 = vunpack.i.h.bf16 %v6664_v25  ;;  %vm4229_vm12 = vmor %vm4227_vm11, %vm4228_vm10  ;;  %v4248_v57 = vand.u32 2147483648, %v4185_v45 }
0x11a3   :  { %v4224_v60 = vsub.f32 1.0, %v4223_v42  ;;  %v4281_v35 = vmul.f32 %v8636_v13, %v4280_v53  ;;  %v4246_v53 = vand.u32 2147483647, %v4185_v45  ;;  %vm4242_vm1 = vweird.f32 %v4185_v45 }
0x11a5   :  { %v4585_v21 = vpop.permute.xlu0 %4584  ;;  %v4225_v14 = vmul.f32 %v6909_v6, %v4224_v60  ;;  %6507 = vmatmul.msk.f32.vlgmr.msrb.gmra.mxu0 %vm856_vm14, %v4281_v35  ;;  %vm4247_vm4 = vcmp.eq.f32.partialorder %v4246_v53, 8.507059e+37 }
0x11a6   :  { %4815 = vmatpush.msrb.mxu0 %v6666_v8 }
0x11a7   :  { %v4226_v12 = vadd.f32 %v6909_v6, %v4225_v14 }
0x11a8   :  { %v6911_v19 = vpop.eup %6910 }
0x11a9   :  { %v4230_v44 = vsel %vm4229_vm12, %v6909_v6, %v4226_v12  ;;  %v4238_v10 = vmul.f32 %v6911_v19, %v4185_v45  ;;  %vm4243_vm0 = vweird.f32 %v6911_v19  ;;  %v4249_v6 = vor.u32 1.1754944e-38, %v4248_v57 }
0x11aa   :  { %v4235_v7 = vsel %vm4232_vm15, %v4234_v23, %v4230_v44  ;;  %vm4244_vm2 = vmor %vm4242_vm1, %vm4243_vm0  ;;  %v6665_v45 = vunpack.i.l.bf16 %v6664_v25 }
0x11ab   :  { %v4236_v52 = vmul.f32 %v8642_v22, %v4235_v7  ;;  %v4239_v13 = vsub.f32 1.0, %v4238_v10 }
0x11ad   :  { %v6659_v42 = vpop.permute.xlu0 %6658  ;;  %v4240_v31 = vmul.f32 %v6911_v19, %v4239_v13  ;;  %6504 = vmatmul.msk.f32.vlgmr.msrb.gmra.mxu1 %vm856_vm14, %v4236_v52  ;;  %6515 = vmatmul.msk.f32.vlgmr.msra.gmra.mxu0 %vm675_vm13, %v8681_v32 }
0x11ae   :  { %v6661_v60 = vunpack.i.h.bf16 %v6659_v42  ;;  %6516 = vmatpush.xpose.msk.msrb.mxu1 %vm675_vm13, %v4559_v15  ;;  %v6660_v55 = vunpack.i.l.bf16 %v6659_v42 }
0x11af   :  { %v4241_v9 = vadd.f32 %v6911_v19, %v4240_v31 }
0x11b0   :  { %4789 = vmatpush.msrb.mxu3 %v6661_v60 }
0x11b1   :  { %v4245_v22 = vsel %vm4244_vm2, %v6911_v19, %v4241_v9 }
0x11b2   :  { %v4250_v8 = vsel %vm4247_vm4, %v4249_v6, %v4245_v22 }
0x11b3   :  { %v4251_v35 = vmul.f32 %v8648_v30, %v4250_v8 }
0x11b5   :  { %6505 = vmatmul.msk.f32.vlgmr.msrb.gmra.mxu2 %vm856_vm14, %v4251_v35  ;;  %6509 = vmatmul.msk.f32.vlgmr.msra.gmra.mxu1 %vm675_vm13, %v8689_v40  ;;  %v8713_v15 = vpop.permute.xlu0 %4924 }
0x11b6   :  { %6518 = vmatpush.xpose.msk.msrb.mxu2 %vm675_vm13, %v8692_v4  ;;  %4841 = vmatpush.msra.mxu1 %v6660_v55 }
0x11b9   :  { %v4557_v32 = vpop.permute.xlu1 %4556 }
0x11bd   :  { %6511 = vmatmul.msk.f32.vlgmr.msra.gmra.mxu2 %vm675_vm13, %v8679_v24  ;;  %6517 = vmatmul.msk.f32.vlgmr.msrb.gmra.mxu1 %vm675_vm13, %v4557_v32  ;;  %v4955_v14 = vpop.permute.xlu0 %4954 }
0x11be   :  { %4867 = vmatpush.msra.mxu2 %v6665_v45 }
0x11c1   :  { %v4927_v30 = vpop.permute.xlu1 %4926 }
0x11c2   :  { %6526 = vmatpush.xpose.msk.msrb.mxu1 %vm675_vm13, %v4927_v30 }
0x11c5   :  { %6519 = vmatmul.msk.f32.vlgmr.msrb.gmra.mxu2 %vm675_vm13, %v4585_v21 }
0x11c6   :  { %6528 = vmatpush.xpose.msk.msrb.mxu2 %vm675_vm13, %v4955_v14 }
0x11c9   :  { %v4873_v40 = vpop.permute.xlu1 %4872 }
0x11ca   :  { %4893 = vmatpush.msra.mxu3 %v4873_v40 }
0x1211   :  { %v8721_v4 = vpop.f32.mrf.mxu3 }
0x1219   :  { %v8723_v47 = vpop.f32.mrf.mxu3  ;;  %v8725_v25 = vpop.f32.mrf.mxu0 }
0x121a   :  { %v6677_v24 = vpack.i.bf16 %v8725_v25, %v8721_v4 }
0x1221   :  { %v4525_v12 = vpop.f32.mrf.mxu3 }
0x1222   :  { %v4614_v19 = vmul.f32 0.17677669, %v4525_v12  ;;  %v8729_v23 = vpop.f32.mrf.mxu0 }
0x1224   :  { %v4620_v44 = vadd.f32 %v4614_v19, %v7658_v63 }
0x1226   :  { %v4630_v21 = vsel %vm856_vm14, %v4620_v44, -inf }
0x1227   :  { %4631 = vmax.xlane.f32.xlu2 %v4630_v21 }
0x122a   :  { %v8733_v10 = vpop.f32.mrf.mxu1  ;;  %v4553_v7 = vpop.f32.mrf.mxu0 }
0x122b   :  { %v4615_v52 = vmul.f32 0.17677669, %v4553_v7  ;;  %v8755_v7 = vpop.permute.xlu2 %4952 }
0x122d   :  { %v4621_v13 = vadd.f32 %v4615_v52, %v7665_v1 }
0x122f   :  { %v4633_v57 = vsel %vm856_vm14, %v4621_v13, -inf }
0x1230   :  { %4634 = vmax.xlane.f32.xlu0 %v4633_v57 }
0x1232   :  { %v4469_v42 = vpop.f32.mrf.mxu1 }
0x1233   :  { %v4612_v31 = vmul.f32 0.17677669, %v4469_v42 }
0x1235   :  { %v4618_v53 = vadd.f32 %v4612_v31, %v7650_v26 }
0x1237   :  { %v4624_v60 = vsel %vm856_vm14, %v4618_v53, -inf }
0x1238   :  { %4625 = vmax.xlane.f32.xlu1 %v4624_v60  ;;  %v8739_v9 = vpop.f32.mrf.mxu2 }
0x1239   :  { %v6687_v6 = vpack.i.bf16 %v8739_v9, %v8733_v10 }
0x123a   :  { %v4581_v22 = vpop.f32.mrf.mxu1 }
0x123b   :  { %v4616_v8 = vmul.f32 0.17677669, %v4581_v22 }
0x123d   :  { %v4622_v35 = vadd.f32 %v4616_v8, %v7669_v18 }
0x123f   :  { %v4636_v55 = vsel %vm856_vm14, %v4622_v35, -inf }
0x1240   :  { %v4497_v32 = vpop.f32.mrf.mxu2  ;;  %4637 = vmax.xlane.f32.xlu1 %v4636_v55 }
0x1241   :  { %v4613_v45 = vmul.f32 0.17677669, %v4497_v32 }
0x1243   :  { %v4619_v30 = vadd.f32 %v4613_v45, %v7652_v28 }
0x1245   :  { %v4627_v14 = vsel %vm856_vm14, %v4619_v30, -inf }
0x1246   :  { %4628 = vmax.xlane.f32.xlu2 %v4627_v14 }
0x1248   :  { %v4609_v40 = vpop.f32.mrf.mxu2 }
0x1249   :  { %v4617_v12 = vmul.f32 0.17677669, %v4609_v40 }
0x124b   :  { %v4623_v19 = vadd.f32 %v4617_v12, %v7671_v20 }
0x124d   :  { %v4639_v21 = vsel %vm856_vm14, %v4623_v19, -inf }
0x124e   :  { %4640 = vmax.xlane.f32.xlu0 %v4639_v21 }
0x1259   :  { %4898 = vrot.lane.b32.xlu1 %v8465_v61, %s7255_s5 }
0x125e   :  { %4980 = vrot.lane.b32.xlu2 %v8432_v37, %s7256_s9 }
0x1262   :  { %4982 = vrot.lane.b32.xlu0 %v8427_v3, %s7256_s9 }
0x129a   :  { %v4632_v52 = vpop.xlane.xlu2 %4631 }
0x129b   :  { %v4644_v57 = vsub.f32 %v4620_v44, %v4632_v52 }
0x129d   :  { %v4652_v42 = vmul.f32 1.442695, %v4644_v57 }
0x129f   :  { %6912 = vpow2.f32 %v4652_v42 }
0x12a3   :  { %v4635_v60 = vpop.xlane.xlu0 %4634 }
0x12a4   :  { %v4645_v22 = vsub.f32 %v4621_v13, %v4635_v60 }
0x12a5   :  { %v8757_v31 = vpop.eup %6912 }
0x12a6   :  { %v4666_v8 = vsel %vm856_vm14, %v8757_v31, 0.0  ;;  %v4654_v55 = vmul.f32 1.442695, %v4645_v22 }
0x12a7   :  { %4667 = vadd.xlane.f32.xlu2 %v4666_v8 }
0x12a8   :  { %6914 = vpow2.f32 %v4654_v55 }
0x12ab   :  { %v4626_v37 = vpop.xlane.xlu1 %4625 }
0x12ac   :  { %v4642_v32 = vsub.f32 %v4618_v53, %v4626_v37 }
0x12ae   :  { %v4648_v45 = vmul.f32 1.442695, %v4642_v32  ;;  %v8761_v3 = vpop.eup %6914 }
0x12af   :  { %v4669_v44 = vsel %vm856_vm14, %v8761_v3, 0.0 }
0x12b0   :  { %6916 = vpow2.f32 %v4648_v45  ;;  %4670 = vadd.xlane.f32.xlu0 %v4669_v44 }
0x12b3   :  { %v4638_v14 = vpop.xlane.xlu1 %4637 }
0x12b4   :  { %v4646_v40 = vsub.f32 %v4622_v35, %v4638_v14 }
0x12b6   :  { %v8765_v12 = vpop.eup %6916  ;;  %v4656_v13 = vmul.f32 1.442695, %v4646_v40 }
0x12b7   :  { %v4660_v21 = vsel %vm856_vm14, %v8765_v12, 0.0 }
0x12b8   :  { %6918 = vpow2.f32 %v4656_v13  ;;  %4661 = vadd.xlane.f32.xlu1 %v4660_v21 }
0x12b9   :  { %v4629_v52 = vpop.xlane.xlu2 %4628 }
0x12ba   :  { %v4643_v53 = vsub.f32 %v4619_v30, %v4629_v52 }
0x12bc   :  { %v4650_v57 = vmul.f32 1.442695, %v4643_v53 }
0x12be   :  { %v8769_v42 = vpop.eup %6918  ;;  %6920 = vpow2.f32 %v4650_v57 }
0x12bf   :  { %v4672_v60 = vsel %vm856_vm14, %v8769_v42, 0.0 }
0x12c0   :  { %4673 = vadd.xlane.f32.xlu1 %v4672_v60 }
0x12c1   :  { %v4641_v22 = vpop.xlane.xlu0 %4640 }
0x12c2   :  { %v4647_v35 = vsub.f32 %v4623_v19, %v4641_v22 }
0x12c4   :  { %v8773_v8 = vpop.eup %6920  ;;  %v4658_v55 = vmul.f32 1.442695, %v4647_v35  ;;  %5010 = vrot.lane.b32.xlu0 %v8443_v54, %s7256_s9  ;;  %v8793_v54 = vpop.permute.xlu2 %4980 }
0x12c5   :  { %v4663_v37 = vsel %vm856_vm14, %v8773_v8, 0.0 }
0x12c6   :  { %6922 = vpow2.f32 %v4658_v55  ;;  %4664 = vadd.xlane.f32.xlu2 %v4663_v37 }
0x12cb   :  { %v4899_v30 = vpop.permute.xlu1 %4898 }
0x12cc   :  { %v8779_v32 = vpop.eup %6922  ;;  %4919 = vmatpush.msra.mxu0 %v4899_v30  ;;  %5036 = vrot.lane.b32.xlu0 %v8457_v39, %s7256_s9 }
0x12cd   :  { %v4675_v19 = vsel %vm856_vm14, %v8779_v32, 0.0 }
0x12ce   :  { %4676 = vadd.xlane.f32.xlu2 %v4675_v19 }
0x12d4   :  { %v8795_v39 = vpop.permute.xlu0 %4982 }
0x12d9   :  { %5008 = vrot.lane.b32.xlu1 %v8448_v58, %s7256_s9 }
0x12e1   :  { %5066 = vrot.lane.b32.xlu1 %v8473_v27, %s7256_s9 }
0x12e6   :  { %5038 = vrot.lane.b32.xlu2 %v8459_v41, %s7256_s9 }
0x12ee   :  { %5064 = vrot.lane.b32.xlu2 %v8478_v2, %s7256_s9 }
0x131a   :  { %v4668_v45 = vpop.xlane.xlu2 %4667 }
0x131b   :  { %6924 = vrcp.f32 %v4668_v45  ;;  %v4719_v13 = vand.u32 2147483648, %v4668_v45  ;;  %v4717_v27 = vand.u32 2147483647, %v4668_v45  ;;  %vm4713_vm7 = vweird.f32 %v4668_v45 }
0x131d   :  { %v4720_v41 = vor.u32 1.1754944e-38, %v4719_v13  ;;  %vm4718_vm9 = vcmp.eq.f32.partialorder %v4717_v27, 8.507059e+37 }
0x1321   :  { %v6925_v44 = vpop.eup %6924 }
0x1322   :  { %v4709_v14 = vmul.f32 %v6925_v44, %v4668_v45  ;;  %vm4714_vm6 = vweird.f32 %v6925_v44 }
0x1323   :  { %v4671_v58 = vpop.xlane.xlu0 %4670  ;;  %vm4715_vm8 = vmor %vm4713_vm7, %vm4714_vm6 }
0x1324   :  { %v4710_v40 = vsub.f32 1.0, %v4709_v14  ;;  %6926 = vrcp.f32 %v4671_v58  ;;  %v4734_v37 = vand.u32 2147483648, %v4671_v58  ;;  %v4732_v19 = vand.u32 2147483647, %v4671_v58 }
0x1325   :  { %vm4728_vm11 = vweird.f32 %v4671_v58 }
0x1326   :  { %v4711_v21 = vmul.f32 %v6925_v44, %v4710_v40  ;;  %vm4733_vm15 = vcmp.eq.f32.partialorder %v4732_v19, 8.507059e+37 }
0x1328   :  { %v4712_v52 = vadd.f32 %v6925_v44, %v4711_v21 }
0x132a   :  { %v4716_v2 = vsel %vm4715_vm8, %v6925_v44, %v4712_v52  ;;  %v6927_v57 = vpop.eup %6926  ;;  %v4735_v44 = vor.u32 1.1754944e-38, %v4734_v37 }
0x132b   :  { %v4721_v53 = vsel %vm4718_vm9, %v4720_v41, %v4716_v2  ;;  %v4662_v22 = vpop.xlane.xlu1 %4661  ;;  %v4724_v35 = vmul.f32 %v6927_v57, %v4671_v58  ;;  %vm4729_vm10 = vweird.f32 %v6927_v57 }
0x132c   :  { %v4722_v60 = vmul.f32 %v8757_v31, %v4721_v53  ;;  %6928 = vrcp.f32 %v4662_v22  ;;  %vm4730_vm12 = vmor %vm4728_vm11, %vm4729_vm10  ;;  %v4689_v41 = vand.u32 2147483648, %v4662_v22  ;;  %v4687_v53 = vand.u32 2147483647, %v4662_v22 }
0x132d   :  { %v4725_v55 = vsub.f32 1.0, %v4724_v35  ;;  %vm4683_vm1 = vweird.f32 %v4662_v22 }
0x132e   :  { %6522 = vmatmul.msk.f32.vlgmr.msra.gmra.mxu1 %vm856_vm14, %v4722_v60  ;;  %vm4688_vm4 = vcmp.eq.f32.partialorder %v4687_v53, 8.507059e+37 }
0x132f   :  { %v4726_v30 = vmul.f32 %v6927_v57, %v4725_v55 }
0x1331   :  { %v4727_v45 = vadd.f32 %v6927_v57, %v4726_v30 }
0x1332   :  { %v6929_v14 = vpop.eup %6928 }
0x1333   :  { %v4679_v40 = vmul.f32 %v6929_v14, %v4662_v22  ;;  %v4674_v13 = vpop.xlane.xlu1 %4673  ;;  %v4731_v21 = vsel %vm4730_vm12, %v6927_v57, %v4727_v45  ;;  %vm4684_vm0 = vweird.f32 %v6929_v14  ;;  %v4690_v57 = vor.u32 1.1754944e-38, %v4689_v41 }
0x1334   :  { %6930 = vrcp.f32 %v4674_v13  ;;  %v4736_v31 = vsel %vm4733_vm15, %v4735_v44, %v4731_v21  ;;  %vm4685_vm2 = vmor %vm4683_vm1, %vm4684_vm0  ;;  %v4749_v19 = vand.u32 2147483648, %v4674_v13  ;;  %v4747_v44 = vand.u32 2147483647, %v4674_v13 }
0x1335   :  { %v4680_v27 = vsub.f32 1.0, %v4679_v40  ;;  %v4737_v52 = vmul.f32 %v8761_v3, %v4736_v31  ;;  %vm4743_vm7 = vweird.f32 %v4674_v13 }
0x1336   :  { %6527 = vmatmul.msk.f32.vlgmr.msrb.gmra.mxu1 %vm675_vm13, %v8713_v15  ;;  %v5011_v31 = vpop.permute.xlu0 %5010  ;;  %vm4748_vm9 = vcmp.eq.f32.partialorder %v4747_v44, 8.507059e+37 }
0x1337   :  { %v4681_v2 = vmul.f32 %v6929_v14, %v4680_v27  ;;  %6523 = vmatmul.msk.f32.vlgmr.msra.gmra.mxu2 %vm856_vm14, %v4737_v52 }
0x1339   :  { %v4682_v58 = vadd.f32 %v6929_v14, %v4681_v2  ;;  %v4665_v60 = vpop.xlane.xlu2 %4664 }
0x133a   :  { %v6931_v35 = vpop.eup %6930  ;;  %6932 = vrcp.f32 %v4665_v60  ;;  %v4704_v2 = vand.u32 2147483648, %v4665_v60  ;;  %vm4698_vm11 = vweird.f32 %v4665_v60 }
0x133b   :  { %v4686_v55 = vsel %vm4685_vm2, %v6929_v14, %v4682_v58  ;;  %v4739_v37 = vmul.f32 %v6931_v35, %v4674_v13  ;;  %vm4744_vm6 = vweird.f32 %v6931_v35 }
0x133c   :  { %v4691_v30 = vsel %vm4688_vm4, %v4690_v57, %v4686_v55  ;;  %vm4745_vm8 = vmor %vm4743_vm7, %vm4744_vm6  ;;  %v4705_v13 = vor.u32 1.1754944e-38, %v4704_v2 }
0x133d   :  { %v4692_v15 = vmul.f32 %v8765_v12, %v4691_v30  ;;  %v4740_v3 = vsub.f32 1.0, %v4739_v37  ;;  %v4750_v12 = vor.u32 1.1754944e-38, %v4749_v19 }
0x133e   :  { %v5037_v19 = vpop.permute.xlu0 %5036 }
0x133f   :  { %v4741_v45 = vmul.f32 %v6931_v35, %v4740_v3  ;;  %6520 = vmatmul.msk.f32.vlgmr.msrb.gmra.mxu3 %vm856_vm14, %v4692_v15  ;;  %6529 = vmatmul.msk.f32.vlgmr.msrb.gmra.mxu2 %vm675_vm13, %v8755_v7  ;;  %v4702_v7 = vand.u32 2147483647, %v4665_v60 }
0x1340   :  { %v6933_v40 = vpop.eup %6932  ;;  %6530 = vmatpush.xpose.msk.msrb.mxu3 %vm675_vm13, %v8795_v39 }
0x1341   :  { %v4742_v22 = vadd.f32 %v6931_v35, %v4741_v45  ;;  %v4694_v14 = vmul.f32 %v6933_v40, %v4665_v60  ;;  %v4677_v21 = vpop.xlane.xlu2 %4676  ;;  %vm4699_vm10 = vweird.f32 %v6933_v40  ;;  %vm4703_vm15 = vcmp.eq.f32.partialorder %v4702_v7, 8.507059e+37 }
0x1342   :  { %6934 = vrcp.f32 %v4677_v21  ;;  %vm4700_vm12 = vmor %vm4698_vm11, %vm4699_vm10  ;;  %v4764_v45 = vand.u32 2147483648, %v4677_v21  ;;  %v4762_v60 = vand.u32 2147483647, %v4677_v21  ;;  %vm4758_vm1 = vweird.f32 %v4677_v21 }
0x1343   :  { %v4746_v27 = vsel %vm4745_vm8, %v6931_v35, %v4742_v22  ;;  %v4695_v52 = vsub.f32 1.0, %v4694_v14 }
0x1344   :  { %v4751_v41 = vsel %vm4748_vm9, %v4750_v12, %v4746_v27  ;;  %vm4763_vm4 = vcmp.eq.f32.partialorder %v4762_v60, 8.507059e+37 }
0x1345   :  { %v4752_v53 = vmul.f32 %v8769_v42, %v4751_v41  ;;  %v4696_v58 = vmul.f32 %v6933_v40, %v4695_v52 }
0x1347   :  { %v4697_v57 = vadd.f32 %v6933_v40, %v4696_v58  ;;  %6524 = vmatmul.msk.f32.vlgmr.msra.gmra.mxu3 %vm856_vm14, %v4752_v53 }
0x1348   :  { %v6935_v39 = vpop.eup %6934 }
0x1349   :  { %v4701_v55 = vsel %vm4700_vm12, %v6933_v40, %v4697_v57  ;;  %v4754_v37 = vmul.f32 %v6935_v39, %v4677_v21  ;;  %v5039_v35 = vpop.permute.xlu2 %5038  ;;  %vm4759_vm0 = vweird.f32 %v6935_v39 }
0x134a   :  { %v4706_v30 = vsel %vm4703_vm15, %v4705_v13, %v4701_v55  ;;  %6534 = vmatpush.xpose.msk.msra.mxu1 %vm675_vm13, %v5039_v35  ;;  %vm4760_vm2 = vmor %vm4758_vm1, %vm4759_vm0 }
0x134b   :  { %v4707_v15 = vmul.f32 %v8773_v8, %v4706_v30  ;;  %v4755_v42 = vsub.f32 1.0, %v4754_v37  ;;  %v5009_v3 = vpop.permute.xlu1 %5008  ;;  %v4765_v8 = vor.u32 1.1754944e-38, %v4764_v45 }
0x134d   :  { %v4756_v44 = vmul.f32 %v6935_v39, %v4755_v42  ;;  %6521 = vmatmul.msk.f32.vlgmr.msrb.gmra.mxu0 %vm856_vm14, %v4707_v15  ;;  %6535 = vmatmul.msk.f32.vlgmr.msra.gmra.mxu1 %vm675_vm13, %v5037_v19 }
0x134e   :  { %6532 = vmatpush.xpose.msk.msrb.mxu0 %vm675_vm13, %v5011_v31 }
0x134f   :  { %v4757_v40 = vadd.f32 %v6935_v39, %v4756_v44  ;;  %6531 = vmatmul.msk.f32.vlgmr.msrb.gmra.mxu3 %vm675_vm13, %v8793_v54 }
0x1351   :  { %v4761_v22 = vsel %vm4760_vm2, %v6935_v39, %v4757_v40  ;;  %v5065_v52 = vpop.permute.xlu2 %5064 }
0x1352   :  { %v4766_v14 = vsel %vm4763_vm4, %v4765_v8, %v4761_v22 }
0x1353   :  { %v4767_v12 = vmul.f32 %v8779_v32, %v4766_v14  ;;  %v5067_v27 = vpop.permute.xlu1 %5066 }
0x1354   :  { %6536 = vmatpush.xpose.msk.msra.mxu2 %vm675_vm13, %v5067_v27 }
0x1355   :  { %6525 = vmatmul.msk.f32.vlgmr.msra.gmra.mxu0 %vm856_vm14, %v4767_v12 }
0x1357   :  { %6537 = vmatmul.msk.f32.vlgmr.msra.gmra.mxu2 %vm675_vm13, %v5065_v52 }
0x135d   :  { %6533 = vmatmul.msk.f32.vlgmr.msrb.gmra.mxu0 %vm675_vm13, %v5009_v3 }
0x13ab   :  { %v8823_v21 = vpop.f32.mrf.mxu1 }
0x13b3   :  { %v4949_v54 = vpop.f32.mrf.mxu1 }
0x13b4   :  { %v5092_v31 = vmul.f32 0.17677669, %v4949_v54 }
0x13b6   :  { %v5098_v41 = vadd.f32 %v5092_v31, %v7650_v26 }
0x13b8   :  { %v5104_v2 = vsel %vm856_vm14, %v5098_v41, -inf }
0x13b9   :  { %5105 = vmax.xlane.f32.xlu0 %v5104_v2 }
0x13ba   :  { %v8827_v32 = vpop.f32.mrf.mxu2 }
0x13c2   :  { %v8829_v53 = vpop.f32.mrf.mxu3  ;;  %v4977_v58 = vpop.f32.mrf.mxu2 }
0x13c3   :  { %v5093_v7 = vmul.f32 0.17677669, %v4977_v58 }
0x13c5   :  { %v5099_v57 = vadd.f32 %v5093_v7, %v7652_v28 }
0x13c7   :  { %v5107_v39 = vsel %vm856_vm14, %v5099_v57, -inf }
0x13c8   :  { %5108 = vmax.xlane.f32.xlu1 %v5107_v39 }
0x13ca   :  { %v8833_v13 = vpop.f32.mrf.mxu0  ;;  %v8835_v55 = vpop.f32.mrf.mxu3 }
0x13cb   :  { %v6682_v26 = vpack.i.bf16 %v8833_v13, %v8829_v53  ;;  %v5061_v37 = vpop.f32.mrf.mxu1 }
0x13cc   :  { %v5096_v35 = vmul.f32 0.17677669, %v5061_v37 }
0x13ce   :  { %v5102_v30 = vadd.f32 %v5096_v35, %v7669_v18 }
0x13d0   :  { %v5116_v15 = vsel %vm856_vm14, %v5102_v30, -inf }
0x13d1   :  { %5117 = vmax.xlane.f32.xlu1 %v5116_v15 }
0x13d2   :  { %v8841_v42 = vpop.f32.mrf.mxu0  ;;  %v5005_v28 = vpop.f32.mrf.mxu3 }
0x13d3   :  { %v5094_v3 = vmul.f32 0.17677669, %v5005_v28 }
0x13d5   :  { %v5100_v19 = vadd.f32 %v5094_v3, %v7658_v63 }
0x13d7   :  { %v5110_v45 = vsel %vm856_vm14, %v5100_v19, -inf }
0x13d8   :  { %5111 = vmax.xlane.f32.xlu2 %v5110_v45 }
0x13da   :  { %v5033_v44 = vpop.f32.mrf.mxu0  ;;  %v5089_v60 = vpop.f32.mrf.mxu2 }
0x13db   :  { %v5095_v40 = vmul.f32 0.17677669, %v5033_v44  ;;  %v5097_v8 = vmul.f32 0.17677669, %v5089_v60 }
0x13dd   :  { %v5101_v22 = vadd.f32 %v5095_v40, %v7665_v1  ;;  %v5103_v18 = vadd.f32 %v5097_v8, %v7671_v20 }
0x13df   :  { %v5113_v14 = vsel %vm856_vm14, %v5101_v22, -inf  ;;  %v5119_v12 = vsel %vm856_vm14, %v5103_v18, -inf }
0x13e0   :  { %5114 = vmax.xlane.f32.xlu0 %v5113_v14  ;;  %5120 = vmax.xlane.f32.xlu2 %v5119_v12  ;;  %v9315_v14 = vpack.i.bf16 %v8437_v34, %v8419_v50 }
0x13f8   :  { %6668 = vrot.lane.b32.xlu2 %v6667_v16, %s7256_s9 }
0x1400   :  { %5352 = vrot.lane.b32.xlu2 %v8453_v46, %s7256_s9 }
0x1408   :  { %6678 = vrot.lane.b32.xlu2 %v6677_v24, %s7256_s9 }
0x142c   :  { %v5106_v63 = vpop.xlane.xlu0 %5105 }
0x142d   :  { %v5122_v1 = vsub.f32 %v5098_v41, %v5106_v63 }
0x142f   :  { %v5128_v20 = vmul.f32 1.442695, %v5122_v1 }
0x1431   :  { %6936 = vpow2.f32 %v5128_v20 }
0x1437   :  { %v8859_v27 = vpop.eup %6936 }
0x1438   :  { %v5140_v52 = vsel %vm856_vm14, %v8859_v27, 0.0 }
0x1439   :  { %5141 = vadd.xlane.f32.xlu0 %v5140_v52 }
0x143b   :  { %v5109_v43 = vpop.xlane.xlu1 %5108 }
0x143c   :  { %v5123_v11 = vsub.f32 %v5099_v57, %v5109_v43 }
0x143e   :  { %v5130_v16 = vmul.f32 1.442695, %v5123_v11 }
0x1440   :  { %6938 = vpow2.f32 %v5130_v16 }
0x1444   :  { %v5118_v46 = vpop.xlane.xlu1 %5117 }
0x1445   :  { %v5126_v54 = vsub.f32 %v5102_v30, %v5118_v46 }
0x1446   :  { %v8863_v31 = vpop.eup %6938 }
0x1447   :  { %v5136_v4 = vmul.f32 1.442695, %v5126_v54  ;;  %v5143_v25 = vsel %vm856_vm14, %v8863_v31, 0.0 }
0x1448   :  { %5144 = vadd.xlane.f32.xlu1 %v5143_v25 }
0x1449   :  { %6940 = vpow2.f32 %v5136_v4 }
0x144b   :  { %v5112_v24 = vpop.xlane.xlu2 %5111 }
0x144c   :  { %v5124_v41 = vsub.f32 %v5100_v19, %v5112_v24 }
0x144e   :  { %v5132_v2 = vmul.f32 1.442695, %v5124_v41 }
0x144f   :  { %v8867_v58 = vpop.eup %6940 }
0x1450   :  { %6942 = vpow2.f32 %v5132_v2  ;;  %v5152_v7 = vsel %vm856_vm14, %v8867_v58, 0.0 }
0x1451   :  { %5153 = vadd.xlane.f32.xlu0 %v5152_v7 }
0x1453   :  { %v5115_v57 = vpop.xlane.xlu0 %5114  ;;  %v5121_v39 = vpop.xlane.xlu2 %5120 }
0x1454   :  { %v5125_v37 = vsub.f32 %v5101_v22, %v5115_v57  ;;  %v5127_v35 = vsub.f32 %v5103_v18, %v5121_v39 }
0x1456   :  { %v8871_v30 = vpop.eup %6942  ;;  %v5134_v15 = vmul.f32 1.442695, %v5125_v37  ;;  %v5138_v28 = vmul.f32 1.442695, %v5127_v35 }
0x1457   :  { %v5146_v3 = vsel %vm856_vm14, %v8871_v30, 0.0 }
0x1458   :  { %6944 = vpow2.f32 %v5134_v15 }
0x1459   :  { %6946 = vpow2.f32 %v5138_v28  ;;  %5147 = vadd.xlane.f32.xlu0 %v5146_v3 }
0x145b   :  { %v6669_v19 = vpop.permute.xlu2 %6668 }
0x145c   :  { %v6671_v45 = vunpack.i.h.bf16 %v6669_v19  ;;  %v6670_v44 = vunpack.i.l.bf16 %v6669_v19 }
0x145e   :  { %v8875_v60 = vpop.eup %6944  ;;  %5269 = vmatpush.msra.mxu3 %v6670_v44  ;;  %5295 = vmatpush.msra.mxu0 %v6671_v45 }
0x145f   :  { %v8877_v40 = vpop.eup %6946  ;;  %v5149_v8 = vsel %vm856_vm14, %v8875_v60, 0.0 }
0x1460   :  { %5150 = vadd.xlane.f32.xlu1 %v5149_v8  ;;  %v5155_v22 = vsel %vm856_vm14, %v8877_v40, 0.0 }
0x1461   :  { %5156 = vadd.xlane.f32.xlu0 %v5155_v22 }
0x1463   :  { %v5353_v18 = vpop.permute.xlu2 %5352 }
0x1464   :  { %5373 = vmatpush.msrb.mxu3 %v5353_v18 }
0x1475   :  { %5378 = vrot.lane.b32.xlu0 %v8465_v61, %s7256_s9 }
0x1479   :  { %6673 = vrot.lane.b32.xlu1 %v9315_v14, %s7256_s9 }
0x1481   :  { %6683 = vrot.lane.b32.xlu1 %v6682_v26, %s7255_s5 }
0x1489   :  { %6688 = vrot.lane.b32.xlu1 %v6687_v6, %s7256_s9 }
0x1491   :  { %5440 = vrot.lane.b32.xlu1 %v8827_v32, %s7255_s5 }
0x1499   :  { %5442 = vrot.lane.b32.xlu1 %v8835_v55, %s7255_s5 }
0x14a1   :  { %5444 = vrot.lane.b32.xlu1 %v8841_v42, %s7255_s5 }
0x14ac   :  { %v5142_v50 = vpop.xlane.xlu0 %5141 }
0x14ad   :  { %6948 = vrcp.f32 %v5142_v50  ;;  %v5169_v13 = vand.u32 2147483648, %v5142_v50  ;;  %v5167_v12 = vand.u32 2147483647, %v5142_v50  ;;  %vm5163_vm7 = vweird.f32 %v5142_v50 }
0x14af   :  { %v5170_v9 = vor.u32 1.1754944e-38, %v5169_v13  ;;  %vm5168_vm9 = vcmp.eq.f32.partialorder %v5167_v12, 8.507059e+37 }
0x14b3   :  { %v6949_v34 = vpop.eup %6948 }
0x14b4   :  { %v5159_v61 = vmul.f32 %v6949_v34, %v5142_v50  ;;  %vm5164_vm6 = vweird.f32 %v6949_v34 }
0x14b5   :  { %vm5165_vm8 = vmor %vm5163_vm7, %vm5164_vm6 }
0x14b6   :  { %v5160_v53 = vsub.f32 1.0, %v5159_v61 }
0x14b8   :  { %v5161_v26 = vmul.f32 %v6949_v34, %v5160_v53 }
0x14ba   :  { %v5162_v10 = vadd.f32 %v6949_v34, %v5161_v26 }
0x14bb   :  { %v5145_v55 = vpop.xlane.xlu1 %5144 }
0x14bc   :  { %v5166_v6 = vsel %vm5165_vm8, %v6949_v34, %v5162_v10  ;;  %6950 = vrcp.f32 %v5145_v55  ;;  %v5184_v43 = vand.u32 2147483648, %v5145_v55  ;;  %v5182_v16 = vand.u32 2147483647, %v5145_v55 }
0x14bd   :  { %v5171_v32 = vsel %vm5168_vm9, %v5170_v9, %v5166_v6  ;;  %vm5178_vm11 = vweird.f32 %v5145_v55 }
0x14be   :  { %v5172_v63 = vmul.f32 %v8859_v27, %v5171_v32  ;;  %v5185_v4 = vor.u32 1.1754944e-38, %v5184_v43  ;;  %vm5183_vm15 = vcmp.eq.f32.partialorder %v5182_v16, 8.507059e+37 }
0x14c0   :  { %6538 = vmatmul.msk.f32.vlgmr.msra.gmra.mxu3 %vm856_vm14, %v5172_v63 }
0x14c2   :  { %v6951_v42 = vpop.eup %6950 }
0x14c3   :  { %v5174_v1 = vmul.f32 %v6951_v42, %v5145_v55  ;;  %vm5179_vm10 = vweird.f32 %v6951_v42 }
0x14c4   :  { %v5154_v20 = vpop.xlane.xlu0 %5153  ;;  %vm5180_vm12 = vmor %vm5178_vm11, %vm5179_vm10 }
0x14c5   :  { %6952 = vrcp.f32 %v5154_v20  ;;  %v5175_v52 = vsub.f32 1.0, %v5174_v1  ;;  %v5229_v57 = vand.u32 2147483648, %v5154_v20  ;;  %v5227_v37 = vand.u32 2147483647, %v5154_v20 }
0x14c6   :  { %vm5223_vm1 = vweird.f32 %v5154_v20 }
0x14c7   :  { %v5176_v11 = vmul.f32 %v6951_v42, %v5175_v52  ;;  %v5230_v15 = vor.u32 1.1754944e-38, %v5229_v57  ;;  %vm5228_vm4 = vcmp.eq.f32.partialorder %v5227_v37, 8.507059e+37 }
0x14c9   :  { %v5177_v46 = vadd.f32 %v6951_v42, %v5176_v11 }
0x14cb   :  { %v6953_v54 = vpop.eup %6952  ;;  %v5181_v25 = vsel %vm5180_vm12, %v6951_v42, %v5177_v46 }
0x14cc   :  { %v5219_v27 = vmul.f32 %v6953_v54, %v5154_v20  ;;  %v8905_v24 = vpop.xlane.xlu0 %5147  ;;  %v5186_v41 = vsel %vm5183_vm15, %v5185_v4, %v5181_v25  ;;  %vm5224_vm0 = vweird.f32 %v6953_v54 }
0x14cd   :  { %v5187_v2 = vmul.f32 %v8863_v31, %v5186_v41  ;;  %6954 = vrcp.f32 %v8905_v24  ;;  %vm5225_vm2 = vmor %vm5223_vm1, %vm5224_vm0  ;;  %vm5193_vm7 = vweird.f32 %v8905_v24  ;;  %v5199_v63 = vand.u32 2147483648, %v8905_v24 }
0x14ce   :  { %v5220_v7 = vsub.f32 1.0, %v5219_v27  ;;  %v5197_v52 = vand.u32 2147483647, %v8905_v24 }
0x14cf   :  { %6539 = vmatmul.msk.f32.vlgmr.msra.gmra.mxu0 %vm856_vm14, %v5187_v2  ;;  %v5200_v25 = vor.u32 1.1754944e-38, %v5199_v63 }
0x14d0   :  { %v5221_v39 = vmul.f32 %v6953_v54, %v5220_v7 }
0x14d2   :  { %v5222_v35 = vadd.f32 %v6953_v54, %v5221_v39 }
0x14d3   :  { %v5151_v28 = vpop.xlane.xlu1 %5150  ;;  %v6955_v3 = vpop.eup %6954 }
0x14d4   :  { %v5226_v19 = vsel %vm5225_vm2, %v6953_v54, %v5222_v35  ;;  %v5157_v45 = vpop.xlane.xlu0 %5156  ;;  %6956 = vrcp.f32 %v5151_v28  ;;  %v5189_v8 = vmul.f32 %v6955_v3, %v8905_v24  ;;  %vm5194_vm8 = vweird.f32 %v6955_v3 }
0x14d5   :  { %v5231_v31 = vsel %vm5228_vm4, %v5230_v15, %v5226_v19  ;;  %6958 = vrcp.f32 %v5157_v45  ;;  %v5244_v26 = vand.u32 2147483648, %v5157_v45  ;;  %v5242_v9 = vand.u32 2147483647, %v5157_v45  ;;  %vm8915_vm15 = vmor %vm5193_vm7, %vm5194_vm8  ;;  %v5510_v15 = vld [vmem:[#allocation7 + $0xf8] sm:$0xff]  ;;  %v5505_v19 = vld [vmem:[#allocation7 + $0xd0] sm:$0xff] }
0x14d6   :  { %v5232_v44 = vmul.f32 %v8867_v58, %v5231_v31  ;;  %v5190_v14 = vsub.f32 1.0, %v5189_v8  ;;  %vm5238_vm9 = vweird.f32 %v5157_v45  ;;  %v5214_v1 = vand.u32 2147483648, %v5151_v28  ;;  %v5504_v31 = vld [vmem:[#allocation7 + $0xc8] sm:$0xff] }
0x14d7   :  { %v5245_v32 = vor.u32 1.1754944e-38, %v5244_v26  ;;  %vm5243_vm12 = vcmp.eq.f32.partialorder %v5242_v9, 8.507059e+37  ;;  %vm5208_vm0 = vweird.f32 %v5151_v28  ;;  %v5212_v11 = vand.u32 2147483647, %v5151_v28 }
0x14d8   :  { %6542 = vmatmul.msk.f32.vlgmr.msrb.gmra.mxu3 %vm856_vm14, %v5232_v44  ;;  %v5191_v13 = vmul.f32 %v6955_v3, %v5190_v14  ;;  %v5215_v27 = vor.u32 1.1754944e-38, %v5214_v1  ;;  %vm5198_vm2 = vcmp.eq.f32.partialorder %v5197_v52, 8.507059e+37  ;;  %v5502_v44 = vld [vmem:[#allocation7 + $0xb8] sm:$0xff]  ;;  %v5499_v14 = vld [vmem:[#allocation7 + $0xa0] sm:$0xff] }
0x14d9   :  { %vm5213_vm4 = vcmp.eq.f32.partialorder %v5212_v11, 8.507059e+37 }
0x14da   :  { %v6957_v22 = vpop.eup %6956  ;;  %v5192_v6 = vadd.f32 %v6955_v3, %v5191_v13  ;;  %v5495_v13 = vld [vmem:[#allocation7 + $0x80] sm:$0xff] }
0x14db   :  { %v6959_v18 = vpop.eup %6958  ;;  %v5204_v50 = vmul.f32 %v6957_v22, %v5151_v28  ;;  %vm5209_vm11 = vweird.f32 %v6957_v22  ;;  %v5509_v28 = vld [vmem:[#allocation7 + $0xf0] sm:$0xff] }
0x14dc   :  { %v5234_v34 = vmul.f32 %v6959_v18, %v5157_v45  ;;  %vm5239_vm6 = vweird.f32 %v6959_v18  ;;  %vm5210_vm1 = vmor %vm5208_vm0, %vm5209_vm11  ;;  %v5196_v46 = vsel %vm8915_vm15, %v6955_v3, %v5192_v6  ;;  %v5506_v3 = vld [vmem:[#allocation7 + $0xd8] sm:$0xff] }
0x14dd   :  { %v5205_v61 = vsub.f32 1.0, %v5204_v50  ;;  %vm5240_vm10 = vmor %vm5238_vm9, %vm5239_vm6  ;;  %v5201_v41 = vsel %vm5198_vm2, %v5200_v25, %v5196_v46  ;;  %v5498_v50 = vld [vmem:[#allocation7 + $0x98] sm:$0xff] }
0x14de   :  { %v5235_v53 = vsub.f32 1.0, %v5234_v34 }
0x14df   :  { %v5206_v12 = vmul.f32 %v6957_v22, %v5205_v61  ;;  %v5497_v61 = vld [vmem:[#allocation7 + $0x90] sm:$0xff] }
0x14e0   :  { %v5236_v10 = vmul.f32 %v6959_v18, %v5235_v53  ;;  %v5496_v53 = vld [vmem:[#allocation7 + $0x88] sm:$0xff] }
0x14e1   :  { %v5207_v55 = vadd.f32 %v6957_v22, %v5206_v12 }
0x14e2   :  { %v5237_v58 = vadd.f32 %v6959_v18, %v5236_v10 }
0x14e3   :  { %v5211_v54 = vsel %vm5210_vm1, %v6957_v22, %v5207_v55  ;;  %v5501_v22 = vld [vmem:[#allocation7 + $0xb0] sm:$0xff] }
0x14e4   :  { %v5241_v42 = vsel %vm5240_vm10, %v6959_v18, %v5237_v58  ;;  %v5216_v24 = vsel %vm5213_vm4, %v5215_v27, %v5211_v54  ;;  %v5500_v18 = vld [vmem:[#allocation7 + $0xa8] sm:$0xff] }
0x14e5   :  { %v5246_v43 = vsel %vm5243_vm12, %v5245_v32, %v5241_v42  ;;  %v5217_v39 = vmul.f32 %v8875_v60, %v5216_v24  ;;  %v5507_v60 = vld [vmem:[#allocation7 + $0xe0] sm:$0xff] }
0x14e6   :  { %v5247_v16 = vmul.f32 %v8877_v40, %v5246_v43  ;;  %v5202_v40 = vmul.f32 %v8871_v30, %v5201_v41  ;;  %v5508_v30 = vld [vmem:[#allocation7 + $0xe8] sm:$0xff] }
0x14e7   :  { %v5379_v4 = vpop.permute.xlu0 %5378 }
0x14e8   :  { %5399 = vmatpush.msrb.mxu0 %v5379_v4 }
0x14e9   :  { %6543 = vmatmul.msk.f32.vlgmr.msrb.gmra.mxu0 %vm856_vm14, %v5247_v16 }
0x14eb   :  { %v6674_v2 = vpop.permute.xlu1 %6673 }
0x14ec   :  { %v6676_v7 = vunpack.i.h.bf16 %v6674_v2  ;;  %v6675_v57 = vunpack.i.l.bf16 %v6674_v2 }
0x14ee   :  { %5321 = vmatpush.msrb.mxu1 %v6675_v57  ;;  %5347 = vmatpush.msrb.mxu2 %v6676_v7 }
0x14ef   :  { %6540 = vmatmul.msk.f32.vlgmr.msrb.gmra.mxu1 %vm856_vm14, %v5202_v40  ;;  %6541 = vmatmul.msk.f32.vlgmr.msrb.gmra.mxu2 %vm856_vm14, %v5217_v39 }
0x14f0   :  { %5516 = vmatpush.msra.mxu1 %v5510_v15 }
0x14f2   :  { %5517 = vmatpush.msra.mxu1 %v5509_v28 }
0x14f3   :  { %v6684_v12 = vpop.permute.xlu1 %6683 }
0x14f4   :  { %5518 = vmatpush.msra.mxu1 %v5508_v30  ;;  %v6685_v9 = vunpack.i.l.bf16 %v6684_v12  ;;  %v6686_v63 = vunpack.i.h.bf16 %v6684_v12 }
0x14f6   :  { %5519 = vmatpush.msra.mxu1 %v5507_v60 }
0x14f8   :  { %5520 = vmatpush.msra.mxu1 %v5506_v3 }
0x14fa   :  { %5521 = vmatpush.msra.mxu1 %v5505_v19 }
0x14fb   :  { %v6689_v43 = vpop.permute.xlu1 %6688 }
0x14fc   :  { %5522 = vmatpush.msra.mxu1 %v5504_v31  ;;  %v6690_v11 = vunpack.i.l.bf16 %v6689_v43 }
0x14fe   :  { %v5478_v16 = vsel %vm675_vm13, %v8583_v17, %v6690_v11 }
0x1503   :  { %v5441_v4 = vpop.permute.xlu1 %5440 }
0x150b   :  { %v5443_v57 = vpop.permute.xlu1 %5442 }
0x1513   :  { %v5445_v15 = vpop.permute.xlu1 %5444 }
0x1543   :  { %v5271_v37 = vpop.f32.mrf.mxu3 }
0x1544   :  { %5458 = vrot.lane.b32.xlu2 %v5271_v37, %s7254_s22 }
0x154c   :  { %5438 = vrot.lane.b32.xlu2 %v8823_v21, %s7255_s5  ;;  %v5297_v35 = vpop.f32.mrf.mxu0  ;;  %v5503_v21 = vld [vmem:[#allocation7 + $0xc0] sm:$0xff] }
0x154d   :  { %5460 = vrot.lane.b32.xlu0 %v5297_v35, %s7254_s22  ;;  %5523 = vmatpush.msra.mxu1 %v5503_v21 }
0x154f   :  { %5524 = vmatpush.msra.mxu1 %v5502_v44 }
0x1551   :  { %5525 = vmatpush.msra.mxu1 %v5501_v22 }
0x1553   :  { %5526 = vmatpush.msra.mxu1 %v5500_v18 }
0x1555   :  { %5527 = vmatpush.msra.mxu1 %v5499_v14 }
0x1557   :  { %5528 = vmatpush.msra.mxu1 %v5498_v50 }
0x1559   :  { %5529 = vmatpush.msra.mxu1 %v5497_v61 }
0x155b   :  { %v5375_v34 = vpop.f32.mrf.mxu3  ;;  %5530 = vmatpush.msra.mxu1 %v5496_v53 }
0x155d   :  { %5531 = vmatpush.msra.mxu1 %v5495_v13 }
0x1566   :  { %v5401_v26 = vpop.f32.mrf.mxu0 }
0x156c   :  { %v5323_v45 = vpop.f32.mrf.mxu1 }
0x156d   :  { %5462 = vrot.lane.b32.xlu0 %v5323_v45, %s7254_s22 }
0x1572   :  { %v5349_v8 = vpop.f32.mrf.mxu2 }
0x1573   :  { %5464 = vrot.lane.b32.xlu2 %v5349_v8, %s7254_s22 }
0x1575   :  { %5418 = vrot.lane.b32.xlu0 %v8723_v47, %s7256_s9  ;;  %v6679_v47 = vpop.permute.xlu2 %6678 }
0x1576   :  { %v6680_v10 = vunpack.i.l.bf16 %v6679_v47  ;;  %v6681_v55 = vunpack.i.h.bf16 %v6679_v47 }
0x1578   :  { %v5476_v58 = vsel %vm675_vm13, %v8591_v56, %v6680_v10  ;;  %v5477_v42 = vsel %vm675_vm13, %v8595_v48, %v6681_v55  ;;  %v6691_v48 = vunpack.i.h.bf16 %v6689_v43 }
0x1579   :  { %v5482_v32 = vsel %vm295_vm3, %v5476_v58, %v6685_v9  ;;  %v5483_v20 = vsel %vm295_vm3, %v5477_v42, %v6686_v63  ;;  %v5731_v58 = vld [vmem:[#allocation8 + $0x1f8] sm:$0xff] }
0x157a   :  { %v5479_v41 = vsel %vm675_vm13, %v8587_v38, %v6691_v48  ;;  %5774 = vmatpush.msra.mxu3 %v5731_v58 }
0x157b   :  { %5466 = vrot.lane.b32.xlu2 %v5375_v34, %s7254_s22  ;;  %v5485_v24 = vsel %vm295_vm3, %v5479_v41, %v5441_v4  ;;  %v5727_v41 = vld [vmem:[#allocation8 + $0x1d8] sm:$0xff] }
0x157d   :  { %5420 = vrot.lane.b32.xlu0 %v8729_v23, %s7256_s9 }
0x1583   :  { %5468 = vrot.lane.b32.xlu2 %v5401_v26, %s7254_s22  ;;  %s6358_s22 = sshll.u32 %s9323_s11, 4  ;;  %s6359_s22 = int_to_ptr.hbm [resolvable:$true] %s6358_s22 }
0x159e   :  { %v5459_v6 = vpop.permute.xlu2 %5458 }
0x159f   :  { %v5488_v23 = vsel %vm2669_vm5, %v5482_v32, %v5459_v6  ;;  %v5728_v6 = vld [vmem:[#allocation8 + $0x1e0] sm:$0xff] }
0x15a0   :  { %5532 = vmatmul.f32.vlgmr.msra.gmra.mxu1 %v5488_v23  ;;  %v5729_v23 = vld [vmem:[#allocation8 + $0x1e8] sm:$0xff] }
0x15a1   :  { %5775 = vmatpush.msra.mxu3 %v5729_v23 }
0x15a3   :  { %5776 = vmatpush.msra.mxu3 %v5727_v41 }
0x15a6   :  { %v5439_v56 = vpop.permute.xlu2 %5438 }
0x15a7   :  { %v5484_v46 = vsel %vm295_vm3, %v5478_v16, %v5439_v56 }
0x15bf   :  { %v5461_v1 = vpop.permute.xlu0 %5460 }
0x15c0   :  { %v5489_v52 = vsel %vm2669_vm5, %v5483_v20, %v5461_v1 }
0x15c1   :  { %5535 = vmatmul.f32.gmra.mxu1 %v5489_v52 }
0x15cd   :  { %v5465_v27 = vpop.permute.xlu2 %5464 }
0x15ce   :  { %v5491_v7 = vsel %vm2669_vm5, %v5485_v24, %v5465_v27  ;;  %v5726_v27 = vld [vmem:[#allocation8 + $0x1d0] sm:$0xff]  ;;  %v5724_v24 = vld [vmem:[#allocation8 + $0x1c0] sm:$0xff] }
0x15d5   :  { %v5467_v40 = vpop.permute.xlu2 %5466 }
0x15dd   :  { %v5469_v30 = vpop.permute.xlu2 %5468 }
0x15df   :  { %v5463_v54 = vpop.permute.xlu0 %5462 }
0x15e0   :  { %v5490_v25 = vsel %vm2669_vm5, %v5484_v46, %v5463_v54 }
0x15e1   :  { %5538 = vmatmul.f32.gmra.mxu1 %v5490_v25 }
0x15e7   :  { %v5419_v2 = vpop.permute.xlu0 %5418 }
0x15e8   :  { %v5480_v17 = vsel %vm675_vm13, %v8597_v0, %v5419_v2  ;;  %v6700_v0 = vld [vmem:[%s9258_s13 + $0x1] ss:$0 sm:$0xff]  ;;  %v5725_v2 = vld [vmem:[#allocation8 + $0x1c8] sm:$0xff] }
0x15e9   :  { %5541 = vmatmul.f32.gmra.mxu1 %v5491_v7  ;;  %v5486_v39 = vsel %vm295_vm3, %v5480_v17, %v5443_v57  ;;  %5777 = vmatpush.msra.mxu3 %v5725_v2  ;;  %v5722_v7 = vld [vmem:[#allocation8 + $0x1b0] sm:$0xff]  ;;  %v5723_v57 = vld [vmem:[#allocation8 + $0x1b8] sm:$0xff]  ;;  %v5720_v17 = vld [vmem:[#allocation8 + $0x1a0] sm:$0xff] }
0x15ea   :  { %v5492_v35 = vsel %vm2669_vm5, %v5486_v39, %v5467_v40  ;;  %v5721_v40 = vld [vmem:[#allocation8 + $0x1a8] sm:$0xff]  ;;  %v5718_v39 = vld [vmem:[#allocation8 + $0x190] sm:$0xff] }
0x15eb   :  { %5778 = vmatpush.msra.mxu3 %v5723_v57 }
0x15ed   :  { %5779 = vmatpush.msra.mxu3 %v5721_v40 }
0x15ef   :  { %v5421_v37 = vpop.permute.xlu0 %5420 }
0x15f0   :  { %v5481_v38 = vsel %vm675_vm13, %v8601_v5, %v5421_v37  ;;  %v5719_v37 = vld [vmem:[#allocation8 + $0x198] sm:$0xff] }
0x15f1   :  { %5544 = vmatmul.f32.gmra.mxu1 %v5492_v35  ;;  %v5487_v28 = vsel %vm295_vm3, %v5481_v38, %v5445_v15  ;;  %5780 = vmatpush.msra.mxu3 %v5719_v37  ;;  %v5716_v35 = vld [vmem:[#allocation8 + $0x180] sm:$0xff]  ;;  %v5717_v38 = vld [vmem:[#allocation8 + $0x188] sm:$0xff]  ;;  %v5714_v15 = vld [vmem:[#allocation8 + $0x170] sm:$0xff] }
0x15f2   :  { %v5493_v60 = vsel %vm2669_vm5, %v5487_v28, %v5469_v30  ;;  %v5715_v28 = vld [vmem:[#allocation8 + $0x178] sm:$0xff]  ;;  %v5712_v30 = vld [vmem:[#allocation8 + $0x160] sm:$0xff] }
0x15f3   :  { %5781 = vmatpush.msra.mxu3 %v5717_v38 }
0x15f5   :  { %5782 = vmatpush.msra.mxu3 %v5715_v28 }
0x15f9   :  { %5547 = vmatmul.f32.gmra.mxu1 %v5493_v60  ;;  %v5713_v60 = vld [vmem:[#allocation8 + $0x168] sm:$0xff] }
0x15fa   :  { %5783 = vmatpush.msra.mxu3 %v5713_v60  ;;  %v5932_v60 = vld [vmem:[#allocation10 + $0x170] sm:$0xff] }
0x161d   :  { %v5533_v3 = vpop.f32.mrf.mxu1 }
0x161e   :  { %v5534_v19 = vadd.f32 %v6700_v0, %v5533_v3  ;;  %v5711_v3 = vld [vmem:[#allocation8 + $0x158] sm:$0xff] }
0x161f   :  { %5784 = vmatpush.msra.mxu3 %v5711_v3 }
0x1620   :  { %v5551_v45 = vadd.f32 %v5534_v19, %v8338_v51  ;;  %v5708_v19 = vld [vmem:[#allocation8 + $0x140] sm:$0xff] }
0x1622   :  { %5561 = vadd.xlane.f32.xlu0 %v5551_v45 }
0x163e   :  { %v5536_v31 = vpop.f32.mrf.mxu1 }
0x163f   :  { %v5537_v21 = vadd.f32 %v6700_v0, %v5536_v31  ;;  %v5706_v31 = vld [vmem:[#allocation8 + $0x130] sm:$0xff] }
0x1641   :  { %v5552_v5 = vadd.f32 %v5537_v21, %v8347_v36  ;;  %v5707_v21 = vld [vmem:[#allocation8 + $0x138] sm:$0xff] }
0x1643   :  { %5563 = vadd.xlane.f32.xlu1 %v5552_v5 }
0x165e   :  { %v5539_v44 = vpop.f32.mrf.mxu1 }
0x165f   :  { %v5540_v8 = vadd.f32 %v6700_v0, %v5539_v44  ;;  %v5705_v44 = vld [vmem:[#allocation8 + $0x128] sm:$0xff] }
0x1661   :  { %v5553_v22 = vadd.f32 %v5540_v8, %v8355_v29  ;;  %v5702_v8 = vld [vmem:[#allocation8 + $0x110] sm:$0xff] }
0x1663   :  { %5565 = vadd.xlane.f32.xlu2 %v5553_v22 }
0x1666   :  { %v5542_v18 = vpop.f32.mrf.mxu1 }
0x1667   :  { %v5543_v14 = vadd.f32 %v6700_v0, %v5542_v18  ;;  %v5700_v18 = vld [vmem:[#allocation8 + $0x100] sm:$0xff] }
0x1669   :  { %v5554_v50 = vadd.f32 %v5543_v14, %v8365_v49  ;;  %v5701_v14 = vld [vmem:[#allocation8 + $0x108] sm:$0xff] }
0x166b   :  { %5567 = vadd.xlane.f32.xlu2 %v5554_v50 }
0x166e   :  { %v5545_v34 = vpop.f32.mrf.mxu1 }
0x166f   :  { %v5546_v61 = vadd.f32 %v6700_v0, %v5545_v34 }
0x1671   :  { %v5555_v51 = vadd.f32 %v5546_v61, %v8373_v33 }
0x1673   :  { %5569 = vadd.xlane.f32.xlu0 %v5555_v51 }
0x1676   :  { %v5548_v53 = vpop.f32.mrf.mxu1 }
0x1677   :  { %v5549_v13 = vadd.f32 %v6700_v0, %v5548_v53  ;;  %v5710_v0 = vld [vmem:[#allocation8 + $0x150] sm:$0xff] }
0x1679   :  { %v5556_v36 = vadd.f32 %v5549_v13, %v8381_v62  ;;  %v5730_v62 = vld [vmem:[#allocation8 + $0x1f0] sm:$0xff] }
0x167a   :  { %5739 = vmatpush.msra.mxu2 %v5730_v62 }
0x167b   :  { %5571 = vadd.xlane.f32.xlu1 %v5556_v36 }
0x167c   :  { %5740 = vmatpush.msra.mxu2 %v5728_v6 }
0x167e   :  { %5741 = vmatpush.msra.mxu2 %v5726_v27 }
0x1680   :  { %5742 = vmatpush.msra.mxu2 %v5724_v24 }
0x1682   :  { %5743 = vmatpush.msra.mxu2 %v5722_v7 }
0x1684   :  { %5744 = vmatpush.msra.mxu2 %v5720_v17 }
0x1686   :  { %5745 = vmatpush.msra.mxu2 %v5718_v39 }
0x1688   :  { %5746 = vmatpush.msra.mxu2 %v5716_v35 }
0x168a   :  { %5747 = vmatpush.msra.mxu2 %v5714_v15 }
0x168c   :  { %5748 = vmatpush.msra.mxu2 %v5712_v30  ;;  %v5933_v30 = vld [vmem:[#allocation10 + $0x178] sm:$0xff] }
0x168d   :  { %5955 = vmatpush.msra.mxu0 %v5933_v30 }
0x168e   :  { %5749 = vmatpush.msra.mxu2 %v5710_v0 }
0x168f   :  { %5956 = vmatpush.msra.mxu0 %v5932_v60 }
0x1690   :  { %5750 = vmatpush.msra.mxu2 %v5708_v19 }
0x1692   :  { %5751 = vmatpush.msra.mxu2 %v5706_v31 }
0x1695   :  { %v5562_v26 = vpop.xlane.xlu0 %5561 }
0x1696   :  { %v5573_v47 = vmul.f32 %v5562_v26, %v9314_v59 }
0x1698   :  { %v8974_v29 = vsub.f32 %v5551_v45, %v5573_v47  ;;  %v5709_v45 = vld [vmem:[#allocation8 + $0x148] sm:$0xff] }
0x1699   :  { %5785 = vmatpush.msra.mxu3 %v5709_v45  ;;  %v5931_v45 = vld [vmem:[#allocation10 + $0x168] sm:$0xff] }
0x169a   :  { %v5585_v12 = vmul.f32 %v8974_v29, %v8974_v29  ;;  %5957 = vmatpush.msra.mxu0 %v5931_v45 }
0x169b   :  { %5786 = vmatpush.msra.mxu3 %v5707_v21 }
0x169c   :  { %5591 = vadd.xlane.f32.xlu2 %v5585_v12  ;;  %v9007_v12 = vld [vmem:[%s9259_s14 + $0x1] ss:$0 sm:$0xff] }
0x169d   :  { %5787 = vmatpush.msra.mxu3 %v5705_v44 }
0x16b6   :  { %v5564_v49 = vpop.xlane.xlu1 %5563 }
0x16b7   :  { %v5574_v10 = vmul.f32 %v5564_v49, %v9314_v59 }
0x16b9   :  { %v8979_v9 = vsub.f32 %v5552_v5, %v5574_v10  ;;  %v5704_v5 = vld [vmem:[#allocation8 + $0x120] sm:$0xff] }
0x16ba   :  { %5752 = vmatpush.msra.mxu2 %v5704_v5 }
0x16bb   :  { %v5586_v33 = vmul.f32 %v8979_v9, %v8979_v9 }
0x16bc   :  { %5753 = vmatpush.msra.mxu2 %v5702_v8 }
0x16bd   :  { %5593 = vadd.xlane.f32.xlu0 %v5586_v33  ;;  %v9013_v33 = vld [vmem:[%s9260_s15 + $0x1] ss:$0 sm:$0xff] }
0x16be   :  { %5754 = vmatpush.msra.mxu2 %v5700_v18 }
0x16d6   :  { %v5566_v32 = vpop.xlane.xlu2 %5565 }
0x16d7   :  { %v5575_v55 = vmul.f32 %v5566_v32, %v9314_v59 }
0x16d9   :  { %v8984_v63 = vsub.f32 %v5553_v22, %v5575_v55  ;;  %v5703_v22 = vld [vmem:[#allocation8 + $0x118] sm:$0xff] }
0x16da   :  { %5788 = vmatpush.msra.mxu3 %v5703_v22 }
0x16db   :  { %v5587_v42 = vmul.f32 %v8984_v63, %v8984_v63 }
0x16dc   :  { %5789 = vmatpush.msra.mxu3 %v5701_v14 }
0x16dd   :  { %5595 = vadd.xlane.f32.xlu1 %v5587_v42 }
0x16de   :  { %v5568_v1 = vpop.xlane.xlu2 %5567 }
0x16df   :  { %v5576_v20 = vmul.f32 %v5568_v1, %v9314_v59 }
0x16e1   :  { %v8989_v52 = vsub.f32 %v5554_v50, %v5576_v20 }
0x16e3   :  { %v5588_v43 = vmul.f32 %v8989_v52, %v8989_v52 }
0x16e5   :  { %5597 = vadd.xlane.f32.xlu2 %v5588_v43 }
0x16e6   :  { %v5570_v11 = vpop.xlane.xlu0 %5569 }
0x16e7   :  { %v5577_v56 = vmul.f32 %v5570_v11, %v9314_v59 }
0x16e9   :  { %v8994_v16 = vsub.f32 %v5555_v51, %v5577_v56 }
0x16eb   :  { %v5589_v46 = vmul.f32 %v8994_v16, %v8994_v16 }
0x16ed   :  { %5599 = vadd.xlane.f32.xlu0 %v5589_v46 }
0x16ee   :  { %v5572_v54 = vpop.xlane.xlu1 %5571 }
0x16ef   :  { %v5578_v4 = vmul.f32 %v5572_v54, %v9314_v59 }
0x16f1   :  { %v8999_v25 = vsub.f32 %v5556_v36, %v5578_v4 }
0x16f3   :  { %v5590_v48 = vmul.f32 %v8999_v25, %v8999_v25 }
0x16f5   :  { %5601 = vadd.xlane.f32.xlu1 %v5590_v48 }
0x170f   :  { %v5592_v50 = vpop.xlane.xlu2 %5591 }
0x1710   :  { %v5603_v34 = vmul.f32 %v5592_v50, %v9314_v59 }
0x1712   :  { %v5609_v61 = vadd.f32 1e-05, %v5603_v34 }
0x1714   :  { %6960 = vrsqrt.f32 %v5609_v61  ;;  %vm5621_vm13 = vweird.f32 %v5609_v61 }
0x171a   :  { %v6961_v51 = vpop.eup %6960 }
0x171b   :  { %v5616_v53 = vmul.f32 %v6961_v51, %v5609_v61  ;;  %vm5622_vm3 = vweird.f32 %v6961_v51 }
0x171c   :  { %vm5623_vm14 = vmor %vm5621_vm13, %vm5622_vm3 }
0x171d   :  { %v5617_v13 = vmul.f32 %v6961_v51, %v5616_v53 }
0x171f   :  { %v5618_v36 = vmul.f32 0.5, %v5617_v13 }
0x1721   :  { %v5619_v26 = vsub.f32 1.5, %v5618_v36 }
0x1723   :  { %v5620_v47 = vmul.f32 %v6961_v51, %v5619_v26 }
0x1725   :  { %v5624_v49 = vsel %vm5623_vm14, %v6961_v51, %v5620_v47 }
0x1726   :  { %v5675_v10 = vmul.f32 %v5624_v49, %v8974_v29 }
0x1728   :  { %v5684_v62 = vmul.f32 %v9007_v12, %v5675_v10 }
0x172a   :  { %v9017_v58 = vadd.f32 %v9013_v33, %v5684_v62 }
0x172c   :  { %5755 = vmatmul.f32.vlgmr.msra.gmra.mxu2 %v9017_v58  ;;  %5790 = vmatmul.f32.vlgmr.msra.gmra.mxu3 %v9017_v58 }
0x1730   :  { %v5594_v6 = vpop.xlane.xlu0 %5593 }
0x1731   :  { %v5604_v32 = vmul.f32 %v5594_v6, %v9314_v59 }
0x1733   :  { %v5610_v23 = vadd.f32 1e-05, %v5604_v32 }
0x1735   :  { %6962 = vrsqrt.f32 %v5610_v23  ;;  %vm5631_vm6 = vweird.f32 %v5610_v23 }
0x173b   :  { %v6963_v29 = vpop.eup %6962 }
0x173c   :  { %v5626_v55 = vmul.f32 %v6963_v29, %v5610_v23  ;;  %vm5632_vm5 = vweird.f32 %v6963_v29 }
0x173d   :  { %vm5633_vm7 = vmor %vm5631_vm6, %vm5632_vm5 }
0x173e   :  { %v5627_v42 = vmul.f32 %v6963_v29, %v5626_v55 }
0x1740   :  { %v5628_v1 = vmul.f32 0.5, %v5627_v42 }
0x1742   :  { %v5629_v20 = vsub.f32 1.5, %v5628_v1 }
0x1744   :  { %v5630_v43 = vmul.f32 %v6963_v29, %v5629_v20 }
0x1746   :  { %v5634_v11 = vsel %vm5633_vm7, %v6963_v29, %v5630_v43 }
0x1747   :  { %v5676_v56 = vmul.f32 %v5634_v11, %v8979_v9  ;;  %v5930_v11 = vld [vmem:[#allocation10 + $0x160] sm:$0xff] }
0x1748   :  { %5958 = vmatpush.msra.mxu0 %v5930_v11  ;;  %v5934_v11 = vld [vmem:[#allocation10 + $0x180] sm:$0xff] }
0x1749   :  { %v5685_v46 = vmul.f32 %v9007_v12, %v5676_v56  ;;  %v5929_v56 = vld [vmem:[#allocation10 + $0x158] sm:$0xff] }
0x174a   :  { %5959 = vmatpush.msra.mxu0 %v5929_v56 }
0x174b   :  { %v9025_v54 = vadd.f32 %v9013_v33, %v5685_v46  ;;  %v5928_v46 = vld [vmem:[#allocation10 + $0x150] sm:$0xff] }
0x174c   :  { %5960 = vmatpush.msra.mxu0 %v5928_v46 }
0x174d   :  { %5758 = vmatmul.f32.gmra.mxu2 %v9025_v54  ;;  %5793 = vmatmul.f32.gmra.mxu3 %v9025_v54 }
0x1750   :  { %v5596_v4 = vpop.xlane.xlu1 %5595 }
0x1751   :  { %v5605_v48 = vmul.f32 %v5596_v4, %v9314_v59  ;;  %v5927_v4 = vld [vmem:[#allocation10 + $0x148] sm:$0xff] }
0x1752   :  { %5961 = vmatpush.msra.mxu0 %v5927_v4 }
0x1753   :  { %v5611_v27 = vadd.f32 1e-05, %v5605_v48  ;;  %v5926_v48 = vld [vmem:[#allocation10 + $0x140] sm:$0xff] }
0x1754   :  { %5962 = vmatpush.msra.mxu0 %v5926_v48 }
0x1755   :  { %6964 = vrsqrt.f32 %v5611_v27  ;;  %vm5641_vm9 = vweird.f32 %v5611_v27 }
0x1758   :  { %v5598_v41 = vpop.xlane.xlu2 %5597 }
0x1759   :  { %v5606_v24 = vmul.f32 %v5598_v41, %v9314_v59  ;;  %v5921_v41 = vld [vmem:[#allocation10 + $0x118] sm:$0xff] }
0x175b   :  { %v6965_v2 = vpop.eup %6964  ;;  %v5612_v7 = vadd.f32 1e-05, %v5606_v24  ;;  %v5920_v24 = vld [vmem:[#allocation10 + $0x110] sm:$0xff] }
0x175c   :  { %v5636_v9 = vmul.f32 %v6965_v2, %v5611_v27  ;;  %vm5642_vm8 = vweird.f32 %v6965_v2  ;;  %v5922_v27 = vld [vmem:[#allocation10 + $0x120] sm:$0xff] }
0x175d   :  { %6966 = vrsqrt.f32 %v5612_v7  ;;  %vm5643_vm10 = vmor %vm5641_vm9, %vm5642_vm8  ;;  %vm5651_vm12 = vweird.f32 %v5612_v7 }
0x175e   :  { %v5637_v57 = vmul.f32 %v6965_v2, %v5636_v9  ;;  %v5918_v9 = vld [vmem:[#allocation10 + $0x100] sm:$0xff] }
0x1760   :  { %v5638_v17 = vmul.f32 0.5, %v5637_v57  ;;  %v5600_v40 = vpop.xlane.xlu0 %5599 }
0x1761   :  { %v5607_v39 = vmul.f32 %v5600_v40, %v9314_v59 }
0x1762   :  { %v5639_v37 = vsub.f32 1.5, %v5638_v17 }
0x1763   :  { %v6967_v35 = vpop.eup %6966  ;;  %v5613_v38 = vadd.f32 1e-05, %v5607_v39 }
0x1764   :  { %v5640_v15 = vmul.f32 %v6965_v2, %v5639_v37  ;;  %v5646_v28 = vmul.f32 %v6967_v35, %v5612_v7  ;;  %vm5652_vm11 = vweird.f32 %v6967_v35  ;;  %v5919_v7 = vld [vmem:[#allocation10 + $0x108] sm:$0xff] }
0x1765   :  { %6968 = vrsqrt.f32 %v5613_v38  ;;  %vm5653_vm15 = vmor %vm5651_vm12, %vm5652_vm11  ;;  %vm5661_vm1 = vweird.f32 %v5613_v38 }
0x1766   :  { %v5644_v0 = vsel %vm5643_vm10, %v6965_v2, %v5640_v15  ;;  %v5647_v3 = vmul.f32 %v6967_v35, %v5646_v28  ;;  %v9064_v2 = vld [vmem:[%s9262_s17 + $0x2] sm:$0x3] }
0x1767   :  { %v5677_v19 = vmul.f32 %v5644_v0, %v8984_v63  ;;  %v9067_v57 = vperm.slane %v9064_v2, 0  ;;  %v9077_v4 = vperm.slane %v9064_v2, 1 }
0x1768   :  { %v5648_v31 = vmul.f32 0.5, %v5647_v3  ;;  %v5602_v21 = vpop.xlane.xlu1 %5601 }
0x1769   :  { %v5608_v5 = vmul.f32 %v5602_v21, %v9314_v59  ;;  %v5686_v44 = vmul.f32 %v9007_v12, %v5677_v19 }
0x176a   :  { %v5649_v8 = vsub.f32 1.5, %v5648_v31  ;;  %v5949_v31 = vld [vmem:[#allocation10 + $0x1f8] sm:$0xff] }
0x176b   :  { %v6969_v22 = vpop.eup %6968  ;;  %v5614_v18 = vadd.f32 1e-05, %v5608_v5  ;;  %v9036_v14 = vadd.f32 %v9013_v33, %v5686_v44  ;;  %6553 = vmatpush.msrb.mxu1 %v5949_v31  ;;  %v5948_v5 = vld [vmem:[#allocation10 + $0x1f0] sm:$0xff] }
0x176c   :  { %v5650_v50 = vmul.f32 %v6967_v35, %v5649_v8  ;;  %v5656_v34 = vmul.f32 %v6969_v22, %v5613_v38  ;;  %vm5662_vm0 = vweird.f32 %v6969_v22  ;;  %v5947_v8 = vld [vmem:[#allocation10 + $0x1e8] sm:$0xff] }
0x176d   :  { %6970 = vrsqrt.f32 %v5614_v18  ;;  %5761 = vmatmul.f32.gmra.mxu2 %v9036_v14  ;;  %5796 = vmatmul.f32.gmra.mxu3 %v9036_v14  ;;  %vm5663_vm2 = vmor %vm5661_vm1, %vm5662_vm0  ;;  %vm5671_vm3 = vweird.f32 %v5614_v18 }
0x176e   :  { %v5654_v63 = vsel %vm5653_vm15, %v6967_v35, %v5650_v50  ;;  %v5657_v61 = vmul.f32 %v6969_v22, %v5656_v34  ;;  %6554 = vmatpush.msrb.mxu1 %v5948_v5  ;;  %v5945_v34 = vld [vmem:[#allocation10 + $0x1d8] sm:$0xff] }
0x176f   :  { %v5678_v51 = vmul.f32 %v5654_v63, %v8989_v52  ;;  %v5944_v63 = vld [vmem:[#allocation10 + $0x1d0] sm:$0xff] }
0x1770   :  { %v5658_v53 = vmul.f32 0.5, %v5657_v61  ;;  %6555 = vmatpush.msrb.mxu1 %v5947_v8 }
0x1771   :  { %v5687_v13 = vmul.f32 %v9007_v12, %v5678_v51  ;;  %v5943_v51 = vld [vmem:[#allocation10 + $0x1c8] sm:$0xff] }
0x1772   :  { %v5659_v36 = vsub.f32 1.5, %v5658_v53  ;;  %v5942_v53 = vld [vmem:[#allocation10 + $0x1c0] sm:$0xff] }
0x1773   :  { %v6971_v26 = vpop.eup %6970  ;;  %v9043_v47 = vadd.f32 %v9013_v33, %v5687_v13 }
0x1774   :  { %v5660_v49 = vmul.f32 %v6969_v22, %v5659_v36  ;;  %v5666_v10 = vmul.f32 %v6971_v26, %v5614_v18  ;;  %vm5672_vm4 = vweird.f32 %v6971_v26  ;;  %v5946_v18 = vld [vmem:[#allocation10 + $0x1e0] sm:$0xff] }
0x1775   :  { %5764 = vmatmul.f32.gmra.mxu2 %v9043_v47  ;;  %5799 = vmatmul.f32.gmra.mxu3 %v9043_v47  ;;  %vm5673_vm13 = vmor %vm5671_vm3, %vm5672_vm4 }
0x1776   :  { %v5664_v62 = vsel %vm5663_vm2, %v6969_v22, %v5660_v49  ;;  %v5667_v6 = vmul.f32 %v6971_v26, %v5666_v10  ;;  %6556 = vmatpush.msrb.mxu1 %v5946_v18  ;;  %v5940_v10 = vld [vmem:[#allocation10 + $0x1b0] sm:$0xff] }
0x1777   :  { %v5679_v52 = vmul.f32 %v5664_v62, %v8994_v16 }
0x1778   :  { %v5668_v32 = vmul.f32 0.5, %v5667_v6  ;;  %6557 = vmatpush.msrb.mxu1 %v5945_v34 }
0x1779   :  { %v5688_v23 = vmul.f32 %v9007_v12, %v5679_v52  ;;  %v5939_v52 = vld [vmem:[#allocation10 + $0x1a8] sm:$0xff] }
0x177a   :  { %v5669_v29 = vsub.f32 1.5, %v5668_v32  ;;  %6558 = vmatpush.msrb.mxu1 %v5944_v63  ;;  %v5938_v32 = vld [vmem:[#allocation10 + $0x1a0] sm:$0xff] }
0x177b   :  { %v9050_v55 = vadd.f32 %v9013_v33, %v5688_v23  ;;  %v5937_v23 = vld [vmem:[#allocation10 + $0x198] sm:$0xff] }
0x177c   :  { %v5670_v42 = vmul.f32 %v6971_v26, %v5669_v29  ;;  %6559 = vmatpush.msrb.mxu1 %v5943_v51  ;;  %v5936_v29 = vld [vmem:[#allocation10 + $0x190] sm:$0xff] }
0x177d   :  { %5767 = vmatmul.f32.gmra.mxu2 %v9050_v55  ;;  %5802 = vmatmul.f32.gmra.mxu3 %v9050_v55 }
0x177e   :  { %v5674_v1 = vsel %vm5673_vm13, %v6971_v26, %v5670_v42  ;;  %6560 = vmatpush.msrb.mxu1 %v5942_v53  ;;  %v5941_v26 = vld [vmem:[#allocation10 + $0x1b8] sm:$0xff] }
0x177f   :  { %v5680_v20 = vmul.f32 %v5674_v1, %v8999_v25  ;;  %v5925_v25 = vld [vmem:[#allocation10 + $0x138] sm:$0xff] }
0x1780   :  { %5963 = vmatpush.msra.mxu0 %v5925_v25  ;;  %6561 = vmatpush.msrb.mxu1 %v5941_v26 }
0x1781   :  { %v5689_v16 = vmul.f32 %v9007_v12, %v5680_v20  ;;  %v5924_v12 = vld [vmem:[#allocation10 + $0x130] sm:$0xff] }
0x1782   :  { %5964 = vmatpush.msra.mxu0 %v5924_v12  ;;  %6562 = vmatpush.msrb.mxu1 %v5940_v10 }
0x1783   :  { %v9057_v43 = vadd.f32 %v9013_v33, %v5689_v16  ;;  %v5923_v33 = vld [vmem:[#allocation10 + $0x128] sm:$0xff] }
0x1784   :  { %5965 = vmatpush.msra.mxu0 %v5923_v33  ;;  %6563 = vmatpush.msrb.mxu1 %v5939_v52  ;;  %v5935_v16 = vld [vmem:[#allocation10 + $0x188] sm:$0xff] }
0x1785   :  { %5770 = vmatmul.f32.gmra.mxu2 %v9057_v43  ;;  %5805 = vmatmul.f32.gmra.mxu3 %v9057_v43 }
0x1786   :  { %5966 = vmatpush.msra.mxu0 %v5922_v27  ;;  %6564 = vmatpush.msrb.mxu1 %v5938_v32 }
0x1788   :  { %5967 = vmatpush.msra.mxu0 %v5921_v41  ;;  %6565 = vmatpush.msrb.mxu1 %v5937_v23 }
0x178a   :  { %5968 = vmatpush.msra.mxu0 %v5920_v24  ;;  %6566 = vmatpush.msrb.mxu1 %v5936_v29 }
0x178c   :  { %5969 = vmatpush.msra.mxu0 %v5919_v7  ;;  %6567 = vmatpush.msrb.mxu1 %v5935_v16 }
0x178e   :  { %5970 = vmatpush.msra.mxu0 %v5918_v9  ;;  %6568 = vmatpush.msrb.mxu1 %v5934_v11 }
0x1790   :  { %5990 = vmatpush.msrb.mxu0 %v5949_v31 }
0x1792   :  { %5991 = vmatpush.msrb.mxu0 %v5948_v5 }
0x1794   :  { %5992 = vmatpush.msrb.mxu0 %v5947_v8 }
0x1796   :  { %5993 = vmatpush.msrb.mxu0 %v5946_v18 }
0x1798   :  { %5994 = vmatpush.msrb.mxu0 %v5945_v34 }
0x179a   :  { %5995 = vmatpush.msrb.mxu0 %v5944_v63 }
0x179c   :  { %5996 = vmatpush.msrb.mxu0 %v5943_v51 }
0x179e   :  { %5997 = vmatpush.msrb.mxu0 %v5942_v53 }
0x17a0   :  { %5998 = vmatpush.msrb.mxu0 %v5941_v26 }
0x17a2   :  { %5999 = vmatpush.msrb.mxu0 %v5940_v10 }
0x17a4   :  { %6000 = vmatpush.msrb.mxu0 %v5939_v52 }
0x17a6   :  { %6001 = vmatpush.msrb.mxu0 %v5938_v32 }
0x17a8   :  { %6002 = vmatpush.msrb.mxu0 %v5937_v23 }
0x17aa   :  { %6003 = vmatpush.msrb.mxu0 %v5936_v29 }
0x17ac   :  { %6004 = vmatpush.msrb.mxu0 %v5935_v16 }
0x17ae   :  { %6005 = vmatpush.msrb.mxu0 %v5934_v11 }
0x17af   :  { %v5756_v17 = vpop.f32.mrf.mxu2  ;;  %v5791_v61 = vpop.f32.mrf.mxu3 }
0x17b0   :  { %v5757_v40 = vadd.f32 %v5756_v17, %v9067_v57 }
0x17b2   :  { %v5809_v39 = vmul.f32 %v5757_v40, %v5757_v40 }
0x17b4   :  { %v5821_v37 = vmul.f32 %v5809_v39, %v5757_v40 }
0x17b6   :  { %v5833_v35 = vmul.f32 0.044715, %v5821_v37  ;;  %v9087_v37 = vadd.f32 %v5791_v61, %v9077_v4 }
0x17b8   :  { %v5845_v38 = vadd.f32 %v5833_v35, %v5757_v40 }
0x17ba   :  { %v5857_v15 = vmul.f32 0.7978846, %v5845_v38 }
0x17bc   :  { %6972 = vtanh.f32 %v5857_v15 }
0x17c2   :  { %v6973_v28 = vpop.eup %6972 }
0x17c3   :  { %v5881_v30 = vadd.f32 1.0, %v6973_v28 }
0x17c5   :  { %v5893_v60 = vmul.f32 0.5, %v5881_v30 }
0x17c7   :  { %v5905_v0 = vmul.f32 %v5893_v60, %v5757_v40 }
0x17c9   :  { %5971 = vmatmul.f32.vlgmr.msra.gmra.mxu0 %v5905_v0 }
0x17d0   :  { %v5759_v3 = vpop.f32.mrf.mxu2  ;;  %v9071_v62 = vpop.f32.mrf.mxu3 }
0x17d1   :  { %v5760_v19 = vadd.f32 %v5759_v3, %v9067_v57  ;;  %v9107_v63 = vadd.f32 %v9071_v62, %v9077_v4 }
0x17d3   :  { %v5811_v45 = vmul.f32 %v5760_v19, %v5760_v19 }
0x17d5   :  { %v5823_v21 = vmul.f32 %v5811_v45, %v5760_v19 }
0x17d7   :  { %v5835_v44 = vmul.f32 0.044715, %v5823_v21  ;;  %v5810_v21 = vmul.f32 %v9087_v37, %v9087_v37 }
0x17d9   :  { %v5847_v22 = vadd.f32 %v5835_v44, %v5760_v19  ;;  %v5822_v34 = vmul.f32 %v5810_v21, %v9087_v37 }
0x17db   :  { %v5859_v50 = vmul.f32 0.7978846, %v5847_v22  ;;  %v5834_v62 = vmul.f32 0.044715, %v5822_v34 }
0x17dd   :  { %6974 = vtanh.f32 %v5859_v50 }
0x17e3   :  { %v6975_v13 = vpop.eup %6974 }
0x17e4   :  { %v5883_v36 = vadd.f32 1.0, %v6975_v13 }
0x17e6   :  { %v5895_v49 = vmul.f32 0.5, %v5883_v36 }
0x17e8   :  { %v5907_v6 = vmul.f32 %v5895_v49, %v5760_v19 }
0x17ea   :  { %5974 = vmatmul.f32.gmra.mxu0 %v5907_v6 }
0x17f0   :  { %v5762_v42 = vpop.f32.mrf.mxu2  ;;  %v9073_v1 = vpop.f32.mrf.mxu3 }
0x17f1   :  { %v5763_v20 = vadd.f32 %v5762_v42, %v9067_v57  ;;  %v5812_v42 = vmul.f32 %v9107_v63, %v9107_v63 }
0x17f3   :  { %v5813_v56 = vmul.f32 %v5763_v20, %v5763_v20 }
0x17f5   :  { %v5825_v46 = vmul.f32 %v5813_v56, %v5763_v20 }
0x17f7   :  { %v5837_v48 = vmul.f32 0.044715, %v5825_v46 }
0x17f8   :  { %v5765_v25 = vpop.f32.mrf.mxu2  ;;  %v5800_v12 = vpop.f32.mrf.mxu3 }
0x17f9   :  { %v5849_v33 = vadd.f32 %v5837_v48, %v5763_v20  ;;  %v9080_v27 = vadd.f32 %v5765_v25, %v9067_v57  ;;  %v5801_v41 = vadd.f32 %v5800_v12, %v9077_v4  ;;  %v5846_v12 = vadd.f32 %v5834_v62, %v9087_v37 }
0x17fb   :  { %v5815_v24 = vmul.f32 %v9080_v27, %v9080_v27  ;;  %v5816_v7 = vmul.f32 %v5801_v41, %v5801_v41  ;;  %v5861_v9 = vmul.f32 0.7978846, %v5849_v33  ;;  %v5824_v33 = vmul.f32 %v5812_v42, %v9107_v63 }
0x17fd   :  { %v5827_v17 = vmul.f32 %v5815_v24, %v9080_v27  ;;  %v5828_v40 = vmul.f32 %v5816_v7, %v5801_v41  ;;  %6976 = vtanh.f32 %v5861_v9  ;;  %v5798_v24 = vadd.f32 %v9073_v1, %v9077_v4 }
0x17ff   :  { %v5839_v2 = vmul.f32 0.044715, %v5827_v17  ;;  %v5840_v39 = vmul.f32 0.044715, %v5828_v40 }
0x1800   :  { %v5768_v35 = vpop.f32.mrf.mxu2  ;;  %v5803_v38 = vpop.f32.mrf.mxu3 }
0x1801   :  { %v5851_v15 = vadd.f32 %v5839_v2, %v9080_v27  ;;  %v5852_v28 = vadd.f32 %v5840_v39, %v5801_v41  ;;  %v9091_v30 = vadd.f32 %v5768_v35, %v9067_v57  ;;  %v9094_v60 = vadd.f32 %v5803_v38, %v9077_v4 }
0x1803   :  { %v6977_v0 = vpop.eup %6976  ;;  %v5864_v3 = vmul.f32 0.7978846, %v5852_v28  ;;  %v5817_v19 = vmul.f32 %v9091_v30, %v9091_v30  ;;  %v5818_v45 = vmul.f32 %v9094_v60, %v9094_v60  ;;  %v5863_v31 = vmul.f32 0.7978846, %v5851_v15 }
0x1804   :  { %v5885_v5 = vadd.f32 1.0, %v6977_v0  ;;  %v5858_v15 = vmul.f32 0.7978846, %v5846_v12  ;;  %v5836_v28 = vmul.f32 0.044715, %v5824_v33  ;;  %v5814_v0 = vmul.f32 %v5798_v24, %v5798_v24 }
0x1805   :  { %6978 = vtanh.f32 %v5864_v3  ;;  %v5829_v44 = vmul.f32 %v5817_v19, %v9091_v30  ;;  %v5830_v8 = vmul.f32 %v5818_v45, %v9094_v60 }
0x1806   :  { %v5897_v22 = vmul.f32 0.5, %v5885_v5  ;;  %6980 = vtanh.f32 %v5863_v31 }
0x1807   :  { %v5841_v18 = vmul.f32 0.044715, %v5829_v44  ;;  %v5842_v50 = vmul.f32 0.044715, %v5830_v8 }
0x1808   :  { %v5771_v61 = vpop.f32.mrf.mxu2  ;;  %v5806_v51 = vpop.f32.mrf.mxu3  ;;  %v5909_v53 = vmul.f32 %v5897_v22, %v5763_v20 }
0x1809   :  { %v5853_v13 = vadd.f32 %v5841_v18, %v9091_v30  ;;  %v5854_v36 = vadd.f32 %v5842_v50, %v9094_v60  ;;  %v5772_v26 = vadd.f32 %v5771_v61, %v9067_v57  ;;  %v5807_v49 = vadd.f32 %v5806_v51, %v9077_v4 }
0x180a   :  { %5977 = vmatmul.f32.gmra.mxu0 %v5909_v53  ;;  %v5848_v4 = vadd.f32 %v5836_v28, %v9107_v63 }
0x180b   :  { %v6979_v10 = vpop.eup %6978  ;;  %v5819_v6 = vmul.f32 %v5772_v26, %v5772_v26  ;;  %v5820_v52 = vmul.f32 %v5807_v49, %v5807_v49  ;;  %v5865_v32 = vmul.f32 0.7978846, %v5853_v13  ;;  %v5866_v23 = vmul.f32 0.7978846, %v5854_v36 }
0x180c   :  { %v6981_v29 = vpop.eup %6980  ;;  %v5888_v20 = vadd.f32 1.0, %v6979_v10  ;;  %v5860_v22 = vmul.f32 0.7978846, %v5848_v4 }
0x180d   :  { %v5831_v16 = vmul.f32 %v5819_v6, %v5772_v26  ;;  %v5832_v11 = vmul.f32 %v5820_v52, %v5807_v49  ;;  %v5887_v56 = vadd.f32 1.0, %v6981_v29  ;;  %6982 = vtanh.f32 %v5865_v32 }
0x180e   :  { %v5900_v46 = vmul.f32 0.5, %v5888_v20  ;;  %6984 = vtanh.f32 %v5866_v23 }
0x180f   :  { %v5843_v57 = vmul.f32 0.044715, %v5831_v16  ;;  %v5844_v48 = vmul.f32 0.044715, %v5832_v11  ;;  %v5899_v25 = vmul.f32 0.5, %v5887_v56 }
0x1810   :  { %v5912_v7 = vmul.f32 %v5900_v46, %v5801_v41  ;;  %v5826_v41 = vmul.f32 %v5814_v0, %v5798_v24 }
0x1811   :  { %v5855_v9 = vadd.f32 %v5843_v57, %v5772_v26  ;;  %v5856_v17 = vadd.f32 %v5844_v48, %v5807_v49  ;;  %v5911_v40 = vmul.f32 %v5899_v25, %v9080_v27 }
0x1812   :  { %6015 = vmatmul.f32.vlgmr.msrb.gmra.mxu1 %v5912_v7  ;;  %v5838_v44 = vmul.f32 0.044715, %v5826_v41 }
0x1813   :  { %v6983_v2 = vpop.eup %6982  ;;  %5980 = vmatmul.f32.gmra.mxu0 %v5911_v40  ;;  %v5867_v39 = vmul.f32 0.7978846, %v5855_v9  ;;  %v5868_v35 = vmul.f32 0.7978846, %v5856_v17 }
0x1814   :  { %v6985_v38 = vpop.eup %6984  ;;  %v5889_v3 = vadd.f32 1.0, %v6983_v2  ;;  %v5850_v51 = vadd.f32 %v5838_v44, %v5798_v24 }
0x1815   :  { %v5890_v19 = vadd.f32 1.0, %v6985_v38  ;;  %6986 = vtanh.f32 %v5867_v39 }
0x1816   :  { %v5901_v45 = vmul.f32 0.5, %v5889_v3  ;;  %6988 = vtanh.f32 %v5868_v35 }
0x1817   :  { %v5902_v1 = vmul.f32 0.5, %v5890_v19  ;;  %6990 = vtanh.f32 %v5858_v15 }
0x1818   :  { %v5913_v27 = vmul.f32 %v5901_v45, %v9091_v30  ;;  %6992 = vtanh.f32 %v5860_v22  ;;  %v5862_v30 = vmul.f32 0.7978846, %v5850_v51 }
0x1819   :  { %v5914_v31 = vmul.f32 %v5902_v1, %v9094_v60 }
0x181a   :  { %6994 = vtanh.f32 %v5862_v30 }
0x181b   :  { %v6987_v21 = vpop.eup %6986  ;;  %5983 = vmatmul.f32.gmra.mxu0 %v5913_v27  ;;  %6018 = vmatmul.f32.gmra.mxu1 %v5914_v31 }
0x181c   :  { %v6989_v5 = vpop.eup %6988  ;;  %v5891_v8 = vadd.f32 1.0, %v6987_v21 }
0x181d   :  { %v5892_v18 = vadd.f32 1.0, %v6989_v5  ;;  %v6991_v50 = vpop.eup %6990 }
0x181e   :  { %v5903_v34 = vmul.f32 0.5, %v5891_v8  ;;  %v5882_v13 = vadd.f32 1.0, %v6991_v50  ;;  %v6993_v10 = vpop.eup %6992 }
0x181f   :  { %v5904_v61 = vmul.f32 0.5, %v5892_v18  ;;  %v5884_v52 = vadd.f32 1.0, %v6993_v10 }
0x1820   :  { %v5915_v53 = vmul.f32 %v5903_v34, %v5772_v26  ;;  %v5894_v60 = vmul.f32 0.5, %v5882_v13  ;;  %v6995_v23 = vpop.eup %6994 }
0x1821   :  { %v5916_v36 = vmul.f32 %v5904_v61, %v5807_v49  ;;  %v5896_v32 = vmul.f32 0.5, %v5884_v52  ;;  %v5886_v62 = vadd.f32 1.0, %v6995_v23  ;;  %v6204_v52 = vld [vmem:[#allocation11 + $0xf8] sm:$0xff]  ;;  %v6202_v23 = vld [vmem:[#allocation11 + $0xe8] sm:$0xff] }
0x1822   :  { %v5906_v6 = vmul.f32 %v5894_v60, %v9087_v37  ;;  %v6703_v37 = vld [vmem:[%s9264_s19 + $0x1] ss:$0 sm:$0xff]  ;;  %6253 = vmatpush.msrb.mxu3 %v6204_v52 }
0x1823   :  { %5986 = vmatmul.f32.gmra.mxu0 %v5915_v53  ;;  %6021 = vmatmul.f32.gmra.mxu1 %v5916_v36  ;;  %v5908_v29 = vmul.f32 %v5896_v32, %v9107_v63  ;;  %v5898_v26 = vmul.f32 0.5, %v5886_v62  ;;  %v6201_v32 = vld [vmem:[#allocation11 + $0xe0] sm:$0xff]  ;;  %v6200_v62 = vld [vmem:[#allocation11 + $0xd8] sm:$0xff] }
0x1824   :  { %6254 = vmatpush.msrb.mxu3 %v6202_v23 }
0x1825   :  { %v5910_v42 = vmul.f32 %v5898_v26, %v5798_v24 }
0x1826   :  { %6255 = vmatpush.msrb.mxu3 %v6200_v62 }
0x182b   :  { %6006 = vmatmul.f32.vlgmr.msrb.gmra.mxu0 %v5906_v6  ;;  %v6203_v6 = vld [vmem:[#allocation11 + $0xf0] sm:$0xff] }
0x182c   :  { %6233 = vmatpush.msrb.mxu2 %v6203_v6 }
0x182e   :  { %6234 = vmatpush.msrb.mxu2 %v6201_v32 }
0x1833   :  { %6009 = vmatmul.f32.gmra.mxu0 %v5908_v29  ;;  %v6199_v29 = vld [vmem:[#allocation11 + $0xd0] sm:$0xff] }
0x1834   :  { %6235 = vmatpush.msrb.mxu2 %v6199_v29 }
0x183b   :  { %6012 = vmatmul.f32.gmra.mxu0 %v5910_v42 }
0x1846   :  { %v5972_v49 = vpop.f32.mrf.mxu0 }
0x1847   :  { %v5973_v25 = vadd.f32 %v6703_v37, %v5972_v49  ;;  %v6197_v49 = vld [vmem:[#allocation11 + $0xc0] sm:$0xff] }
0x1848   :  { %6236 = vmatpush.msrb.mxu2 %v6197_v49 }
0x1867   :  { %v5975_v20 = vpop.f32.mrf.mxu0 }
0x1868   :  { %v5976_v9 = vadd.f32 %v6703_v37, %v5975_v20  ;;  %v6198_v20 = vld [vmem:[#allocation11 + $0xc8] sm:$0xff] }
0x1869   :  { %6256 = vmatpush.msrb.mxu3 %v6198_v20 }
0x1887   :  { %v5978_v16 = vpop.f32.mrf.mxu0 }
0x1888   :  { %v5979_v15 = vadd.f32 %v6703_v37, %v5978_v16  ;;  %v6195_v16 = vld [vmem:[#allocation11 + $0xb0] sm:$0xff] }
0x1889   :  { %6237 = vmatpush.msrb.mxu2 %v6195_v16 }
0x188f   :  { %v6016_v46 = vpop.f32.mrf.mxu1 }
0x1890   :  { %v5981_v11 = vpop.f32.mrf.mxu0 }
0x1891   :  { %v5982_v39 = vadd.f32 %v6703_v37, %v5981_v11  ;;  %v6196_v11 = vld [vmem:[#allocation11 + $0xb8] sm:$0xff] }
0x1892   :  { %6257 = vmatpush.msrb.mxu3 %v6196_v11 }
0x1893   :  { %v6017_v28 = vadd.f32 %v6016_v46, %v5982_v39  ;;  %v6193_v46 = vld [vmem:[#allocation11 + $0xa0] sm:$0xff] }
0x1894   :  { %6238 = vmatpush.msrb.mxu2 %v6193_v46  ;;  %v6185_v39 = vld [vmem:[#allocation11 + $0x60] sm:$0xff] }
0x1895   :  { %v6028_v19 = vadd.f32 %v6017_v28, %v9043_v47  ;;  %v6184_v28 = vld [vmem:[#allocation11 + $0x58] sm:$0xff] }
0x1898   :  { %v5984_v56 = vpop.f32.mrf.mxu0  ;;  %v6019_v48 = vpop.f32.mrf.mxu1 }
0x18a0   :  { %v5987_v57 = vpop.f32.mrf.mxu0  ;;  %v6022_v24 = vpop.f32.mrf.mxu1 }
0x18a1   :  { %v5988_v33 = vadd.f32 %v6703_v37, %v5987_v57  ;;  %v6194_v57 = vld [vmem:[#allocation11 + $0xa8] sm:$0xff] }
0x18a2   :  { %6258 = vmatpush.msrb.mxu3 %v6194_v57 }
0x18a3   :  { %v6023_v17 = vadd.f32 %v6022_v24, %v5988_v33  ;;  %v6190_v24 = vld [vmem:[#allocation11 + $0x88] sm:$0xff] }
0x18a5   :  { %v6030_v35 = vadd.f32 %v6023_v17, %v9057_v43 }
0x18a8   :  { %v6007_v12 = vpop.f32.mrf.mxu0 }
0x18a9   :  { %v6008_v63 = vadd.f32 %v6007_v12, %v5973_v25 }
0x18ab   :  { %v6025_v7 = vadd.f32 %v6008_v63, %v9017_v58  ;;  %v5985_v58 = vadd.f32 %v6703_v37, %v5984_v56  ;;  %v6191_v37 = vld [vmem:[#allocation11 + $0x90] sm:$0xff] }
0x18ac   :  { %6239 = vmatpush.msrb.mxu2 %v6191_v37 }
0x18ad   :  { %6035 = vadd.xlane.f32.xlu1 %v6025_v7  ;;  %v6020_v1 = vadd.f32 %v6019_v48, %v5985_v58  ;;  %v6192_v48 = vld [vmem:[#allocation11 + $0x98] sm:$0xff] }
0x18ae   :  { %6259 = vmatpush.msrb.mxu3 %v6192_v48 }
0x18af   :  { %v6029_v4 = vadd.f32 %v6020_v1, %v9050_v55  ;;  %v6181_v1 = vld [vmem:[#allocation11 + $0x40] sm:$0xff] }
0x18b0   :  { %v6010_v40 = vpop.f32.mrf.mxu0  ;;  %6260 = vmatpush.msrb.mxu3 %v6190_v24 }
0x18b1   :  { %v6011_v2 = vadd.f32 %v6010_v40, %v5976_v9  ;;  %v6187_v40 = vld [vmem:[#allocation11 + $0x70] sm:$0xff] }
0x18b3   :  { %v6026_v38 = vadd.f32 %v6011_v2, %v9025_v54  ;;  %v6188_v2 = vld [vmem:[#allocation11 + $0x78] sm:$0xff] }
0x18b4   :  { %6261 = vmatpush.msrb.mxu3 %v6188_v2 }
0x18b5   :  { %6037 = vadd.xlane.f32.xlu2 %v6026_v38  ;;  %6045 = vadd.xlane.f32.xlu1 %v6030_v35 }
0x18b8   :  { %v6013_v0 = vpop.f32.mrf.mxu0 }
0x18b9   :  { %v6014_v3 = vadd.f32 %v6013_v0, %v5979_v15  ;;  %v6183_v15 = vld [vmem:[#allocation11 + $0x50] sm:$0xff] }
0x18bb   :  { %v6027_v45 = vadd.f32 %v6014_v3, %v9036_v14 }
0x18bd   :  { %6039 = vadd.xlane.f32.xlu0 %v6027_v45  ;;  %6041 = vadd.xlane.f32.xlu2 %v6028_v19 }
0x18c5   :  { %6043 = vadd.xlane.f32.xlu0 %v6029_v4 }
0x1920   :  { %v6036_v43 = vpop.xlane.xlu1 %6035 }
0x1921   :  { %v6047_v54 = vmul.f32 %v6036_v43, %v9314_v59  ;;  %v6179_v43 = vld [vmem:[#allocation11 + $0x30] sm:$0xff] }
0x1923   :  { %v9135_v41 = vsub.f32 %v6025_v7, %v6047_v54  ;;  %v6189_v7 = vld [vmem:[#allocation11 + $0x80] sm:$0xff]  ;;  %v6180_v54 = vld [vmem:[#allocation11 + $0x38] sm:$0xff] }
0x1924   :  { %6240 = vmatpush.msrb.mxu2 %v6189_v7 }
0x1925   :  { %v6059_v27 = vmul.f32 %v9135_v41, %v9135_v41 }
0x1926   :  { %6241 = vmatpush.msrb.mxu2 %v6187_v40 }
0x1927   :  { %6065 = vadd.xlane.f32.xlu1 %v6059_v27 }
0x1928   :  { %v6038_v31 = vpop.xlane.xlu2 %6037  ;;  %v6046_v47 = vpop.xlane.xlu1 %6045  ;;  %6242 = vmatpush.msrb.mxu2 %v6185_v39 }
0x1929   :  { %v6048_v21 = vmul.f32 %v6038_v31, %v9314_v59  ;;  %v6052_v14 = vmul.f32 %v6046_v47, %v9314_v59 }
0x192a   :  { %6243 = vmatpush.msrb.mxu2 %v6183_v15 }
0x192b   :  { %v9141_v5 = vsub.f32 %v6026_v38, %v6048_v21  ;;  %v9143_v44 = vsub.f32 %v6030_v35, %v6052_v14  ;;  %v6186_v35 = vld [vmem:[#allocation11 + $0x68] sm:$0xff]  ;;  %v6177_v21 = vld [vmem:[#allocation11 + $0x20] sm:$0xff] }
0x192c   :  { %6262 = vmatpush.msrb.mxu3 %v6186_v35  ;;  %6244 = vmatpush.msrb.mxu2 %v6181_v1  ;;  %v6178_v14 = vld [vmem:[#allocation11 + $0x28] sm:$0xff] }
0x192d   :  { %v6060_v55 = vmul.f32 %v9141_v5, %v9141_v5  ;;  %v6064_v8 = vmul.f32 %v9143_v44, %v9143_v44 }
0x192e   :  { %6263 = vmatpush.msrb.mxu3 %v6184_v28  ;;  %6245 = vmatpush.msrb.mxu2 %v6179_v43 }
0x192f   :  { %6067 = vadd.xlane.f32.xlu2 %v6060_v55  ;;  %6075 = vadd.xlane.f32.xlu1 %v6064_v8 }
0x1930   :  { %v6040_v22 = vpop.xlane.xlu0 %6039  ;;  %v6042_v18 = vpop.xlane.xlu2 %6041  ;;  %6246 = vmatpush.msrb.mxu2 %v6177_v21 }
0x1931   :  { %v6049_v50 = vmul.f32 %v6040_v22, %v9314_v59  ;;  %v6050_v34 = vmul.f32 %v6042_v18, %v9314_v59 }
0x1933   :  { %v9151_v61 = vsub.f32 %v6027_v45, %v6049_v50  ;;  %v9153_v51 = vsub.f32 %v6028_v19, %v6050_v34  ;;  %v6175_v50 = vld [vmem:[#allocation11 + $0x10] sm:$0xff]  ;;  %v6176_v34 = vld [vmem:[#allocation11 + $0x18] sm:$0xff] }
0x1934   :  { %6247 = vmatpush.msrb.mxu2 %v6175_v50 }
0x1935   :  { %v6062_v53 = vmul.f32 %v9153_v51, %v9153_v51  ;;  %v6061_v13 = vmul.f32 %v9151_v61, %v9151_v61 }
0x1937   :  { %6071 = vadd.xlane.f32.xlu2 %v6062_v53  ;;  %6069 = vadd.xlane.f32.xlu0 %v6061_v13 }
0x1938   :  { %v6044_v36 = vpop.xlane.xlu0 %6043 }
0x1939   :  { %v6051_v30 = vmul.f32 %v6044_v36, %v9314_v59  ;;  %v6173_v36 = vld [vmem:[#allocation11] sm:$0xff] }
0x193a   :  { %6248 = vmatpush.msrb.mxu2 %v6173_v36 }
0x193b   :  { %v9160_v60 = vsub.f32 %v6029_v4, %v6051_v30  ;;  %v6182_v4 = vld [vmem:[#allocation11 + $0x48] sm:$0xff] }
0x193c   :  { %6264 = vmatpush.msrb.mxu3 %v6182_v4  ;;  %v6174_v30 = vld [vmem:[#allocation11 + $0x8] sm:$0xff] }
0x193d   :  { %v6063_v10 = vmul.f32 %v9160_v60, %v9160_v60 }
0x193e   :  { %6265 = vmatpush.msrb.mxu3 %v6180_v54 }
0x193f   :  { %6073 = vadd.xlane.f32.xlu0 %v6063_v10 }
0x1940   :  { %6266 = vmatpush.msrb.mxu3 %v6178_v14 }
0x1942   :  { %6267 = vmatpush.msrb.mxu3 %v6176_v34 }
0x1944   :  { %6268 = vmatpush.msrb.mxu3 %v6174_v30 }
0x199a   :  { %v6066_v26 = vpop.xlane.xlu1 %6065 }
0x199b   :  { %v6077_v42 = vmul.f32 %v6066_v26, %v9314_v59 }
0x199d   :  { %v9165_v56 = vadd.f32 1e-05, %v6077_v42 }
0x199f   :  { %6996 = vrsqrt.f32 %v9165_v56  ;;  %vm6095_vm9 = vweird.f32 %v9165_v56 }
0x19a2   :  { %v6068_v25 = vpop.xlane.xlu2 %6067  ;;  %v6076_v12 = vpop.xlane.xlu1 %6075 }
0x19a3   :  { %v6078_v63 = vmul.f32 %v6068_v25, %v9314_v59  ;;  %v6082_v33 = vmul.f32 %v6076_v12, %v9314_v59 }
0x19a5   :  { %v9170_v9 = vadd.f32 1e-05, %v6078_v63  ;;  %v9172_v17 = vadd.f32 1e-05, %v6082_v33  ;;  %v9175_v38 = vpop.eup %6996 }
0x19a6   :  { %v6090_v19 = vmul.f32 %v9175_v38, %v9165_v56  ;;  %vm6096_vm7 = vweird.f32 %v9175_v38 }
0x19a7   :  { %6998 = vrsqrt.f32 %v9170_v9  ;;  %vm6105_vm5 = vweird.f32 %v9170_v9  ;;  %vm9208_vm11 = vmor %vm6095_vm9, %vm6096_vm7  ;;  %vm6145_vm12 = vweird.f32 %v9172_v17  ;;  %vm6221_vm7 = vcmask 1042434  }
0x19a8   :  { %7000 = vrsqrt.f32 %v9172_v17  ;;  %v6091_v22 = vmul.f32 %v9175_v38, %v6090_v19  ;;  %v6705_v19 = vld [vmem:[%s9266_s21 + $0x1] ss:$0 sm:$0xff]  ;;  %vm6227_vm9 = vcmask 1044484  }
0x19aa   :  { %v6072_v0 = vpop.xlane.xlu2 %6071  ;;  %v6070_v3 = vpop.xlane.xlu0 %6069  ;;  %v6092_v52 = vmul.f32 0.5, %v6091_v22 }
0x19ab   :  { %v6080_v58 = vmul.f32 %v6072_v0, %v9314_v59  ;;  %v6079_v45 = vmul.f32 %v6070_v3, %v9314_v59 }
0x19ac   :  { %v6093_v16 = vsub.f32 1.5, %v6092_v52 }
0x19ad   :  { %v6999_v27 = vpop.eup %6998  ;;  %v9182_v31 = vadd.f32 1e-05, %v6080_v58  ;;  %v9184_v47 = vadd.f32 1e-05, %v6079_v45 }
0x19ae   :  { %v9186_v55 = vpop.eup %7000  ;;  %v6100_v8 = vmul.f32 %v6999_v27, %v9170_v9  ;;  %vm6106_vm14 = vweird.f32 %v6999_v27  ;;  %v6094_v25 = vmul.f32 %v9175_v38, %v6093_v16  ;;  %v6704_v9 = vld [vmem:[%s9265_s20 + $0x1] ss:$0 sm:$0xff] }
0x19af   :  { %v6140_v18 = vmul.f32 %v9186_v55, %v9172_v17  ;;  %7002 = vrsqrt.f32 %v9182_v31  ;;  %vm6107_vm6 = vmor %vm6105_vm5, %vm6106_vm14  ;;  %vm6146_vm8 = vweird.f32 %v9186_v55  ;;  %vm6125_vm1 = vweird.f32 %v9182_v31 }
0x19b0   :  { %v6101_v53 = vmul.f32 %v6999_v27, %v6100_v8  ;;  %7004 = vrsqrt.f32 %v9184_v47  ;;  %vm9213_vm0 = vmor %vm6145_vm12, %vm6146_vm8  ;;  %v6098_v35 = vsel %vm9208_vm11, %v9175_v38, %v6094_v25  ;;  %vm6115_vm4 = vweird.f32 %v9184_v47 }
0x19b1   :  { %v6141_v13 = vmul.f32 %v9186_v55, %v6140_v18  ;;  %v6149_v38 = vmul.f32 %v6098_v35, %v9135_v41  ;;  %vm6224_vm8 = vcmask 1043459   ;;  %vm6275_vm11 = vcmask 1045504  }
0x19b2   :  { %v6102_v10 = vmul.f32 0.5, %v6101_v53  ;;  %v6074_v6 = vpop.xlane.xlu0 %6073 }
0x19b3   :  { %v6081_v32 = vmul.f32 %v6074_v6, %v9314_v59  ;;  %v6142_v29 = vmul.f32 0.5, %v6141_v13  ;;  %v6158_v21 = vmul.f32 %v6704_v9, %v6149_v38 }
0x19b4   :  { %v6103_v23 = vsub.f32 1.5, %v6102_v10 }
0x19b5   :  { %v7003_v62 = vpop.eup %7002  ;;  %v6087_v26 = vadd.f32 1e-05, %v6081_v32  ;;  %v6143_v59 = vsub.f32 1.5, %v6142_v29  ;;  %v6167_v50 = vadd.f32 %v6705_v19, %v6158_v21 }
0x19b6   :  { %v7005_v42 = vpop.eup %7004  ;;  %v6104_v49 = vmul.f32 %v6999_v27, %v6103_v23  ;;  %v6120_v20 = vmul.f32 %v7003_v62, %v9182_v31  ;;  %vm6126_vm10 = vweird.f32 %v7003_v62 }
0x19b7   :  { %v6110_v11 = vmul.f32 %v7005_v42, %v9184_v47  ;;  %7006 = vrsqrt.f32 %v6087_v26  ;;  %v6144_v33 = vmul.f32 %v9186_v55, %v6143_v59  ;;  %vm6116_vm15 = vweird.f32 %v7005_v42  ;;  %vm6127_vm2 = vmor %vm6125_vm1, %vm6126_vm10 }
0x19b8   :  { %v6108_v46 = vsel %vm6107_vm6, %v6999_v27, %v6104_v49  ;;  %v6121_v57 = vmul.f32 %v7003_v62, %v6120_v20  ;;  %vm6117_vm3 = vmor %vm6115_vm4, %vm6116_vm15  ;;  %vm6135_vm14 = vweird.f32 %v6087_v26  ;;  %vm6218_vm6 = vcmask 1041409  }
0x19b9   :  { %v6111_v37 = vmul.f32 %v7005_v42, %v6110_v11  ;;  %v6150_v12 = vmul.f32 %v6108_v46, %v9141_v5  ;;  %v6148_v17 = vsel %vm9213_vm0, %v9186_v55, %v6144_v33  ;;  %vm6230_vm10 = vcmask 1045509  }
0x19ba   :  { %v6122_v48 = vmul.f32 0.5, %v6121_v57  ;;  %v6154_v54 = vmul.f32 %v6148_v17, %v9143_v44 }
0x19bb   :  { %v6112_v63 = vmul.f32 0.5, %v6111_v37  ;;  %v6159_v15 = vmul.f32 %v6704_v9, %v6150_v12 }
0x19bc   :  { %v6123_v7 = vsub.f32 1.5, %v6122_v48 }
0x19bd   :  { %v7007_v24 = vpop.eup %7006  ;;  %v6113_v5 = vsub.f32 1.5, %v6112_v63  ;;  %v6168_v43 = vadd.f32 %v6705_v19, %v6159_v15 }
0x19be   :  { %v6124_v56 = vmul.f32 %v7003_v62, %v6123_v7  ;;  %v6130_v39 = vmul.f32 %v7007_v24, %v6087_v26  ;;  %vm6136_vm13 = vweird.f32 %v7007_v24 }
0x19bf   :  { %v6114_v28 = vmul.f32 %v7005_v42, %v6113_v5  ;;  %vm6137_vm5 = vmor %vm6135_vm14, %vm6136_vm13  ;;  %v6217_v8 = vrot.slane %v6168_v43, 7 }
0x19c0   :  { %v6128_v0 = vsel %vm6127_vm2, %v7003_v62, %v6124_v56  ;;  %v6131_v3 = vmul.f32 %v7007_v24, %v6130_v39 }
0x19c1   :  { %v6152_v58 = vmul.f32 %v6128_v0, %v9153_v51  ;;  %v6118_v45 = vsel %vm6117_vm3, %v7005_v42, %v6114_v28  ;;  %v6163_v51 = vmul.f32 %v6704_v9, %v6154_v54  ;;  %v6219_v13 = vsel %vm6218_vm6, %v6217_v8, %v6167_v50 }
0x19c2   :  { %v6151_v1 = vmul.f32 %v6118_v45, %v9151_v61  ;;  %v6132_v4 = vmul.f32 0.5, %v6131_v3  ;;  %vm6313_vm3 = vcmask 1041408  }
0x19c3   :  { %v6161_v27 = vmul.f32 %v6704_v9, %v6152_v58  ;;  %v6172_v53 = vadd.f32 %v6705_v19, %v6163_v51 }
0x19c4   :  { %v6160_v31 = vmul.f32 %v6704_v9, %v6151_v1  ;;  %v6133_v47 = vsub.f32 1.5, %v6132_v4 }
0x19c5   :  { %v6170_v22 = vadd.f32 %v6705_v19, %v6161_v27  ;;  %v6229_v52 = vrot.slane %v6172_v53, 3 }
0x19c6   :  { %v6169_v14 = vadd.f32 %v6705_v19, %v6160_v31  ;;  %v6134_v55 = vmul.f32 %v7007_v24, %v6133_v47 }
0x19c7   :  { %v6223_v34 = vrot.slane %v6170_v22, 5 }
0x19c8   :  { %v6138_v18 = vsel %vm6137_vm5, %v7007_v24, %v6134_v55  ;;  %v6220_v41 = vrot.slane %v6169_v14, 6 }
0x19c9   :  { %v6153_v61 = vmul.f32 %v6138_v18, %v9160_v60  ;;  %v6205_v60 = vld [vmem:[%s9268_s23] sm:$0x3]  ;;  %s7257_s23 = smov [#allocation13]  }
0x19ca   :  { %v6222_v30 = vsel %vm6221_vm7, %v6220_v41, %v6219_v13  ;;  %v6207_v29 = vperm.slane %v6205_v60, 0  ;;  %v6208_v62 = vperm.slane %v6205_v60, 1  ;;  %s6334_s7 = sshll.u32 %s7257_s23, 4  ;;  %s6335_s7 = int_to_ptr.vmem [resolvable:$true] %s6334_s7 }
0x19cb   :  { %v6162_v44 = vmul.f32 %v6704_v9, %v6153_v61  ;;  %v6225_v6 = vsel %vm6224_vm8, %v6223_v34, %v6222_v30 }
0x19cd   :  { %v6171_v36 = vadd.f32 %v6705_v19, %v6162_v44 }
0x19cf   :  { %v6226_v10 = vrot.slane %v6171_v36, 4 }
0x19d1   :  { %v6228_v32 = vsel %vm6227_vm9, %v6226_v10, %v6225_v6 }
0x19d2   :  { %v6231_v23 = vsel %vm6230_vm10, %v6229_v52, %v6228_v32 }
0x19d3   :  { %6249 = vmatmul.f32.vlgmr.msrb.gmra.mxu2 %v6231_v23  ;;  %6269 = vmatmul.f32.vlgmr.msrb.gmra.mxu3 %v6231_v23 }
0x1a56   :  { %v6250_v26 = vpop.f32.mrf.mxu2  ;;  %v6270_v42 = vpop.f32.mrf.mxu3 }
0x1a57   :  { %v6251_v49 = vadd.f32 %v6250_v26, %v6207_v29  ;;  %v6271_v20 = vadd.f32 %v6270_v42, %v6208_v62 }
0x1a59   :  { %v6273_v16 = vmul.f32 %v6251_v49, %v6251_v49  ;;  %v6274_v11 = vmul.f32 %v6271_v20, %v6271_v20 }
0x1a5b   :  { %v6276_v46 = vsel %vm6275_vm11, %v6273_v16, 0.0  ;;  %v6277_v59 = vsel %vm6275_vm11, %v6274_v11, 0.0 }
0x1a5c   :  { %v6278_v57 = vadd.f32 %v6277_v59, %v6276_v46 }
0x1a5e   :  { %6279 = vadd.xlane.f32.xlu2 %v6278_v57 }
0x1ad1   :  { %v6280_v37 = vpop.xlane.xlu2 %6279 }
0x1ad2   :  { %7008 = vrsqrt.f32 %v6280_v37  ;;  %vm6288_vm12 = vcmp.eq.f32.partialorder %v6280_v37, inf  ;;  %v6291_v9 = vand.u32 2147483648, %v6280_v37  ;;  %vm6290_vm15 = vcmp.eq.f32.partialorder %v6280_v37, 0.0 }
0x1ad8   :  { %v7009_v48 = vpop.eup %7008 }
0x1ad9   :  { %v6282_v25 = vmul.f32 %v7009_v48, %v6280_v37 }
0x1adb   :  { %v6283_v12 = vmul.f32 %v7009_v48, %v6282_v25 }
0x1add   :  { %v6284_v63 = vmul.f32 0.5, %v6283_v12 }
0x1adf   :  { %v6285_v33 = vsub.f32 1.5, %v6284_v63 }
0x1ae1   :  { %v6286_v7 = vmul.f32 %v7009_v48, %v6285_v33 }
0x1ae3   :  { %v6287_v24 = vmul.f32 %v6286_v7, %v6280_v37 }
0x1ae5   :  { %v6289_v40 = vsel %vm6288_vm12, %v6280_v37, %v6287_v24 }
0x1ae6   :  { %v6292_v5 = vsel %vm6290_vm15, %v6291_v9, %v6289_v40 }
0x1ae7   :  { %v6293_v2 = vmax.f32 %v6292_v5, 1e-12 }
0x1ae9   :  { %7010 = vrcp.f32 %v6293_v2  ;;  %v6305_v15 = vand.u32 2147483648, %v6293_v2  ;;  %v6303_v17 = vand.u32 2147483647, %v6293_v2  ;;  %vm6299_vm1 = vweird.f32 %v6293_v2 }
0x1aeb   :  { %v6306_v3 = vor.u32 1.1754944e-38, %v6305_v15  ;;  %vm6304_vm4 = vcmp.eq.f32.partialorder %v6303_v17, 8.507059e+37 }
0x1aef   :  { %v7011_v56 = vpop.eup %7010 }
0x1af0   :  { %v6295_v39 = vmul.f32 %v7011_v56, %v6293_v2  ;;  %vm6300_vm0 = vweird.f32 %v7011_v56 }
0x1af1   :  { %vm6301_vm2 = vmor %vm6299_vm1, %vm6300_vm0 }
0x1af2   :  { %v6296_v35 = vsub.f32 1.0, %v6295_v39 }
0x1af4   :  { %v6297_v28 = vmul.f32 %v7011_v56, %v6296_v35 }
0x1af6   :  { %v6298_v0 = vadd.f32 %v7011_v56, %v6297_v28 }
0x1af8   :  { %v6302_v19 = vsel %vm6301_vm2, %v7011_v56, %v6298_v0 }
0x1af9   :  { %v6307_v58 = vsel %vm6304_vm4, %v6306_v3, %v6302_v19 }
0x1afa   :  { %v6308_v45 = vmul.f32 %v6307_v58, %v6251_v49  ;;  %v6309_v38 = vmul.f32 %v6307_v58, %v6271_v20 }
0x1afc   :  { %6317 = vst.sshfl [vmem:[#allocation1] sm:$0xff pattern:$0x73625140] %v6308_v45  ;;  %v6312_v1 = vrot.slane %v6309_v38, 6 }
0x1afd   :  { %6318 = vst.sshfl [vmem:[#allocation1 + $0x8] sm:$0xff pattern:$0x73625140] %v6309_v38 }
0x1afe   :  { %v6314_v4 = vsel %vm6313_vm3, %v6308_v45, %v6312_v1 }
0x1aff   :  { %6316 = vst [vmem:[#allocation13] sm:$0xf] %v6314_v4 }
0x1b00   :  { %6339 = dma.vmem_to_hbm [thread:$0]  %s6335_s7, 64, %s6337_s12, [#allocation4]  }
0x1b04   :  { %v6320_v43 = vld [vmem:[#allocation1 + $0x1] ss:$4 sm:$0xff] }
0x1b05   :  { %6322 = vst [vmem:[#allocation14] sm:$0xf] %v6320_v43 }
0x1b06   :  { %6323 = vst.sshfl [vmem:[#allocation1] sm:$0xff pattern:$0x73625140] %v6308_v45  ;;  %6350 = dma.vmem_to_hbm [thread:$0]  %s6346_s18, 64, %s6348_s6, [#allocation15]  }
0x1b07   :  { %6324 = vst.sshfl [vmem:[#allocation1 + $0x8] sm:$0xff pattern:$0x73625140] %v6309_v38 }
0x1b0e   :  { %v6326_v54 = vld [vmem:[#allocation1 + $0x2] ss:$4 sm:$0xff] }
0x1b0f   :  { %6328 = vst [vmem:[#allocation16] sm:$0xf] %v6326_v54 }
0x1b10   :  { %6361 = dma.vmem_to_hbm [thread:$0]  %s6357_s1, 64, %s6359_s22, [#allocation15]  }
0x1b11   :  { %7236 = dma.done.wait [#allocation4], 64  }
0x1b12   :  { %7237 = vsyncadd [#allocation4], 4294967232 }
0x1b13   :  { %7238 = dma.done.wait [#allocation15], 128  }
0x1b14   :  { %7239 = vsyncadd [#allocation15], 4294967168 }
0x1b15   :  { %6374 = vsyncpa [#allocation3], 1 }
0x1b16   :  { %6375 = vsyncpa [#allocation6], 1 }
0x1b17   :  { %6376 = vsyncpa [#allocation9], 1 }
0x1b18   :  { %6377 = vsyncpa [#allocation12], 1 }
0x1b19   :  { %6378 = vsyncpa [#allocation4], 1 }
0x1b1a   :  { %6379 = vsyncpa [#allocation15], 1 }

</bundles_post_ra>
